<compile_context>
chip_gen: v5e
topology: v5e:2x2
jax: 0.10.0
libtpu: 0.0.40
codegen_flags: <defaults>
</compile_context>

<pallas_src>
import functools

import jax
import jax.numpy as jnp
from jax import lax
from jax.experimental import pallas as pl
from jax.experimental.pallas import tpu as pltpu


def _round_up(x, m):
    return ((x + m - 1) // m) * m


# ----------------------------------------------------------------------------
# Fused kernel: head conv + modulation + LeakyReLU + tail conv + loss reductions
# ----------------------------------------------------------------------------
def _fused_forward_kernel(pat_ref, wh_ref, bh_ref, sc_ref, sh_ref,
                          wt_ref, bt_ref, seg_ref, ref_ref, lat_ref,
                          out_ref, *, B, H, W, C, Wg, eps):
    NQ = pat_ref.shape[-1]            # lane extent, multiple of 128
    L = lat_ref.shape[1]              # 14 W+ rows

    # ---- head 3x3 conv: ONE (NF, 32) @ (32, NQ) MXU matmul (lane-dense RHS) ----
    h = jnp.dot(wh_ref[...], pat_ref[...], preferred_element_type=jnp.float32)   # (NF, NQ)
    h = h + bh_ref[...]                                                          # (NF,1) bcast

    # ---- kernel-code modulation (pre-expanded per-column in the wrapper) + LeakyReLU ----
    y = h * sc_ref[...] + sh_ref[...]
    y = jnp.where(y >= 0.0, y, 0.2 * y)

    # ---- zero the halo ring / padding columns (precomputed mask, no div/mod) so the
    #      tail conv sees 'same' zero padding and roll wrap-around only pulls zeros ----
    seg = seg_ref[...]                                    # (B, NQ) per-image interior masks
    mask = jnp.sum(seg, axis=0, keepdims=True)            # (1, NQ) combined interior mask
    y = y * mask

    # ---- tail 3x3 conv: 9 taps via near-free lane rolls (XLU), sublane concat,
    #      then ONE (C, 9*NF) @ (9*NF, NQ) matmul on the padded grid ----
    taps = []
    for dy in range(3):
        for dx in range(3):
            off = (dy - 1) * Wg + (dx - 1)
            s = (-off) % NQ
            taps.append(y if s == 0 else pltpu.roll(y, shift=s, axis=1))
    tp = jnp.concatenate(taps, axis=0)                    # (9*NF, NQ), sublane-aligned
    out = jnp.dot(wt_ref[...], tp, preferred_element_type=jnp.float32) + bt_ref[...]  # (C, NQ)

    # ---- masked diff against the reference laid out on the same padded grid ----
    diff = (out - ref_ref[...]) * mask
    d2 = diff * diff
    d1 = jnp.abs(diff)
    inv_n = 1.0 / float(H * W * C)

    # ---- per-image L1/L2 means + GEOCROSS (direct pairwise = torch reference),
    #      packed into ONE lane-dense (L+2, 128) slab per image ----
    lane = lax.broadcasted_iota(jnp.int32, (2, 128), 1)
    row = lax.broadcasted_iota(jnp.int32, (2, 128), 0)
    for b in range(B):                                    # B=2, unrolled
        sb = seg[b:b + 1, :]                                              # (1, NQ)
        l2m = jnp.maximum(jnp.sum(d2 * sb) * inv_n, eps)
        l1m = jnp.maximum(jnp.sum(d1 * sb) * inv_n, eps)

        lat = lat_ref[b]                                                  # (L, D)
        xm = lat[:, None, :] - lat[None, :, :]                            # (L, L, D)
        xp = lat[:, None, :] + lat[None, :, :]
        A = jnp.sqrt(jnp.sum(xm * xm, axis=-1) + 1e-9)                    # (L, L)
        Bm = jnp.sqrt(jnp.sum(xp * xp, axis=-1) + 1e-9)                   # (L, L)

        ab = jnp.concatenate(
            [A, Bm, jnp.zeros((L, 128 - 2 * L), jnp.float32)], axis=1)    # (L, 128)
        scal = jnp.where((row == 0) & (lane == 0), l2m,
                         jnp.where((row == 0) & (lane == 1), l1m, 0.0))   # (2, 128)
        out_ref[b] = jnp.concatenate([ab, scal], axis=0)                  # (L+2, 128)


def fused_forward(pat_T, wh_T, bh, sc, sh, wt_T, bt, seg, ref_T, lat,
                  *, B, H, W, C, Wg, L, eps):
    assert 2 * L <= 128
    kern = functools.partial(_fused_forward_kernel,
                             B=B, H=H, W=W, C=C, Wg=Wg, eps=float(eps))
    # Grid-less pallas_call: the whole (batch-folded) problem is one invocation with all
    # refs resident in VMEM; single launch, single packed lane-dense output slab.
    return pl.pallas_call(
        kern,
        out_shape=jax.ShapeDtypeStruct((B, L + 2, 128), jnp.float32),
    )(pat_T, wh_T, bh, sc, sh, wt_T, bt, seg, ref_T, lat)


# ----------------------------------------------------------------------------
# Wrapper-side layout plumbing (pure XLA, cheap)
# ----------------------------------------------------------------------------
def _head_patches_T(x_nhwc, Hg, Wg, NQ, KH):
    """(B,H,W,C) -> (KH, NQ) transposed im2col over the padded output grid (Hg, Wg),
    flattened batch-major along the lane axis, contraction padded 9*C -> KH and the
    lane axis zero padded to NQ (multiple of 128)."""
    B, H, W, C = x_nhwc.shape
    gp = jnp.pad(x_nhwc, ((0, 0), (2, 2), (2, Wg - W), (0, 0)))        # (B, Hg+2, Wg+2, C)
    cols = [gp[:, dy:dy + Hg, dx:dx + Wg, :] for dy in range(3) for dx in range(3)]
    pat = jnp.concatenate(cols, axis=-1)                               # (B, Hg, Wg, 9*C)
    pat = jnp.transpose(pat, (3, 0, 1, 2)).reshape(9 * C, B * Hg * Wg)
    return jnp.pad(pat, ((0, KH - 9 * C), (0, NQ - B * Hg * Wg)))


# ----------------------------------------------------------------------------
# Synthetic "KernelWizard" parameters (deterministic init; no checkpoint load)
# ----------------------------------------------------------------------------
def init_kernel_wizard_params(key, C, NF, K):
    k1, k2, k3, k4, k5, k6 = jax.random.split(key, 6)
    return {
        "w_head": 0.1 * jax.random.normal(k1, (3, 3, C, NF), jnp.float32),
        "b_head": 0.01 * jax.random.normal(k5, (NF,), jnp.float32),
        "w_scale": 0.05 * jax.random.normal(k2, (K, NF), jnp.float32),
        "w_shift": 0.05 * jax.random.normal(k3, (K, NF), jnp.float32),
        "w_tail": 0.1 * jax.random.normal(k4, (3, 3, NF, C), jnp.float32),
        "b_tail": 0.01 * jax.random.normal(k6, (C,), jnp.float32),
    }


# ----------------------------------------------------------------------------
# LossBuilderStyleGAN2 equivalent
# ----------------------------------------------------------------------------
class LossBuilderStyleGAN2Pallas:
    def __init__(self, ref_im, opt, params):
        # ref_im is NCHW (PyTorch convention); square spatial as in the original assert
        assert ref_im.shape[2] == ref_im.shape[3]
        B, C, H, W = ref_im.shape
        self.B, self.C, self.H, self.W = B, C, H, W
        self.parsed_loss = [t.split("*") for t in opt["loss_str"].split("+")]
        self.eps = float(opt["eps"])

        Hg = H + 2
        Wg = _round_up(W + 2, 8)
        HgWg = Hg * Wg
        NQ = _round_up(B * HgWg, 128)
        self.Hg, self.Wg, self.HgWg, self.NQ = Hg, Wg, HgWg, NQ

        p = dict(params)
        NF = p["w_head"].shape[-1]
        self.NF = NF
        KH = _round_up(9 * C, 8)                       # head contraction 27 -> 32
        self.KH = KH

        # one-time weight folding into transposed im2col matrices (layout plumbing)
        wh = p["w_head"].reshape(9 * C, NF)
        p["wh_T"] = jnp.pad(wh, ((0, KH - 9 * C), (0, 0))).T            # (NF, KH)
        p["wt_T"] = p["w_tail"].reshape(9 * NF, C).T                    # (C, 9*NF)
        p["bh"] = p["b_head"].reshape(NF, 1)
        p["bt"] = p["b_tail"].reshape(C, 1)
        self.params = p

        # reference image on the padded grid, transposed to (C, NQ), halo = 0
        ref = jnp.transpose(ref_im.astype(jnp.float32), (0, 2, 3, 1))   # NHWC
        ref_pad = jnp.pad(ref, ((0, 0), (1, Hg - H - 1), (1, Wg - W - 1), (0, 0)))
        self.ref_T = jnp.pad(
            jnp.transpose(ref_pad, (3, 0, 1, 2)).reshape(C, B * HgWg),
            ((0, 0), (0, NQ - B * HgWg)))

        # per-image interior masks on the flat padded grid (no in-kernel div/mod)
        iy = jnp.arange(Hg)[:, None]
        ix = jnp.arange(Wg)[None, :]
        inter = ((iy >= 1) & (iy <= H) & (ix >= 1) & (ix <= W)).astype(jnp.float32)
        inter = inter.reshape(1, HgWg)
        eye = jnp.eye(B, dtype=jnp.float32)
        seg = (eye[:, :, None] * inter[None, :, :]).reshape(B, B * HgWg)
        self.seg = jnp.pad(seg, ((0, 0), (0, NQ - B * HgWg)))           # (B, NQ)

    def forward(self, latent, gen_im, kernel, step):
        p = self.params
        B, C, H, W = gen_im.shape
        NF, Hg, Wg, HgWg, NQ, KH = self.NF, self.Hg, self.Wg, self.HgWg, self.NQ, self.KH
        L = latent.shape[1]

        # --- wrapper-side layout plumbing (cheap XLA) ---
        x = jnp.transpose(gen_im.astype(jnp.float32), (0, 2, 3, 1))     # NCHW -> NHWC
        pat_T = _head_patches_T(x, Hg, Wg, NQ, KH)                      # (KH, NQ)
        kflat = kernel.reshape(B, -1).astype(jnp.float32)               # (B, K)
        scale = kflat @ p["w_scale"] + 1.0                              # (B, NF)
        shift = kflat @ p["w_shift"]                                    # (B, NF)
        sc = jnp.pad(jnp.repeat(scale.T, HgWg, axis=1), ((0, 0), (0, NQ - B * HgWg)))
        sh = jnp.pad(jnp.repeat(shift.T, HgWg, axis=1), ((0, 0), (0, NQ - B * HgWg)))
        lat3 = latent.reshape(B, L, -1).astype(jnp.float32)

        # --- everything heavy in ONE fused, grid-less Pallas kernel ---
        packed = fused_forward(pat_T, p["wh_T"], p["bh"], sc, sh,
                               p["wt_T"], p["bt"], self.seg, self.ref_T, lat3,
                               B=B, H=H, W=W, C=C, Wg=Wg, L=L, eps=self.eps)

        # --- unpack the lane-dense slab (cheap slicing in glue) ---
        l2 = jnp.sum(packed[:, L, 0])               # sum of clamped per-image L2 means
        l1 = 10.0 * jnp.sum(packed[:, L, 1])        # 10 * sum(...)

        if L == 1:
            geo = jnp.float32(0.0)
        else:
            A = packed[:, :L, :L]
            Bm = packed[:, :L, L:2 * L]
            # TODO(synk): atan2 has no guaranteed Mosaic lowering; tiny (B,14,14) glue op.
            D = 2.0 * jnp.arctan2(A, Bm)
            geo = jnp.sum(jnp.mean(D * D * 512.0, axis=(1, 2)) / 6.0)

        nrm = jnp.sqrt(jnp.sum(kflat * kflat))      # torch.norm(kernel); 64 elems -> glue

        vals = {"L2": l2, "L1": l1, "GEOCROSS": geo}
        loss = 0.0
        losses = {}
        for weight, loss_type in self.parsed_loss:
            tmp_loss = vals[loss_type]
            losses[loss_type] = tmp_loss
            loss = loss + float(weight) * tmp_loss
        loss = loss + 0.0001 * nrm
        losses["Norm"] = nrm
        return loss, losses


if __name__ == "__main__":
    B, C, H, W = 2, 3, 16, 16
    NF, K = 8, 32   # synthetic adapter width / kernel-code length (K = 8*2*2)

    key = jax.random.PRNGKey(0)
    k_ref, k_gen, k_lat, k_ker, k_par = jax.random.split(key, 5)

    ref_im = jax.random.uniform(k_ref, (B, C, H, W), jnp.float32)        # NCHW (torch-style)
    gen_im = jax.random.uniform(k_gen, (B, C, H, W), jnp.float32)        # NCHW
    latent = jax.random.normal(k_lat, (B, 14, 512), jnp.float32)         # StyleGAN2 W+ latent
    kernel = 0.1 * jax.random.normal(k_ker, (B, 8, 2, 2), jnp.float32)   # kernel code

    params = init_kernel_wizard_params(k_par, C, NF, K)
    opt = {"loss_str": "100*L2+1.0*L1+0.1*GEOCROSS", "eps": 1e-3}

    builder = LossBuilderStyleGAN2Pallas(ref_im, opt, params)
    loss, losses = builder.forward(latent, gen_im, kernel, step=0)
    jax.block_until_ready(loss)
    for v in losses.values():
        jax.block_until_ready(v)
    print("KERNEL_OK")
</pallas_src>

<mosaic_0001>
module attributes {stable_mosaic.version = 11 : i64} {
  func.func @_fused_forward_kernel(%arg0: memref<32x896xf32, #tpu.memory_space<vmem>>, %arg1: memref<8x32xf32, #tpu.memory_space<vmem>>, %arg2: memref<8x1xf32, #tpu.memory_space<vmem>>, %arg3: memref<8x896xf32, #tpu.memory_space<vmem>>, %arg4: memref<8x896xf32, #tpu.memory_space<vmem>>, %arg5: memref<3x72xf32, #tpu.memory_space<vmem>>, %arg6: memref<3x1xf32, #tpu.memory_space<vmem>>, %arg7: memref<2x896xf32, #tpu.memory_space<vmem>>, %arg8: memref<3x896xf32, #tpu.memory_space<vmem>>, %arg9: memref<2x14x512xf32, #tpu.memory_space<vmem>>, %arg10: memref<2x16x128xf32, #tpu.memory_space<vmem>>) attributes {dimension_semantics = [], scalar_prefetch = 0 : i64, scratch_operands = 0 : i64, tpu.core_type = #tpu.core_type<tc>} {
    %c0 = arith.constant 0 : index
    %c0_0 = arith.constant 0 : index
    %0 = vector.load %arg1[%c0, %c0_0] : memref<8x32xf32, #tpu.memory_space<vmem>>, vector<8x32xf32>
    %c0_1 = arith.constant 0 : index
    %c0_2 = arith.constant 0 : index
    %1 = vector.load %arg0[%c0_1, %c0_2] : memref<32x896xf32, #tpu.memory_space<vmem>>, vector<32x896xf32>
    %cst = arith.constant dense<0.000000e+00> : vector<8x896xf32>
    %2 = tpu.matmul %0, %1, %cst {dimension_numbers = #tpu.dot_dimension_numbers<[1], [0], [0], [1], [0, 0, 1, 1], [], []>} : vector<8x32xf32>, vector<32x896xf32>, vector<8x896xf32> -> vector<8x896xf32>
    %c0_3 = arith.constant 0 : index
    %c0_4 = arith.constant 0 : index
    %3 = vector.load %arg2[%c0_3, %c0_4] : memref<8x1xf32, #tpu.memory_space<vmem>>, vector<8x1xf32>
    %4 = vector.broadcast %3 : vector<8x1xf32> to vector<8x896xf32>
    %5 = arith.addf %2, %4 : vector<8x896xf32>
    %c0_5 = arith.constant 0 : index
    %c0_6 = arith.constant 0 : index
    %6 = vector.load %arg3[%c0_5, %c0_6] : memref<8x896xf32, #tpu.memory_space<vmem>>, vector<8x896xf32>
    %7 = arith.mulf %5, %6 : vector<8x896xf32>
    %c0_7 = arith.constant 0 : index
    %c0_8 = arith.constant 0 : index
    %8 = vector.load %arg4[%c0_7, %c0_8] : memref<8x896xf32, #tpu.memory_space<vmem>>, vector<8x896xf32>
    %9 = arith.addf %7, %8 : vector<8x896xf32>
    %cst_9 = arith.constant 0.000000e+00 : f32
    %10 = vector.broadcast %cst_9 : f32 to vector<8x896xf32>
    %11 = arith.cmpf oge, %9, %10 : vector<8x896xf32>
    %cst_10 = arith.constant 2.000000e-01 : f32
    %12 = vector.broadcast %cst_10 : f32 to vector<8x896xf32>
    %13 = arith.mulf %12, %9 : vector<8x896xf32>
    %14 = arith.select %11, %9, %13 : vector<8x896xi1>, vector<8x896xf32>
    %c0_11 = arith.constant 0 : index
    %c0_12 = arith.constant 0 : index
    %15 = vector.load %arg7[%c0_11, %c0_12] : memref<2x896xf32, #tpu.memory_space<vmem>>, vector<2x896xf32>
    %cst_13 = arith.constant dense<0.000000e+00> : vector<896xf32>
    %16 = vector.multi_reduction <add>, %15, %cst_13 [0] : vector<2x896xf32> to vector<896xf32>
    %17 = vector.shape_cast %16 : vector<896xf32> to vector<1x896xf32>
    %18 = vector.broadcast %17 : vector<1x896xf32> to vector<8x896xf32>
    %19 = arith.mulf %14, %18 : vector<8x896xf32>
    %c25_i32 = arith.constant 25 : i32
    %20 = tpu.dynamic_rotate %19 by %c25_i32 dim 1 : vector<8x896xf32>, i32 -> vector<8x896xf32>
    %c24_i32 = arith.constant 24 : i32
    %21 = tpu.dynamic_rotate %19 by %c24_i32 dim 1 : vector<8x896xf32>, i32 -> vector<8x896xf32>
    %c23_i32 = arith.constant 23 : i32
    %22 = tpu.dynamic_rotate %19 by %c23_i32 dim 1 : vector<8x896xf32>, i32 -> vector<8x896xf32>
    %c1_i32 = arith.constant 1 : i32
    %23 = tpu.dynamic_rotate %19 by %c1_i32 dim 1 : vector<8x896xf32>, i32 -> vector<8x896xf32>
    %c895_i32 = arith.constant 895 : i32
    %24 = tpu.dynamic_rotate %19 by %c895_i32 dim 1 : vector<8x896xf32>, i32 -> vector<8x896xf32>
    %c873_i32 = arith.constant 873 : i32
    %25 = tpu.dynamic_rotate %19 by %c873_i32 dim 1 : vector<8x896xf32>, i32 -> vector<8x896xf32>
    %c872_i32 = arith.constant 872 : i32
    %26 = tpu.dynamic_rotate %19 by %c872_i32 dim 1 : vector<8x896xf32>, i32 -> vector<8x896xf32>
    %c871_i32 = arith.constant 871 : i32
    %27 = tpu.dynamic_rotate %19 by %c871_i32 dim 1 : vector<8x896xf32>, i32 -> vector<8x896xf32>
    %28 = tpu.concatenate %20, %21, %22, %23, %19, %24, %25, %26, %27 in 0 : vector<8x896xf32>, vector<8x896xf32>, vector<8x896xf32>, vector<8x896xf32>, vector<8x896xf32>, vector<8x896xf32>, vector<8x896xf32>, vector<8x896xf32>, vector<8x896xf32> -> vector<72x896xf32>
    %c0_14 = arith.constant 0 : index
    %c0_15 = arith.constant 0 : index
    %29 = vector.load %arg5[%c0_14, %c0_15] : memref<3x72xf32, #tpu.memory_space<vmem>>, vector<3x72xf32>
    %cst_16 = arith.constant dense<0.000000e+00> : vector<3x896xf32>
    %30 = tpu.matmul %29, %28, %cst_16 {dimension_numbers = #tpu.dot_dimension_numbers<[1], [0], [0], [1], [0, 0, 1, 1], [], []>} : vector<3x72xf32>, vector<72x896xf32>, vector<3x896xf32> -> vector<3x896xf32>
    %c0_17 = arith.constant 0 : index
    %c0_18 = arith.constant 0 : index
    %31 = vector.load %arg6[%c0_17, %c0_18] : memref<3x1xf32, #tpu.memory_space<vmem>>, vector<3x1xf32>
    %32 = vector.broadcast %31 : vector<3x1xf32> to vector<3x896xf32>
    %33 = arith.addf %30, %32 : vector<3x896xf32>
    %c0_19 = arith.constant 0 : index
    %c0_20 = arith.constant 0 : index
    %34 = vector.load %arg8[%c0_19, %c0_20] : memref<3x896xf32, #tpu.memory_space<vmem>>, vector<3x896xf32>
    %35 = arith.subf %33, %34 : vector<3x896xf32>
    %36 = vector.broadcast %17 : vector<1x896xf32> to vector<3x896xf32>
    %37 = arith.mulf %35, %36 : vector<3x896xf32>
    %38 = arith.mulf %37, %37 : vector<3x896xf32>
    %39 = math.absf %37 : vector<3x896xf32>
    %40 = tpu.iota {dimensions = array<i32: 1>} : vector<2x128xi32>
    %41 = tpu.iota {dimensions = array<i32: 0>} : vector<2x128xi32>
    %42 = vector.extract_strided_slice %15 {offsets = [0, 0], sizes = [1, 896], strides = [1, 1]} : vector<2x896xf32> to vector<1x896xf32>
    %43 = vector.broadcast %42 : vector<1x896xf32> to vector<3x896xf32>
    %44 = arith.mulf %38, %43 : vector<3x896xf32>
    %45 = vector.shape_cast %44 : vector<3x896xf32> to vector<1x3x896xf32>
    %cst_21 = arith.constant dense<0.000000e+00> : vector<1xf32>
    %46 = vector.multi_reduction <add>, %45, %cst_21 [1, 2] : vector<1x3x896xf32> to vector<1xf32>
    %47 = vector.shape_cast %46 : vector<1xf32> to vector<1x1x1xf32>
    %48 = vector.extract %47[0, 0, 0] : f32 from vector<1x1x1xf32>
    %cst_22 = arith.constant 0.00130208337 : f32
    %49 = arith.mulf %48, %cst_22 : f32
    %cst_23 = arith.constant 1.000000e-03 : f32
    %50 = arith.maximumf %49, %cst_23 : f32
    %51 = vector.broadcast %42 : vector<1x896xf32> to vector<3x896xf32>
    %52 = arith.mulf %39, %51 : vector<3x896xf32>
    %53 = vector.shape_cast %52 : vector<3x896xf32> to vector<1x3x896xf32>
    %cst_24 = arith.constant dense<0.000000e+00> : vector<1xf32>
    %54 = vector.multi_reduction <add>, %53, %cst_24 [1, 2] : vector<1x3x896xf32> to vector<1xf32>
    %55 = vector.shape_cast %54 : vector<1xf32> to vector<1x1x1xf32>
    %56 = vector.extract %55[0, 0, 0] : f32 from vector<1x1x1xf32>
    %cst_25 = arith.constant 0.00130208337 : f32
    %57 = arith.mulf %56, %cst_25 : f32
    %cst_26 = arith.constant 1.000000e-03 : f32
    %58 = arith.maximumf %57, %cst_26 : f32
    %c0_27 = arith.constant 0 : index
    %c0_28 = arith.constant 0 : index
    %c0_29 = arith.constant 0 : index
    %59 = vector.load %arg9[%c0_27, %c0_28, %c0_29] : memref<2x14x512xf32, #tpu.memory_space<vmem>>, vector<1x14x512xf32>
    %60 = vector.shape_cast %59 : vector<1x14x512xf32> to vector<14x512xf32>
    %61 = vector.shape_cast %60 : vector<14x512xf32> to vector<14x1x512xf32>
    %62 = vector.shape_cast %60 : vector<14x512xf32> to vector<1x14x512xf32>
    %63 = vector.broadcast %61 : vector<14x1x512xf32> to vector<14x14x512xf32>
    %64 = vector.broadcast %62 : vector<1x14x512xf32> to vector<14x14x512xf32>
    %65 = arith.subf %63, %64 : vector<14x14x512xf32>
    %66 = vector.shape_cast %60 : vector<14x512xf32> to vector<14x1x512xf32>
    %67 = vector.shape_cast %60 : vector<14x512xf32> to vector<1x14x512xf32>
    %68 = vector.broadcast %66 : vector<14x1x512xf32> to vector<14x14x512xf32>
    %69 = vector.broadcast %67 : vector<1x14x512xf32> to vector<14x14x512xf32>
    %70 = arith.addf %68, %69 : vector<14x14x512xf32>
    %71 = arith.mulf %65, %65 : vector<14x14x512xf32>
    %cst_30 = arith.constant dense<0.000000e+00> : vector<14x14xf32>
    %72 = vector.multi_reduction <add>, %71, %cst_30 [2] : vector<14x14x512xf32> to vector<14x14xf32>
    %cst_31 = arith.constant 9.99999971E-10 : f32
    %73 = vector.broadcast %cst_31 : f32 to vector<14x14xf32>
    %74 = arith.addf %72, %73 : vector<14x14xf32>
    %75 = math.sqrt %74 : vector<14x14xf32>
    %76 = arith.mulf %70, %70 : vector<14x14x512xf32>
    %cst_32 = arith.constant dense<0.000000e+00> : vector<14x14xf32>
    %77 = vector.multi_reduction <add>, %76, %cst_32 [2] : vector<14x14x512xf32> to vector<14x14xf32>
    %cst_33 = arith.constant 9.99999971E-10 : f32
    %78 = vector.broadcast %cst_33 : f32 to vector<14x14xf32>
    %79 = arith.addf %77, %78 : vector<14x14xf32>
    %80 = math.sqrt %79 : vector<14x14xf32>
    %cst_34 = arith.constant 0.000000e+00 : f32
    %81 = vector.broadcast %cst_34 : f32 to vector<14x100xf32>
    %82 = tpu.concatenate %75, %80, %81 in 1 : vector<14x14xf32>, vector<14x14xf32>, vector<14x100xf32> -> vector<14x128xf32>
    %c0_i32 = arith.constant 0 : i32
    %83 = vector.broadcast %c0_i32 : i32 to vector<2x128xi32>
    %84 = arith.cmpi eq, %41, %83 : vector<2x128xi32>
    %c0_i32_35 = arith.constant 0 : i32
    %85 = vector.broadcast %c0_i32_35 : i32 to vector<2x128xi32>
    %86 = arith.cmpi eq, %40, %85 : vector<2x128xi32>
    %87 = arith.andi %84, %86 : vector<2x128xi1>
    %c0_i32_36 = arith.constant 0 : i32
    %88 = vector.broadcast %c0_i32_36 : i32 to vector<2x128xi32>
    %89 = arith.cmpi eq, %41, %88 : vector<2x128xi32>
    %c1_i32_37 = arith.constant 1 : i32
    %90 = vector.broadcast %c1_i32_37 : i32 to vector<2x128xi32>
    %91 = arith.cmpi eq, %40, %90 : vector<2x128xi32>
    %92 = arith.andi %89, %91 : vector<2x128xi1>
    %cst_38 = arith.constant 0.000000e+00 : f32
    %93 = vector.broadcast %58 : f32 to vector<2x128xf32>
    %94 = vector.broadcast %cst_38 : f32 to vector<2x128xf32>
    %95 = arith.select %92, %93, %94 : vector<2x128xi1>, vector<2x128xf32>
    %96 = vector.broadcast %50 : f32 to vector<2x128xf32>
    %97 = arith.select %87, %96, %95 : vector<2x128xi1>, vector<2x128xf32>
    %98 = tpu.concatenate %82, %97 in 0 : vector<14x128xf32>, vector<2x128xf32> -> vector<16x128xf32>
    %c0_39 = arith.constant 0 : index
    %c0_40 = arith.constant 0 : index
    %c0_41 = arith.constant 0 : index
    %99 = vector.load %arg10[%c0_39, %c0_40, %c0_41] : memref<2x16x128xf32, #tpu.memory_space<vmem>>, vector<1x16x128xf32>
    %100 = vector.shape_cast %99 : vector<1x16x128xf32> to vector<16x128xf32>
    %101 = vector.shape_cast %98 : vector<16x128xf32> to vector<1x16x128xf32>
    tpu.vector_store %arg10[%c0_39, %c0_40, %c0_41], %101 {strides = array<i32>} : memref<2x16x128xf32, #tpu.memory_space<vmem>>, vector<1x16x128xf32>,
    %102 = vector.extract_strided_slice %15 {offsets = [1, 0], sizes = [1, 896], strides = [1, 1]} : vector<2x896xf32> to vector<1x896xf32>
    %103 = vector.broadcast %102 : vector<1x896xf32> to vector<3x896xf32>
    %104 = arith.mulf %38, %103 : vector<3x896xf32>
    %105 = vector.shape_cast %104 : vector<3x896xf32> to vector<1x3x896xf32>
    %cst_42 = arith.constant dense<0.000000e+00> : vector<1xf32>
    %106 = vector.multi_reduction <add>, %105, %cst_42 [1, 2] : vector<1x3x896xf32> to vector<1xf32>
    %107 = vector.shape_cast %106 : vector<1xf32> to vector<1x1x1xf32>
    %108 = vector.extract %107[0, 0, 0] : f32 from vector<1x1x1xf32>
    %cst_43 = arith.constant 0.00130208337 : f32
    %109 = arith.mulf %108, %cst_43 : f32
    %cst_44 = arith.constant 1.000000e-03 : f32
    %110 = arith.maximumf %109, %cst_44 : f32
    %111 = vector.broadcast %102 : vector<1x896xf32> to vector<3x896xf32>
    %112 = arith.mulf %39, %111 : vector<3x896xf32>
    %113 = vector.shape_cast %112 : vector<3x896xf32> to vector<1x3x896xf32>
    %cst_45 = arith.constant dense<0.000000e+00> : vector<1xf32>
    %114 = vector.multi_reduction <add>, %113, %cst_45 [1, 2] : vector<1x3x896xf32> to vector<1xf32>
    %115 = vector.shape_cast %114 : vector<1xf32> to vector<1x1x1xf32>
    %116 = vector.extract %115[0, 0, 0] : f32 from vector<1x1x1xf32>
    %cst_46 = arith.constant 0.00130208337 : f32
    %117 = arith.mulf %116, %cst_46 : f32
    %cst_47 = arith.constant 1.000000e-03 : f32
    %118 = arith.maximumf %117, %cst_47 : f32
    %c1 = arith.constant 1 : index
    %c0_48 = arith.constant 0 : index
    %c0_49 = arith.constant 0 : index
    %119 = vector.load %arg9[%c1, %c0_48, %c0_49] : memref<2x14x512xf32, #tpu.memory_space<vmem>>, vector<1x14x512xf32>
    %120 = vector.shape_cast %119 : vector<1x14x512xf32> to vector<14x512xf32>
    %121 = vector.shape_cast %120 : vector<14x512xf32> to vector<14x1x512xf32>
    %122 = vector.shape_cast %120 : vector<14x512xf32> to vector<1x14x512xf32>
    %123 = vector.broadcast %121 : vector<14x1x512xf32> to vector<14x14x512xf32>
    %124 = vector.broadcast %122 : vector<1x14x512xf32> to vector<14x14x512xf32>
    %125 = arith.subf %123, %124 : vector<14x14x512xf32>
    %126 = vector.shape_cast %120 : vector<14x512xf32> to vector<14x1x512xf32>
    %127 = vector.shape_cast %120 : vector<14x512xf32> to vector<1x14x512xf32>
    %128 = vector.broadcast %126 : vector<14x1x512xf32> to vector<14x14x512xf32>
    %129 = vector.broadcast %127 : vector<1x14x512xf32> to vector<14x14x512xf32>
    %130 = arith.addf %128, %129 : vector<14x14x512xf32>
    %131 = arith.mulf %125, %125 : vector<14x14x512xf32>
    %cst_50 = arith.constant dense<0.000000e+00> : vector<14x14xf32>
    %132 = vector.multi_reduction <add>, %131, %cst_50 [2] : vector<14x14x512xf32> to vector<14x14xf32>
    %cst_51 = arith.constant 9.99999971E-10 : f32
    %133 = vector.broadcast %cst_51 : f32 to vector<14x14xf32>
    %134 = arith.addf %132, %133 : vector<14x14xf32>
    %135 = math.sqrt %134 : vector<14x14xf32>
    %136 = arith.mulf %130, %130 : vector<14x14x512xf32>
    %cst_52 = arith.constant dense<0.000000e+00> : vector<14x14xf32>
    %137 = vector.multi_reduction <add>, %136, %cst_52 [2] : vector<14x14x512xf32> to vector<14x14xf32>
    %cst_53 = arith.constant 9.99999971E-10 : f32
    %138 = vector.broadcast %cst_53 : f32 to vector<14x14xf32>
    %139 = arith.addf %137, %138 : vector<14x14xf32>
    %140 = math.sqrt %139 : vector<14x14xf32>
    %cst_54 = arith.constant 0.000000e+00 : f32
    %141 = vector.broadcast %cst_54 : f32 to vector<14x100xf32>
    %142 = tpu.concatenate %135, %140, %141 in 1 : vector<14x14xf32>, vector<14x14xf32>, vector<14x100xf32> -> vector<14x128xf32>
    %c0_i32_55 = arith.constant 0 : i32
    %143 = vector.broadcast %c0_i32_55 : i32 to vector<2x128xi32>
    %144 = arith.cmpi eq, %41, %143 : vector<2x128xi32>
    %c0_i32_56 = arith.constant 0 : i32
    %145 = vector.broadcast %c0_i32_56 : i32 to vector<2x128xi32>
    %146 = arith.cmpi eq, %40, %145 : vector<2x128xi32>
    %147 = arith.andi %144, %146 : vector<2x128xi1>
    %c0_i32_57 = arith.constant 0 : i32
    %148 = vector.broadcast %c0_i32_57 : i32 to vector<2x128xi32>
    %149 = arith.cmpi eq, %41, %148 : vector<2x128xi32>
    %c1_i32_58 = arith.constant 1 : i32
    %150 = vector.broadcast %c1_i32_58 : i32 to vector<2x128xi32>
    %151 = arith.cmpi eq, %40, %150 : vector<2x128xi32>
    %152 = arith.andi %149, %151 : vector<2x128xi1>
    %cst_59 = arith.constant 0.000000e+00 : f32
    %153 = vector.broadcast %118 : f32 to vector<2x128xf32>
    %154 = vector.broadcast %cst_59 : f32 to vector<2x128xf32>
    %155 = arith.select %152, %153, %154 : vector<2x128xi1>, vector<2x128xf32>
    %156 = vector.broadcast %110 : f32 to vector<2x128xf32>
    %157 = arith.select %147, %156, %155 : vector<2x128xi1>, vector<2x128xf32>
    %158 = tpu.concatenate %142, %157 in 0 : vector<14x128xf32>, vector<2x128xf32> -> vector<16x128xf32>
    %c1_60 = arith.constant 1 : index
    %c0_61 = arith.constant 0 : index
    %c0_62 = arith.constant 0 : index
    %159 = vector.load %arg10[%c1_60, %c0_61, %c0_62] : memref<2x16x128xf32, #tpu.memory_space<vmem>>, vector<1x16x128xf32>
    %160 = vector.shape_cast %159 : vector<1x16x128xf32> to vector<16x128xf32>
    %161 = vector.shape_cast %158 : vector<16x128xf32> to vector<1x16x128xf32>
    tpu.vector_store %arg10[%c1_60, %c0_61, %c0_62], %161 {strides = array<i32>} : memref<2x16x128xf32, #tpu.memory_space<vmem>>, vector<1x16x128xf32>,
    return
  }
}

</mosaic_0001>

<bundles_post_ra>
// kernel: tpu_custom_call.1
= control target key start
LH: loop header
LB: loop body
LE: loop exit
PB: predicated region body
PF: predicated region fallthrough
CT: control target
= control target key end

     0   :  { %15 = vsyncpa [#allocation3], 0  ;;  %s11152_s0 = inlined_call_operand.vmem [shape: f32[32,896], index: 0, kind: input, shape index: {}]   ;;  %s11153_s1 = inlined_call_operand.hbm [shape: f32[8,32], index: 1, kind: input, shape index: {}]   ;;  %s11154_s2 = inlined_call_operand.vmem [shape: f32[8,1], index: 2, kind: input, shape index: {}]   ;;  %s11155_s3 = inlined_call_operand.hbm [shape: f32[8,896], index: 3, kind: input, shape index: {}]   ;;  %s11156_s4 = inlined_call_operand.hbm [shape: f32[8,896], index: 4, kind: input, shape index: {}]   ;;  %s11157_s5 = inlined_call_operand.hbm [shape: f32[3,72], index: 5, kind: input, shape index: {}]   ;;  %s11158_s6 = inlined_call_operand.vmem [shape: f32[3,1], index: 6, kind: input, shape index: {}]   ;;  %s11159_s7 = inlined_call_operand.hbm [shape: f32[2,896], index: 7, kind: input, shape index: {}]   ;;  %s11160_s8 = inlined_call_operand.vmem [shape: f32[3,896], index: 8, kind: input, shape index: {}]   ;;  %s11161_s9 = inlined_call_operand.vmem [shape: f32[2,14,512], index: 9, kind: input, shape index: {}]   ;;  %s11162_s10 = inlined_call_operand.hbm [shape: f32[2,16,128], index: 10, kind: output, shape index: {}]  }
   0x1   :  { %16 = vsyncpa [#allocation6], 0 }
   0x2   :  { %17 = vsyncpa [#allocation9], 0  ;;  %s39_s15 = sshll.u32 %s11155_s3, 4  ;;  %s40_s15 = int_to_ptr.hbm [resolvable:$true] %s39_s15 }
   0x3   :  { %18 = vsyncpa [#allocation4], 0  ;;  %s5478_s16 = smov [#allocation5]   ;;  %s61_s20 = sshll.u32 %s11157_s5, 4  ;;  %s62_s20 = int_to_ptr.hbm [resolvable:$true] %s61_s20 }
   0x4   :  { %s41_s17 = sshll.u32 %s5478_s16, 4  ;;  %s5479_s21 = smov [#allocation8]   ;;  %s42_s17 = int_to_ptr.vmem [resolvable:$true] %s41_s17 }
   0x5   :  { %44 = dma.hbm_to_vmem [thread:$0]  %s40_s15, 896, %s42_s17, [#allocation6]  }
   0x6   :  { %s63_s22 = sshll.u32 %s5479_s21, 4  ;;  %s26_s25 = sshll.u32 %s11153_s1, 4  ;;  %s64_s22 = int_to_ptr.vmem [resolvable:$true] %s63_s22  ;;  %s27_s25 = int_to_ptr.hbm [resolvable:$true] %s26_s25 }
   0x7   :  { %66 = dma.hbm_to_vmem [thread:$0]  %s62_s20, 64, %s64_s22, [#allocation9]  }
   0x8   :  { %s50_s27 = sshll.u32 %s11156_s4, 4  ;;  %s5480_s28 = smov [#allocation2]   ;;  %s51_s27 = int_to_ptr.hbm [resolvable:$true] %s50_s27 }
   0x9   :  { %s28_s29 = sshll.u32 %s5480_s28, 4  ;;  %s5481_s5 = smov [#allocation7]   ;;  %s29_s29 = int_to_ptr.vmem [resolvable:$true] %s28_s29 }
   0xa   :  { %31 = dma.hbm_to_vmem [thread:$0]  %s27_s25, 128, %s29_s29, [#allocation3]  }
   0xb   :  { %s52_s30 = sshll.u32 %s5481_s5, 4  ;;  %s74_s13 = sshll.u32 %s11159_s7, 4  ;;  %s53_s30 = int_to_ptr.vmem [resolvable:$true] %s52_s30  ;;  %s75_s13 = int_to_ptr.hbm [resolvable:$true] %s74_s13 }
   0xc   :  { %55 = dma.hbm_to_vmem [thread:$0]  %s51_s27, 896, %s53_s30, [#allocation6]  }
   0xd   :  { %s5482_s1 = smov [#allocation10]  }
   0xe   :  { %s76_s14 = sshll.u32 %s5482_s1, 4  ;;  %s77_s14 = int_to_ptr.vmem [resolvable:$true] %s76_s14 }
   0xf   :  { %79 = dma.hbm_to_vmem [thread:$0]  %s75_s13, 224, %s77_s14, [#allocation9]  }
  0x10   :  { %5470 = dma.done.wait [#allocation3], 128  }
  0x11   :  { %5471 = vsyncadd [#allocation3], 4294967168 }
  0x12   :  { %5472 = dma.done.wait [#allocation6], 1792  }
  0x13   :  { %5473 = vsyncadd [#allocation6], 4294965504 }
  0x14   :  { %5474 = dma.done.wait [#allocation9], 288  }
  0x15   :  { %5475 = vsyncadd [#allocation9], 4294967008  ;;  %v5483_v0 = vmov 0   ;;  %v133_v1 = vld [vmem:[%s11154_s2] sm:$0xff]  ;;  %v126_v2 = vld [vmem:[%s11152_s0 + $0xa8] sm:$0xff]  ;;  %vm139_vm0 = vcmask 261120  }
  0x16   :  { %4940 = vset.pattern.permute.xlu0 %v5483_v0  ;;  %v129_v3 = vld [vmem:[%s11152_s0 + $0xc0] sm:$0xff]  ;;  %155 = vmatpush.msra.mxu2 %v126_v2  ;;  %v130_v4 = vld [vmem:[%s11152_s0 + $0xc8] sm:$0xff]  ;;  %v131_v5 = vld [vmem:[%s11152_s0 + $0xd0] sm:$0xff]  ;;  %vm11213_vm1 = vcmask 1040384   ;;  %vm11453_vm2 = vcmask 1043459   ;;  %vm11454_vm3 = vcmask 1042434  }
  0x17   :  { %136 = vperm.xlu0 %4940, %v133_v1   ;;  %v119_v6 = vld [vmem:[%s11152_s0 + $0x70] sm:$0xff]  ;;  %215 = vmatpush.msra.mxu3 %v129_v3  ;;  %v122_v7 = vld [vmem:[%s11152_s0 + $0x88] sm:$0xff]  ;;  %v124_v9 = vld [vmem:[%s11152_s0 + $0x98] sm:$0xff]  ;;  %vm11470_vm4 = vcmask 1041409   ;;  %vm11212_vm5 = vcmask 1041408   ;;  %vm11231_vm6 = vcmask 1045509  }
  0x18   :  { %235 = vmatpush.msra.mxu0 %v130_v4  ;;  %v123_v8 = vld [vmem:[%s11152_s0 + $0x90] sm:$0xff]  ;;  %255 = vmatpush.msra.mxu1 %v131_v5  ;;  %v112_v10 = vld [vmem:[%s11152_s0 + $0x38] sm:$0xff]  ;;  %v117_v13 = vld [vmem:[%s11152_s0 + $0x60] sm:$0xff]  ;;  %vm11230_vm7 = vcmask 1044483   ;;  %vm11211_vm8 = vcmask 1042433   ;;  %vm11337_vm9 = vcmask 1044484  }
  0x19   :  { %156 = vmatpush.msra.mxu2 %v119_v6  ;;  %v115_v11 = vld [vmem:[%s11152_s0 + $0x50] sm:$0xff]  ;;  %v116_v12 = vld [vmem:[%s11152_s0 + $0x58] sm:$0xff]  ;;  %216 = vmatpush.msra.mxu3 %v122_v7  ;;  %v105_v14 = vld [vmem:[%s11152_s0] sm:$0xff]  ;;  %vm11192_vm10 = vcmask 1043458   ;;  %vm11228_vm11 = vcmask 1045504   ;;  %vm11293_vm12 = vcmask 1046534  }
  0x1a   :  { %236 = vmatpush.msra.mxu0 %v123_v8  ;;  %256 = vmatpush.msra.mxu1 %v124_v9  ;;  %v108_v15 = vld [vmem:[%s11152_s0 + $0x18] sm:$0xff]  ;;  %v109_v16 = vld [vmem:[%s11152_s0 + $0x20] sm:$0xff]  ;;  %v110_v17 = vld [vmem:[%s11152_s0 + $0x28] sm:$0xff]  ;;  %vm11292_vm13 = vcmask 1045508   ;;  %vm11229_vm14 = vcmask 1046528   ;;  %vm11219_vm15 = vcmask 1046533  }
  0x1b   :  { %157 = vmatpush.msra.mxu2 %v112_v10  ;;  %217 = vmatpush.msra.mxu3 %v115_v11  ;;  %v5617_v18 = vld [vmem:[#allocation2] sm:$0xff]  ;;  %v589_v19 = vld [vmem:[%s11158_s6] sm:$0x7]  ;;  %v127_v20 = vld [vmem:[%s11152_s0 + $0xb0] sm:$0xff]  ;;  %s5485_s16 = smov 23   ;;  %s5486_s17 = smov 25  }
  0x1c   :  { %237 = vmatpush.msra.mxu0 %v116_v12  ;;  %257 = vmatpush.msra.mxu1 %v117_v13  ;;  %v5634_v21 = vld [vmem:[%s11161_s9] sm:$0xff]  ;;  %v5639_v22 = vld [vmem:[%s11161_s9 + $0x8] sm:$0xff]  ;;  %v120_v23 = vld [vmem:[%s11152_s0 + $0x78] sm:$0xff]  ;;  %s5487_s18 = smov 104   ;;  %s5488_s19 = smov 105  }
  0x1d   :  { %158 = vmatpush.msra.mxu2 %v105_v14  ;;  %218 = vmatpush.msra.mxu3 %v108_v15  ;;  %v5649_v24 = vld [vmem:[%s11161_s9 + $0x10] sm:$0xff]  ;;  %v5654_v25 = vld [vmem:[%s11161_s9 + $0x18] sm:$0xff]  ;;  %v5657_v26 = vrot.slane %v5639_v22, 7  ;;  %v113_v27 = vld [vmem:[%s11152_s0 + $0x40] sm:$0xff]  ;;  %s5489_s20 = smov 24   ;;  %s5490_s21 = smov 127  }
  0x1e   :  { %238 = vmatpush.msra.mxu0 %v109_v16  ;;  %258 = vmatpush.msra.mxu1 %v110_v17  ;;  %v5663_v28 = vrot.slane %v5649_v24, 6  ;;  %v5666_v29 = vrot.slane %v5654_v25, 5  ;;  %v106_v34 = vld [vmem:[%s11152_s0 + $0x8] sm:$0xff]  ;;  %v5686_v35 = vld [vmem:[%s11161_s9 + $0x20] sm:$0x3f]  ;;  %v128_v47 = vld [vmem:[%s11152_s0 + $0xb8] sm:$0xff] }
  0x1f   :  { %4892 = vmatmul.msk.f32.vlgmr.msra.gmra.mxu2 %vm139_vm0, %v5617_v18  ;;  %4895 = vmatmul.msk.f32.vlgmr.msra.gmra.mxu3 %vm139_vm0, %v5617_v18  ;;  %v905_v30 = vsel %vm11213_vm1, %v5634_v21, %v5657_v26  ;;  %v922_v31 = vsel %vm11453_vm2, %v5634_v21, %v5657_v26  ;;  %v910_v32 = vsel %vm11470_vm4, %v5634_v21, %v5657_v26  ;;  %v5703_v40 = vld [vmem:[%s11161_s9 + $0x28] sm:$0x3f]  ;;  %v5708_v41 = vld [vmem:[%s11161_s9 + $0x30] sm:$0x3f]  ;;  %v5713_v42 = vld [vmem:[%s11161_s9 + $0x38] sm:$0x3f] }
  0x20   :  { %4896 = vmatmul.msk.f32.vlgmr.msra.gmra.mxu0 %vm139_vm0, %v5617_v18  ;;  %4897 = vmatmul.msk.f32.vlgmr.msra.gmra.mxu1 %vm139_vm0, %v5617_v18  ;;  %v916_v33 = vsel %vm11454_vm3, %v5634_v21, %v5657_v26  ;;  %v907_v36 = vsel %vm11454_vm3, %v5663_v28, %v5666_v29  ;;  %v924_v37 = vsel %vm11231_vm6, %v5663_v28, %v5666_v29  ;;  %v121_v55 = vld [vmem:[%s11152_s0 + $0x80] sm:$0xff]  ;;  %v114_v0 = vld [vmem:[%s11152_s0 + $0x48] sm:$0xff]  ;;  %v107_v9 = vld [vmem:[%s11152_s0 + $0x10] sm:$0xff]  ;;  %s5491_s22 = smov 103   ;;  %s5492_s5 = smov 0.001  }
  0x21   :  { %592 = vperm.xlu0 %4940, %v589_v19   ;;  %175 = vmatpush.msrb.mxu2 %v127_v20  ;;  %v912_v38 = vsel %vm11453_vm2, %v5663_v28, %v5666_v29  ;;  %v918_v39 = vsel %vm11337_vm9, %v5663_v28, %v5666_v29  ;;  %v908_v43 = vsel %vm11212_vm5, %v905_v30, %v907_v36  ;;  %v132_v19 = vld [vmem:[%s11152_s0 + $0xd8] sm:$0xff]  ;;  %v125_v36 = vld [vmem:[%s11152_s0 + $0xa0] sm:$0xff] }
  0x22   :  { %v926_v44 = vsel %vm11230_vm7, %v922_v31, %v924_v37  ;;  %v914_v45 = vsel %vm11211_vm8, %v910_v32, %v912_v38  ;;  %v920_v46 = vsel %vm11192_vm10, %v916_v33, %v918_v39  ;;  %v5722_v48 = vperm.slane %v908_v43, 0 }
  0x23   :  { %176 = vmatpush.msrb.mxu2 %v120_v23  ;;  %v5724_v49 = vperm.slane %v908_v43, 1  ;;  %v5726_v50 = vperm.slane %v908_v43, 2  ;;  %v5728_v51 = vperm.slane %v908_v43, 3  ;;  %v927_v52 = vrot.slane %v926_v44, 3 }
  0x24   :  { %v915_v53 = vrot.slane %v914_v45, 1  ;;  %v5730_v54 = vrot.slane %v920_v46, 2  ;;  %v1089_v56 = vsub.f32 %v5722_v48, %v5686_v35 }
  0x25   :  { %177 = vmatpush.msrb.mxu2 %v113_v27  ;;  %v1090_v57 = vsub.f32 %v5724_v49, %v5703_v40  ;;  %v1091_v58 = vsub.f32 %v5726_v50, %v5708_v41  ;;  %v1092_v59 = vsub.f32 %v5728_v51, %v5713_v42  ;;  %v5745_v60 = vperm.slane %v927_v52, 0 }
  0x26   :  { %v5747_v61 = vperm.slane %v927_v52, 1  ;;  %v5749_v62 = vperm.slane %v927_v52, 2  ;;  %v5751_v63 = vperm.slane %v927_v52, 3  ;;  %v1313_v1 = vmul.f32 %v1089_v56, %v1089_v56  ;;  %v118_v52 = vld [vmem:[%s11152_s0 + $0x68] sm:$0xff] }
  0x27   :  { %178 = vmatpush.msrb.mxu2 %v106_v34  ;;  %v1314_v2 = vmul.f32 %v1090_v57, %v1090_v57  ;;  %v1315_v3 = vmul.f32 %v1091_v58, %v1091_v58  ;;  %v1316_v4 = vmul.f32 %v1092_v59, %v1092_v59  ;;  %v1109_v5 = vsub.f32 %v5745_v60, %v5634_v21 }
  0x28   :  { %4893 = vmatmul.msk.f32.vlgmr.msrb.gmra.mxu2 %vm139_vm0, %v5617_v18  ;;  %v1110_v6 = vsub.f32 %v5747_v61, %v5639_v22  ;;  %v1111_v7 = vsub.f32 %v5749_v62, %v5649_v24  ;;  %v1112_v8 = vsub.f32 %v5751_v63, %v5654_v25  ;;  %v1426_v10 = vsel %vm11228_vm11, %v1313_v1, 0.0  ;;  %v111_v1 = vld [vmem:[%s11152_s0 + $0x30] sm:$0xff] }
  0x29   :  { %195 = vmatpush.msra.mxu2 %v128_v47  ;;  %v1427_v11 = vsel %vm11228_vm11, %v1314_v2, 0.0  ;;  %v1429_v12 = vsel %vm11228_vm11, %v1315_v3, 0.0  ;;  %v1431_v13 = vsel %vm11228_vm11, %v1316_v4, 0.0  ;;  %v1333_v15 = vmul.f32 %v1109_v5, %v1109_v5 }
  0x2a   :  { %v1428_v14 = vadd.f32 %v1427_v11, %v1426_v10  ;;  %v1334_v16 = vmul.f32 %v1110_v6, %v1110_v6  ;;  %v1335_v17 = vmul.f32 %v1111_v7, %v1111_v7  ;;  %v1336_v20 = vmul.f32 %v1112_v8, %v1112_v8 }
  0x2b   :  { %196 = vmatpush.msra.mxu2 %v121_v55  ;;  %v5774_v23 = vperm.slane %v915_v53, 0  ;;  %v5776_v27 = vperm.slane %v915_v53, 1  ;;  %v5778_v30 = vperm.slane %v915_v53, 2  ;;  %v5780_v33 = vperm.slane %v915_v53, 3 }
  0x2c   :  { %v1430_v31 = vadd.f32 %v1429_v12, %v1428_v14  ;;  %v1463_v32 = vadd.f32 %v1334_v16, %v1333_v15  ;;  %v1085_v34 = vsub.f32 %v5722_v48, %v5634_v21  ;;  %v1086_v43 = vsub.f32 %v5724_v49, %v5639_v22 }
  0x2d   :  { %197 = vmatpush.msra.mxu2 %v114_v0  ;;  %v1093_v37 = vsub.f32 %v5774_v23, %v5634_v21  ;;  %v1094_v38 = vsub.f32 %v5776_v27, %v5639_v22  ;;  %v1095_v39 = vsub.f32 %v5778_v30, %v5649_v24  ;;  %v1096_v46 = vsub.f32 %v5780_v33, %v5654_v25 }
  0x2e   :  { %v1432_v44 = vadd.f32 %v1431_v13, %v1430_v31  ;;  %v1464_v45 = vadd.f32 %v1463_v32, %v1335_v17  ;;  %v1087_v47 = vsub.f32 %v5726_v50, %v5649_v24  ;;  %v1088_v57 = vsub.f32 %v5728_v51, %v5654_v25 }
  0x2f   :  { %198 = vmatpush.msra.mxu2 %v107_v9  ;;  %v1317_v53 = vmul.f32 %v1093_v37, %v1093_v37  ;;  %v1318_v55 = vmul.f32 %v1094_v38, %v1094_v38  ;;  %v1319_v56 = vmul.f32 %v1095_v39, %v1095_v39  ;;  %v1320_v59 = vmul.f32 %v1096_v46, %v1096_v46 }
  0x30   :  { %4894 = vmatmul.msk.f32.vlgmr.msra.gmra.mxu2 %vm139_vm0, %v5617_v18  ;;  %1433 = vadd.xlane.f32.xlu2 %v1432_v44  ;;  %v1465_v58 = vadd.f32 %v1464_v45, %v1336_v20  ;;  %v1309_v0 = vmul.f32 %v1085_v34, %v1085_v34  ;;  %v1310_v3 = vmul.f32 %v1086_v43, %v1086_v43  ;;  %v5810_v5 = vperm.slane %v5730_v54, 0 }
  0x31   :  { %275 = vmatpush.msrb.mxu2 %v132_v19  ;;  %v1435_v2 = vadd.f32 %v1318_v55, %v1317_v53  ;;  %v1311_v4 = vmul.f32 %v1087_v47, %v1087_v47  ;;  %v1097_v6 = vsub.f32 %v5774_v23, %v5686_v35  ;;  %v1098_v7 = vsub.f32 %v5776_v27, %v5703_v40 }
  0x32   :  { %v1099_v8 = vsub.f32 %v5778_v30, %v5708_v41  ;;  %v1100_v9 = vsub.f32 %v5780_v33, %v5713_v42  ;;  %v1421_v11 = vadd.f32 %v1310_v3, %v1309_v0  ;;  %v5821_v12 = vperm.slane %v5730_v54, 1 }
  0x33   :  { %276 = vmatpush.msrb.mxu2 %v125_v36  ;;  %v1436_v10 = vadd.f32 %v1435_v2, %v1319_v56  ;;  %v5824_v13 = vperm.slane %v5730_v54, 2  ;;  %v1321_v14 = vmul.f32 %v1097_v6, %v1097_v6  ;;  %v1322_v15 = vmul.f32 %v1098_v7, %v1098_v7 }
  0x34   :  { %v1323_v16 = vmul.f32 %v1099_v8, %v1099_v8  ;;  %v1324_v17 = vmul.f32 %v1100_v9, %v1100_v9  ;;  %v1312_v20 = vmul.f32 %v1088_v57, %v1088_v57  ;;  %v5829_v31 = vperm.slane %v5730_v54, 3 }
  0x35   :  { %277 = vmatpush.msrb.mxu2 %v118_v52  ;;  %v1437_v19 = vadd.f32 %v1436_v10, %v1320_v59  ;;  %v1105_v32 = vsub.f32 %v5810_v5, %v5686_v35  ;;  %v1422_v34 = vadd.f32 %v1421_v11, %v1311_v4  ;;  %v1440_v36 = vsel %vm11228_vm11, %v1321_v14, 0.0 }
  0x36   :  { %v1441_v37 = vsel %vm11228_vm11, %v1322_v15, 0.0  ;;  %v1443_v38 = vsel %vm11228_vm11, %v1323_v16, 0.0  ;;  %v1445_v43 = vsel %vm11228_vm11, %v1324_v17, 0.0  ;;  %v1107_v54 = vsub.f32 %v5824_v13, %v5708_v41 }
  0x37   :  { %278 = vmatpush.msrb.mxu2 %v111_v1  ;;  %1438 = vadd.xlane.f32.xlu1 %v1437_v19  ;;  %v1442_v39 = vadd.f32 %v1441_v37, %v1440_v36  ;;  %v1108_v44 = vsub.f32 %v5829_v31, %v5713_v42  ;;  %v1329_v45 = vmul.f32 %v1105_v32, %v1105_v32 }
  0x38   :  { %4898 = vmatmul.msk.f32.vlgmr.msrb.gmra.mxu2 %vm139_vm0, %v5617_v18  ;;  %v1106_v18 = vsub.f32 %v5821_v12, %v5703_v40  ;;  %1466 = vadd.xlane.f32.xlu2 %v1465_v58  ;;  %v1101_v46 = vsub.f32 %v5810_v5, %v5634_v21  ;;  %v1102_v47 = vsub.f32 %v5821_v12, %v5639_v22  ;;  %vm11189_vm0 = vcmask 1046529  }
  0x39   :  { %v1444_v52 = vadd.f32 %v1443_v38, %v1442_v39  ;;  %v1331_v55 = vmul.f32 %v1107_v54, %v1107_v54  ;;  %v1103_v56 = vsub.f32 %v5824_v13, %v5649_v24  ;;  %v1332_v57 = vmul.f32 %v1108_v44, %v1108_v44 }
  0x3a   :  { %v1330_v53 = vmul.f32 %v1106_v18, %v1106_v18  ;;  %v1454_v59 = vsel %vm11228_vm11, %v1329_v45, 0.0  ;;  %v1104_v58 = vsub.f32 %v5829_v31, %v5654_v25  ;;  %v1325_v0 = vmul.f32 %v1101_v46, %v1101_v46 }
  0x3b   :  { %v1446_v1 = vadd.f32 %v1445_v43, %v1444_v52  ;;  %v1457_v3 = vsel %vm11228_vm11, %v1331_v55, 0.0  ;;  %v1326_v4 = vmul.f32 %v1102_v47, %v1102_v47  ;;  %v1459_v7 = vsel %vm11228_vm11, %v1332_v57, 0.0 }
  0x3c   :  { %v1455_v2 = vsel %vm11228_vm11, %v1330_v53, 0.0  ;;  %v1327_v8 = vmul.f32 %v1103_v56, %v1103_v56  ;;  %v1328_v9 = vmul.f32 %v1104_v58, %v1104_v58  ;;  %v928_v11 = vsel %vm11337_vm9, %v5634_v21, %v5657_v26 }
  0x3d   :  { %v1456_v6 = vadd.f32 %v1455_v2, %v1454_v59  ;;  %v1449_v10 = vadd.f32 %v1326_v4, %v1325_v0  ;;  %v930_v15 = vsel %vm11293_vm12, %v5663_v28, %v5666_v29  ;;  %v1113_v16 = vsub.f32 %v5745_v60, %v5686_v35 }
  0x3e   :  { %v1114_v17 = vsub.f32 %v5747_v61, %v5703_v40  ;;  %v932_v32 = vsel %vm11292_vm13, %v928_v11, %v930_v15  ;;  %v1115_v36 = vsub.f32 %v5749_v62, %v5708_v41  ;;  %v1116_v37 = vsub.f32 %v5751_v63, %v5713_v42 }
  0x3f   :  { %v1458_v14 = vadd.f32 %v1457_v3, %v1456_v6  ;;  %v1450_v19 = vadd.f32 %v1449_v10, %v1327_v8  ;;  %v933_v39 = vrot.slane %v932_v32, 4  ;;  %v1337_v43 = vmul.f32 %v1113_v16, %v1113_v16 }
  0x40   :  { %1447 = vadd.xlane.f32.xlu2 %v1446_v1  ;;  %v1338_v18 = vmul.f32 %v1114_v17, %v1114_v17  ;;  %v1423_v54 = vadd.f32 %v1422_v34, %v1312_v20  ;;  %v1339_v45 = vmul.f32 %v1115_v36, %v1115_v36  ;;  %v1340_v46 = vmul.f32 %v1116_v37, %v1116_v37 }
  0x41   :  { %v1460_v38 = vadd.f32 %v1459_v7, %v1458_v14  ;;  %v1451_v44 = vadd.f32 %v1450_v19, %v1328_v9  ;;  %v5870_v47 = vperm.slane %v933_v39, 0  ;;  %v5872_v52 = vperm.slane %v933_v39, 1 }
  0x42   :  { %v5874_v53 = vperm.slane %v933_v39, 2  ;;  %v5876_v55 = vperm.slane %v933_v39, 3  ;;  %v1468_v56 = vsel %vm11228_vm11, %v1337_v43, 0.0  ;;  %v1469_v57 = vsel %vm11228_vm11, %v1338_v18, 0.0 }
  0x43   :  { %1461 = vadd.xlane.f32.xlu1 %v1460_v38  ;;  %v1471_v59 = vsel %vm11228_vm11, %v1339_v45, 0.0  ;;  %v934_v20 = vsel %vm11231_vm6, %v5634_v21, %v5657_v26  ;;  %v1117_v34 = vsub.f32 %v5870_v47, %v5634_v21  ;;  %v1118_v58 = vsub.f32 %v5872_v52, %v5639_v22 }
  0x44   :  { %v1119_v0 = vsub.f32 %v5874_v53, %v5649_v24  ;;  %v1120_v1 = vsub.f32 %v5876_v55, %v5654_v25  ;;  %v1470_v2 = vadd.f32 %v1469_v57, %v1468_v56  ;;  %v1121_v3 = vsub.f32 %v5870_v47, %v5686_v35 }
  0x45   :  { %v1122_v4 = vsub.f32 %v5872_v52, %v5703_v40  ;;  %v1123_v6 = vsub.f32 %v5874_v53, %v5708_v41  ;;  %v1341_v7 = vmul.f32 %v1117_v34, %v1117_v34  ;;  %v1342_v8 = vmul.f32 %v1118_v58, %v1118_v58 }
  0x46   :  { %v1343_v9 = vmul.f32 %v1119_v0, %v1119_v0  ;;  %v1473_v10 = vsel %vm11228_vm11, %v1340_v46, 0.0  ;;  %v1344_v11 = vmul.f32 %v1120_v1, %v1120_v1  ;;  %v1124_v14 = vsub.f32 %v5876_v55, %v5713_v42 }
  0x47   :  { %v1345_v15 = vmul.f32 %v1121_v3, %v1121_v3  ;;  %v1346_v16 = vmul.f32 %v1122_v4, %v1122_v4  ;;  %v1477_v17 = vadd.f32 %v1342_v8, %v1341_v7  ;;  %v1347_v19 = vmul.f32 %v1123_v6, %v1123_v6 }
  0x48   :  { %v1472_v32 = vadd.f32 %v1471_v59, %v1470_v2  ;;  %v1348_v36 = vmul.f32 %v1124_v14, %v1124_v14  ;;  %v940_v56 = vsel %vm11293_vm12, %v5634_v21, %v5657_v26  ;;  %v941_v57 = vsel %vm11213_vm1, %v5663_v28, %v5666_v29 }
  0x49   :  { %v1482_v37 = vsel %vm11228_vm11, %v1345_v15, 0.0  ;;  %v1483_v38 = vsel %vm11228_vm11, %v1346_v16, 0.0  ;;  %v1478_v39 = vadd.f32 %v1477_v17, %v1343_v9  ;;  %v1485_v18 = vsel %vm11228_vm11, %v1347_v19, 0.0 }
  0x4a   :  { %v1484_v43 = vadd.f32 %v1483_v38, %v1482_v37  ;;  %v1487_v45 = vsel %vm11228_vm11, %v1348_v36, 0.0  ;;  %v943_v0 = vsel %vm11228_vm11, %v941_v57, %v940_v56  ;;  %v1474_v1 = vadd.f32 %v1473_v10, %v1472_v32 }
  0x4b   :  { %1424 = vadd.xlane.f32.xlu0 %v1423_v54  ;;  %v936_v54 = vsel %vm11229_vm14, %v5666_v29, %v5663_v28  ;;  %v1479_v59 = vadd.f32 %v1478_v39, %v1344_v11  ;;  %v944_v2 = vrot.slane %v943_v0, 6  ;;  %v945_v3 = vsel %vm11229_vm14, %v5657_v26, %v5634_v21 }
  0x4c   :  { %v938_v46 = vsel %vm11219_vm15, %v934_v20, %v936_v54  ;;  %v1486_v34 = vadd.f32 %v1485_v18, %v1484_v43  ;;  %v946_v20 = vsel %vm11470_vm4, %v5663_v28, %v5666_v29 }
  0x4d   :  { %v939_v58 = vrot.slane %v938_v46, 5  ;;  %1480 = vadd.xlane.f32.xlu1 %v1479_v59  ;;  %v5930_v10 = vperm.slane %v944_v2, 0  ;;  %v5932_v11 = vperm.slane %v944_v2, 1  ;;  %v5934_v26 = vperm.slane %v944_v2, 2 }
  0x4e   :  { %v1488_v4 = vadd.f32 %v1487_v45, %v1486_v34  ;;  %v5955_v57 = vperm.slane %v944_v2, 3 }
  0x4f   :  { %v5922_v6 = vperm.slane %v939_v58, 0  ;;  %v5924_v7 = vperm.slane %v939_v58, 1  ;;  %v5926_v8 = vperm.slane %v939_v58, 2  ;;  %v5928_v9 = vperm.slane %v939_v58, 3  ;;  %11476 = vst [vmem:[#allocation20_spill] sm:$0xff] %v5930_v10 }
  0x50   :  { %11477 = vst [vmem:[#allocation21_spill] sm:$0xff] %v5932_v11  ;;  %1489 = vadd.xlane.f32.xlu2 %v1488_v4  ;;  %v1133_v0 = vsub.f32 %v5930_v10, %v5634_v21  ;;  %v1134_v4 = vsub.f32 %v5932_v11, %v5639_v22  ;;  %v1137_v2 = vsub.f32 %v5930_v10, %v5686_v35 }
  0x51   :  { %11472 = vst [vmem:[#allocation16_spill] sm:$0xff] %v5922_v6  ;;  %v1129_v28 = vsub.f32 %v5922_v6, %v5686_v35  ;;  %v1130_v29 = vsub.f32 %v5924_v7, %v5703_v40  ;;  %v1131_v14 = vsub.f32 %v5926_v8, %v5708_v41  ;;  %v1132_v15 = vsub.f32 %v5928_v9, %v5713_v42 }
  0x52   :  { %11473 = vst [vmem:[#allocation17_spill] sm:$0xff] %v5924_v7  ;;  %v1126_v16 = vsub.f32 %v5924_v7, %v5639_v22  ;;  %v1127_v17 = vsub.f32 %v5926_v8, %v5649_v24  ;;  %v1128_v19 = vsub.f32 %v5928_v9, %v5654_v25 }
  0x53   :  { %11474 = vst [vmem:[#allocation18_spill] sm:$0xff] %v5926_v8  ;;  %1452 = vadd.xlane.f32.xlu0 %v1451_v44  ;;  %v1125_v44 = vsub.f32 %v5922_v6, %v5634_v21  ;;  %v1353_v32 = vmul.f32 %v1129_v28, %v1129_v28  ;;  %v1354_v36 = vmul.f32 %v1130_v29, %v1130_v29 }
  0x54   :  { %11475 = vst [vmem:[#allocation19_spill] sm:$0xff] %v5928_v9  ;;  %v1355_v37 = vmul.f32 %v1131_v14, %v1131_v14  ;;  %v1356_v39 = vmul.f32 %v1132_v15, %v1132_v15  ;;  %v1350_v43 = vmul.f32 %v1126_v16, %v1126_v16  ;;  %v1351_v18 = vmul.f32 %v1127_v17, %v1127_v17 }
  0x55   :  { %11478 = vst [vmem:[#allocation22_spill] sm:$0xff] %v5934_v26  ;;  %v1349_v38 = vmul.f32 %v1125_v44, %v1125_v44  ;;  %v1352_v54 = vmul.f32 %v1128_v19, %v1128_v19  ;;  %v1496_v45 = vsel %vm11228_vm11, %v1353_v32, 0.0  ;;  %v1497_v46 = vsel %vm11228_vm11, %v1354_v36, 0.0 }
  0x56   :  { %v1499_v56 = vsel %vm11228_vm11, %v1355_v37, 0.0  ;;  %11479 = vst [vmem:[#allocation23_spill] sm:$0xff] %v5955_v57  ;;  %v1498_v59 = vadd.f32 %v1497_v46, %v1496_v45  ;;  %v1501_v34 = vsel %vm11228_vm11, %v1356_v39, 0.0  ;;  %v1135_v28 = vsub.f32 %v5934_v26, %v5649_v24 }
  0x57   :  { %v1491_v58 = vadd.f32 %v1350_v43, %v1349_v38  ;;  %v1136_v29 = vsub.f32 %v5955_v57, %v5654_v25  ;;  %v1357_v15 = vmul.f32 %v1133_v0, %v1133_v0  ;;  %v1138_v16 = vsub.f32 %v5932_v11, %v5703_v40 }
  0x58   :  { %v1500_v14 = vadd.f32 %v1499_v56, %v1498_v59  ;;  %v1358_v17 = vmul.f32 %v1134_v4, %v1134_v4  ;;  %v1359_v19 = vmul.f32 %v1135_v28, %v1135_v28  ;;  %v1139_v36 = vsub.f32 %v5934_v26, %v5708_v41 }
  0x59   :  { %v1492_v44 = vadd.f32 %v1491_v58, %v1351_v18  ;;  %v1360_v32 = vmul.f32 %v1136_v29, %v1136_v29  ;;  %v1140_v39 = vsub.f32 %v5955_v57, %v5713_v42  ;;  %v1361_v43 = vmul.f32 %v1137_v2, %v1137_v2 }
  0x5a   :  { %v1502_v37 = vadd.f32 %v1501_v34, %v1500_v14  ;;  %v1505_v45 = vadd.f32 %v1358_v17, %v1357_v15  ;;  %v1363_v46 = vmul.f32 %v1139_v36, %v1139_v36  ;;  %v948_v18 = vsel %vm11189_vm0, %v946_v20, %v945_v3 }
  0x5b   :  { %1475 = vadd.xlane.f32.xlu0 %v1474_v1  ;;  %v1493_v38 = vadd.f32 %v1492_v44, %v1352_v54  ;;  %v1362_v1 = vmul.f32 %v1138_v16, %v1138_v16  ;;  %v1364_v56 = vmul.f32 %v1140_v39, %v1140_v39  ;;  %v1510_v59 = vsel %vm11228_vm11, %v1361_v43, 0.0 }
  0x5c   :  { %1503 = vadd.xlane.f32.xlu1 %v1502_v37  ;;  %v949_v58 = vrot.slane %v948_v18, 7  ;;  %v5977_v0 = vrot.slane %v5703_v40, 7  ;;  %v1506_v4 = vadd.f32 %v1505_v45, %v1359_v19  ;;  %v1513_v34 = vsel %vm11228_vm11, %v1363_v46, 0.0 }
  0x5d   :  { %v1511_v54 = vsel %vm11228_vm11, %v1362_v1, 0.0  ;;  %v5982_v28 = vrot.slane %v5708_v41, 6  ;;  %v1515_v2 = vsel %vm11228_vm11, %v1364_v56, 0.0  ;;  %v5994_v16 = vrot.slane %v5713_v42, 5 }
  0x5e   :  { %v1512_v29 = vadd.f32 %v1511_v54, %v1510_v59  ;;  %v5985_v3 = vperm.slane %v949_v58, 0  ;;  %v5987_v20 = vperm.slane %v949_v58, 1  ;;  %v1507_v14 = vadd.f32 %v1506_v4, %v1360_v32 }
  0x5f   :  { %v5989_v44 = vperm.slane %v949_v58, 2  ;;  %v5991_v15 = vperm.slane %v949_v58, 3 }
  0x60   :  { %11480 = vst [vmem:[#allocation24_spill] sm:$0xff] %v5985_v3  ;;  %v1514_v17 = vadd.f32 %v1513_v34, %v1512_v29  ;;  %v1141_v19 = vsub.f32 %v5985_v3, %v5634_v21  ;;  %v1142_v36 = vsub.f32 %v5987_v20, %v5639_v22  ;;  %v1145_v37 = vsub.f32 %v5985_v3, %v5686_v35 }
  0x61   :  { %11481 = vst [vmem:[#allocation25_spill] sm:$0xff] %v5987_v20  ;;  %1508 = vadd.xlane.f32.xlu2 %v1507_v14  ;;  %v1143_v32 = vsub.f32 %v5989_v44, %v5649_v24  ;;  %v1144_v39 = vsub.f32 %v5991_v15, %v5654_v25  ;;  %v1147_v43 = vsub.f32 %v5989_v44, %v5708_v41 }
  0x62   :  { %11482 = vst [vmem:[#allocation26_spill] sm:$0xff] %v5989_v44  ;;  %v1516_v45 = vadd.f32 %v1515_v2, %v1514_v17  ;;  %v1365_v1 = vmul.f32 %v1141_v19, %v1141_v19  ;;  %v1366_v46 = vmul.f32 %v1142_v36, %v1142_v36  ;;  %v1148_v18 = vsub.f32 %v5991_v15, %v5713_v42 }
  0x63   :  { %11483 = vst [vmem:[#allocation27_spill] sm:$0xff] %v5991_v15  ;;  %1494 = vadd.xlane.f32.xlu0 %v1493_v38  ;;  %v1146_v38 = vsub.f32 %v5987_v20, %v5703_v40  ;;  %v1367_v56 = vmul.f32 %v1143_v32, %v1143_v32  ;;  %v1368_v59 = vmul.f32 %v1144_v39, %v1144_v39 }
  0x64   :  { %v1369_v58 = vmul.f32 %v1145_v37, %v1145_v37  ;;  %v1519_v54 = vadd.f32 %v1366_v46, %v1365_v1  ;;  %v1371_v34 = vmul.f32 %v1147_v43, %v1147_v43  ;;  %v1372_v29 = vmul.f32 %v1148_v18, %v1148_v18 }
  0x65   :  { %v1370_v4 = vmul.f32 %v1146_v38, %v1146_v38  ;;  %v950_v14 = vsel %vm11213_vm1, %v5686_v35, %v5977_v0  ;;  %v951_v17 = vsel %vm11454_vm3, %v5982_v28, %v5994_v16  ;;  %v953_v19 = vsel %vm11470_vm4, %v5686_v35, %v5977_v0 }
  0x66   :  { %v1524_v20 = vsel %vm11228_vm11, %v1369_v58, 0.0  ;;  %v1520_v36 = vadd.f32 %v1519_v54, %v1367_v56  ;;  %v1527_v32 = vsel %vm11228_vm11, %v1371_v34, 0.0  ;;  %v1529_v39 = vsel %vm11228_vm11, %v1372_v29, 0.0 }
  0x67   :  { %v1525_v2 = vsel %vm11228_vm11, %v1370_v4, 0.0  ;;  %v952_v38 = vsel %vm11212_vm5, %v950_v14, %v951_v17  ;;  %v954_v43 = vsel %vm11453_vm2, %v5982_v28, %v5994_v16  ;;  %v957_v1 = vsel %vm11454_vm3, %v5686_v35, %v5977_v0 }
  0x68   :  { %v1526_v37 = vadd.f32 %v1525_v2, %v1524_v20  ;;  %v958_v46 = vsel %vm11337_vm9, %v5982_v28, %v5994_v16  ;;  %v1521_v20 = vadd.f32 %v1520_v36, %v1368_v59  ;;  %v6035_v56 = vperm.slane %v952_v38, 0 }
  0x69   :  { %v6037_v58 = vperm.slane %v952_v38, 1  ;;  %v6039_v4 = vperm.slane %v952_v38, 2  ;;  %v6041_v54 = vperm.slane %v952_v38, 3  ;;  %v955_v34 = vsel %vm11211_vm8, %v953_v19, %v954_v43 }
  0x6a   :  { %v1528_v18 = vadd.f32 %v1527_v32, %v1526_v37  ;;  %11484 = vst [vmem:[#allocation28_spill] sm:$0xff] %v6035_v56  ;;  %v959_v29 = vsel %vm11192_vm10, %v957_v1, %v958_v46  ;;  %1522 = vadd.xlane.f32.xlu1 %v1521_v20  ;;  %v1149_v2 = vsub.f32 %v6035_v56, %v5634_v21  ;;  %v956_v3 = vrot.slane %v955_v34, 1 }
  0x6b   :  { %1517 = vadd.xlane.f32.xlu0 %v1516_v45  ;;  %11485 = vst [vmem:[#allocation29_spill] sm:$0xff] %v6037_v58  ;;  %v1150_v45 = vsub.f32 %v6037_v58, %v5639_v22  ;;  %v1153_v59 = vsub.f32 %v6035_v56, %v5686_v35  ;;  %v1151_v17 = vsub.f32 %v6039_v4, %v5649_v24 }
  0x6c   :  { %11486 = vst [vmem:[#allocation30_spill] sm:$0xff] %v6039_v4  ;;  %v1530_v14 = vadd.f32 %v1529_v39, %v1528_v18  ;;  %v1152_v36 = vsub.f32 %v6041_v54, %v5654_v25  ;;  %v1154_v19 = vsub.f32 %v6037_v58, %v5703_v40  ;;  %v1155_v37 = vsub.f32 %v6039_v4, %v5708_v41 }
  0x6d   :  { %11487 = vst [vmem:[#allocation31_spill] sm:$0xff] %v6041_v54  ;;  %v1373_v32 = vmul.f32 %v1149_v2, %v1149_v2  ;;  %v1374_v39 = vmul.f32 %v1150_v45, %v1150_v45  ;;  %v1156_v38 = vsub.f32 %v6041_v54, %v5713_v42  ;;  %v1377_v43 = vmul.f32 %v1153_v59, %v1153_v59 }
  0x6e   :  { %1531 = vadd.xlane.f32.xlu2 %v1530_v14  ;;  %v1375_v1 = vmul.f32 %v1151_v17, %v1151_v17  ;;  %v1376_v46 = vmul.f32 %v1152_v36, %v1152_v36  ;;  %v1378_v20 = vmul.f32 %v1154_v19, %v1154_v19  ;;  %v1379_v18 = vmul.f32 %v1155_v37, %v1155_v37 }
  0x6f   :  { %v1533_v56 = vadd.f32 %v1374_v39, %v1373_v32  ;;  %v1380_v15 = vmul.f32 %v1156_v38, %v1156_v38  ;;  %v1538_v44 = vsel %vm11228_vm11, %v1377_v43, 0.0  ;;  %v960_v14 = vrot.slane %v959_v29, 2 }
  0x70   :  { %v1539_v58 = vsel %vm11228_vm11, %v1378_v20, 0.0  ;;  %v1541_v4 = vsel %vm11228_vm11, %v1379_v18, 0.0  ;;  %v6065_v54 = vperm.slane %v956_v3, 0  ;;  %v6067_v59 = vperm.slane %v956_v3, 1 }
  0x71   :  { %v1534_v2 = vadd.f32 %v1533_v56, %v1375_v1  ;;  %v1540_v45 = vadd.f32 %v1539_v58, %v1538_v44  ;;  %v1543_v57 = vsel %vm11228_vm11, %v1380_v15, 0.0  ;;  %v6069_v17 = vperm.slane %v956_v3, 2 }
  0x72   :  { %11488 = vst [vmem:[#allocation32_spill] sm:$0xff] %v6065_v54  ;;  %v6071_v36 = vperm.slane %v956_v3, 3  ;;  %v6073_v19 = vperm.slane %v960_v14, 0  ;;  %v1157_v32 = vsub.f32 %v6065_v54, %v5634_v21  ;;  %v1161_v44 = vsub.f32 %v6065_v54, %v5686_v35 }
  0x73   :  { %11489 = vst [vmem:[#allocation33_spill] sm:$0xff] %v6067_v59  ;;  %v1535_v34 = vadd.f32 %v1534_v2, %v1376_v46  ;;  %v1542_v37 = vadd.f32 %v1541_v4, %v1540_v45  ;;  %v1158_v15 = vsub.f32 %v6067_v59, %v5639_v22  ;;  %v1159_v56 = vsub.f32 %v6069_v17, %v5649_v24 }
  0x74   :  { %11490 = vst [vmem:[#allocation34_spill] sm:$0xff] %v6069_v17  ;;  %v1160_v3 = vsub.f32 %v6071_v36, %v5654_v25  ;;  %v1162_v58 = vsub.f32 %v6067_v59, %v5703_v40  ;;  %v1381_v29 = vmul.f32 %v1157_v32, %v1157_v32  ;;  %v1163_v39 = vsub.f32 %v6069_v17, %v5708_v41  ;;  %v299_v17 = vld [vmem:[#allocation7 + $0x10] sm:$0xff] }
  0x75   :  { %11491 = vst [vmem:[#allocation35_spill] sm:$0xff] %v6071_v36  ;;  %1536 = vadd.xlane.f32.xlu0 %v1535_v34  ;;  %v1544_v4 = vadd.f32 %v1543_v57, %v1542_v37  ;;  %v1164_v38 = vsub.f32 %v6071_v36, %v5713_v42  ;;  %v1382_v43 = vmul.f32 %v1158_v15, %v1158_v15  ;;  %v6091_v54 = vperm.slane %v960_v14, 1  ;;  %v300_v36 = vld [vmem:[#allocation7 + $0x18] sm:$0xff] }
  0x76   :  { %11492 = vst [vmem:[#allocation36_spill] sm:$0xff] %v6073_v19  ;;  %v1383_v1 = vmul.f32 %v1159_v56, %v1159_v56  ;;  %v1384_v46 = vmul.f32 %v1160_v3, %v1160_v3  ;;  %v1385_v20 = vmul.f32 %v1161_v44, %v1161_v44  ;;  %v1386_v18 = vmul.f32 %v1162_v58, %v1162_v58 }
  0x77   :  { %1545 = vadd.xlane.f32.xlu1 %v1544_v4  ;;  %v1387_v2 = vmul.f32 %v1163_v39, %v1163_v39  ;;  %v1388_v45 = vmul.f32 %v1164_v38, %v1164_v38  ;;  %11493 = vst [vmem:[#allocation37_spill] sm:$0xff] %v6091_v54  ;;  %v1547_v59 = vadd.f32 %v1382_v43, %v1381_v29  ;;  %v6094_v34 = vperm.slane %v960_v14, 2 }
  0x78   :  { %v1552_v57 = vsel %vm11228_vm11, %v1385_v20, 0.0  ;;  %v6096_v37 = vperm.slane %v960_v14, 3  ;;  %v1553_v32 = vsel %vm11228_vm11, %v1386_v18, 0.0  ;;  %v1165_v44 = vsub.f32 %v6073_v19, %v5634_v21  ;;  %v6113_v18 = vld [vmem:[#allocation10 + $0x8] sm:$0x3f] }
  0x79   :  { %11494 = vst [vmem:[#allocation38_spill] sm:$0xff] %v6094_v34  ;;  %v1555_v15 = vsel %vm11228_vm11, %v1387_v2, 0.0  ;;  %v1557_v56 = vsel %vm11228_vm11, %v1388_v45, 0.0  ;;  %v1548_v3 = vadd.f32 %v1547_v59, %v1383_v1  ;;  %v1554_v58 = vadd.f32 %v1553_v32, %v1552_v57 }
  0x7a   :  { %11495 = vst [vmem:[#allocation39_spill] sm:$0xff] %v6096_v37  ;;  %v1166_v4 = vsub.f32 %v6091_v54, %v5639_v22  ;;  %v1167_v29 = vsub.f32 %v6094_v34, %v5649_v24  ;;  %v1168_v14 = vsub.f32 %v6096_v37, %v5654_v25  ;;  %v1389_v39 = vmul.f32 %v1165_v44, %v1165_v44 }
  0x7b   :  { %v1169_v38 = vsub.f32 %v6073_v19, %v5686_v35  ;;  %v1170_v43 = vsub.f32 %v6091_v54, %v5703_v40  ;;  %v1549_v20 = vadd.f32 %v1548_v3, %v1384_v46  ;;  %v1556_v21 = vadd.f32 %v1555_v15, %v1554_v58  ;;  %11496 = vst [vmem:[#allocation40_spill] sm:$0xff] %v6113_v18 }
  0x7c   :  { %v1390_v59 = vmul.f32 %v1166_v4, %v1166_v4  ;;  %v1391_v1 = vmul.f32 %v1167_v29, %v1167_v29  ;;  %v1171_v22 = vsub.f32 %v6094_v34, %v5708_v41  ;;  %v1172_v24 = vsub.f32 %v6096_v37, %v5713_v42  ;;  %338 = vst [vmem:[#allocation1 + $0x20] ss:$4 sm:$0xff] %v6113_v18  ;;  %v6124_v4 = vld [vmem:[#allocation10] sm:$0xff]  ;;  %v283_v34 = vld [vmem:[#allocation5] sm:$0xff] }
  0x7d   :  { %v1393_v25 = vmul.f32 %v1169_v38, %v1169_v38  ;;  %1550 = vadd.xlane.f32.xlu2 %v1549_v20  ;;  %v1558_v35 = vadd.f32 %v1557_v56, %v1556_v21  ;;  %v1392_v2 = vmul.f32 %v1168_v14, %v1168_v14  ;;  %v1394_v40 = vmul.f32 %v1170_v43, %v1170_v43  ;;  %v741_v38 = vld [vmem:[%s11160_s8 + $0x10] sm:$0x77] }
  0x7e   :  { %v1561_v45 = vadd.f32 %v1390_v59, %v1389_v39  ;;  %v1395_v46 = vmul.f32 %v1171_v22, %v1171_v22  ;;  %v1396_v57 = vmul.f32 %v1172_v24, %v1172_v24  ;;  %11497 = vst [vmem:[#allocation41_spill] sm:$0xff] %v6124_v4 }
  0x7f   :  { %v1566_v32 = vsel %vm11228_vm11, %v1393_v25, 0.0  ;;  %1559 = vadd.xlane.f32.xlu0 %v1558_v35  ;;  %v1567_v44 = vsel %vm11228_vm11, %v1394_v40, 0.0  ;;  %336 = vst [vmem:[#allocation1] ss:$4 sm:$0xff] %v6124_v4  ;;  %v739_v35 = vld [vmem:[%s11160_s8] sm:$0x77] }
  0x80   :  { %v1562_v15 = vadd.f32 %v1561_v45, %v1391_v1  ;;  %v1568_v41 = vadd.f32 %v1567_v44, %v1566_v32  ;;  %v1569_v3 = vsel %vm11228_vm11, %v1395_v46, 0.0  ;;  %v1571_v58 = vsel %vm11228_vm11, %v1396_v57, 0.0 }
  0x82   :  { %v1563_v42 = vadd.f32 %v1562_v15, %v1392_v2  ;;  %v1570_v56 = vadd.f32 %v1569_v3, %v1568_v41 }
  0x83   :  { %v343_v14 = vld.sshfl [vmem:[#allocation1 + $0x20] sm:$0xff pattern:$0x73625140]  ;;  %v344_v39 = vld.sshfl [vmem:[#allocation1 + $0x28] sm:$0xff pattern:$0x73625140] }
  0x84   :  { %1564 = vadd.xlane.f32.xlu1 %v1563_v42  ;;  %v1572_v29 = vadd.f32 %v1571_v58, %v1570_v56  ;;  %751 = vst [vmem:[#allocation1 + $0x20] ss:$2 sm:$0xff] %v741_v38  ;;  %v382_v43 = vsel %vm11212_vm5, %v343_v14, 0.0  ;;  %v389_v20 = vsel %vm11212_vm5, %v344_v39, 0.0  ;;  %v287_v42 = vld [vmem:[#allocation5 + $0x20] sm:$0xff]  ;;  %v301_v39 = vld [vmem:[#allocation7 + $0x20] sm:$0xff] }
  0x85   :  { %v383_v21 = vrot.slane %v382_v43, 4  ;;  %v390_v59 = vrot.slane %v389_v20, 4 }
  0x86   :  { %1573 = vadd.xlane.f32.xlu2 %v1572_v29  ;;  %v339_v24 = vld.sshfl [vmem:[#allocation1] sm:$0xff pattern:$0x73625140]  ;;  %v340_v25 = vld.sshfl [vmem:[#allocation1 + $0x8] sm:$0xff pattern:$0x73625140] }
  0x87   :  { %v384_v1 = vadd.f32 %v383_v21, %v382_v43  ;;  %v391_v22 = vadd.f32 %v390_v59, %v389_v20  ;;  %747 = vst [vmem:[#allocation1] ss:$2 sm:$0xff] %v739_v35  ;;  %v361_v40 = vsel %vm11212_vm5, %v340_v25, 0.0  ;;  %v354_v57 = vsel %vm11212_vm5, %v339_v24, 0.0  ;;  %v288_v29 = vld [vmem:[#allocation5 + $0x28] sm:$0xff]  ;;  %v302_v20 = vld [vmem:[#allocation7 + $0x28] sm:$0xff] }
  0x88   :  { %v342_v15 = vld.sshfl [vmem:[#allocation1 + $0x18] sm:$0xff pattern:$0x73625140]  ;;  %v362_v44 = vrot.slane %v361_v40, 4  ;;  %v355_v14 = vrot.slane %v354_v57, 4 }
  0x89   :  { %v385_v2 = vrot.slane %v384_v1, 2  ;;  %v392_v45 = vrot.slane %v391_v22, 2  ;;  %v6137_v41 = vpop.permute.xlu0 %136  ;;  %v375_v21 = vsel %vm11212_vm5, %v342_v15, 0.0  ;;  %v341_v24 = vld.sshfl [vmem:[#allocation1 + $0x10] sm:$0xff pattern:$0x73625140] }
  0x8a   :  { %v740_v25 = vld [vmem:[%s11160_s8 + $0x8] sm:$0x77]  ;;  %v376_v18 = vrot.slane %v375_v21, 4 }
  0x8b   :  { %v386_v46 = vadd.f32 %v385_v2, %v384_v1  ;;  %v393_v32 = vadd.f32 %v392_v45, %v391_v22  ;;  %v363_v22 = vadd.f32 %v362_v44, %v361_v40  ;;  %749 = vst [vmem:[#allocation1 + $0x10] ss:$2 sm:$0xff] %v740_v25 }
  0x8d   :  { %v387_v38 = vrot.slane %v386_v46, 1  ;;  %v394_v1 = vrot.slane %v393_v32, 1 }
  0x8f   :  { %v6145_v4 = vadd.f32 %v387_v38, %v386_v46  ;;  %v6147_v15 = vadd.f32 %v394_v1, %v393_v32  ;;  %v742_v32 = vld [vmem:[%s11160_s8 + $0x18] sm:$0x7]  ;;  %v297_v1 = vld [vmem:[#allocation7] sm:$0xff]  ;;  %s5484_s8 = smov 1  }
  0x91   :  { %11498 = vst [vmem:[#allocation42_spill] sm:$0xff] %v6145_v4 }
  0x92   :  { %11499 = vst [vmem:[#allocation43_spill] sm:$0xff] %v6147_v15 }
  0x9d   :  { %v240_v3 = vpop.f32.mrf.mxu0  ;;  %v260_v56 = vpop.f32.mrf.mxu1 }
  0x9e   :  { %v241_v58 = vadd.f32 %v240_v3, %v6137_v41  ;;  %v261_v43 = vadd.f32 %v260_v56, %v6137_v41  ;;  %v356_v3 = vadd.f32 %v355_v14, %v354_v57  ;;  %v345_v14 = vld.sshfl [vmem:[#allocation1 + $0x30] sm:$0xff pattern:$0x73625140] }
  0x9f   :  { %753 = vst [vmem:[#allocation1 + $0x30] ss:$2 sm:$0xff] %v742_v32 }
  0xa0   :  { %v294_v59 = vmul.f32 %v287_v42, %v241_v58  ;;  %v295_v35 = vmul.f32 %v288_v29, %v261_v43  ;;  %v364_v42 = vrot.slane %v363_v22, 2  ;;  %v357_v29 = vrot.slane %v356_v3, 2 }
  0xa1   :  { %v377_v43 = vadd.f32 %v376_v18, %v375_v21 }
  0xa2   :  { %v308_v2 = vadd.f32 %v301_v39, %v294_v59  ;;  %v160_v45 = vpop.f32.mrf.mxu2  ;;  %v309_v56 = vadd.f32 %v302_v20, %v295_v35  ;;  %v365_v20 = vadd.f32 %v364_v42, %v363_v22  ;;  %v220_v21 = vpop.f32.mrf.mxu3  ;;  %v358_v25 = vadd.f32 %v357_v29, %v356_v3  ;;  %v284_v22 = vld [vmem:[#allocation5 + $0x8] sm:$0xff]  ;;  %v286_v42 = vld [vmem:[#allocation5 + $0x18] sm:$0xff] }
  0xa3   :  { %v161_v44 = vadd.f32 %v160_v45, %v6137_v41  ;;  %v1434_v46 = vpop.xlane.xlu2 %1433  ;;  %v378_v35 = vrot.slane %v377_v43, 2 }
  0xa4   :  { %vm315_vm0 = vcmp.ge.f32.partialorder %v308_v2, 0.0  ;;  %v322_v37 = vmul.f32 0.2, %v308_v2  ;;  %vm316_vm10 = vcmp.ge.f32.partialorder %v309_v56, 0.0  ;;  %v323_v40 = vmul.f32 0.2, %v309_v56 }
  0xa5   :  { %v6159_v59 = vadd.f32 1e-09, %v1434_v46  ;;  %v290_v18 = vmul.f32 %v283_v34, %v161_v44  ;;  %v396_v44 = vsel %vm11212_vm5, %v345_v14, 0.0  ;;  %v6176_v29 = vadd.f32 %v378_v35, %v377_v43 }
  0xa6   :  { %v329_v58 = vsel %vm315_vm0, %v308_v2, %v322_v37  ;;  %v330_v57 = vsel %vm316_vm10, %v309_v56, %v323_v40  ;;  %v368_v37 = vsel %vm11212_vm5, %v341_v24, 0.0  ;;  %v221_v56 = vadd.f32 %v220_v21, %v6137_v41 }
  0xa7   :  { %v6151_v39 = vmul.f32 %v6145_v4, %v329_v58  ;;  %v6157_v38 = vmul.f32 %v6147_v15, %v330_v57  ;;  %5061 = vrsqrt.f32 %v6159_v59  ;;  %v369_v45 = vrot.slane %v368_v37, 4  ;;  %v298_v57 = vld [vmem:[#allocation7 + $0x8] sm:$0xff] }
  0xa8   :  { %v366_v24 = vrot.slane %v365_v20, 1  ;;  %v304_v3 = vadd.f32 %v297_v1, %v290_v18  ;;  %v359_v58 = vrot.slane %v358_v25, 1  ;;  %v11206_v21 = vlaneseq }
  0xa9   :  { %11500 = vst [vmem:[#allocation44_spill] sm:$0xff] %v6151_v39  ;;  %v6164_v2 = vpack.i.bf16 %v6157_v38, %v6151_v39  ;;  %v370_v15 = vadd.f32 %v369_v45, %v368_v37  ;;  %v293_v18 = vmul.f32 %v286_v42, %v221_v56  ;;  %v397_v19 = vrot.slane %v396_v44, 4 }
  0xaa   :  { %11501 = vst [vmem:[#allocation45_spill] sm:$0xff] %v6157_v38  ;;  %v1439_v46 = vpop.xlane.xlu1 %1438  ;;  %v6180_v1 = vadd.f32 %v366_v24, %v365_v20  ;;  %vm311_vm10 = vcmp.ge.f32.partialorder %v304_v3, 0.0  ;;  %v318_v14 = vmul.f32 0.2, %v304_v3  ;;  %v6187_v56 = vadd.f32 %v359_v58, %v358_v25 }
  0xab   :  { %4957 = vrot.lane.b32.xlu0 %v6164_v2, %s5484_s8  ;;  %4952 = vrot.lane.b32.xlu2 %v6164_v2, %s5485_s16  ;;  %v180_v34 = vpop.f32.mrf.mxu2  ;;  %v1467_v4 = vpop.xlane.xlu2 %1466  ;;  %v6178_v38 = vadd.f32 1e-09, %v1439_v46  ;;  %v371_v45 = vrot.slane %v370_v15, 2  ;;  %v307_v20 = vadd.f32 %v300_v36, %v293_v18  ;;  %v398_v36 = vadd.f32 %v397_v19, %v396_v44  ;;  %v285_v46 = vld [vmem:[#allocation5 + $0x10] sm:$0xff] }
  0xac   :  { %4942 = vrot.lane.b32.xlu1 %v6164_v2, %s5486_s17  ;;  %v181_v40 = vadd.f32 %v180_v34, %v6137_v41  ;;  %11502 = vst [vmem:[#allocation46_spill] sm:$0xff] %v6180_v1  ;;  %v6182_v54 = vadd.f32 1e-09, %v1467_v4  ;;  %v325_v24 = vsel %vm311_vm10, %v304_v3, %v318_v14  ;;  %v380_v18 = vrot.slane %v6176_v29, 1 }
  0xad   :  { %v5062_v34 = vpop.eup %5061  ;;  %5063 = vrsqrt.f32 %v6178_v38  ;;  %11503 = vst [vmem:[#allocation47_spill] sm:$0xff] %v6187_v56  ;;  %v6204_v3 = vand.u32 127, %v11206_v21  ;;  %v372_v14 = vadd.f32 %v371_v45, %v370_v15  ;;  %vm314_vm10 = vcmp.ge.f32.partialorder %v307_v20, 0.0 }
  0xae   :  { %v291_v32 = vmul.f32 %v284_v22, %v181_v40  ;;  %v1658_v35 = vmul.f32 %v5062_v34, %v6159_v59  ;;  %5065 = vrsqrt.f32 %v6182_v54  ;;  %v6197_v40 = vpop.permute.xlu0 %592  ;;  %vm1676_vm5 = vcmp.eq.f32.partialorder %v6178_v38, inf }
  0xaf   :  { %11504 = vst [vmem:[#allocation48_spill] sm:$0xff] %v6197_v40  ;;  %vm1678_vm1 = vcmp.eq.f32.partialorder %v6178_v38, 0.0  ;;  %v1679_v11 = vand.u32 2147483648, %v6178_v38  ;;  %vm1726_vm7 = vcmp.eq.f32.partialorder %v6182_v54, 0.0 }
  0xb0   :  { %v305_v43 = vadd.f32 %v298_v57, %v291_v32  ;;  %v1659_v4 = vmul.f32 %v5062_v34, %v1658_v35  ;;  %11506 = vst [vmem:[#allocation50_spill] sm:$0xff] %v6204_v3 }
  0xb2   :  { %vm312_vm0 = vcmp.ge.f32.partialorder %v305_v43, 0.0  ;;  %v319_v37 = vmul.f32 0.2, %v305_v43  ;;  %v1660_v57 = vmul.f32 0.5, %v1659_v4 }
  0xb3   :  { %4972 = vrot.lane.b32.xlu0 %v6164_v2, %s5487_s18  ;;  %4967 = vrot.lane.b32.xlu2 %v6164_v2, %s5488_s19  ;;  %v200_v22 = vpop.f32.mrf.mxu2  ;;  %v5064_v32 = vpop.eup %5063 }
  0xb4   :  { %v326_v42 = vsel %vm312_vm0, %v305_v43, %v319_v37  ;;  %4947 = vrot.lane.b32.xlu1 %v6164_v2, %s5489_s20  ;;  %v201_v25 = vadd.f32 %v200_v22, %v6137_v41  ;;  %v1448_v43 = vpop.xlane.xlu2 %1447  ;;  %v6206_v35 = vpop.eup %5065  ;;  %v6209_v37 = vmul.f32 %v6187_v56, %v325_v24  ;;  %v1661_v19 = vsub.f32 1.5, %v1660_v57 }
  0xb5   :  { %v6200_v58 = vmul.f32 %v6180_v1, %v326_v42  ;;  %v1670_v44 = vmul.f32 %v5064_v32, %v6178_v38  ;;  %v321_v22 = vmul.f32 0.2, %v307_v20  ;;  %v399_v42 = vrot.slane %v398_v36, 2 }
  0xb6   :  { %v292_v4 = vmul.f32 %v285_v46, %v201_v25  ;;  %v6212_v1 = vadd.f32 1e-09, %v1448_v43  ;;  %v1462_v40 = vpop.xlane.xlu1 %1461  ;;  %v373_v24 = vrot.slane %v372_v14, 1  ;;  %v1718_v57 = vmul.f32 %v6206_v35, %v6182_v54 }
  0xb7   :  { %11505 = vst [vmem:[#allocation49_spill] sm:$0xff] %v6200_v58  ;;  %v6216_v21 = vpack.i.bf16 %v6200_v58, %v6209_v37  ;;  %v1671_v15 = vmul.f32 %v5064_v32, %v1670_v44  ;;  %v6218_v45 = vadd.f32 1e-09, %v1462_v40  ;;  %v6224_v25 = vadd.f32 %v380_v18, %v6176_v29 }
  0xb8   :  { %5067 = vrsqrt.f32 %v6212_v1  ;;  %v1662_v46 = vmul.f32 %v5062_v34, %v1661_v19  ;;  %v328_v40 = vsel %vm314_vm10, %v307_v20, %v321_v22  ;;  %v400_v44 = vadd.f32 %v399_v42, %v398_v36 }
  0xb9   :  { %11507 = vst [vmem:[#allocation51_spill] sm:$0xff] %v6224_v25  ;;  %v1672_v43 = vmul.f32 0.5, %v1671_v15  ;;  %v6234_v56 = vadd.s32 4294967288, %v6204_v3  ;;  %v306_v29 = vadd.f32 %v299_v17, %v292_v4  ;;  %5069 = vrsqrt.f32 %v6218_v45 }
  0xba   :  { %vm1664_vm0 = vcmp.eq.f32.partialorder %v6159_v59, inf  ;;  %v6238_v19 = vadd.f32 %v373_v24, %v372_v14  ;;  %v1719_v15 = vmul.f32 %v6206_v35, %v1718_v57  ;;  %v6244_v22 = vmul.f32 %v6224_v25, %v328_v40 }
  0xbb   :  { %4987 = vrot.lane.b32.xlu2 %v6216_v21, %s5489_s20  ;;  %4982 = vrot.lane.b32.xlu0 %v6216_v21, %s5486_s17  ;;  %11508 = vst [vmem:[#allocation52_spill] sm:$0xff] %v6234_v56  ;;  %v1673_v18 = vsub.f32 1.5, %v1672_v43  ;;  %v1663_v36 = vmul.f32 %v1662_v46, %v6159_v59  ;;  %vm1666_vm10 = vcmp.eq.f32.partialorder %v6159_v59, 0.0  ;;  %v1667_v17 = vand.u32 2147483648, %v6159_v59  ;;  %v280_v42 = vpop.f32.mrf.mxu2 }
  0xbc   :  { %4962 = vrot.lane.b32.xlu1 %v6164_v2, %s5490_s21  ;;  %11509 = vst [vmem:[#allocation53_spill] sm:$0xff] %v6238_v19  ;;  %v401_v43 = vrot.slane %v400_v44, 1  ;;  %v320_v14 = vmul.f32 0.2, %v306_v29  ;;  %vm313_vm8 = vcmp.ge.f32.partialorder %v306_v29, 0.0  ;;  %v1720_v57 = vmul.f32 0.5, %v1719_v15 }
  0xbd   :  { %11510 = vst [vmem:[#allocation54_spill] sm:$0xff] %v6244_v22  ;;  %v1674_v39 = vmul.f32 %v5064_v32, %v1673_v18  ;;  %v1665_v40 = vsel %vm1664_vm0, %v6159_v59, %v1663_v36  ;;  %v281_v32 = vadd.f32 %v280_v42, %v6137_v41  ;;  %v289_v15 = vld [vmem:[#allocation5 + $0x30] sm:$0xff]  ;;  %vm1688_vm0 = vcmp.eq.f32.partialorder %v6212_v1, inf }
  0xbe   :  { %v1425_v34 = vpop.xlane.xlu0 %1424  ;;  %v5068_v4 = vpop.eup %5067  ;;  %v6262_v25 = vadd.f32 %v401_v43, %v400_v44  ;;  %v327_v42 = vsel %vm313_vm8, %v306_v29, %v320_v14  ;;  %vm1690_vm15 = vcmp.eq.f32.partialorder %v6212_v1, 0.0  ;;  %vm11288_vm8 = vcmask 130112  }
  0xbf   :  { %v6241_v20 = vadd.f32 1e-09, %v1425_v34  ;;  %v1682_v24 = vmul.f32 %v5068_v4, %v6212_v1  ;;  %v5070_v46 = vpop.eup %5069  ;;  %v1675_v26 = vmul.f32 %v1674_v39, %v6178_v38  ;;  %v6274_v39 = vsel %vm1666_vm10, %v1667_v17, %v1665_v40  ;;  %v303_v17 = vld [vmem:[#allocation7 + $0x30] sm:$0xff] }
  0xc0   :  { %11511 = vst [vmem:[#allocation55_spill] sm:$0xff] %v6262_v25  ;;  %v1706_v41 = vmul.f32 %v5070_v46, %v6218_v45  ;;  %v1481_v36 = vpop.xlane.xlu1 %1480  ;;  %v1721_v34 = vsub.f32 1.5, %v1720_v57  ;;  %vm1714_vm10 = vcmp.eq.f32.partialorder %v6218_v45, 0.0 }
  0xc1   :  { %5071 = vrsqrt.f32 %v6241_v20  ;;  %v1683_v18 = vmul.f32 %v5068_v4, %v1682_v24  ;;  %v6279_v29 = vadd.f32 1e-09, %v1481_v36  ;;  %v1677_v14 = vsel %vm1676_vm5, %v6178_v38, %v1675_v26 }
  0xc2   :  { %v1707_v10 = vmul.f32 %v5070_v46, %v1706_v41  ;;  %v2683_v36 = vperm.slane %v6274_v39, %v6234_v56  ;;  %vm1712_vm5 = vcmp.eq.f32.partialorder %v6218_v45, inf  ;;  %vm1652_vm11 = vcmp.eq.f32.partialorder %v6241_v20, inf }
  0xc3   :  { %5002 = vrot.lane.b32.xlu2 %v6216_v21, %s5490_s21  ;;  %4992 = vrot.lane.b32.xlu0 %v6216_v21, %s5485_s16  ;;  %v1684_v24 = vmul.f32 0.5, %v1683_v18  ;;  %v1490_v59 = vpop.xlane.xlu2 %1489 }
  0xc4   :  { %4977 = vrot.lane.b32.xlu1 %v6164_v2, %s5491_s22  ;;  %v296_v2 = vmul.f32 %v289_v15, %v281_v32  ;;  %v1708_v18 = vmul.f32 0.5, %v1707_v10  ;;  %v6287_v32 = vmul.f32 %v6238_v19, %v327_v42  ;;  %v1691_v15 = vand.u32 2147483648, %v6212_v1 }
  0xc5   :  { %v1685_v7 = vsub.f32 1.5, %v1684_v24  ;;  %v1680_v42 = vsel %vm1678_vm1, %v1679_v11, %v1677_v14  ;;  %vm1654_vm1 = vcmp.eq.f32.partialorder %v6241_v20, 0.0 }
  0xc6   :  { %v1453_v44 = vpop.xlane.xlu0 %1452  ;;  %11512 = vst [vmem:[#allocation56_spill] sm:$0xff] %v6287_v32  ;;  %v1709_v41 = vsub.f32 1.5, %v1708_v18 }
  0xc7   :  { %v5072_v43 = vpop.eup %5071  ;;  %v6276_v9 = vadd.f32 1e-09, %v1453_v44  ;;  %v1686_v57 = vmul.f32 %v5068_v4, %v1685_v7  ;;  %v6297_v7 = vadd.f32 1e-09, %v1490_v59  ;;  %v6300_v4 = vadd.f32 %v303_v17, %v296_v2 }
  0xc8   :  { %v1646_v8 = vmul.f32 %v5072_v43, %v6241_v20  ;;  %v1710_v39 = vmul.f32 %v5070_v46, %v1709_v41  ;;  %v2686_v2 = vperm.slane %v1680_v42, %v6204_v3  ;;  %v1655_v46 = vand.u32 2147483648, %v6241_v20 }
  0xc9   :  { %5073 = vrsqrt.f32 %v6276_v9  ;;  %v1687_v10 = vmul.f32 %v1686_v57, %v6212_v1  ;;  %vm1700_vm14 = vcmp.eq.f32.partialorder %v6276_v9, inf  ;;  %vm1702_vm6 = vcmp.eq.f32.partialorder %v6276_v9, 0.0 }
  0xca   :  { %v1647_v40 = vmul.f32 %v5072_v43, %v1646_v8  ;;  %5075 = vrsqrt.f32 %v6279_v29  ;;  %v1722_v8 = vmul.f32 %v6206_v35, %v1721_v34 }
  0xcb   :  { %5017 = vrot.lane.b32.xlu2 %v6216_v21, %s5491_s22  ;;  %5007 = vrot.lane.b32.xlu0 %v6216_v21, %s5488_s19  ;;  %v1689_v44 = vsel %vm1688_vm0, %v6212_v1, %v1687_v10  ;;  %5077 = vrsqrt.f32 %v6297_v7  ;;  %vm1724_vm0 = vcmp.eq.f32.partialorder %v6182_v54, inf  ;;  %v6326_v1 = vpack.i.bf16 %v6244_v22, %v6287_v32 }
  0xcc   :  { %v1648_v26 = vmul.f32 0.5, %v1647_v40  ;;  %4997 = vrot.lane.b32.xlu1 %v6216_v21, %s5484_s8  ;;  %v1692_v11 = vsel %vm1690_vm15, %v1691_v15, %v1689_v44  ;;  %v1723_v41 = vmul.f32 %v1722_v8, %v6182_v54  ;;  %vm317_vm15 = vcmp.ge.f32.partialorder %v6300_v4, 0.0 }
  0xcd   :  { %v2687_v57 = vperm.slane %v1692_v11, %v6234_v56  ;;  %v1715_v44 = vand.u32 2147483648, %v6218_v45 }
  0xce   :  { %v1649_v24 = vsub.f32 1.5, %v1648_v26  ;;  %v1476_v18 = vpop.xlane.xlu0 %1475  ;;  %v324_v26 = vmul.f32 0.2, %v6300_v4 }
  0xcf   :  { %v5074_v35 = vpop.eup %5073  ;;  %v6316_v38 = vadd.f32 1e-09, %v1476_v18 }
  0xd0   :  { %v5076_v34 = vpop.eup %5075  ;;  %v1650_v14 = vmul.f32 %v5072_v43, %v1649_v24  ;;  %v1694_v59 = vmul.f32 %v5074_v35, %v6276_v9  ;;  %v1711_v43 = vmul.f32 %v1710_v39, %v6218_v45 }
  0xd1   :  { %v1742_v17 = vmul.f32 %v5076_v34, %v6279_v29  ;;  %5079 = vrsqrt.f32 %v6316_v38  ;;  %v5078_v42 = vpop.eup %5077 }
  0xd2   :  { %v1651_v40 = vmul.f32 %v1650_v14, %v6241_v20  ;;  %v1695_v15 = vmul.f32 %v5074_v35, %v1694_v59  ;;  %v1754_v11 = vmul.f32 %v5078_v42, %v6297_v7  ;;  %v2688_v59 = vsel %vm11288_vm8, %v2687_v57, %v2686_v2 }
  0xd3   :  { %v1743_v10 = vmul.f32 %v5076_v34, %v1742_v17  ;;  %5037 = vrot.lane.b32.xlu2 %v6326_v1, %s5484_s8  ;;  %5027 = vrot.lane.b32.xlu0 %v6326_v1, %s5489_s20  ;;  %v1713_v17 = vsel %vm1712_vm5, %v6218_v45, %v1711_v43  ;;  %vm1750_vm5 = vcmp.eq.f32.partialorder %v6279_v29, 0.0 }
  0xd4   :  { %v1653_v24 = vsel %vm1652_vm11, %v6241_v20, %v1651_v40  ;;  %v1696_v18 = vmul.f32 0.5, %v1695_v15  ;;  %5012 = vrot.lane.b32.xlu1 %v6216_v21, %s5487_s18  ;;  %v1703_v20 = vand.u32 2147483648, %v6276_v9  ;;  %vm1748_vm11 = vcmp.eq.f32.partialorder %v6279_v29, inf }
  0xd5   :  { %v1656_v8 = vsel %vm1654_vm1, %v1655_v46, %v1653_v24  ;;  %v1744_v39 = vmul.f32 0.5, %v1743_v10  ;;  %v1755_v10 = vmul.f32 %v5078_v42, %v1754_v11  ;;  %v1751_v21 = vand.u32 2147483648, %v6279_v29 }
  0xd6   :  { %v2681_v14 = vperm.slane %v1656_v8, %v6204_v3  ;;  %v1697_v40 = vsub.f32 1.5, %v1696_v18  ;;  %v1716_v57 = vsel %vm1714_vm10, %v1715_v44, %v1713_v17  ;;  %vm1760_vm10 = vcmp.eq.f32.partialorder %v6297_v7, inf }
  0xd7   :  { %v5080_v15 = vpop.eup %5079  ;;  %v1745_v46 = vsub.f32 1.5, %v1744_v39  ;;  %v1756_v18 = vmul.f32 0.5, %v1755_v10  ;;  %v2690_v11 = vperm.slane %v1716_v57, %v6234_v56  ;;  %v1763_v17 = vand.u32 2147483648, %v6297_v7 }
  0xd8   :  { %v2685_v24 = vsel %vm11288_vm8, %v2683_v36, %v2681_v14  ;;  %v1698_v19 = vmul.f32 %v5074_v35, %v1697_v40  ;;  %v1730_v8 = vmul.f32 %v5080_v15, %v6316_v38  ;;  %v1725_v35 = vsel %vm1724_vm0, %v6182_v54, %v1723_v41 }
  0xd9   :  { %v2725_v2 = vsel %vm11470_vm4, %v2688_v59, %v2685_v24  ;;  %v1746_v43 = vmul.f32 %v5076_v34, %v1745_v46  ;;  %v1757_v36 = vsub.f32 1.5, %v1756_v18  ;;  %v6398_v46 = vpop.xlane.xlu2 %1508  ;;  %vm11532_vm1 = vcmask 1045509  }
  0xda   :  { %v1699_v6 = vmul.f32 %v1698_v19, %v6276_v9  ;;  %v1731_v39 = vmul.f32 %v5080_v15, %v1730_v8  ;;  %11514 = vst [vmem:[#allocation57_spill] sm:$0xff] %v6398_v46  ;;  %vm11534_vm0 = vcmask 1044483  }
  0xdb   :  { %v1747_v22 = vmul.f32 %v1746_v43, %v6279_v29  ;;  %5052 = vrot.lane.b32.xlu2 %v6326_v1, %s5487_s18  ;;  %5042 = vrot.lane.b32.xlu0 %v6326_v1, %s5490_s21  ;;  %v1758_v44 = vmul.f32 %v5078_v42, %v1757_v36 }
  0xdc   :  { %v1701_v45 = vsel %vm1700_vm14, %v6276_v9, %v1699_v6  ;;  %v1732_v34 = vmul.f32 0.5, %v1731_v39  ;;  %5022 = vrot.lane.b32.xlu1 %v6326_v1, %s5486_s17  ;;  %v331_v9 = vsel %vm317_vm15, %v6300_v4, %v324_v26  ;;  %vm1736_vm14 = vcmp.eq.f32.partialorder %v6316_v38, inf  ;;  %vm11539_vm15 = vmmov %vm11532_vm1 }
  0xdd   :  { %v1704_v19 = vsel %vm1702_vm6, %v1703_v20, %v1701_v45  ;;  %v1749_v41 = vsel %vm1748_vm11, %v6279_v29, %v1747_v22  ;;  %v1759_v40 = vmul.f32 %v1758_v44, %v6297_v7  ;;  %vm1762_vm6 = vcmp.eq.f32.partialorder %v6297_v7, 0.0 }
  0xde   :  { %v2689_v6 = vperm.slane %v1704_v19, %v6204_v3  ;;  %v1752_v14 = vsel %vm1750_vm5, %v1751_v21, %v1749_v41  ;;  %v1733_v59 = vsub.f32 1.5, %v1732_v34  ;;  %v11513_v22 = vand.u32 2147483648, %v6182_v54 }
  0xdf   :  { %v2695_v4 = vperm.slane %v1752_v14, %v6204_v3  ;;  %v1739_v26 = vand.u32 2147483648, %v6316_v38  ;;  %v1761_v24 = vsel %vm1760_vm10, %v6297_v7, %v1759_v40  ;;  %v6409_v54 = vmul.f32 %v6262_v25, %v331_v9 }
  0xe0   :  { %v1728_v29 = vsel %vm1726_vm7, %v11513_v22, %v1725_v35  ;;  %v2691_v42 = vsel %vm11288_vm8, %v2690_v11, %v2689_v6  ;;  %v1734_v20 = vmul.f32 %v5080_v15, %v1733_v59  ;;  %vm1738_vm7 = vcmp.eq.f32.partialorder %v6316_v38, 0.0  ;;  %v6443_v35 = vpop.xlane.xlu0 %1494  ;;  %v6445_v11 = vpop.xlane.xlu1 %1503  ;;  %v6478_v22 = vld [vmem:[%s11161_s9] sm:$0xff] }
  0xe1   :  { %v6401_v10 = vsel %vm11454_vm3, %v2691_v42, %v2725_v2  ;;  %11516 = vst [vmem:[#allocation59_spill] sm:$0xff] %v6409_v54  ;;  %v1764_v21 = vsel %vm1762_vm6, %v1763_v17, %v1761_v24  ;;  %v2692_v2 = vperm.slane %v1728_v29, %v6204_v3  ;;  %v6427_v36 = vpop.xlane.xlu2 %1531  ;;  %v966_v34 = vsel %vm11293_vm12, %v5982_v28, %v5994_v16  ;;  %v6485_v42 = vld [vmem:[%s11161_s9 + $0x8] sm:$0xff] }
  0xe2   :  { %11515 = vst [vmem:[#allocation58_spill] sm:$0xff] %v6401_v10  ;;  %v1735_v15 = vmul.f32 %v1734_v20, %v6316_v38  ;;  %v2696_v8 = vperm.slane %v1764_v21, %v6234_v56  ;;  %vm11540_vm11 = vcmask 1046528   ;;  %vm11542_vm5 = vcmask 1045504  }
  0xe3   :  { %422 = vrot.lane.b32.xlu2 %v6409_v54, %s5486_s17  ;;  %11519 = vst [vmem:[#allocation62_spill] sm:$0xff] %v6427_v36  ;;  %5057 = vrot.lane.b32.xlu0 %v6326_v1, %s5491_s22  ;;  %v970_v46 = vsel %vm11540_vm11, %v5994_v16, %v5982_v28  ;;  %vm11543_vm10 = vmmov %vm11542_vm5 }
  0xe4   :  { %v1737_v57 = vsel %vm1736_vm14, %v6316_v38, %v1735_v15  ;;  %v6419_v7 = vsel %vm11288_vm8, %v2696_v8, %v2695_v4  ;;  %5032 = vrot.lane.b32.xlu1 %v6326_v1, %s5485_s16  ;;  %11521 = vst [vmem:[#allocation64_spill] sm:$0xff] %v6443_v35  ;;  %v6499_v15 = vld [vmem:[%s11161_s9 + $0x10] sm:$0xff]  ;;  %vm11545_vm6 = vmmov %vm11542_vm5 }
  0xe5   :  { %v1740_v43 = vsel %vm1738_vm7, %v1739_v26, %v1737_v57  ;;  %11517 = vst [vmem:[#allocation60_spill] sm:$0xff] %v6419_v7  ;;  %v962_v57 = vsel %vm11532_vm1, %v5982_v28, %v5994_v16  ;;  %vm11546_vm14 = vmmov %vm11542_vm5  ;;  %vm11547_vm7 = vcmask 1046533  }
  0xe6   :  { %v2693_v18 = vperm.slane %v1740_v43, %v6234_v56  ;;  %11522 = vst [vmem:[#allocation65_spill] sm:$0xff] %v6445_v11  ;;  %vm11555_vm1 = vmmov %vm11542_vm5 }
  0xe8   :  { %v6425_v39 = vsel %vm11288_vm8, %v2693_v18, %v2692_v2  ;;  %v6463_v44 = vpop.xlane.xlu0 %1517  ;;  %v6465_v14 = vpop.xlane.xlu1 %1522 }
  0xe9   :  { %11518 = vst [vmem:[#allocation61_spill] sm:$0xff] %v6425_v39 }
  0xea   :  { %11524 = vst [vmem:[#allocation67_spill] sm:$0xff] %v6463_v44 }
  0xeb   :  { %446 = vrot.lane.b32.xlu2 %v6409_v54, %s5489_s20  ;;  %468 = vrot.lane.b32.xlu0 %v6409_v54, %s5485_s16  ;;  %11525 = vst [vmem:[#allocation68_spill] sm:$0xff] %v6465_v14  ;;  %s5494_s20 = smov 128  }
  0xec   :  { %5047 = vrot.lane.b32.xlu1 %v6326_v1, %s5488_s19  ;;  %v6452_v1 = vld [vmem:[%s11161_s9 + $0x20] sm:$0x3f] }
  0xed   :  { %v965_v45 = vsel %vm11337_vm9, %v6452_v1, %v5977_v0  ;;  %v961_v4 = vsel %vm11453_vm2, %v6452_v1, %v5977_v0 }
  0xee   :  { %v967_v41 = vsel %vm11292_vm13, %v965_v45, %v966_v34  ;;  %v963_v18 = vsel %vm11534_vm0, %v961_v4, %v962_v57  ;;  %vm11556_vm0 = vmmov %vm11555_vm1 }
  0xef   :  { %v968_v6 = vrot.slane %v967_v41, 4  ;;  %v964_v34 = vrot.slane %v963_v18, 3  ;;  %v6514_v41 = vld [vmem:[%s11161_s9 + $0x18] sm:$0xff]  ;;  %v6531_v18 = vld [vmem:[%s11161_s9 + $0x28] sm:$0x3f]  ;;  %vm11558_vm11 = vmmov %vm11556_vm0 }
  0xf0   :  { %v6437_v38 = vpop.xlane.xlu2 %1550  ;;  %v6494_v24 = vpop.xlane.xlu0 %1536  ;;  %vm11599_vm8 = vmmov %vm11556_vm0 }
  0xf1   :  { %11520 = vst [vmem:[#allocation63_spill] sm:$0xff] %v6437_v38  ;;  %v6467_v59 = vperm.slane %v968_v6, 0  ;;  %v6469_v17 = vperm.slane %v968_v6, 1  ;;  %v6473_v40 = vperm.slane %v968_v6, 2  ;;  %v6492_v26 = vperm.slane %v968_v6, 3  ;;  %v6506_v43 = vpop.xlane.xlu1 %1545  ;;  %vm11618_vm13 = vmmov %vm11556_vm0 }
  0xf2   :  { %11531 = vst [vmem:[#allocation74_spill] sm:$0xff] %v6494_v24  ;;  %v6518_v7 = vperm.slane %v964_v34, 0  ;;  %v6520_v39 = vperm.slane %v964_v34, 1  ;;  %v6522_v10 = vperm.slane %v964_v34, 2  ;;  %v6524_v4 = vperm.slane %v964_v34, 3  ;;  %vm11628_vm12 = vmmov %vm11556_vm0 }
  0xf3   :  { %512 = vrot.lane.b32.xlu2 %v6409_v54, %s5490_s21  ;;  %534 = vrot.lane.b32.xlu0 %v6409_v54, %s5488_s19  ;;  %11526 = vst [vmem:[#allocation69_spill] sm:$0xff] %v6467_v59  ;;  %v1181_v29 = vsub.f32 %v6467_v59, %v6478_v22  ;;  %v1182_v20 = vsub.f32 %v6469_v17, %v6485_v42  ;;  %v6540_v34 = vld [vmem:[%s11161_s9 + $0x30] sm:$0x3f]  ;;  %s4877_s19 = sshll.u32 %s11162_s10, 4  ;;  %s5495_s21 = smov 8   ;;  %s4878_s19 = int_to_ptr.hbm [resolvable:$true] %s4877_s19 }
  0xf4   :  { %490 = vrot.lane.b32.xlu1 %v6409_v54, %s5484_s8  ;;  %11527 = vst [vmem:[#allocation70_spill] sm:$0xff] %v6469_v17  ;;  %v1183_v21 = vsub.f32 %v6473_v40, %v6499_v15  ;;  %v1184_v6 = vsub.f32 %v6492_v26, %v6514_v41  ;;  %v1177_v57 = vsub.f32 %v6518_v7, %v6452_v1  ;;  %s5493_s8 = smov [#allocation11]  }
  0xf5   :  { %11529 = vst [vmem:[#allocation72_spill] sm:$0xff] %v6473_v40  ;;  %v1405_v8 = vmul.f32 %v1181_v29, %v1181_v29  ;;  %v1406_v2 = vmul.f32 %v1182_v20, %v1182_v20  ;;  %v1179_v25 = vsub.f32 %v6522_v10, %v6540_v34  ;;  %v1175_v44 = vsub.f32 %v6522_v10, %v6499_v15  ;;  %s4875_s16 = sshll.u32 %s5493_s8, 4  ;;  %s4876_s16 = int_to_ptr.vmem [resolvable:$true] %s4875_s16 }
  0xf6   :  { %11530 = vst [vmem:[#allocation73_spill] sm:$0xff] %v6492_v26  ;;  %v1407_v29 = vmul.f32 %v1183_v21, %v1183_v21  ;;  %v1178_v21 = vsub.f32 %v6520_v39, %v6531_v18  ;;  %v1401_v24 = vmul.f32 %v1177_v57, %v1177_v57 }
  0xf7   :  { %11533 = vst [vmem:[#allocation75_spill] sm:$0xff] %v6506_v43  ;;  %v1589_v20 = vadd.f32 %v1406_v2, %v1405_v8  ;;  %v1173_v8 = vsub.f32 %v6518_v7, %v6478_v22  ;;  %v1408_v2 = vmul.f32 %v1184_v6, %v1184_v6  ;;  %v969_v6 = vsel %vm11539_vm15, %v6452_v1, %v5977_v0  ;;  %vm11557_vm15 = vmmov %vm11556_vm0 }
  0xf8   :  { %11535 = vst [vmem:[#allocation76_spill] sm:$0xff] %v6518_v7  ;;  %v1402_v56 = vmul.f32 %v1178_v21, %v1178_v21  ;;  %v1174_v7 = vsub.f32 %v6520_v39, %v6485_v42  ;;  %v1403_v36 = vmul.f32 %v1179_v25, %v1179_v25  ;;  %v6561_v35 = vpop.xlane.xlu0 %1559  ;;  %v1580_v0 = vsel %vm11542_vm5, %v1401_v24, 0.0  ;;  %vm11559_vm5 = vmmov %vm11556_vm0 }
  0xf9   :  { %v6460_v19 = vpop.xlane.xlu2 %1573  ;;  %11536 = vst [vmem:[#allocation77_spill] sm:$0xff] %v6520_v39  ;;  %v1590_v43 = vadd.f32 %v1589_v20, %v1407_v29  ;;  %v1176_v20 = vsub.f32 %v6524_v4, %v6514_v41  ;;  %v1397_v25 = vmul.f32 %v1173_v8, %v1173_v8  ;;  %v1399_v16 = vmul.f32 %v1175_v44, %v1175_v44 }
  0xfa   :  { %11523 = vst [vmem:[#allocation66_spill] sm:$0xff] %v6460_v19  ;;  %v6547_v19 = vld [vmem:[%s11161_s9 + $0x38] sm:$0x3f]  ;;  %v1581_v29 = vsel %vm11543_vm10, %v1402_v56, 0.0  ;;  %v1583_v21 = vsel %vm11545_vm6, %v1403_v36, 0.0  ;;  %v1398_v28 = vmul.f32 %v1174_v7, %v1174_v7  ;;  %v971_v32 = vsel %vm11547_vm7, %v969_v6, %v970_v46  ;;  %vm11560_vm10 = vmmov %vm11556_vm0 }
  0xfb   :  { %11537 = vst [vmem:[#allocation78_spill] sm:$0xff] %v6522_v10  ;;  %v1180_v38 = vsub.f32 %v6524_v4, %v6547_v19  ;;  %v1582_v57 = vadd.f32 %v1581_v29, %v1580_v0  ;;  %v1185_v56 = vsub.f32 %v6467_v59, %v6452_v1  ;;  %v1400_v24 = vmul.f32 %v1176_v20, %v1176_v20  ;;  %vm11561_vm6 = vmmov %vm11556_vm0 }
  0xfc   :  { %11538 = vst [vmem:[#allocation79_spill] sm:$0xff] %v6524_v4  ;;  %v1575_v58 = vadd.f32 %v1398_v28, %v1397_v25  ;;  %v972_v4 = vrot.slane %v971_v32, 5  ;;  %v1186_v0 = vsub.f32 %v6469_v17, %v6531_v18  ;;  %v1187_v36 = vsub.f32 %v6473_v40, %v6540_v34  ;;  %vm11564_vm7 = vmmov %vm11556_vm0 }
  0xfd   :  { %v1404_v14 = vmul.f32 %v1180_v38, %v1180_v38  ;;  %11541 = vst [vmem:[#allocation80_spill] sm:$0xff] %v6561_v35  ;;  %v6569_v38 = vpop.xlane.xlu1 %1564  ;;  %v1591_v35 = vadd.f32 %v1590_v43, %v1408_v2  ;;  %v1584_v39 = vadd.f32 %v1583_v21, %v1582_v57 }
  0xfe   :  { %11544 = vst [vmem:[#allocation81_spill] sm:$0xff] %v6569_v38  ;;  %v1576_v7 = vadd.f32 %v1575_v58, %v1399_v16  ;;  %v6580_v44 = vperm.slane %v972_v4, 0  ;;  %v6582_v43 = vperm.slane %v972_v4, 1  ;;  %v6584_v46 = vperm.slane %v972_v4, 2 }
  0xff   :  { %v1585_v10 = vsel %vm11546_vm14, %v1404_v14, 0.0  ;;  %v1409_v14 = vmul.f32 %v1185_v56, %v1185_v56  ;;  %v6586_v2 = vperm.slane %v972_v4, 3  ;;  %v1410_v4 = vmul.f32 %v1186_v0, %v1186_v0 }
 0x100   :  { %v1586_v8 = vadd.f32 %v1585_v10, %v1584_v39  ;;  %11548 = vst [vmem:[#allocation82_spill] sm:$0xff] %v6580_v44  ;;  %v1193_v10 = vsub.f32 %v6580_v44, %v6452_v1  ;;  %v1194_v39 = vsub.f32 %v6582_v43, %v6531_v18  ;;  %v1195_v58 = vsub.f32 %v6584_v46, %v6540_v34 }
 0x101   :  { %11549 = vst [vmem:[#allocation83_spill] sm:$0xff] %v6582_v43  ;;  %v1411_v20 = vmul.f32 %v1187_v36, %v1187_v36  ;;  %v1577_v25 = vadd.f32 %v1576_v7, %v1400_v24  ;;  %v1196_v57 = vsub.f32 %v6586_v2, %v6547_v19  ;;  %v1594_v28 = vsel %vm11555_vm1, %v1409_v14, 0.0  ;;  %vm11565_vm1 = vmmov %vm11556_vm0 }
 0x102   :  { %11550 = vst [vmem:[#allocation84_spill] sm:$0xff] %v6584_v46  ;;  %v1417_v21 = vmul.f32 %v1193_v10, %v1193_v10  ;;  %v1418_v16 = vmul.f32 %v1194_v39, %v1194_v39  ;;  %v1419_v56 = vmul.f32 %v1195_v58, %v1195_v58  ;;  %v1189_v38 = vsub.f32 %v6580_v44, %v6478_v22 }
 0x103   :  { %11551 = vst [vmem:[#allocation85_spill] sm:$0xff] %v6586_v2  ;;  %v1420_v40 = vmul.f32 %v1196_v57, %v1196_v57  ;;  %v1191_v24 = vsub.f32 %v6584_v46, %v6499_v15  ;;  %v1192_v0 = vsub.f32 %v6586_v2, %v6514_v41  ;;  %v1595_v17 = vsel %vm11560_vm10, %v1410_v4, 0.0  ;;  %vm11569_vm10 = vmmov %vm11556_vm0 }
 0x104   :  { %v1609_v36 = vsel %vm11557_vm15, %v1418_v16, 0.0  ;;  %v1611_v14 = vsel %vm11558_vm11, %v1419_v56, 0.0  ;;  %v1413_v7 = vmul.f32 %v1189_v38, %v1189_v38  ;;  %v1597_v46 = vsel %vm11561_vm6, %v1411_v20, 0.0  ;;  %vm11566_vm15 = vmmov %vm11556_vm0 }
 0x105   :  { %v6471_v9 = vpop.permute.xlu2 %4952  ;;  %v1613_v58 = vsel %vm11559_vm5, %v1420_v40, 0.0  ;;  %v1416_v44 = vmul.f32 %v1192_v0, %v1192_v0  ;;  %v1596_v56 = vadd.f32 %v1595_v17, %v1594_v28  ;;  %v1205_v38 = vadd.f32 %v6478_v22, %v5774_v23  ;;  %vm11567_vm11 = vmmov %vm11556_vm0 }
 0x106   :  { %11528 = vst [vmem:[#allocation71_spill] sm:$0xff] %v6471_v9  ;;  %v1206_v40 = vadd.f32 %v6485_v42, %v5776_v27  ;;  %vm580_vm14 = vcmp.lt.s32.totalorder %v6204_v3, 103  ;;  %v1207_v28 = vadd.f32 %v6499_v15, %v5778_v30  ;;  %v1208_v0 = vadd.f32 %v6514_v41, %v5780_v33  ;;  %vm11568_vm5 = vmmov %vm11556_vm0 }
 0x107   :  { %v1598_v17 = vadd.f32 %v1597_v46, %v1596_v56  ;;  %v1197_v56 = vadd.f32 %v6478_v22, %v5722_v48  ;;  %vm11570_vm6 = vmmov %vm11556_vm0 }
 0x10d   :  { %v6509_v45 = vpop.permute.xlu2 %4967 }
 0x115   :  { %v6563_v11 = vpop.permute.xlu2 %4987 }
 0x11c   :  { %1592 = vadd.xlane.f32.xlu2 %v1591_v35  ;;  %v1188_v35 = vsub.f32 %v6492_v26, %v6547_v19  ;;  %v1608_v26 = vsel %vm11556_vm0, %v1417_v21, 0.0 }
 0x11d   :  { %v6588_v6 = vpop.permute.xlu0 %4957  ;;  %v6590_v32 = vpop.permute.xlu2 %5002  ;;  %1578 = vadd.xlane.f32.xlu0 %v1577_v25  ;;  %v1610_v39 = vadd.f32 %v1609_v36, %v1608_v26  ;;  %v1990_v36 = vmul.f32 %v1206_v40, %v1206_v40  ;;  %v1199_v40 = vadd.f32 %v6499_v15, %v5726_v50 }
 0x11e   :  { %11552 = vst [vmem:[#allocation86_spill] sm:$0xff] %v6588_v6  ;;  %v6598_v29 = vpop.permute.xlu1 %4942  ;;  %1587 = vadd.xlane.f32.xlu1 %v1586_v8  ;;  %v1190_v8 = vsub.f32 %v6582_v43, %v6485_v42  ;;  %v1415_v43 = vmul.f32 %v1191_v24, %v1191_v24  ;;  %v1412_v57 = vmul.f32 %v1188_v35, %v1188_v35 }
 0x11f   :  { %11553 = vst [vmem:[#allocation87_spill] sm:$0xff] %v6590_v32  ;;  %v1612_v59 = vadd.f32 %v1611_v14, %v1610_v39  ;;  %v1991_v14 = vmul.f32 %v1207_v28, %v1207_v28  ;;  %v1202_v39 = vadd.f32 %v6531_v18, %v5724_v49 }
 0x120   :  { %11554 = vst [vmem:[#allocation88_spill] sm:$0xff] %v6598_v29  ;;  %v1414_v10 = vmul.f32 %v1190_v8, %v1190_v8  ;;  %v1599_v8 = vsel %vm11564_vm7, %v1412_v57, 0.0  ;;  %v1204_v57 = vadd.f32 %v6547_v19, %v5728_v51  ;;  %vm492_vm7 = vcmp.lt.s32.totalorder %v6204_v3, 1 }
 0x121   :  { %v1614_v4 = vadd.f32 %v1613_v58, %v1612_v59  ;;  %v1600_v46 = vadd.f32 %v1599_v8, %v1598_v17  ;;  %v1203_v58 = vadd.f32 %v6540_v34, %v5726_v50  ;;  %v1981_v50 = vmul.f32 %v1197_v56, %v1197_v56 }
 0x122   :  { %v1603_v21 = vadd.f32 %v1414_v10, %v1413_v7  ;;  %v1992_v7 = vmul.f32 %v1208_v0, %v1208_v0  ;;  %v1209_v56 = vadd.f32 %v6452_v1, %v5774_v23  ;;  %v1212_v23 = vadd.f32 %v6547_v19, %v5780_v33 }
 0x123   :  { %v1987_v8 = vmul.f32 %v1203_v58, %v1203_v58  ;;  %v1213_v58 = vadd.f32 %v6478_v22, %v5810_v5 }
 0x124   :  { %v1604_v35 = vadd.f32 %v1603_v21, %v1415_v43  ;;  %1615 = vadd.xlane.f32.xlu2 %v1614_v4  ;;  %v1989_v43 = vmul.f32 %v1205_v38, %v1205_v38  ;;  %v1198_v38 = vadd.f32 %v6485_v42, %v5724_v49  ;;  %v1986_v4 = vmul.f32 %v1202_v39, %v1202_v39 }
 0x125   :  { %v6619_v2 = vpop.permute.xlu0 %4972  ;;  %v6621_v16 = vpop.permute.xlu2 %5017  ;;  %1601 = vadd.xlane.f32.xlu0 %v1600_v46 }
 0x126   :  { %11562 = vst [vmem:[#allocation89_spill] sm:$0xff] %v6619_v2  ;;  %v6627_v26 = vpop.permute.xlu1 %4947  ;;  %v11275_v25 = vunpack.i.h.bf16 %v6621_v16  ;;  %v11265_v20 = vunpack.i.l.bf16 %v6621_v16  ;;  %v1605_v24 = vadd.f32 %v1604_v35, %v1416_v44  ;;  %v1201_v44 = vadd.f32 %v6452_v1, %v5722_v48 }
 0x127   :  { %11563 = vst [vmem:[#allocation90_spill] sm:$0xff] %v6621_v16  ;;  %v2107_v10 = vadd.f32 %v1990_v36, %v1989_v43  ;;  %v2099_v43 = vsel %vm11556_vm0, %v1986_v4, 0.0  ;;  %v2101_v36 = vsel %vm11566_vm15, %v1987_v8, 0.0  ;;  %v1982_v46 = vmul.f32 %v1198_v38, %v1198_v38 }
 0x128   :  { %v586_v59 = vsel %vm580_vm14, %v11265_v20, %v11275_v25  ;;  %1606 = vadd.xlane.f32.xlu1 %v1605_v24  ;;  %v1985_v21 = vmul.f32 %v1201_v44, %v1201_v44  ;;  %v1988_v24 = vmul.f32 %v1204_v57, %v1204_v57  ;;  %v1215_v57 = vadd.f32 %v6499_v15, %v5824_v13 }
 0x129   :  { %606 = vmatpush.msrb.mxu3 %v586_v59  ;;  %v2108_v35 = vadd.f32 %v2107_v10, %v1991_v14  ;;  %v1200_v59 = vadd.f32 %v6514_v41, %v5728_v51  ;;  %v1983_v14 = vmul.f32 %v1199_v40, %v1199_v40  ;;  %v1214_v51 = vadd.f32 %v6485_v42, %v5821_v12 }
 0x12a   :  { %v2098_v0 = vsel %vm11565_vm1, %v1985_v21, 0.0  ;;  %v2103_v44 = vsel %vm11567_vm11, %v1988_v24, 0.0  ;;  %v1216_v21 = vadd.f32 %v6514_v41, %v5829_v31  ;;  %v1997_v40 = vmul.f32 %v1213_v58, %v1213_v58 }
 0x12b   :  { %v2109_v48 = vadd.f32 %v2108_v35, %v1992_v7  ;;  %v2100_v49 = vadd.f32 %v2099_v43, %v2098_v0  ;;  %v1984_v39 = vmul.f32 %v1200_v59, %v1200_v59  ;;  %v2093_v7 = vadd.f32 %v1982_v46, %v1981_v50 }
 0x12c   :  { %v1998_v35 = vmul.f32 %v1214_v51, %v1214_v51  ;;  %v1210_v4 = vadd.f32 %v6531_v18, %v5776_v27  ;;  %v1999_v24 = vmul.f32 %v1215_v57, %v1215_v57  ;;  %v1211_v0 = vadd.f32 %v6540_v34, %v5778_v30 }
 0x12d   :  { %v6657_v17 = vpop.permute.xlu0 %4982  ;;  %2110 = vadd.xlane.f32.xlu2 %v2109_v48  ;;  %v2102_v10 = vadd.f32 %v2101_v36, %v2100_v49  ;;  %v2094_v8 = vadd.f32 %v2093_v7, %v1983_v14  ;;  %v2000_v43 = vmul.f32 %v1216_v21, %v1216_v21  ;;  %v11267_v36 = vunpack.i.h.bf16 %v6471_v9  ;;  %v6688_v50 = vpop.permute.xlu2 %5037 }
 0x12e   :  { %v6659_v28 = vpop.permute.xlu1 %4962  ;;  %v2121_v49 = vadd.f32 %v1998_v35, %v1997_v40  ;;  %v1994_v14 = vmul.f32 %v1210_v4, %v1210_v4  ;;  %v1996_v30 = vmul.f32 %v1212_v23, %v1212_v23  ;;  %v11270_v58 = vunpack.i.l.bf16 %v6471_v9 }
 0x12f   :  { %v2104_v38 = vadd.f32 %v2103_v44, %v2102_v10  ;;  %v2095_v27 = vadd.f32 %v2094_v8, %v1984_v39  ;;  %v1993_v44 = vmul.f32 %v1209_v56, %v1209_v56  ;;  %v1995_v10 = vmul.f32 %v1211_v0, %v1211_v0 }
 0x130   :  { %v2122_v46 = vadd.f32 %v2121_v49, %v1999_v24  ;;  %v11269_v51 = vunpack.i.h.bf16 %v6588_v6  ;;  %v11277_v7 = vunpack.i.l.bf16 %v6588_v6  ;;  %v11272_v33 = vunpack.i.h.bf16 %v6627_v26 }
 0x131   :  { %2105 = vadd.xlane.f32.xlu1 %v2104_v38  ;;  %2096 = vadd.xlane.f32.xlu0 %v2095_v27  ;;  %v2112_v57 = vsel %vm11568_vm5, %v1993_v44, 0.0  ;;  %v2113_v38 = vsel %vm11569_vm10, %v1994_v14, 0.0  ;;  %v2115_v39 = vsel %vm11570_vm6, %v1995_v10, 0.0  ;;  %v11271_v56 = vunpack.i.l.bf16 %v6627_v26 }
 0x132   :  { %v2123_v21 = vadd.f32 %v2122_v46, %v2000_v43  ;;  %v2114_v40 = vadd.f32 %v2113_v38, %v2112_v57  ;;  %vm470_vm1 = vcmp.lt.s32.totalorder %v6204_v3, 23  ;;  %v11276_v35 = vunpack.i.h.bf16 %v6598_v29 }
 0x133   :  { %v11266_v4 = vunpack.i.l.bf16 %v6598_v29  ;;  %v2117_v8 = vsel %vm11556_vm0, %v1996_v30, 0.0  ;;  %vm426_vm15 = vcmp.lt.s32.totalorder %v6204_v3, 25  ;;  %vm448_vm11 = vcmp.lt.s32.totalorder %v6204_v3, 24 }
 0x134   :  { %v2116_v24 = vadd.f32 %v2115_v39, %v2114_v40  ;;  %v6715_v49 = vsel %vm492_vm7, %v11277_v7, %v11269_v51  ;;  %v6723_v23 = vsel %vm470_vm1, %v11270_v58, %v11267_v36  ;;  %v6731_v44 = vsel %vm448_vm11, %v11271_v56, %v11272_v33 }
 0x135   :  { %v6681_v59 = vpop.permute.xlu0 %4992  ;;  %11571 = vst [vmem:[#allocation91_spill] sm:$0xff] %v6715_v49  ;;  %v6739_v46 = vsel %vm426_vm15, %v11266_v4, %v11276_v35  ;;  %v6741_v14 = vpop.permute.xlu2 %5052  ;;  %vm558_vm5 = vcmp.lt.s32.totalorder %v6204_v3, 104  ;;  %v11279_v40 = vunpack.i.h.bf16 %v6590_v32  ;;  %vm536_vm10 = vcmp.lt.s32.totalorder %v6204_v3, 105 }
 0x136   :  { %v6683_v48 = vpop.permute.xlu1 %4977  ;;  %11572 = vst [vmem:[#allocation92_spill] sm:$0xff] %v6723_v23  ;;  %v2118_v27 = vadd.f32 %v2117_v8, %v2116_v24  ;;  %v11278_v8 = vunpack.i.l.bf16 %v6590_v32  ;;  %vm514_vm6 = vcmp.lt.s32.totalorder %v6204_v3, 127  ;;  %v4974_v58 = vunpack.i.l.bf16 %v6619_v2 }
 0x137   :  { %11573 = vst [vmem:[#allocation93_spill] sm:$0xff] %v6731_v44  ;;  %v5040_v56 = vunpack.i.h.bf16 %v6688_v50  ;;  %v5039_v33 = vunpack.i.l.bf16 %v6688_v50  ;;  %v5054_v25 = vunpack.i.l.bf16 %v6741_v14  ;;  %v11577_v51 = vunpack.i.h.bf16 %v6619_v2 }
 0x138   :  { %11574 = vst [vmem:[#allocation94_spill] sm:$0xff] %v6739_v46  ;;  %v1217_v50 = vadd.f32 %v6452_v1, %v5810_v5  ;;  %v1218_v46 = vadd.f32 %v6531_v18, %v5821_v12  ;;  %v11585_v44 = vunpack.i.h.bf16 %v6659_v28  ;;  %v11586_v23 = vunpack.i.l.bf16 %v6659_v28 }
 0x139   :  { %2124 = vadd.xlane.f32.xlu1 %v2123_v21  ;;  %2119 = vadd.xlane.f32.xlu0 %v2118_v27  ;;  %v6813_v27 = vsel %vm558_vm5, %v4974_v58, %v11577_v51  ;;  %v1223_v5 = vadd.f32 %v6499_v15, %v5749_v62 }
 0x13a   :  { %11578 = vst [vmem:[#allocation97_spill] sm:$0xff] %v6813_v27  ;;  %v11595_v27 = vunpack.i.h.bf16 %v6563_v11 }
 0x13d   :  { %v6703_v0 = vpop.permute.xlu0 %5007  ;;  %v6763_v20 = vpop.permute.xlu2 %422 }
 0x13e   :  { %v6706_v43 = vpop.permute.xlu1 %4997  ;;  %v11274_v30 = vunpack.i.h.bf16 %v6703_v0  ;;  %v11273_v57 = vunpack.i.l.bf16 %v6703_v0 }
 0x140   :  { %v542_v4 = vsel %vm536_vm10, %v11273_v57, %v11274_v30  ;;  %v520_v57 = vsel %vm514_vm6, %v11278_v8, %v11279_v40  ;;  %v5055_v30 = vunpack.i.h.bf16 %v6741_v14  ;;  %v11580_v40 = vunpack.i.l.bf16 %v6509_v45 }
 0x142   :  { %v6831_v51 = vsel %vm558_vm5, %v5055_v30, %v4974_v58  ;;  %v6851_v58 = vsel %vm514_vm6, %v11586_v23, %v11585_v44  ;;  %v1221_v23 = vadd.f32 %v6478_v22, %v5745_v60  ;;  %v1222_v44 = vadd.f32 %v6485_v42, %v5747_v61 }
 0x143   :  { %11587 = vst [vmem:[#allocation100_spill] sm:$0xff] %v6851_v58  ;;  %v2002_v58 = vmul.f32 %v1218_v46, %v1218_v46  ;;  %v1220_v46 = vadd.f32 %v6547_v19, %v5829_v31  ;;  %v11598_v31 = vunpack.i.l.bf16 %v6683_v48 }
 0x144   :  { %v2005_v9 = vmul.f32 %v1221_v23, %v1221_v23 }
 0x145   :  { %v6749_v39 = vpop.permute.xlu0 %5027  ;;  %578 = vrot.lane.b32.xlu2 %v6409_v54, %s5491_s22 }
 0x146   :  { %v6743_v10 = vpop.permute.xlu1 %5012  ;;  %11576 = vst [vmem:[#allocation96_spill] sm:$0xff] %v6749_v39  ;;  %v5029_v12 = vunpack.i.l.bf16 %v6749_v39 }
 0x147   :  { %11575 = vst [vmem:[#allocation95_spill] sm:$0xff] %v6743_v10  ;;  %v5015_v21 = vunpack.i.h.bf16 %v6743_v10  ;;  %v11268_v38 = vunpack.i.l.bf16 %v6743_v10  ;;  %v447_v10 = vpop.permute.xlu2 %446 }
 0x149   :  { %v564_v24 = vsel %vm558_vm5, %v11268_v38, %v5015_v21  ;;  %v11280_v38 = vunpack.i.h.bf16 %v6563_v11  ;;  %v563_v2 = vsel %vm558_vm5, %v5015_v21, %v5054_v25 }
 0x14a   :  { %607 = vmatpush.msrb.mxu3 %v564_v24  ;;  %v4989_v24 = vunpack.i.l.bf16 %v6563_v11 }
 0x14c   :  { %608 = vmatpush.msrb.mxu3 %v542_v4  ;;  %v6807_v7 = vsel %vm448_vm11, %v4989_v24, %v11280_v38  ;;  %v5000_v4 = vunpack.i.h.bf16 %v6706_v43  ;;  %v6827_v38 = vsel %vm558_vm5, %v5054_v25, %v5055_v30  ;;  %v11588_v30 = vunpack.i.l.bf16 %v6588_v6 }
 0x14d   :  { %v6797_v14 = vpop.permute.xlu0 %5042  ;;  %v1219_v6 = vadd.f32 %v6540_v34, %v5824_v13  ;;  %v2006_v25 = vmul.f32 %v1222_v44, %v1222_v44  ;;  %v6905_v13 = vsel %vm448_vm11, %v447_v10, %v4989_v24 }
 0x14e   :  { %v6786_v35 = vpop.permute.xlu1 %5022  ;;  %609 = vmatpush.msrb.mxu3 %v520_v57  ;;  %v6801_v57 = vsel %vm492_vm7, %v5039_v33, %v5040_v56  ;;  %v6859_v49 = vsel %vm492_vm7, %v5040_v56, %v11588_v30  ;;  %v1224_v56 = vadd.f32 %v6514_v41, %v5751_v63  ;;  %v5045_v21 = vunpack.i.h.bf16 %v6797_v14 }
 0x14f   :  { %11589 = vst [vmem:[#allocation101_spill] sm:$0xff] %v6859_v49  ;;  %v2001_v49 = vmul.f32 %v1217_v50, %v1217_v50  ;;  %v5044_v50 = vunpack.i.l.bf16 %v6797_v14  ;;  %v2135_v44 = vadd.f32 %v2006_v25, %v2005_v9  ;;  %v11597_v14 = vunpack.i.h.bf16 %v6683_v48 }
 0x150   :  { %610 = vmatpush.msrb.mxu3 %v6209_v37  ;;  %v11579_v37 = vunpack.i.h.bf16 %v6509_v45  ;;  %v2008_v23 = vmul.f32 %v1224_v56, %v1224_v56  ;;  %v2003_v11 = vmul.f32 %v1219_v6, %v1219_v6 }
 0x151   :  { %v6929_v9 = vsel %vm580_vm14, %v11598_v31, %v11597_v14  ;;  %v2126_v56 = vsel %vm11556_vm0, %v2001_v49, 0.0  ;;  %v518_v6 = vsel %vm514_vm6, %v5044_v50, %v5045_v21  ;;  %v2004_v31 = vmul.f32 %v1220_v46, %v1220_v46 }
 0x152   :  { %v6821_v8 = vsel %vm536_vm10, %v11580_v40, %v11579_v37  ;;  %v11582_v40 = vunpack.i.h.bf16 %v6657_v17  ;;  %v11583_v37 = vunpack.i.l.bf16 %v6657_v17  ;;  %556 = vrot.lane.b32.xlu1 %v6409_v54, %s5487_s18  ;;  %v5024_v54 = vunpack.i.l.bf16 %v6786_v35 }
 0x153   :  { %11581 = vst [vmem:[#allocation98_spill] sm:$0xff] %v6821_v8  ;;  %v11593_v8 = vunpack.i.h.bf16 %v6681_v59 }
 0x154   :  { %v6843_v36 = vsel %vm426_vm15, %v11583_v37, %v11582_v40  ;;  %v11590_v40 = vunpack.i.h.bf16 %v6598_v29  ;;  %v6888_v29 = vsel %vm492_vm7, %v5000_v4, %v5039_v33 }
 0x155   :  { %11584 = vst [vmem:[#allocation99_spill] sm:$0xff] %v6843_v36  ;;  %v11600_v36 = vunpack.i.h.bf16 %v6590_v32 }
 0x156   :  { %v6866_v37 = vsel %vm426_vm15, %v11590_v40, %v6763_v20  ;;  %v6876_v30 = vpop.permute.xlu1 %5032  ;;  %v11592_v40 = vunpack.i.l.bf16 %v6706_v43 }
 0x157   :  { %11591 = vst [vmem:[#allocation102_spill] sm:$0xff] %v6866_v37  ;;  %v519_v14 = vsel %vm514_vm6, %v11600_v36, %v5044_v50 }
 0x158   :  { %v6884_v37 = vsel %vm492_vm7, %v11592_v40, %v5000_v4  ;;  %v11594_v40 = vunpack.i.l.bf16 %v6681_v59  ;;  %v2007_v4 = vmul.f32 %v1223_v5, %v1223_v5  ;;  %v5058_v5 = vpop.permute.xlu0 %5057 }
 0x15a   :  { %v6901_v33 = vsel %vm470_vm1, %v11594_v40, %v11593_v8  ;;  %v6915_v8 = vsel %vm448_vm11, %v11595_v27, %v5029_v12  ;;  %v11596_v40 = vunpack.i.h.bf16 %v6749_v39  ;;  %v2127_v27 = vsel %vm11599_vm8, %v2002_v58, 0.0  ;;  %vm11603_vm8 = vmmov %vm11556_vm0 }
 0x15b   :  { %v2136_v25 = vadd.f32 %v2135_v44, %v2007_v4  ;;  %v5060_v39 = vunpack.i.h.bf16 %v5058_v5  ;;  %v11601_v58 = vunpack.i.h.bf16 %v6621_v16  ;;  %v2128_v36 = vadd.f32 %v2127_v27, %v2126_v56 }
 0x15c   :  { %v6921_v24 = vsel %vm448_vm11, %v5029_v12, %v11596_v40  ;;  %v5059_v12 = vunpack.i.l.bf16 %v5058_v5  ;;  %v1225_v40 = vadd.f32 %v6452_v1, %v5745_v60  ;;  %v11602_v60 = vunpack.i.l.bf16 %v6683_v48 }
 0x15d   :  { %v2137_v49 = vadd.f32 %v2136_v25, %v2008_v23  ;;  %v2129_v23 = vsel %vm11603_vm8, %v2003_v11, 0.0  ;;  %v1226_v25 = vadd.f32 %v6531_v18, %v5747_v61  ;;  %vm11611_vm8 = vmmov %vm11556_vm0 }
 0x15e   :  { %v585_v4 = vsel %vm580_vm14, %v11601_v58, %v5059_v12  ;;  %v584_v44 = vsel %vm580_vm14, %v5059_v12, %v5060_v39  ;;  %v583_v5 = vsel %vm580_vm14, %v5060_v39, %v11602_v60  ;;  %v5048_v32 = vpop.permute.xlu1 %5047  ;;  %v11604_v58 = vunpack.i.l.bf16 %v6659_v28 }
 0x15f   :  { %626 = vmatpush.msrb.mxu0 %v585_v4  ;;  %646 = vmatpush.msrb.mxu1 %v584_v44  ;;  %v5050_v50 = vunpack.i.h.bf16 %v5048_v32  ;;  %v5049_v46 = vunpack.i.l.bf16 %v5048_v32  ;;  %v2009_v16 = vmul.f32 %v1225_v40, %v1225_v40  ;;  %v11605_v39 = vunpack.i.h.bf16 %v6627_v26 }
 0x160   :  { %666 = vmatpush.msra.mxu2 %v583_v5  ;;  %v517_v12 = vsel %vm514_vm6, %v5045_v21, %v11604_v58  ;;  %2138 = vadd.xlane.f32.xlu0 %v2137_v49  ;;  %v11606_v32 = vunpack.i.h.bf16 %v6703_v0  ;;  %v11607_v21 = vunpack.i.l.bf16 %v6509_v45  ;;  %v11609_v40 = vunpack.i.h.bf16 %v6657_v17 }
 0x161   :  { %v6963_v56 = vsel %vm448_vm11, %v11605_v39, %v447_v10  ;;  %627 = vmatpush.msrb.mxu0 %v563_v2  ;;  %647 = vmatpush.msrb.mxu1 %v6827_v38  ;;  %v540_v11 = vsel %vm536_vm10, %v5049_v46, %v5050_v50  ;;  %v2130_v10 = vadd.f32 %v2129_v23, %v2128_v36  ;;  %v11608_v2 = vunpack.i.l.bf16 %v6657_v17  ;;  %v11612_v39 = vld [vmem:[#allocation49_spill] sm:$0xff] }
 0x162   :  { %v541_v61 = vsel %vm536_vm10, %v11606_v32, %v5049_v46  ;;  %v539_v27 = vsel %vm536_vm10, %v5050_v50, %v11607_v21  ;;  %667 = vmatpush.msra.mxu2 %v6831_v51  ;;  %v6988_v49 = vsel %vm426_vm15, %v11609_v40, %v5024_v54  ;;  %v11610_v4 = vunpack.i.h.bf16 %v6786_v35  ;;  %v7007_v46 = vpop.permute.xlu0 %468 }
 0x163   :  { %v6982_v38 = vsel %vm426_vm15, %v6763_v20, %v11608_v2  ;;  %628 = vmatpush.msrb.mxu0 %v541_v61  ;;  %648 = vmatpush.msrb.mxu1 %v540_v11  ;;  %v2131_v51 = vsel %vm11556_vm0, %v2004_v31, 0.0  ;;  %v2010_v60 = vmul.f32 %v1226_v25, %v1226_v25  ;;  %v1233_v20 = vadd.f32 %v6452_v1, %v5870_v47  ;;  %v11615_v11 = vld [vmem:[#allocation54_spill] sm:$0xff] }
 0x164   :  { %v6994_v44 = vsel %vm426_vm15, %v5024_v54, %v11610_v4  ;;  %v1234_v17 = vadd.f32 %v6531_v18, %v5872_v52  ;;  %v5035_v5 = vunpack.i.h.bf16 %v6876_v30  ;;  %v5034_v36 = vunpack.i.l.bf16 %v6876_v30  ;;  %668 = vmatpush.msra.mxu2 %v539_v27 }
 0x165   :  { %v1227_v54 = vadd.f32 %v6540_v34, %v5749_v62  ;;  %v1228_v50 = vadd.f32 %v6547_v19, %v5751_v63  ;;  %629 = vmatpush.msrb.mxu0 %v519_v14  ;;  %649 = vmatpush.msrb.mxu1 %v518_v6  ;;  %v2140_v31 = vsel %vm11611_vm8, %v2009_v16, 0.0  ;;  %v1229_v23 = vadd.f32 %v6478_v22, %v5870_v47  ;;  %v11613_v47 = vld [vmem:[#allocation56_spill] sm:$0xff]  ;;  %vm11617_vm8 = vmmov %vm11556_vm0 }
 0x166   :  { %v1230_v25 = vadd.f32 %v6485_v42, %v5872_v52  ;;  %v1235_v58 = vadd.f32 %v6540_v34, %v5874_v53  ;;  %669 = vmatpush.msra.mxu2 %v517_v12  ;;  %v7016_v62 = vpop.permute.xlu1 %490  ;;  %v1231_v63 = vadd.f32 %v6499_v15, %v5874_v53  ;;  %v1236_v14 = vadd.f32 %v6547_v19, %v5876_v55 }
 0x167   :  { %v2017_v6 = vmul.f32 %v1233_v20, %v1233_v20  ;;  %v2018_v16 = vmul.f32 %v1234_v17, %v1234_v17  ;;  %630 = vmatpush.msrb.mxu0 %v11612_v39  ;;  %650 = vmatpush.msrb.mxu1 %v11613_v47  ;;  %v11614_v52 = vunpack.i.l.bf16 %v6706_v43  ;;  %v2141_v32 = vsel %vm11556_vm0, %v2010_v60, 0.0 }
 0x168   :  { %v1232_v53 = vadd.f32 %v6514_v41, %v5876_v55  ;;  %v2019_v61 = vmul.f32 %v1235_v58, %v1235_v58  ;;  %670 = vmatpush.msra.mxu2 %v11615_v11  ;;  %v11616_v21 = vunpack.i.l.bf16 %v6681_v59  ;;  %v2020_v43 = vmul.f32 %v1236_v14, %v1236_v14  ;;  %v11629_v11 = vld [vmem:[#allocation21_spill] sm:$0xff] }
 0x169   :  { %v499_v12 = vsel %vm492_vm7, %v7016_v62, %v11614_v52  ;;  %v2154_v2 = vsel %vm11617_vm8, %v2017_v6, 0.0  ;;  %v2155_v40 = vsel %vm11618_vm13, %v2018_v16, 0.0  ;;  %631 = vmatpush.msrb.mxu0 %v6884_v37  ;;  %651 = vmatpush.msrb.mxu1 %v6888_v29  ;;  %v2013_v55 = vmul.f32 %v1229_v23, %v1229_v23  ;;  %vm11620_vm13 = vmmov %vm11556_vm0  ;;  %v11621_v16 = vld [vmem:[#allocation16_spill] sm:$0xff] }
 0x16a   :  { %611 = vmatpush.msrb.mxu3 %v499_v12  ;;  %v477_v27 = vsel %vm470_vm1, %v7007_v46, %v11616_v21  ;;  %v2014_v4 = vmul.f32 %v1230_v25, %v1230_v25  ;;  %v2156_v60 = vadd.f32 %v2155_v40, %v2154_v2  ;;  %v2157_v20 = vsel %vm11556_vm0, %v2019_v61, 0.0  ;;  %671 = vmatpush.msra.mxu2 %v6801_v57  ;;  %v11626_v12 = vld [vmem:[#allocation20_spill] sm:$0xff] }
 0x16b   :  { %v11619_v17 = vunpack.i.h.bf16 %v6681_v59  ;;  %v474_v37 = vsel %vm470_vm1, %v5034_v36, %v5035_v5  ;;  %v2132_v14 = vadd.f32 %v2131_v51, %v2130_v10  ;;  %632 = vmatpush.msrb.mxu0 %v6901_v33  ;;  %v2011_v29 = vmul.f32 %v1227_v54, %v1227_v54  ;;  %v7059_v10 = vld [vmem:[#allocation8] sm:$0x7] }
 0x16c   :  { %612 = vmatpush.msrb.mxu3 %v477_v27  ;;  %v2012_v23 = vmul.f32 %v1228_v50, %v1228_v50  ;;  %v2158_v25 = vadd.f32 %v2157_v20, %v2156_v60  ;;  %v2159_v57 = vsel %vm11620_vm13, %v2020_v43, 0.0  ;;  %672 = vmatpush.msra.mxu2 %v474_v37  ;;  %v2142_v59 = vadd.f32 %v2141_v32, %v2140_v31  ;;  %v11623_v50 = vld [vmem:[#allocation18_spill] sm:$0xff]  ;;  %vm11627_vm13 = vmmov %vm11556_vm0  ;;  %v11632_v20 = vld [vmem:[#allocation23_spill] sm:$0xff] }
 0x16d   :  { %v475_v58 = vsel %vm470_vm1, %v11619_v17, %v5034_v36  ;;  %v2015_v6 = vmul.f32 %v1231_v63, %v1231_v63  ;;  %v1241_v39 = vadd.f32 %v6452_v1, %v11621_v16  ;;  %633 = vmatpush.msrb.mxu0 %v6807_v7  ;;  %vm595_vm8 = vcmask 588800   ;;  %v11622_v36 = vld [vmem:[#allocation17_spill] sm:$0xff]  ;;  %v11624_v63 = vld [vmem:[#allocation19_spill] sm:$0xff]  ;;  %v11630_v27 = vld [vmem:[#allocation22_spill] sm:$0xff] }
 0x16e   :  { %652 = vmatpush.msrb.mxu1 %v475_v58  ;;  %613 = vmatpush.msrb.mxu3 %v6905_v13  ;;  %v2016_v33 = vmul.f32 %v1232_v53, %v1232_v53  ;;  %v2149_v51 = vadd.f32 %v2014_v4, %v2013_v55  ;;  %v1242_v54 = vadd.f32 %v6531_v18, %v11622_v36  ;;  %v2145_v2 = vsel %vm11556_vm0, %v2012_v23, 0.0 }
 0x16f   :  { %673 = vmatpush.msra.mxu2 %v6921_v24  ;;  %v2160_v13 = vadd.f32 %v2159_v57, %v2158_v25  ;;  %v1243_v31 = vadd.f32 %v6540_v34, %v11623_v50  ;;  %v1244_v7 = vadd.f32 %v6547_v19, %v11624_v63  ;;  %v2025_v47 = vmul.f32 %v1241_v39, %v1241_v39  ;;  %v11633_v57 = vld [vmem:[#allocation97_spill] sm:$0xff] }
 0x170   :  { %653 = vmatpush.msrb.mxu1 %v6915_v8  ;;  %614 = vmatpush.msrb.mxu3 %v6982_v38  ;;  %v11625_v8 = vld [vmem:[#allocation99_spill] sm:$0xff]  ;;  %v2026_v52 = vmul.f32 %v1242_v54, %v1242_v54  ;;  %v1245_v32 = vadd.f32 %v6478_v22, %v11626_v12  ;;  %v2143_v24 = vsel %vm11556_vm0, %v2011_v29, 0.0  ;;  %v1237_v38 = vadd.f32 %v6478_v22, %v11621_v16  ;;  %v11635_v54 = vld [vmem:[#allocation96_spill] sm:$0xff] }
 0x171   :  { %634 = vmatpush.msrb.mxu0 %v11625_v8  ;;  %674 = vmatpush.msra.mxu2 %v6994_v44  ;;  %v1238_v53 = vadd.f32 %v6485_v42, %v11622_v36  ;;  %v2027_v61 = vmul.f32 %v1243_v31, %v1243_v31  ;;  %v1246_v21 = vadd.f32 %v6485_v42, %v11629_v11  ;;  %v11634_v36 = vunpack.i.l.bf16 %v6627_v26 }
 0x172   :  { %654 = vmatpush.msrb.mxu1 %v6988_v49  ;;  %4899 = vmatmul.msk.f32.vlgmr.msrb.gmra.mxu3 %vm595_vm8, %v7059_v10  ;;  %v2168_v49 = vsel %vm11627_vm13, %v2025_v47, 0.0  ;;  %v2169_v44 = vsel %vm11628_vm12, %v2026_v52, 0.0  ;;  %v1247_v43 = vadd.f32 %v6499_v15, %v11630_v27  ;;  %v2150_v40 = vadd.f32 %v2149_v51, %v2015_v6  ;;  %vm11631_vm13 = vmmov %vm11556_vm0 }
 0x173   :  { %4900 = vmatmul.msk.f32.vlgmr.msrb.gmra.mxu0 %vm595_vm8, %v7059_v10  ;;  %4901 = vmatmul.msk.f32.vlgmr.msrb.gmra.mxu1 %vm595_vm8, %v7059_v10  ;;  %v2028_v55 = vmul.f32 %v1244_v7, %v1244_v7  ;;  %v2170_v4 = vadd.f32 %v2169_v44, %v2168_v49  ;;  %v2171_v60 = vsel %vm11631_vm13, %v2027_v61, 0.0  ;;  %v1248_v17 = vadd.f32 %v6514_v41, %v11632_v20  ;;  %vm11639_vm12 = vmmov %vm11556_vm0  ;;  %v535_v44 = vpop.permute.xlu0 %534 }
 0x174   :  { %2133 = vadd.xlane.f32.xlu2 %v2132_v14  ;;  %4902 = vmatmul.msk.f32.vlgmr.msra.gmra.mxu2 %vm595_vm8, %v7059_v10  ;;  %v2029_v58 = vmul.f32 %v1245_v32, %v1245_v32  ;;  %v2030_v37 = vmul.f32 %v1246_v21, %v1246_v21  ;;  %v2144_v29 = vadd.f32 %v2143_v24, %v2142_v59  ;;  %v11641_v24 = vld [vmem:[#allocation71_spill] sm:$0xff]  ;;  %v11643_v21 = vld [vmem:[#allocation100_spill] sm:$0xff]  ;;  %vm11654_vm13 = vmmov %vm11556_vm0 }
 0x175   :  { %686 = vmatpush.msra.mxu3 %v6929_v9  ;;  %2161 = vadd.xlane.f32.xlu0 %v2160_v13  ;;  %v1239_v14 = vadd.f32 %v6499_v15, %v11623_v50  ;;  %v1240_v23 = vadd.f32 %v6514_v41, %v11624_v63  ;;  %v2031_v25 = vmul.f32 %v1247_v43, %v1247_v43  ;;  %v11636_v13 = vunpack.i.h.bf16 %v11635_v54  ;;  %v11637_v50 = vld [vmem:[#allocation24_spill] sm:$0xff]  ;;  %v11638_v63 = vld [vmem:[#allocation98_spill] sm:$0xff] }
 0x176   :  { %v2021_v6 = vmul.f32 %v1237_v38, %v1237_v38  ;;  %v2022_v9 = vmul.f32 %v1238_v53, %v1238_v53  ;;  %v2032_v16 = vmul.f32 %v1248_v17, %v1248_v17  ;;  %v2177_v39 = vadd.f32 %v2030_v37, %v2029_v58  ;;  %v11645_v17 = vld [vmem:[#allocation44_spill] sm:$0xff] }
 0x177   :  { %687 = vmatpush.msra.mxu3 %v11633_v57  ;;  %v2151_v51 = vadd.f32 %v2150_v40, %v2016_v33  ;;  %v451_v59 = vsel %vm448_vm11, %v11636_v13, %v11634_v36  ;;  %v2172_v31 = vadd.f32 %v2171_v60, %v2170_v4  ;;  %v1253_v7 = vadd.f32 %v6478_v22, %v11637_v50  ;;  %v11640_v33 = vld [vmem:[#allocation25_spill] sm:$0xff]  ;;  %v11644_v4 = vld [vmem:[#allocation26_spill] sm:$0xff]  ;;  %vm11650_vm11 = vmmov %vm11556_vm0 }
 0x178   :  { %v2173_v8 = vsel %vm11639_vm12, %v2028_v55, 0.0  ;;  %v2178_v47 = vadd.f32 %v2177_v39, %v2031_v25  ;;  %v1249_v52 = vadd.f32 %v6452_v1, %v11626_v12  ;;  %v1254_v26 = vadd.f32 %v6485_v42, %v11640_v33  ;;  %v11648_v57 = vld [vmem:[#allocation101_spill] sm:$0xff]  ;;  %vm11655_vm12 = vmmov %vm11556_vm0 }
 0x179   :  { %688 = vmatpush.msra.mxu3 %v11638_v63  ;;  %v2146_v32 = vadd.f32 %v2145_v2, %v2144_v29  ;;  %v11642_v38 = vunpack.i.l.bf16 %v11641_v24  ;;  %v2023_v61 = vmul.f32 %v1239_v14, %v1239_v14  ;;  %v1250_v49 = vadd.f32 %v6531_v18, %v11629_v11  ;;  %v11646_v14 = vld [vmem:[#allocation27_spill] sm:$0xff] }
 0x17a   :  { %v2024_v43 = vmul.f32 %v1240_v23, %v1240_v23  ;;  %v2163_v12 = vadd.f32 %v2022_v9, %v2021_v6  ;;  %v2179_v40 = vadd.f32 %v2178_v47, %v2032_v16  ;;  %v1251_v2 = vadd.f32 %v6540_v34, %v11630_v27 }
 0x17b   :  { %v473_v53 = vsel %vm470_vm1, %v5035_v5, %v11642_v38  ;;  %689 = vmatpush.msra.mxu3 %v11643_v21  ;;  %v2174_v55 = vadd.f32 %v2173_v8, %v2172_v31  ;;  %v1255_v30 = vadd.f32 %v6499_v15, %v11644_v4  ;;  %v2037_v60 = vmul.f32 %v1253_v7, %v1253_v7 }
 0x17c   :  { %2152 = vadd.xlane.f32.xlu2 %v2151_v51  ;;  %v2038_v5 = vmul.f32 %v1254_v26, %v1254_v26  ;;  %v2033_v11 = vmul.f32 %v1249_v52, %v1249_v52  ;;  %v1257_v58 = vadd.f32 %v6452_v1, %v11637_v50  ;;  %v1258_v37 = vadd.f32 %v6531_v18, %v11640_v33 }
 0x17d   :  { %690 = vmatpush.msra.mxu3 %v11645_v17  ;;  %2180 = vadd.xlane.f32.xlu0 %v2179_v40  ;;  %v2034_v29 = vmul.f32 %v1250_v49, %v1250_v49  ;;  %v1259_v27 = vadd.f32 %v6540_v34, %v11644_v4  ;;  %v1260_v23 = vadd.f32 %v6547_v19, %v11646_v14  ;;  %v11647_v15 = vunpack.i.h.bf16 %v6509_v45 }
 0x17e   :  { %v1256_v1 = vadd.f32 %v6514_v41, %v11646_v14  ;;  %v2041_v6 = vmul.f32 %v1257_v58, %v1257_v58  ;;  %v2042_v9 = vmul.f32 %v1258_v37, %v1258_v37  ;;  %v11649_v16 = vunpack.i.l.bf16 %v6703_v0  ;;  %v11651_v41 = vld [vmem:[#allocation86_spill] sm:$0xff]  ;;  %2147 = vadd.xlane.f32.xlu1 %v2146_v32  ;;  %v11668_v14 = vld [vmem:[#allocation57_spill] sm:$0xff] }
 0x17f   :  { %v7143_v25 = vsel %vm536_vm10, %v11647_v15, %v535_v44  ;;  %691 = vmatpush.msra.mxu3 %v11648_v57  ;;  %v2039_v51 = vmul.f32 %v1255_v30, %v1255_v30  ;;  %v2191_v36 = vadd.f32 %v2038_v5, %v2037_v60  ;;  %v2043_v45 = vmul.f32 %v1259_v27, %v1259_v27  ;;  %v11663_v30 = vld [vmem:[#allocation28_spill] sm:$0xff]  ;;  %v11666_v37 = vld [vmem:[#allocation30_spill] sm:$0xff] }
 0x180   :  { %v7152_v39 = vsel %vm536_vm10, %v535_v44, %v11649_v16  ;;  %v2044_v54 = vmul.f32 %v1260_v23, %v1260_v23  ;;  %v2164_v13 = vadd.f32 %v2163_v12, %v2023_v61  ;;  %v2196_v31 = vsel %vm11650_vm11, %v2041_v6, 0.0  ;;  %vm11653_vm10 = vmmov %vm11556_vm0  ;;  %v11661_v12 = vld [vmem:[#allocation65_spill] sm:$0xff] }
 0x181   :  { %692 = vmatpush.msra.mxu3 %v473_v53  ;;  %v2197_v50 = vsel %vm11556_vm0, %v2042_v9, 0.0  ;;  %v11652_v7 = vunpack.i.h.bf16 %v11651_v41  ;;  %v1252_v63 = vadd.f32 %v6547_v19, %v11632_v20  ;;  %v2035_v8 = vmul.f32 %v1251_v2, %v1251_v2  ;;  %vm11656_vm11 = vmmov %vm11556_vm0  ;;  %v11658_v20 = vld [vmem:[#allocation88_spill] sm:$0xff] }
 0x182   :  { %v2198_v47 = vadd.f32 %v2197_v50, %v2196_v31  ;;  %v2199_v52 = vsel %vm11653_vm10, %v2043_v45, 0.0  ;;  %v2182_v33 = vsel %vm11654_vm13, %v2033_v11, 0.0  ;;  %v2183_v26 = vsel %vm11655_vm12, %v2034_v29, 0.0  ;;  %v11665_v11 = vld [vmem:[#allocation64_spill] sm:$0xff]  ;;  %v7233_v50 = vld [vmem:[%s11161_s9] sm:$0xff]  ;;  %vm11675_vm10 = vmmov %vm11556_vm0 }
 0x183   :  { %v7161_v0 = vsel %vm492_vm7, %v11652_v7, %v7016_v62  ;;  %693 = vmatpush.msra.mxu3 %v451_v59  ;;  %v2201_v38 = vsel %vm11656_vm11, %v2044_v54, 0.0  ;;  %v11657_v53 = vunpack.i.h.bf16 %v11641_v24  ;;  %v11659_v61 = vunpack.i.l.bf16 %v11658_v20  ;;  %vm11662_vm7 = vmmov %vm11556_vm0  ;;  %v7211_v57 = vld [vmem:[%s11161_s9 + $0x18] sm:$0xff]  ;;  %v7250_v20 = vpop.permute.xlu2 %512 }
 0x184   :  { %v11660_v49 = vunpack.i.h.bf16 %v6786_v35  ;;  %2175 = vadd.xlane.f32.xlu2 %v2174_v55  ;;  %v2040_v32 = vmul.f32 %v1256_v1, %v1256_v1  ;;  %v2192_v44 = vadd.f32 %v2191_v36, %v2039_v51  ;;  %v2200_v21 = vadd.f32 %v2199_v52, %v2198_v47  ;;  %v11664_v55 = vld [vmem:[#allocation29_spill] sm:$0xff]  ;;  %v11669_v1 = vld [vmem:[#allocation31_spill] sm:$0xff]  ;;  %v11670_v41 = vld [vmem:[#allocation32_spill] sm:$0xff] }
 0x185   :  { %v7174_v62 = vsel %vm470_vm1, %v11657_v53, %v7007_v46  ;;  %v7183_v40 = vadd.f32 1e-09, %v11661_v12  ;;  %v2165_v46 = vadd.f32 %v2164_v13, %v2024_v43  ;;  %v2184_v24 = vadd.f32 %v2183_v26, %v2182_v33  ;;  %v7199_v43 = vld [vmem:[%s11161_s9 + $0x10] sm:$0xff]  ;;  %vm11667_vm1 = vmmov %vm11556_vm0  ;;  %v7220_v36 = vld [vmem:[%s11161_s9 + $0x20] sm:$0x3f] }
 0x186   :  { %v429_v59 = vsel %vm426_vm15, %v11660_v49, %v11659_v61  ;;  %v2202_v2 = vadd.f32 %v2201_v38, %v2200_v21  ;;  %v2036_v4 = vmul.f32 %v1252_v63, %v1252_v63  ;;  %v2185_v35 = vsel %vm11662_vm7, %v2035_v8, 0.0  ;;  %v7240_v63 = vld [vmem:[%s11161_s9 + $0x8] sm:$0xff]  ;;  %vm11674_vm15 = vmmov %vm11556_vm0 }
 0x187   :  { %694 = vmatpush.msra.mxu3 %v429_v59  ;;  %v1261_v60 = vadd.f32 %v6478_v22, %v11663_v30  ;;  %v1262_v5 = vadd.f32 %v6485_v42, %v11664_v55  ;;  %v2193_v17 = vadd.f32 %v2192_v44, %v2040_v32  ;;  %5081 = vrsqrt.f32 %v7183_v40  ;;  %2166 = vadd.xlane.f32.xlu1 %v2165_v46  ;;  %v11673_v26 = vld [vmem:[#allocation35_spill] sm:$0xff]  ;;  %vm11676_vm13 = vmmov %vm11556_vm0 }
 0x188   :  { %4903 = vmatmul.msk.f32.vlgmr.msra.gmra.mxu3 %vm595_vm8, %v7059_v10  ;;  %2203 = vadd.xlane.f32.xlu0 %v2202_v2  ;;  %v7194_v58 = vadd.f32 1e-09, %v11665_v11  ;;  %v2186_v10 = vadd.f32 %v2185_v35, %v2184_v24  ;;  %v1263_v29 = vadd.f32 %v7199_v43, %v11666_v37  ;;  %v2187_v22 = vsel %vm11667_vm1, %v2036_v4, 0.0  ;;  %vm11678_vm12 = vmmov %vm11556_vm0 }
 0x189   :  { %v2045_v42 = vmul.f32 %v1261_v60, %v1261_v60  ;;  %v2046_v27 = vmul.f32 %v1262_v5, %v1262_v5  ;;  %v7205_v23 = vadd.f32 1e-09, %v11668_v14  ;;  %v1264_v6 = vadd.f32 %v7211_v57, %v11669_v1  ;;  %vm11679_vm11 = vmmov %vm11556_vm0 }
 0x18a   :  { %5083 = vrsqrt.f32 %v7194_v58  ;;  %v2188_v15 = vadd.f32 %v2187_v22, %v2186_v10  ;;  %v2047_v9 = vmul.f32 %v1263_v29, %v1263_v29  ;;  %v1265_v45 = vadd.f32 %v7220_v36, %v11663_v30  ;;  %vm11680_vm7 = vmmov %vm11556_vm0 }
 0x18b   :  { %v2205_v51 = vadd.f32 %v2046_v27, %v2045_v42  ;;  %v1266_v54 = vadd.f32 %v6531_v18, %v11664_v55  ;;  %v1267_v13 = vadd.f32 %v6540_v34, %v11666_v37  ;;  %v1268_v31 = vadd.f32 %v6547_v19, %v11669_v1  ;;  %v11671_v18 = vld [vmem:[#allocation33_spill] sm:$0xff]  ;;  %v11672_v34 = vld [vmem:[#allocation34_spill] sm:$0xff]  ;;  %vm11687_vm1 = vmmov %vm11556_vm0 }
 0x18c   :  { %2194 = vadd.xlane.f32.xlu2 %v2193_v17  ;;  %v1269_v7 = vadd.f32 %v7233_v50, %v11670_v41  ;;  %v1270_v8 = vadd.f32 %v7240_v63, %v11671_v18  ;;  %v1271_v47 = vadd.f32 %v7199_v43, %v11672_v34  ;;  %v2049_v19 = vmul.f32 %v1265_v45, %v1265_v45  ;;  %v7262_v55 = vld [vmem:[%s11161_s9 + $0x28] sm:$0x3f]  ;;  %v7269_v17 = vld [vmem:[%s11161_s9 + $0x30] sm:$0x3f]  ;;  %v7279_v27 = vld [vmem:[%s11161_s9 + $0x38] sm:$0x3f] }
 0x18d   :  { %v7215_v16 = vpop.eup %5081  ;;  %v2050_v52 = vmul.f32 %v1266_v54, %v1266_v54  ;;  %v2051_v33 = vmul.f32 %v1267_v13, %v1267_v13  ;;  %v1272_v38 = vadd.f32 %v7211_v57, %v11673_v26  ;;  %v2048_v61 = vmul.f32 %v1264_v6, %v1264_v6 }
 0x18e   :  { %v1778_v53 = vmul.f32 %v7215_v16, %v7183_v40  ;;  %v2053_v49 = vmul.f32 %v1269_v7, %v1269_v7  ;;  %v2054_v59 = vmul.f32 %v1270_v8, %v1270_v8  ;;  %v2206_v32 = vadd.f32 %v2205_v51, %v2047_v9 }
 0x18f   :  { %2189 = vadd.xlane.f32.xlu1 %v2188_v15  ;;  %v2052_v44 = vmul.f32 %v1268_v31, %v1268_v31  ;;  %v2210_v21 = vsel %vm11674_vm15, %v2049_v19, 0.0  ;;  %v2211_v12 = vsel %vm11556_vm0, %v2050_v52, 0.0  ;;  %v2055_v24 = vmul.f32 %v1271_v47, %v1271_v47  ;;  %v7283_v9 = vpop.xlane.xlu2 %1592  ;;  %v11683_v52 = vld [vmem:[#allocation36_spill] sm:$0xff] }
 0x190   :  { %v7254_v46 = vpop.eup %5083  ;;  %v2212_v2 = vadd.f32 %v2211_v12, %v2210_v21  ;;  %v2213_v4 = vsel %vm11675_vm10, %v2051_v33, 0.0  ;;  %v2056_v35 = vmul.f32 %v1272_v38, %v1272_v38  ;;  %v2219_v30 = vadd.f32 %v2054_v59, %v2053_v49  ;;  %11677 = vst [vmem:[#allocation49_spill] sm:$0xff] %v7283_v9  ;;  %v7301_v49 = vpop.xlane.xlu0 %1578  ;;  %vm11698_vm10 = vmmov %vm11687_vm1 }
 0x191   :  { %v1273_v60 = vadd.f32 %v7220_v36, %v11670_v41  ;;  %v1274_v5 = vadd.f32 %v7262_v55, %v11671_v18  ;;  %v1275_v11 = vadd.f32 %v7269_v17, %v11672_v34  ;;  %v1779_v10 = vmul.f32 %v7215_v16, %v1778_v53  ;;  %v11681_v34 = vld [vmem:[#allocation67_spill] sm:$0xff]  ;;  %v7299_v53 = vpop.xlane.xlu1 %1587  ;;  %11686 = vst [vmem:[#allocation16_spill] sm:$0xff] %v7301_v49 }
 0x192   :  { %5085 = vrsqrt.f32 %v7205_v23  ;;  %v2207_v37 = vadd.f32 %v2206_v32, %v2048_v61  ;;  %v2215_v29 = vsel %vm11676_vm13, %v2052_v44, 0.0  ;;  %v2214_v22 = vadd.f32 %v2213_v4, %v2212_v2  ;;  %11685 = vst [vmem:[#allocation54_spill] sm:$0xff] %v7299_v53  ;;  %v11688_v44 = vld [vmem:[#allocation38_spill] sm:$0xff]  ;;  %v11689_v2 = vld [vmem:[#allocation68_spill] sm:$0xff]  ;;  %vm11699_vm13 = vmmov %vm11687_vm1 }
 0x193   :  { %v2220_v42 = vadd.f32 %v2219_v30, %v2055_v24  ;;  %v1276_v14 = vadd.f32 %v7279_v27, %v11673_v26  ;;  %v2057_v15 = vmul.f32 %v1273_v60, %v1273_v60  ;;  %v2058_v1 = vmul.f32 %v1274_v5, %v1274_v5  ;;  %v11684_v26 = vld [vmem:[#allocation37_spill] sm:$0xff] }
 0x194   :  { %v2059_v6 = vmul.f32 %v1275_v11, %v1275_v11  ;;  %v2216_v51 = vadd.f32 %v2215_v29, %v2214_v22  ;;  %v1780_v13 = vmul.f32 0.5, %v1779_v10  ;;  %v1766_v41 = vmul.f32 %v7254_v46, %v7194_v58 }
 0x195   :  { %v2221_v45 = vadd.f32 %v2220_v42, %v2056_v35  ;;  %v2224_v54 = vsel %vm11678_vm12, %v2057_v15, 0.0  ;;  %v2060_v31 = vmul.f32 %v1276_v14, %v1276_v14  ;;  %v2225_v7 = vsel %vm11679_vm11, %v2058_v1, 0.0  ;;  %v11691_v35 = vld [vmem:[#allocation39_spill] sm:$0xff]  ;;  %vm11700_vm11 = vmmov %vm11687_vm1 }
 0x196   :  { %2217 = vadd.xlane.f32.xlu2 %v2216_v51  ;;  %v2227_v18 = vsel %vm11680_vm7, %v2059_v6, 0.0  ;;  %v7293_v47 = vadd.f32 1e-09, %v11681_v34  ;;  %v2226_v19 = vadd.f32 %v2225_v7, %v2224_v54  ;;  %v1277_v33 = vadd.f32 %v7233_v50, %v11683_v52  ;;  %v11693_v51 = vld [vmem:[#allocation62_spill] sm:$0xff]  ;;  %vm11701_vm7 = vmmov %vm11687_vm1 }
 0x197   :  { %2208 = vadd.xlane.f32.xlu1 %v2207_v37  ;;  %2222 = vadd.xlane.f32.xlu0 %v2221_v45  ;;  %v1278_v38 = vadd.f32 %v7240_v63, %v11684_v26  ;;  %v1781_v61 = vsub.f32 1.5, %v1780_v13  ;;  %v2229_v32 = vsel %vm11687_vm1, %v2060_v31, 0.0  ;;  %v1279_v21 = vadd.f32 %v7199_v43, %v11688_v44  ;;  %v7318_v42 = vpop.xlane.xlu2 %1615 }
 0x198   :  { %v7290_v8 = vpop.eup %5085  ;;  %11682 = vst [vmem:[#allocation56_spill] sm:$0xff] %v7293_v47  ;;  %v2228_v59 = vadd.f32 %v2227_v18, %v2226_v19  ;;  %v1767_v12 = vmul.f32 %v7254_v46, %v1766_v41  ;;  %v7310_v4 = vadd.f32 1e-09, %v11689_v2  ;;  %5087 = vrsqrt.f32 %v7293_v47  ;;  %v7337_v19 = vpop.xlane.xlu0 %1601 }
 0x199   :  { %v1790_v24 = vmul.f32 %v7290_v8, %v7205_v23  ;;  %v1280_v30 = vadd.f32 %v7211_v57, %v11691_v35  ;;  %v2061_v60 = vmul.f32 %v1277_v33, %v1277_v33  ;;  %v2062_v5 = vmul.f32 %v1278_v38, %v1278_v38  ;;  %11692 = vst [vmem:[#allocation18_spill] sm:$0xff] %v7318_v42 }
 0x19a   :  { %11690 = vst [vmem:[#allocation17_spill] sm:$0xff] %v7310_v4  ;;  %v2230_v11 = vadd.f32 %v2229_v32, %v2228_v59  ;;  %v1782_v10 = vmul.f32 %v7215_v16, %v1781_v61  ;;  %v2063_v37 = vmul.f32 %v1279_v21, %v1279_v21  ;;  %v1768_v29 = vmul.f32 0.5, %v1767_v12 }
 0x19b   :  { %v1791_v22 = vmul.f32 %v7290_v8, %v1790_v24  ;;  %5089 = vrsqrt.f32 %v7310_v4  ;;  %v1281_v14 = vadd.f32 %v7220_v36, %v11683_v52  ;;  %v2064_v15 = vmul.f32 %v1280_v30, %v1280_v30  ;;  %v7333_v18 = vpop.xlane.xlu1 %1606  ;;  %11696 = vst [vmem:[#allocation20_spill] sm:$0xff] %v7337_v19 }
 0x19c   :  { %v2233_v1 = vadd.f32 %v2062_v5, %v2061_v60  ;;  %v1282_v6 = vadd.f32 %v7262_v55, %v11684_v26  ;;  %v1283_v16 = vadd.f32 %v7269_v17, %v11688_v44  ;;  %v7327_v45 = vadd.f32 1e-09, %v11693_v51  ;;  %11695 = vst [vmem:[#allocation99_spill] sm:$0xff] %v7333_v18  ;;  %v11718_v60 = vld [vmem:[#allocation70_spill] sm:$0xff] }
 0x19d   :  { %v1783_v13 = vmul.f32 %v1782_v10, %v7183_v40  ;;  %vm1784_vm15 = vcmp.eq.f32.partialorder %v7183_v40, inf  ;;  %v1769_v41 = vsub.f32 1.5, %v1768_v29  ;;  %v1792_v7 = vmul.f32 0.5, %v1791_v22 }
 0x19e   :  { %11694 = vst [vmem:[#allocation19_spill] sm:$0xff] %v7327_v45  ;;  %v7329_v54 = vpop.eup %5087  ;;  %v2234_v31 = vadd.f32 %v2233_v1, %v2063_v37  ;;  %v1284_v34 = vadd.f32 %v7279_v27, %v11691_v35  ;;  %v2065_v33 = vmul.f32 %v1281_v14, %v1281_v14  ;;  %v2066_v26 = vmul.f32 %v1282_v6, %v1282_v6  ;;  %v11703_v6 = vld [vmem:[#allocation76_spill] sm:$0xff]  ;;  %v11717_v14 = vld [vmem:[#allocation69_spill] sm:$0xff] }
 0x19f   :  { %2231 = vadd.xlane.f32.xlu1 %v2230_v11  ;;  %v2067_v38 = vmul.f32 %v1283_v16, %v1283_v16  ;;  %vm1786_vm0 = vcmp.eq.f32.partialorder %v7183_v40, 0.0  ;;  %v1787_v59 = vand.u32 2147483648, %v7183_v40  ;;  %v1802_v32 = vmul.f32 %v7329_v54, %v7293_v47 }
 0x1a0   :  { %v2235_v52 = vadd.f32 %v2234_v31, %v2064_v15  ;;  %5091 = vrsqrt.f32 %v7327_v45  ;;  %v1785_v44 = vsel %vm1784_vm15, %v7183_v40, %v1783_v13  ;;  %v2068_v21 = vmul.f32 %v1284_v34, %v1284_v34  ;;  %v2111_v22 = vpop.xlane.xlu2 %2110  ;;  %vm11720_vm15 = vmmov %vm11701_vm7 }
 0x1a1   :  { %v7339_v61 = vpop.eup %5089  ;;  %v2238_v12 = vsel %vm11698_vm10, %v2065_v33, 0.0  ;;  %v2239_v24 = vsel %vm11699_vm13, %v2066_v26, 0.0  ;;  %v1770_v2 = vmul.f32 %v7254_v46, %v1769_v41  ;;  %v1793_v35 = vsub.f32 1.5, %v1792_v7  ;;  %v11705_v41 = vld [vmem:[#allocation77_spill] sm:$0xff]  ;;  %v11707_v26 = vld [vmem:[#allocation74_spill] sm:$0xff]  ;;  %vm11722_vm10 = vmmov %vm11701_vm7 }
 0x1a2   :  { %11697 = vst [vmem:[#allocation21_spill] sm:$0xff] %v7339_v61  ;;  %2236 = vadd.xlane.f32.xlu2 %v2235_v52  ;;  %v2240_v30 = vadd.f32 %v2239_v24, %v2238_v12  ;;  %vm1772_vm12 = vcmp.eq.f32.partialorder %v7194_v58, inf  ;;  %v2241_v5 = vsel %vm11700_vm11, %v2067_v38, 0.0  ;;  %v2243_v11 = vsel %vm11701_vm7, %v2068_v21, 0.0  ;;  %v11709_v21 = vld [vmem:[#allocation78_spill] sm:$0xff]  ;;  %vm11723_vm13 = vmmov %vm11701_vm7 }
 0x1a3   :  { %v7356_v10 = vsel %vm1786_vm0, %v1787_v59, %v1785_v44  ;;  %v1803_v37 = vmul.f32 %v7329_v54, %v1802_v32  ;;  %v1814_v29 = vmul.f32 %v7339_v61, %v7310_v4  ;;  %v7363_v1 = vadd.f32 1e-09, %v2111_v22  ;;  %v11708_v44 = vld [vmem:[#allocation75_spill] sm:$0xff] }
 0x1a4   :  { %11702 = vst [vmem:[#allocation22_spill] sm:$0xff] %v7356_v10  ;;  %v2242_v46 = vadd.f32 %v2241_v5, %v2240_v30  ;;  %v1285_v16 = vadd.f32 %v7233_v50, %v11703_v6  ;;  %v1771_v40 = vmul.f32 %v1770_v2, %v7194_v58  ;;  %v1794_v13 = vmul.f32 %v7290_v8, %v1793_v35  ;;  %v2106_v24 = vpop.xlane.xlu1 %2105  ;;  %v11710_v35 = vld [vmem:[#allocation79_spill] sm:$0xff]  ;;  %v11719_v10 = vld [vmem:[#allocation72_spill] sm:$0xff] }
 0x1a5   :  { %v1286_v7 = vadd.f32 %v7240_v63, %v11705_v41  ;;  %v7377_v38 = vadd.f32 1e-09, %v11707_v26  ;;  %5093 = vrsqrt.f32 %v7363_v1  ;;  %v7380_v59 = vmul.f32 0.5, %v1803_v37  ;;  %v2097_v37 = vpop.xlane.xlu0 %2096 }
 0x1a6   :  { %v7367_v51 = vpop.eup %5091  ;;  %v2244_v31 = vadd.f32 %v2243_v11, %v2242_v46  ;;  %v1815_v32 = vmul.f32 %v7339_v61, %v1814_v29  ;;  %v7384_v8 = vadd.f32 1e-09, %v11708_v44  ;;  %v1287_v12 = vadd.f32 %v7199_v43, %v11709_v21 }
 0x1a7   :  { %11704 = vst [vmem:[#allocation23_spill] sm:$0xff] %v7367_v51  ;;  %v1826_v2 = vmul.f32 %v7367_v51, %v7327_v45  ;;  %v1288_v30 = vadd.f32 %v7211_v57, %v11710_v35  ;;  %v2069_v5 = vmul.f32 %v1285_v16, %v1285_v16  ;;  %v2070_v11 = vmul.f32 %v1286_v7, %v1286_v7 }
 0x1a8   :  { %2245 = vadd.xlane.f32.xlu0 %v2244_v31  ;;  %v7395_v29 = vsel %vm1772_vm12, %v7194_v58, %v1771_v40  ;;  %v7398_v46 = vmul.f32 %v1794_v13, %v7205_v23  ;;  %v2071_v31 = vmul.f32 %v1287_v12, %v1287_v12  ;;  %5095 = vrsqrt.f32 %v7377_v38  ;;  %vm11724_vm12 = vmmov %vm11701_vm7 }
 0x1a9   :  { %11711 = vst [vmem:[#allocation97_spill] sm:$0xff] %v7395_v29  ;;  %v2072_v26 = vmul.f32 %v1288_v30, %v1288_v30  ;;  %v2247_v44 = vadd.f32 %v2070_v11, %v2069_v5  ;;  %v7402_v52 = vadd.f32 1e-09, %v2106_v24  ;;  %v7405_v7 = vmul.f32 0.5, %v1815_v32  ;;  %v11713_v24 = vld [vmem:[#allocation63_spill] sm:$0xff] }
 0x1aa   :  { %11712 = vst [vmem:[#allocation96_spill] sm:$0xff] %v7398_v46  ;;  %5097 = vrsqrt.f32 %v7384_v8  ;;  %v7408_v40 = vadd.f32 1e-09, %v2097_v37  ;;  %v7411_v13 = vmul.f32 %v7367_v51, %v1826_v2  ;;  %v1289_v12 = vadd.f32 %v7220_v36, %v11703_v6 }
 0x1ab   :  { %v5094_v33 = vpop.eup %5093  ;;  %v2248_v22 = vadd.f32 %v2247_v44, %v2071_v31  ;;  %5099 = vrsqrt.f32 %v7402_v52  ;;  %v7417_v30 = vadd.f32 1e-09, %v11713_v24  ;;  %v11714_v5 = vunpack.i.h.bf16 %v6659_v28 }
 0x1ac   :  { %v2342_v32 = vmul.f32 %v5094_v33, %v7363_v1  ;;  %5101 = vrsqrt.f32 %v7408_v40  ;;  %v7429_v11 = vadd.s32 4294967282, %v6204_v3  ;;  %v7433_v31 = vadd.s32 4294967274, %v6204_v3 }
 0x1ad   :  { %v7426_v2 = vsel %vm514_vm6, %v11714_v5, %v7250_v20  ;;  %v2249_v6 = vadd.f32 %v2248_v22, %v2072_v26  ;;  %v1290_v15 = vadd.f32 %v7262_v55, %v11705_v41  ;;  %v1291_v28 = vadd.f32 %v7269_v17, %v11709_v21 }
 0x1ae   :  { %11715 = vst [vmem:[#allocation24_spill] sm:$0xff] %v7429_v11  ;;  %v2343_v44 = vmul.f32 %v5094_v33, %v2342_v32  ;;  %v7440_v5 = vpop.eup %5095  ;;  %vm2348_vm1 = vcmp.eq.f32.partialorder %v7363_v1, inf  ;;  %v1292_v22 = vadd.f32 %v7279_v27, %v11710_v35  ;;  %v2073_v26 = vmul.f32 %v1289_v12, %v1289_v12  ;;  %v11721_v35 = vld [vmem:[#allocation73_spill] sm:$0xff] }
 0x1af   :  { %11716 = vst [vmem:[#allocation98_spill] sm:$0xff] %v7433_v31  ;;  %2250 = vadd.xlane.f32.xlu1 %v2249_v6  ;;  %v1293_v32 = vadd.f32 %v7233_v50, %v11717_v14  ;;  %v1294_v16 = vadd.f32 %v7240_v63, %v11718_v60  ;;  %v2074_v37 = vmul.f32 %v1290_v15, %v1290_v15  ;;  %vm2350_vm0 = vcmp.eq.f32.partialorder %v7363_v1, 0.0 }
 0x1b0   :  { %v7449_v24 = vpop.eup %5097  ;;  %v2344_v41 = vmul.f32 0.5, %v2343_v44  ;;  %v2075_v21 = vmul.f32 %v1291_v28, %v1291_v28  ;;  %v1295_v19 = vadd.f32 %v7199_v43, %v11719_v10  ;;  %v2076_v6 = vmul.f32 %v1292_v22, %v1292_v22  ;;  %v579_v28 = vpop.permute.xlu2 %578 }
 0x1b1   :  { %v5100_v18 = vpop.eup %5099  ;;  %v2252_v42 = vsel %vm11720_vm15, %v2073_v26, 0.0  ;;  %v1296_v12 = vadd.f32 %v7211_v57, %v11721_v35  ;;  %v2077_v49 = vmul.f32 %v1293_v32, %v1293_v32  ;;  %v2253_v15 = vsel %vm11722_vm10, %v2074_v37, 0.0 }
 0x1b2   :  { %v5102_v53 = vpop.eup %5101  ;;  %v2345_v9 = vsub.f32 1.5, %v2344_v41  ;;  %v2330_v34 = vmul.f32 %v5100_v18, %v7402_v52  ;;  %v2255_v44 = vsel %vm11723_vm13, %v2075_v21, 0.0  ;;  %v2254_v22 = vadd.f32 %v2253_v15, %v2252_v42  ;;  %vm11729_vm13 = vmmov %vm11722_vm10 }
 0x1b3   :  { %v2318_v46 = vmul.f32 %v5102_v53, %v7408_v40  ;;  %v2257_v26 = vsel %vm11724_vm12, %v2076_v6, 0.0  ;;  %v2078_v29 = vmul.f32 %v1294_v16, %v1294_v16  ;;  %vm2324_vm11 = vcmp.eq.f32.partialorder %v7408_v40, inf  ;;  %v11726_v16 = vld [vmem:[#allocation90_spill] sm:$0xff]  ;;  %vm11731_vm12 = vmmov %vm11722_vm10 }
 0x1b4   :  { %v2346_v45 = vmul.f32 %v5094_v33, %v2345_v9  ;;  %v2331_v51 = vmul.f32 %v5100_v18, %v2330_v34  ;;  %v2079_v32 = vmul.f32 %v1295_v19, %v1295_v19  ;;  %v2080_v41 = vmul.f32 %v1296_v12, %v1296_v12  ;;  %v2125_v12 = vpop.xlane.xlu1 %2124 }
 0x1b5   :  { %vm2336_vm7 = vcmp.eq.f32.partialorder %v7402_v52, inf  ;;  %v2319_v4 = vmul.f32 %v5102_v53, %v2318_v46  ;;  %v2256_v61 = vadd.f32 %v2255_v44, %v2254_v22  ;;  %v2261_v37 = vadd.f32 %v2078_v29, %v2077_v49 }
 0x1b6   :  { %v11725_v21 = vunpack.i.h.bf16 %v6683_v48  ;;  %v2347_v42 = vmul.f32 %v2346_v45, %v7363_v1  ;;  %v2332_v6 = vmul.f32 0.5, %v2331_v51  ;;  %v11727_v9 = vunpack.i.l.bf16 %v11726_v16 }
 0x1b7   :  { %v1297_v19 = vadd.f32 %v7220_v36, %v11717_v14  ;;  %v2320_v33 = vmul.f32 0.5, %v2319_v4  ;;  %v2258_v46 = vadd.f32 %v2257_v26, %v2256_v61  ;;  %v2262_v49 = vadd.f32 %v2261_v37, %v2079_v32  ;;  %v2120_v14 = vpop.xlane.xlu0 %2119 }
 0x1b8   :  { %v581_v47 = vsel %vm580_vm14, %v11725_v21, %v579_v28  ;;  %v587_v34 = vsel %vm580_vm14, %v579_v28, %v11727_v9  ;;  %v1298_v48 = vadd.f32 %v7262_v55, %v11718_v60  ;;  %v2333_v29 = vsub.f32 1.5, %v2332_v6  ;;  %vm11728_vm14 = vmmov %vm11722_vm10 }
 0x1b9   :  { %706 = vmatpush.msra.mxu0 %v581_v47  ;;  %726 = vmatpush.msra.mxu1 %v587_v34  ;;  %vm2326_vm15 = vcmp.eq.f32.partialorder %v7408_v40, 0.0  ;;  %v1299_v45 = vadd.f32 %v7269_v17, %v11719_v10  ;;  %v1300_v51 = vadd.f32 %v7279_v27, %v11721_v35  ;;  %v2321_v15 = vsub.f32 1.5, %v2320_v33 }
 0x1ba   :  { %v2327_v47 = vand.u32 2147483648, %v7408_v40  ;;  %2259 = vadd.xlane.f32.xlu2 %v2258_v46  ;;  %v2263_v4 = vadd.f32 %v2262_v49, %v2080_v41  ;;  %v2081_v61 = vmul.f32 %v1297_v19, %v1297_v19  ;;  %v2349_v60 = vsel %vm2348_vm1, %v7363_v1, %v2347_v42  ;;  %v11732_v19 = vld [vmem:[#allocation87_spill] sm:$0xff] }
 0x1bb   :  { %v2334_v44 = vmul.f32 %v5100_v18, %v2333_v29  ;;  %v2082_v28 = vmul.f32 %v1298_v48, %v1298_v48  ;;  %v2083_v22 = vmul.f32 %v1299_v45, %v1299_v45  ;;  %v2322_v26 = vmul.f32 %v5102_v53, %v2321_v15 }
 0x1bc   :  { %2264 = vadd.xlane.f32.xlu0 %v2263_v4  ;;  %v2084_v10 = vmul.f32 %v1300_v51, %v1300_v51  ;;  %v2266_v35 = vsel %vm11728_vm14, %v2081_v61, 0.0  ;;  %v7487_v32 = vadd.f32 1e-09, %v2125_v12  ;;  %v7492_v6 = vadd.f32 1e-09, %v2120_v14  ;;  %v11735_v4 = vld [vmem:[#allocation82_spill] sm:$0xff] }
 0x1bd   :  { %v2335_v37 = vmul.f32 %v2334_v44, %v7402_v52  ;;  %v2267_v41 = vsel %vm11722_vm10, %v2082_v28, 0.0  ;;  %v2269_v21 = vsel %vm11729_vm13, %v2083_v22, 0.0  ;;  %v11730_v42 = vand.u32 2147483648, %v7363_v1  ;;  %v11736_v14 = vld [vmem:[#allocation83_spill] sm:$0xff]  ;;  %v11737_v44 = vld [vmem:[#allocation84_spill] sm:$0xff]  ;;  %v11738_v22 = vld [vmem:[#allocation85_spill] sm:$0xff] }
 0x1be   :  { %v2323_v53 = vmul.f32 %v2322_v26, %v7408_v40  ;;  %v2268_v16 = vadd.f32 %v2267_v41, %v2266_v35  ;;  %5103 = vrsqrt.f32 %v7487_v32  ;;  %vm2338_vm1 = vcmp.eq.f32.partialorder %v7402_v52, 0.0 }
 0x1bf   :  { %v7498_v18 = vsel %vm2350_vm0, %v11730_v42, %v2349_v60  ;;  %v2337_v9 = vsel %vm2336_vm7, %v7402_v52, %v2335_v37  ;;  %v2271_v34 = vsel %vm11731_vm12, %v2084_v10, 0.0  ;;  %v11733_v33 = vunpack.i.l.bf16 %v11732_v19  ;;  %v7556_v19 = vld [vmem:[%s11161_s9 + $0x40] sm:$0xff]  ;;  %vm11739_vm7 = vmmov %vm11722_vm10 }
 0x1c0   :  { %v11734_v46 = vand.u32 2147483648, %v7402_v52  ;;  %v2325_v48 = vsel %vm2324_vm11, %v7408_v40, %v2323_v53  ;;  %v2270_v29 = vadd.f32 %v2269_v21, %v2268_v16  ;;  %5105 = vrsqrt.f32 %v7492_v6  ;;  %vm11741_vm14 = vmmov %vm11739_vm7 }
 0x1c1   :  { %v7512_v1 = vsel %vm514_vm6, %v7250_v20, %v11733_v33  ;;  %v2774_v45 = vperm.slane %v7498_v18, %v7429_v11  ;;  %vm11471_vm0 = vcmask 244912   ;;  %v2328_v20 = vsel %vm2326_vm15, %v2327_v47, %v2325_v48  ;;  %v7561_v33 = vld [vmem:[%s11161_s9 + $0x50] sm:$0xff]  ;;  %vm11740_vm15 = vmmov %vm11739_vm7 }
 0x1c2   :  { %v2340_v49 = vsel %vm2338_vm1, %v11734_v46, %v2337_v9  ;;  %v2769_v12 = vperm.slane %v2328_v20, %v7429_v11  ;;  %v2272_v52 = vadd.f32 %v2271_v34, %v2270_v29  ;;  %v2375_v15 = vand.u32 2147483648, %v7487_v32  ;;  %vm11742_vm13 = vmmov %vm11739_vm7 }
 0x1c3   :  { %v2771_v51 = vperm.slane %v2340_v49, %v7433_v31  ;;  %v1301_v61 = vadd.f32 %v7233_v50, %v11735_v4  ;;  %v1302_v60 = vadd.f32 %v7240_v63, %v11736_v14  ;;  %v1303_v28 = vadd.f32 %v7199_v43, %v11737_v44  ;;  %v7547_v43 = vld [vmem:[%s11161_s9 + $0x48] sm:$0xff] }
 0x1c4   :  { %v1304_v26 = vadd.f32 %v7211_v57, %v11738_v22  ;;  %v1305_v40 = vadd.f32 %v7220_v36, %v11735_v4  ;;  %v5104_v47 = vpop.eup %5103  ;;  %2273 = vadd.xlane.f32.xlu1 %v2272_v52  ;;  %v1306_v50 = vadd.f32 %v7262_v55, %v11736_v14  ;;  %v1307_v63 = vadd.f32 %v7269_v17, %v11737_v44 }
 0x1c5   :  { %v7538_v10 = vsel %vm11471_vm0, %v2771_v51, %v2769_v12  ;;  %v2085_v35 = vmul.f32 %v1301_v61, %v1301_v61  ;;  %v2366_v57 = vmul.f32 %v5104_v47, %v7487_v32  ;;  %v2086_v36 = vmul.f32 %v1302_v60, %v1302_v60  ;;  %v557_v61 = vpop.permute.xlu1 %556 }
 0x1c6   :  { %v2087_v37 = vmul.f32 %v1303_v28, %v1303_v28  ;;  %v2088_v41 = vmul.f32 %v1304_v26, %v1304_v26  ;;  %v5106_v21 = vpop.eup %5105  ;;  %v1308_v42 = vadd.f32 %v7279_v27, %v11738_v22  ;;  %v2089_v53 = vmul.f32 %v1305_v40, %v1305_v40  ;;  %v7566_v27 = vld [vmem:[%s11161_s9 + $0x58] sm:$0xff] }
 0x1c7   :  { %v2090_v16 = vmul.f32 %v1306_v50, %v1306_v50  ;;  %v2091_v55 = vmul.f32 %v1307_v63, %v1307_v63  ;;  %v2367_v9 = vmul.f32 %v5104_v47, %v2366_v57  ;;  %v2354_v17 = vmul.f32 %v5106_v21, %v7492_v6  ;;  %v11744_v63 = vld [vmem:[#allocation89_spill] sm:$0xff] }
 0x1c8   :  { %v2275_v34 = vadd.f32 %v2086_v36, %v2085_v35  ;;  %v7569_v46 = vrot.slane %v7547_v43, 7  ;;  %vm2372_vm6 = vcmp.eq.f32.partialorder %v7487_v32, inf  ;;  %vm2360_vm11 = vcmp.eq.f32.partialorder %v7492_v6, inf }
 0x1c9   :  { %v2092_v49 = vmul.f32 %v1308_v42, %v1308_v42  ;;  %v2280_v48 = vsel %vm11739_vm7, %v2089_v53, 0.0  ;;  %v2281_v29 = vsel %vm11740_vm15, %v2090_v16, 0.0  ;;  %v2283_v51 = vsel %vm11741_vm14, %v2091_v55, 0.0 }
 0x1ca   :  { %v2368_v20 = vmul.f32 0.5, %v2367_v9  ;;  %v2355_v12 = vmul.f32 %v5106_v21, %v2354_v17  ;;  %v2276_v52 = vadd.f32 %v2275_v34, %v2087_v37  ;;  %v2282_v4 = vadd.f32 %v2281_v29, %v2280_v48  ;;  %v11746_v37 = vld [vmem:[#allocation95_spill] sm:$0xff]  ;;  %v7603_v17 = vld [vmem:[%s11161_s9 + $0x60] sm:$0x3f] }
 0x1cb   :  { %vm2374_vm10 = vcmp.eq.f32.partialorder %v7487_v32, 0.0  ;;  %v2285_v14 = vsel %vm11742_vm13, %v2092_v49, 0.0  ;;  %v7579_v60 = vrot.slane %v7561_v33, 6  ;;  %v7582_v44 = vrot.slane %v7566_v27, 5 }
 0x1cc   :  { %vm11743_vm1 = vcmask 1040384   ;;  %v2369_v22 = vsub.f32 1.5, %v2368_v20  ;;  %v2356_v26 = vmul.f32 0.5, %v2355_v12  ;;  %v2277_v40 = vadd.f32 %v2276_v52, %v2088_v41 }
 0x1cd   :  { %v2954_v28 = vsel %vm11743_vm1, %v7556_v19, %v7569_v46  ;;  %v2284_v35 = vadd.f32 %v2283_v51, %v2282_v4  ;;  %vm2362_vm12 = vcmp.eq.f32.partialorder %v7492_v6, 0.0  ;;  %v2955_v50 = vsel %vm11454_vm3, %v7579_v60, %v7582_v44 }
 0x1ce   :  { %v11745_v57 = vunpack.i.h.bf16 %v11744_v63  ;;  %v11747_v42 = vunpack.i.l.bf16 %v11746_v37  ;;  %v2370_v16 = vmul.f32 %v5104_v47, %v2369_v22  ;;  %v2357_v55 = vsub.f32 1.5, %v2356_v26  ;;  %2278 = vadd.xlane.f32.xlu2 %v2277_v40  ;;  %v7616_v47 = vld [vmem:[%s11161_s9 + $0x68] sm:$0x3f]  ;;  %v7646_v26 = vld [vmem:[%s11161_s9 + $0x78] sm:$0x3f] }
 0x1cf   :  { %v2286_v41 = vadd.f32 %v2285_v14, %v2284_v35  ;;  %vm11748_vm7 = vcmask 1041408   ;;  %v2363_v12 = vand.u32 2147483648, %v7492_v6  ;;  %v2957_v52 = vsel %vm11470_vm4, %v7556_v19, %v7569_v46 }
 0x1d0   :  { %v559_v36 = vsel %vm558_vm5, %v11745_v57, %v557_v61  ;;  %v565_v53 = vsel %vm558_vm5, %v557_v61, %v11747_v42  ;;  %v2956_v9 = vsel %vm11748_vm7, %v2954_v28, %v2955_v50  ;;  %v2371_v51 = vmul.f32 %v2370_v16, %v7487_v32  ;;  %v11749_v42 = vld [vmem:[#allocation45_spill] sm:$0xff] }
 0x1d1   :  { %707 = vmatpush.msra.mxu0 %v559_v36  ;;  %v7605_v34 = vperm.slane %v2956_v9, 0  ;;  %v7607_v49 = vperm.slane %v2956_v9, 1  ;;  %v7609_v48 = vperm.slane %v2956_v9, 2  ;;  %v7611_v29 = vperm.slane %v2956_v9, 3  ;;  %727 = vmatpush.msra.mxu1 %v565_v53 }
 0x1d2   :  { %v2358_v20 = vmul.f32 %v5106_v21, %v2357_v55  ;;  %2287 = vadd.xlane.f32.xlu0 %v2286_v41  ;;  %v2373_v28 = vsel %vm2372_vm6, %v7487_v32, %v2371_v51  ;;  %v11750_v55 = vld [vmem:[#allocation59_spill] sm:$0xff]  ;;  %vm11751_vm5 = vcmask 1042433   ;;  %vm11753_vm6 = vmmov %vm11742_vm13  ;;  %vm11762_vm13 = vcmask 1045509  }
 0x1d3   :  { %708 = vmatpush.msra.mxu0 %v7143_v25  ;;  %v3120_v4 = vsub.f32 %v7605_v34, %v7556_v19  ;;  %v3121_v61 = vsub.f32 %v7607_v49, %v7547_v43  ;;  %v3122_v14 = vsub.f32 %v7609_v48, %v7561_v33  ;;  %v3123_v21 = vsub.f32 %v7611_v29, %v7566_v27  ;;  %v7636_v25 = vld [vmem:[%s11161_s9 + $0x70] sm:$0x3f]  ;;  %vm11755_vm15 = vmmov %vm11753_vm6 }
 0x1d4   :  { %728 = vmatpush.msra.mxu1 %v7152_v39  ;;  %v2359_v22 = vmul.f32 %v2358_v20, %v7492_v6  ;;  %v3124_v39 = vsub.f32 %v7605_v34, %v7603_v17  ;;  %v3125_v40 = vsub.f32 %v7607_v49, %v7616_v47  ;;  %v7660_v57 = vsel %vm2374_vm10, %v2375_v15, %v2373_v28  ;;  %vm11757_vm14 = vmmov %vm11753_vm6 }
 0x1d5   :  { %709 = vmatpush.msra.mxu0 %v7426_v2  ;;  %v3344_v35 = vmul.f32 %v3120_v4, %v3120_v4  ;;  %v3345_v50 = vmul.f32 %v3121_v61, %v3121_v61  ;;  %v3346_v63 = vmul.f32 %v3122_v14, %v3122_v14  ;;  %v2958_v2 = vsel %vm11453_vm2, %v7579_v60, %v7582_v44  ;;  %v11752_v4 = vld [vmem:[#allocation91_spill] sm:$0xff]  ;;  %vm11763_vm1 = vmmov %vm11753_vm6 }
 0x1d6   :  { %729 = vmatpush.msra.mxu1 %v7512_v1  ;;  %v2361_v36 = vsel %vm2360_vm11, %v7492_v6, %v2359_v22  ;;  %v3347_v37 = vmul.f32 %v3123_v21, %v3123_v21  ;;  %v3126_v1 = vsub.f32 %v7609_v48, %v7636_v25  ;;  %v3127_v32 = vsub.f32 %v7611_v29, %v7646_v26  ;;  %vm11754_vm11 = vmmov %vm11753_vm6 }
 0x1d7   :  { %710 = vmatpush.msra.mxu0 %v11749_v42  ;;  %v2364_v53 = vsel %vm2362_vm12, %v2363_v12, %v2361_v36  ;;  %v3456_v16 = vadd.f32 %v3345_v50, %v3344_v35  ;;  %v3348_v15 = vmul.f32 %v3124_v39, %v3124_v39  ;;  %v3349_v9 = vmul.f32 %v3125_v40, %v3125_v40  ;;  %v11756_v39 = vld [vmem:[#allocation92_spill] sm:$0xff]  ;;  %v11758_v36 = vld [vmem:[#allocation93_spill] sm:$0xff]  ;;  %vm11764_vm12 = vmmov %vm11763_vm1 }
 0x1d8   :  { %730 = vmatpush.msra.mxu1 %v11750_v55  ;;  %v2775_v41 = vperm.slane %v2364_v53, %v7433_v31  ;;  %v3350_v51 = vmul.f32 %v3126_v1, %v3126_v1  ;;  %v2959_v20 = vsel %vm11751_vm5, %v2957_v52, %v2958_v2  ;;  %v3351_v14 = vmul.f32 %v3127_v32, %v3127_v32  ;;  %vm11765_vm7 = vmmov %vm11763_vm1 }
 0x1d9   :  { %711 = vmatpush.msra.mxu0 %v11752_v4  ;;  %v3457_v61 = vadd.f32 %v3456_v16, %v3346_v63  ;;  %v3461_v6 = vsel %vm11753_vm6, %v3348_v15, 0.0  ;;  %v2960_v12 = vrot.slane %v2959_v20, 1  ;;  %v3462_v28 = vsel %vm11754_vm11, %v3349_v9, 0.0  ;;  %v11759_v16 = vld [vmem:[#allocation94_spill] sm:$0xff]  ;;  %vm11767_vm5 = vmmov %vm11763_vm1 }
 0x1da   :  { %731 = vmatpush.msra.mxu1 %v7161_v0  ;;  %v2776_v21 = vsel %vm11471_vm0, %v2775_v41, %v2774_v45  ;;  %v3464_v22 = vsel %vm11755_vm15, %v3350_v51, 0.0  ;;  %v2961_v52 = vsel %vm11454_vm3, %v7556_v19, %v7569_v46  ;;  %v3463_v35 = vadd.f32 %v3462_v28, %v3461_v6  ;;  %v11760_v9 = vld [vmem:[#allocation102_spill] sm:$0xff]  ;;  %vm11775_vm11 = vmmov %vm11763_vm1 }
 0x1db   :  { %712 = vmatpush.msra.mxu0 %v11756_v39  ;;  %v7690_v40 = vsel %vm11470_vm4, %v2776_v21, %v7538_v10  ;;  %v3458_v0 = vadd.f32 %v3457_v61, %v3347_v37  ;;  %v3466_v18 = vsel %vm11757_vm14, %v3351_v14, 0.0  ;;  %v7694_v45 = vperm.slane %v2960_v12, 0  ;;  %v5301_v14 = vld [vmem:[#allocation8] sm:$0x7]  ;;  %vm11777_vm15 = vmmov %vm11763_vm1 }
 0x1dc   :  { %732 = vmatpush.msra.mxu1 %v7174_v62  ;;  %v7696_v50 = vperm.slane %v2960_v12, 1  ;;  %v7698_v63 = vperm.slane %v2960_v12, 2  ;;  %v7700_v2 = vperm.slane %v2960_v12, 3  ;;  %v7704_v42 = vmul.f32 0.5, %v7411_v13  ;;  %vm11778_vm14 = vmmov %vm11763_vm1 }
 0x1dd   :  { %713 = vmatpush.msra.mxu0 %v11758_v36  ;;  %3459 = vadd.xlane.f32.xlu0 %v3458_v0  ;;  %v3465_v10 = vadd.f32 %v3464_v22, %v3463_v35  ;;  %v2962_v62 = vsel %vm11337_vm9, %v7579_v60, %v7582_v44  ;;  %v2965_v37 = vsel %vm11453_vm2, %v7556_v19, %v7569_v46  ;;  %vm11761_vm10 = vcmask 1043458  }
 0x1de   :  { %733 = vmatpush.msra.mxu1 %v6963_v56  ;;  %v3128_v1 = vsub.f32 %v7694_v45, %v7556_v19  ;;  %v3129_v53 = vsub.f32 %v7696_v50, %v7547_v43  ;;  %v3130_v13 = vsub.f32 %v7698_v63, %v7561_v33  ;;  %v3131_v56 = vsub.f32 %v7700_v2, %v7566_v27 }
 0x1df   :  { %714 = vmatpush.msra.mxu0 %v11759_v16  ;;  %v3467_v55 = vadd.f32 %v3466_v18, %v3465_v10  ;;  %v3132_v32 = vsub.f32 %v7694_v45, %v7603_v17  ;;  %v3133_v15 = vsub.f32 %v7696_v50, %v7616_v47  ;;  %v3134_v41 = vsub.f32 %v7698_v63, %v7636_v25 }
 0x1e0   :  { %734 = vmatpush.msra.mxu1 %v11760_v9  ;;  %v3352_v51 = vmul.f32 %v3128_v1, %v3128_v1  ;;  %v3353_v20 = vmul.f32 %v3129_v53, %v3129_v53  ;;  %v3354_v4 = vmul.f32 %v3130_v13, %v3130_v13  ;;  %v3355_v61 = vmul.f32 %v3131_v56, %v3131_v56 }
 0x1e1   :  { %4904 = vmatmul.msk.f32.vlgmr.msra.gmra.mxu0 %vm595_vm8, %v5301_v14  ;;  %3468 = vadd.xlane.f32.xlu1 %v3467_v55  ;;  %v3135_v6 = vsub.f32 %v7700_v2, %v7646_v26  ;;  %v3356_v12 = vmul.f32 %v3132_v32, %v3132_v32  ;;  %v3357_v21 = vmul.f32 %v3133_v15, %v3133_v15  ;;  %vm11768_vm6 = vcmask 1046534  }
 0x1e2   :  { %v3358_v28 = vmul.f32 %v3134_v41, %v3134_v41  ;;  %v3470_v22 = vadd.f32 %v3353_v20, %v3352_v51  ;;  %v2963_v39 = vsel %vm11761_vm10, %v2961_v52, %v2962_v62  ;;  %4905 = vmatmul.msk.f32.vlgmr.msra.gmra.mxu1 %vm595_vm8, %v5301_v14  ;;  %v2966_v0 = vsel %vm11762_vm13, %v7579_v60, %v7582_v44  ;;  %vm11780_vm10 = vmmov %vm11763_vm1 }
 0x1e3   :  { %v7740_v35 = vsel %vm11337_vm9, %v7556_v19, %v7569_v46  ;;  %v3359_v18 = vmul.f32 %v3135_v6, %v3135_v6  ;;  %v3475_v36 = vsel %vm11763_vm1, %v3356_v12, 0.0  ;;  %v3476_v10 = vsel %vm11764_vm12, %v3357_v21, 0.0  ;;  %vm11782_vm12 = vmmov %vm11763_vm1 }
 0x1e4   :  { %v3478_v1 = vsel %vm11765_vm7, %v3358_v28, 0.0  ;;  %v3471_v53 = vadd.f32 %v3470_v22, %v3354_v4  ;;  %v3477_v52 = vadd.f32 %v3476_v10, %v3475_v36  ;;  %v2964_v62 = vrot.slane %v2963_v39, 2  ;;  %vm11783_vm7 = vmmov %vm11763_vm1 }
 0x1e5   :  { %vm11766_vm8 = vcmask 1044483   ;;  %v3480_v16 = vsel %vm11767_vm5, %v3359_v18, 0.0  ;;  %v2970_v32 = vsel %vm11768_vm6, %v7579_v60, %v7582_v44  ;;  %vm11781_vm13 = vcmask 1045508   ;;  %vm11790_vm6 = vmmov %vm11763_vm1 }
 0x1e6   :  { %v2967_v13 = vsel %vm11766_vm8, %v2965_v37, %v2966_v0  ;;  %v3472_v41 = vadd.f32 %v3471_v53, %v3355_v61  ;;  %v3479_v9 = vadd.f32 %v3478_v1, %v3477_v52  ;;  %v7752_v51 = vperm.slane %v2964_v62, 0  ;;  %vm11784_vm8 = vmmov %vm11763_vm1 }
 0x1e7   :  { %v2134_v56 = vpop.xlane.xlu2 %2133  ;;  %v2968_v55 = vrot.slane %v2967_v13, 3  ;;  %v7754_v20 = vperm.slane %v2964_v62, 1  ;;  %v7756_v4 = vperm.slane %v2964_v62, 2  ;;  %v7758_v14 = vperm.slane %v2964_v62, 3 }
 0x1e8   :  { %v7750_v15 = vadd.f32 1e-09, %v2134_v56  ;;  %11769 = vst [vmem:[#allocation25_spill] sm:$0xff] %v7752_v51  ;;  %3473 = vadd.xlane.f32.xlu2 %v3472_v41  ;;  %v3481_v12 = vadd.f32 %v3480_v16, %v3479_v9  ;;  %v3136_v21 = vsub.f32 %v7752_v51, %v7556_v19  ;;  %v3140_v28 = vsub.f32 %v7752_v51, %v7603_v17 }
 0x1e9   :  { %11770 = vst [vmem:[#allocation71_spill] sm:$0xff] %v7754_v20  ;;  %v7760_v37 = vperm.slane %v2968_v55, 0  ;;  %v7762_v6 = vperm.slane %v2968_v55, 1  ;;  %v3137_v61 = vsub.f32 %v7754_v20, %v7547_v43  ;;  %v3138_v22 = vsub.f32 %v7756_v4, %v7561_v33 }
 0x1ea   :  { %11771 = vst [vmem:[#allocation100_spill] sm:$0xff] %v7756_v4  ;;  %v3139_v39 = vsub.f32 %v7758_v14, %v7566_v27  ;;  %v3141_v0 = vsub.f32 %v7754_v20, %v7616_v47  ;;  %v3142_v18 = vsub.f32 %v7756_v4, %v7636_v25  ;;  %3482 = vadd.xlane.f32.xlu0 %v3481_v12  ;;  %v7781_v51 = vperm.slane %v2968_v55, 2 }
 0x1eb   :  { %11772 = vst [vmem:[#allocation26_spill] sm:$0xff] %v7758_v14  ;;  %v3360_v36 = vmul.f32 %v3136_v21, %v3136_v21  ;;  %v3361_v10 = vmul.f32 %v3137_v61, %v3137_v61  ;;  %v3143_v1 = vsub.f32 %v7758_v14, %v7646_v26  ;;  %v3364_v53 = vmul.f32 %v3140_v28, %v3140_v28 }
 0x1ec   :  { %11773 = vst [vmem:[#allocation44_spill] sm:$0xff] %v7760_v37  ;;  %v3362_v52 = vmul.f32 %v3138_v22, %v3138_v22  ;;  %v3363_v62 = vmul.f32 %v3139_v39, %v3139_v39  ;;  %v3365_v13 = vmul.f32 %v3141_v0, %v3141_v0  ;;  %v3366_v56 = vmul.f32 %v3142_v18, %v3142_v18 }
 0x1ed   :  { %11774 = vst [vmem:[#allocation27_spill] sm:$0xff] %v7762_v6  ;;  %v3484_v16 = vadd.f32 %v3361_v10, %v3360_v36  ;;  %v3367_v41 = vmul.f32 %v3143_v1, %v3143_v1  ;;  %v3489_v9 = vsel %vm11775_vm11, %v3364_v53, 0.0  ;;  %v7785_v21 = vperm.slane %v2968_v55, 3  ;;  %vm11791_vm11 = vmmov %vm11763_vm1 }
 0x1ee   :  { %11776 = vst [vmem:[#allocation101_spill] sm:$0xff] %v7781_v51  ;;  %v3490_v20 = vsel %vm11777_vm15, %v3365_v13, 0.0  ;;  %v3492_v12 = vsel %vm11778_vm14, %v3366_v56, 0.0  ;;  %v3144_v61 = vsub.f32 %v7760_v37, %v7556_v19  ;;  %v3145_v0 = vsub.f32 %v7762_v6, %v7547_v43  ;;  %vm11792_vm15 = vmmov %vm11763_vm1 }
 0x1ef   :  { %11779 = vst [vmem:[#allocation86_spill] sm:$0xff] %v7785_v21  ;;  %v3485_v28 = vadd.f32 %v3484_v16, %v3362_v52  ;;  %v3491_v22 = vadd.f32 %v3490_v20, %v3489_v9  ;;  %v3494_v39 = vsel %vm11780_vm10, %v3367_v41, 0.0  ;;  %v3146_v18 = vsub.f32 %v7781_v51, %v7561_v33  ;;  %vm11794_vm10 = vmmov %vm11763_vm1 }
 0x1f0   :  { %v3147_v36 = vsub.f32 %v7785_v21, %v7566_v27  ;;  %v3368_v10 = vmul.f32 %v3144_v61, %v3144_v61  ;;  %v3148_v55 = vsub.f32 %v7760_v37, %v7603_v17  ;;  %v3369_v13 = vmul.f32 %v3145_v0, %v3145_v0 }
 0x1f1   :  { %v3486_v1 = vadd.f32 %v3485_v28, %v3363_v62  ;;  %v3493_v53 = vadd.f32 %v3492_v12, %v3491_v22  ;;  %v3149_v20 = vsub.f32 %v7762_v6, %v7616_v47  ;;  %v3370_v52 = vmul.f32 %v3146_v18, %v3146_v18 }
 0x1f2   :  { %v3371_v56 = vmul.f32 %v3147_v36, %v3147_v36  ;;  %v3150_v16 = vsub.f32 %v7781_v51, %v7636_v25  ;;  %v3151_v41 = vsub.f32 %v7785_v21, %v7646_v26  ;;  %v3498_v61 = vadd.f32 %v3369_v13, %v3368_v10 }
 0x1f3   :  { %3487 = vadd.xlane.f32.xlu1 %v3486_v1  ;;  %v3495_v9 = vadd.f32 %v3494_v39, %v3493_v53  ;;  %v3372_v14 = vmul.f32 %v3148_v55, %v3148_v55  ;;  %v3373_v4 = vmul.f32 %v3149_v20, %v3149_v20  ;;  %v2971_v12 = vsel %vm11781_vm13, %v7740_v35, %v2970_v32 }
 0x1f4   :  { %v3374_v37 = vmul.f32 %v3150_v16, %v3150_v16  ;;  %v3375_v62 = vmul.f32 %v3151_v41, %v3151_v41  ;;  %5107 = vrsqrt.f32 %v7750_v15  ;;  %v3499_v28 = vadd.f32 %v3498_v61, %v3370_v52 }
 0x1f5   :  { %3496 = vadd.xlane.f32.xlu2 %v3495_v9  ;;  %v3503_v22 = vsel %vm11763_vm1, %v3372_v14, 0.0  ;;  %v3504_v0 = vsel %vm11782_vm12, %v3373_v4, 0.0  ;;  %v2972_v18 = vrot.slane %v2971_v12, 4  ;;  %v7811_v39 = vmul.f32 %v7440_v5, %v7377_v38 }
 0x1f6   :  { %v3505_v36 = vadd.f32 %v3504_v0, %v3503_v22  ;;  %v3506_v10 = vsel %vm11783_vm7, %v3374_v37, 0.0  ;;  %v3508_v55 = vsel %vm11784_vm8, %v3375_v62, 0.0  ;;  %v3500_v1 = vadd.f32 %v3499_v28, %v3371_v56 }
 0x1f7   :  { %v7815_v35 = vperm.slane %v2972_v18, 0  ;;  %v7817_v32 = vperm.slane %v2972_v18, 1  ;;  %v7819_v53 = vperm.slane %v2972_v18, 2  ;;  %5109 = vrsqrt.f32 %v7417_v30 }
 0x1f8   :  { %v3507_v14 = vadd.f32 %v3506_v10, %v3505_v36  ;;  %v7824_v13 = vperm.slane %v2972_v18, 3  ;;  %3501 = vadd.xlane.f32.xlu0 %v3500_v1  ;;  %vm11789_vm5 = vcmask 1045509   ;;  %vm11793_vm14 = vcmask 1046528  }
 0x1f9   :  { %11785 = vst [vmem:[#allocation88_spill] sm:$0xff] %v7815_v35  ;;  %v3152_v37 = vsub.f32 %v7815_v35, %v7556_v19  ;;  %v3153_v20 = vsub.f32 %v7817_v32, %v7547_v43  ;;  %v3154_v52 = vsub.f32 %v7819_v53, %v7561_v33  ;;  %v3156_v56 = vsub.f32 %v7815_v35, %v7603_v17 }
 0x1fa   :  { %11786 = vst [vmem:[#allocation65_spill] sm:$0xff] %v7817_v32  ;;  %v5108_v16 = vpop.eup %5107  ;;  %v3509_v41 = vadd.f32 %v3508_v55, %v3507_v14  ;;  %v3155_v9 = vsub.f32 %v7824_v13, %v7566_v27  ;;  %v3157_v61 = vsub.f32 %v7817_v32, %v7616_v47  ;;  %v3158_v62 = vsub.f32 %v7819_v53, %v7636_v25 }
 0x1fb   :  { %11787 = vst [vmem:[#allocation28_spill] sm:$0xff] %v7819_v53  ;;  %v3376_v12 = vmul.f32 %v3152_v37, %v3152_v37  ;;  %v3377_v28 = vmul.f32 %v3153_v20, %v3153_v20  ;;  %v3378_v22 = vmul.f32 %v3154_v52, %v3154_v52  ;;  %v3159_v0 = vsub.f32 %v7824_v13, %v7646_v26 }
 0x1fc   :  { %11788 = vst [vmem:[#allocation29_spill] sm:$0xff] %v7824_v13  ;;  %3510 = vadd.xlane.f32.xlu1 %v3509_v41  ;;  %v3379_v18 = vmul.f32 %v3155_v9, %v3155_v9  ;;  %v3380_v36 = vmul.f32 %v3156_v56, %v3156_v56  ;;  %v3381_v10 = vmul.f32 %v3157_v61, %v3157_v61  ;;  %vm11795_vm13 = vcmask 1046533  }
 0x1fd   :  { %v3382_v55 = vmul.f32 %v3158_v62, %v3158_v62  ;;  %v3512_v1 = vadd.f32 %v3377_v28, %v3376_v12  ;;  %v3383_v14 = vmul.f32 %v3159_v0, %v3159_v0  ;;  %v2378_v4 = vmul.f32 %v5108_v16, %v7750_v15  ;;  %v7846_v53 = vpop.eup %5109  ;;  %v2139_v12 = vpop.xlane.xlu0 %2138 }
 0x1fe   :  { %v2973_v32 = vsel %vm11789_vm5, %v7556_v19, %v7569_v46  ;;  %v3517_v37 = vsel %vm11790_vm6, %v3380_v36, 0.0  ;;  %v3518_v20 = vsel %vm11791_vm11, %v3381_v10, 0.0  ;;  %v2974_v56 = vsel %vm11793_vm14, %v7582_v44, %v7579_v60  ;;  %vm11798_vm5 = vmmov %vm11790_vm6 }
 0x1ff   :  { %v3520_v52 = vsel %vm11792_vm15, %v3382_v55, 0.0  ;;  %v3513_v41 = vadd.f32 %v3512_v1, %v3378_v22  ;;  %v3519_v9 = vadd.f32 %v3518_v20, %v3517_v37  ;;  %v3522_v61 = vsel %vm11794_vm10, %v3383_v14, 0.0  ;;  %vm11803_vm6 = vmmov %vm11798_vm5 }
 0x200   :  { %v2379_v62 = vmul.f32 %v5108_v16, %v2378_v4  ;;  %v2975_v28 = vsel %vm11795_vm13, %v2973_v32, %v2974_v56  ;;  %vm11796_vm1 = vcmask 1046534   ;;  %vm11797_vm12 = vcmask 1040384   ;;  %vm11804_vm11 = vmmov %vm11798_vm5 }
 0x201   :  { %v2977_v0 = vsel %vm11796_vm1, %v7556_v19, %v7569_v46  ;;  %v2978_v36 = vsel %vm11797_vm12, %v7579_v60, %v7582_v44  ;;  %v7862_v10 = vadd.f32 1e-09, %v2139_v12  ;;  %v3514_v55 = vadd.f32 %v3513_v41, %v3379_v18  ;;  %vm11806_vm15 = vmmov %vm11798_vm5 }
 0x202   :  { %v3521_v13 = vadd.f32 %v3520_v52, %v3519_v9  ;;  %v2380_v22 = vmul.f32 0.5, %v2379_v62  ;;  %v2976_v1 = vrot.slane %v2975_v28, 5  ;;  %vm2384_vm7 = vcmp.eq.f32.partialorder %v7750_v15, inf  ;;  %vm11807_vm14 = vmmov %vm11798_vm5 }
 0x203   :  { %vm2386_vm8 = vcmp.eq.f32.partialorder %v7750_v15, 0.0  ;;  %v2387_v32 = vand.u32 2147483648, %v7750_v15  ;;  %v2979_v4 = vsel %vm11798_vm5, %v2978_v36, %v2977_v0  ;;  %3515 = vadd.xlane.f32.xlu2 %v3514_v55  ;;  %5111 = vrsqrt.f32 %v7862_v10  ;;  %vm11814_vm13 = vmmov %vm11798_vm5 }
 0x204   :  { %v3523_v14 = vadd.f32 %v3522_v61, %v3521_v13  ;;  %v2381_v37 = vsub.f32 1.5, %v2380_v22  ;;  %v7868_v20 = vperm.slane %v2976_v1, 0  ;;  %v7870_v56 = vperm.slane %v2976_v1, 1  ;;  %vm11815_vm1 = vmmov %vm11798_vm5 }
 0x205   :  { %v7872_v12 = vperm.slane %v2976_v1, 2  ;;  %v7874_v18 = vperm.slane %v2976_v1, 3  ;;  %v2980_v52 = vrot.slane %v2979_v4, 6  ;;  %vm11813_vm10 = vcmask 1046528  }
 0x206   :  { %11799 = vst [vmem:[#allocation64_spill] sm:$0xff] %v7868_v20  ;;  %3524 = vadd.xlane.f32.xlu0 %v3523_v14  ;;  %v2382_v41 = vmul.f32 %v5108_v16, %v2381_v37  ;;  %v3160_v9 = vsub.f32 %v7868_v20, %v7556_v19  ;;  %v3161_v13 = vsub.f32 %v7870_v56, %v7547_v43  ;;  %vm11816_vm12 = vcmask 1046529  }
 0x207   :  { %11800 = vst [vmem:[#allocation30_spill] sm:$0xff] %v7870_v56  ;;  %v3164_v61 = vsub.f32 %v7868_v20, %v7603_v17  ;;  %v3162_v62 = vsub.f32 %v7872_v12, %v7561_v33  ;;  %v3163_v28 = vsub.f32 %v7874_v18, %v7566_v27  ;;  %v3165_v0 = vsub.f32 %v7870_v56, %v7616_v47 }
 0x208   :  { %11801 = vst [vmem:[#allocation57_spill] sm:$0xff] %v7872_v12  ;;  %v3166_v16 = vsub.f32 %v7872_v12, %v7636_v25  ;;  %v2383_v36 = vmul.f32 %v2382_v41, %v7750_v15  ;;  %v3384_v55 = vmul.f32 %v3160_v9, %v3160_v9  ;;  %v3385_v22 = vmul.f32 %v3161_v13, %v3161_v13 }
 0x209   :  { %11802 = vst [vmem:[#allocation31_spill] sm:$0xff] %v7874_v18  ;;  %v3167_v1 = vsub.f32 %v7874_v18, %v7646_v26  ;;  %v3386_v4 = vmul.f32 %v3162_v62, %v3162_v62  ;;  %v3387_v14 = vmul.f32 %v3163_v28, %v3163_v28  ;;  %v3388_v37 = vmul.f32 %v3164_v61, %v3164_v61  ;;  %v7897_v6 = vpop.eup %5111 }
 0x20a   :  { %v3389_v20 = vmul.f32 %v3165_v0, %v3165_v0  ;;  %v2385_v35 = vsel %vm2384_vm7, %v7750_v15, %v2383_v36  ;;  %v3526_v21 = vadd.f32 %v3385_v22, %v3384_v55  ;;  %v3390_v56 = vmul.f32 %v3166_v16, %v3166_v16  ;;  %vm11817_vm7 = vmmov %vm11815_vm1 }
 0x20b   :  { %v3391_v51 = vmul.f32 %v3167_v1, %v3167_v1  ;;  %v2388_v41 = vsel %vm2386_vm8, %v2387_v32, %v2385_v35  ;;  %v3531_v9 = vsel %vm11803_vm6, %v3388_v37, 0.0  ;;  %v7903_v62 = vperm.slane %v2980_v52, 0  ;;  %vm11818_vm8 = vmmov %vm11815_vm1 }
 0x20c   :  { %v3532_v13 = vsel %vm11804_vm11, %v3389_v20, 0.0  ;;  %v2778_v61 = vperm.slane %v2388_v41, %v7433_v31  ;;  %v3527_v28 = vadd.f32 %v3526_v21, %v3386_v4  ;;  %v3534_v36 = vsel %vm11806_vm15, %v3390_v56, 0.0  ;;  %vm11824_vm11 = vmmov %vm11815_vm1 }
 0x20d   :  { %11805 = vst [vmem:[#allocation32_spill] sm:$0xff] %v7903_v62  ;;  %v3533_v0 = vadd.f32 %v3532_v13, %v3531_v9  ;;  %v3536_v16 = vsel %vm11807_vm14, %v3391_v51, 0.0  ;;  %v7908_v55 = vperm.slane %v2980_v52, 1  ;;  %v7910_v22 = vperm.slane %v2980_v52, 2  ;;  %vm11825_vm15 = vmmov %vm11815_vm1 }
 0x20e   :  { %v7912_v15 = vperm.slane %v2980_v52, 3  ;;  %v11811_v35 = vperm.slane %v7660_v57, %v7429_v11  ;;  %v3528_v20 = vadd.f32 %v3527_v28, %v3387_v14  ;;  %v3168_v21 = vsub.f32 %v7903_v62, %v7556_v19  ;;  %vm11826_vm14 = vmmov %vm11815_vm1 }
 0x20f   :  { %11808 = vst [vmem:[#allocation33_spill] sm:$0xff] %v7908_v55  ;;  %v3535_v1 = vadd.f32 %v3534_v36, %v3533_v0  ;;  %v3169_v51 = vsub.f32 %v7908_v55, %v7547_v43  ;;  %v3170_v52 = vsub.f32 %v7910_v22, %v7561_v33  ;;  %v2390_v37 = vmul.f32 %v7897_v6, %v7862_v10 }
 0x210   :  { %11809 = vst [vmem:[#allocation34_spill] sm:$0xff] %v7910_v22  ;;  %v2779_v32 = vsel %vm11471_vm0, %v2778_v61, %v11811_v35  ;;  %v3171_v57 = vsub.f32 %v7912_v15, %v7566_v27  ;;  %3529 = vadd.xlane.f32.xlu1 %v3528_v20  ;;  %v3392_v14 = vmul.f32 %v3168_v21, %v3168_v21  ;;  %v2148_v35 = vpop.xlane.xlu1 %2147  ;;  %vm1774_vm5 = vcmp.eq.f32.partialorder %v7194_v58, 0.0 }
 0x211   :  { %11810 = vst [vmem:[#allocation35_spill] sm:$0xff] %v7912_v15  ;;  %v7922_v56 = vsel %vm11454_vm3, %v2779_v32, %v7690_v40  ;;  %v3537_v4 = vadd.f32 %v3536_v16, %v3535_v1  ;;  %v3172_v41 = vsub.f32 %v7903_v62, %v7603_v17  ;;  %v3393_v40 = vmul.f32 %v3169_v51, %v3169_v51 }
 0x212   :  { %11812 = vst [vmem:[#allocation67_spill] sm:$0xff] %v7922_v56  ;;  %v3394_v9 = vmul.f32 %v3170_v52, %v3170_v52  ;;  %v3395_v13 = vmul.f32 %v3171_v57, %v3171_v57  ;;  %v3173_v61 = vsub.f32 %v7908_v55, %v7616_v47  ;;  %v2391_v28 = vmul.f32 %v7897_v6, %v2390_v37 }
 0x213   :  { %3538 = vadd.xlane.f32.xlu2 %v3537_v4  ;;  %v3174_v0 = vsub.f32 %v7910_v22, %v7636_v25  ;;  %v3175_v36 = vsub.f32 %v7912_v15, %v7646_v26  ;;  %v3396_v16 = vmul.f32 %v3172_v41, %v3172_v41  ;;  %v3540_v32 = vadd.f32 %v3393_v40, %v3392_v14  ;;  %v11870_v15 = vld [vmem:[#allocation20_spill] sm:$0xff] }
 0x214   :  { %v3397_v20 = vmul.f32 %v3173_v61, %v3173_v61  ;;  %v2981_v1 = vsel %vm11813_vm10, %v7569_v46, %v7556_v19  ;;  %v2982_v21 = vsel %vm11470_vm4, %v7579_v60, %v7582_v44  ;;  %v2392_v51 = vmul.f32 0.5, %v2391_v28 }
 0x215   :  { %v3398_v52 = vmul.f32 %v3174_v0, %v3174_v0  ;;  %v3399_v57 = vmul.f32 %v3175_v36, %v3175_v36  ;;  %v3545_v4 = vsel %vm11814_vm13, %v3396_v16, 0.0  ;;  %v3541_v37 = vadd.f32 %v3540_v32, %v3394_v9  ;;  %v11819_v36 = vld [vmem:[#allocation80_spill] sm:$0xff]  ;;  %vm11828_vm13 = vmmov %vm11815_vm1 }
 0x216   :  { %v3546_v56 = vsel %vm11815_vm1, %v3397_v20, 0.0  ;;  %v2983_v41 = vsel %vm11816_vm12, %v2982_v21, %v2981_v1  ;;  %v7950_v14 = vadd.f32 1e-09, %v2148_v35  ;;  %v1850_v40 = vmul.f32 %v7449_v24, %v7384_v8  ;;  %v2153_v1 = vpop.xlane.xlu2 %2152 }
 0x217   :  { %v2393_v46 = vsub.f32 1.5, %v2392_v51  ;;  %v3547_v61 = vadd.f32 %v3546_v56, %v3545_v4  ;;  %v3548_v18 = vsel %vm11817_vm7, %v3398_v52, 0.0  ;;  %v3542_v60 = vadd.f32 %v3541_v37, %v3395_v13 }
 0x218   :  { %v3550_v44 = vsel %vm11818_vm8, %v3399_v57, 0.0  ;;  %v2984_v28 = vrot.slane %v2983_v41, 7  ;;  %5113 = vrsqrt.f32 %v7950_v14  ;;  %v1817_v9 = vsub.f32 1.5, %v7405_v7 }
 0x219   :  { %v7960_v16 = vadd.f32 1e-09, %v11819_v36  ;;  %v3549_v35 = vadd.f32 %v3548_v18, %v3547_v61  ;;  %3543 = vadd.xlane.f32.xlu0 %v3542_v60  ;;  %v1839_v21 = vmul.f32 %v7440_v5, %v7811_v39  ;;  %v1851_v7 = vmul.f32 %v7449_v24, %v1850_v40 }
 0x21a   :  { %v7962_v32 = vperm.slane %v2984_v28, 0  ;;  %v7964_v56 = vperm.slane %v2984_v28, 1  ;;  %v7966_v20 = vperm.slane %v2984_v28, 2  ;;  %v7968_v13 = vperm.slane %v2984_v28, 3 }
 0x21b   :  { %v2394_v51 = vmul.f32 %v7897_v6, %v2393_v46  ;;  %v3551_v52 = vadd.f32 %v3550_v44, %v3549_v35  ;;  %5115 = vrsqrt.f32 %v7960_v16  ;;  %vm1796_vm6 = vcmp.eq.f32.partialorder %v7205_v23, inf }
 0x21c   :  { %11820 = vst [vmem:[#allocation36_spill] sm:$0xff] %v7962_v32  ;;  %v3176_v18 = vsub.f32 %v7962_v32, %v7556_v19  ;;  %v3177_v57 = vsub.f32 %v7964_v56, %v7547_v43  ;;  %v3178_v4 = vsub.f32 %v7966_v20, %v7561_v33  ;;  %v3179_v37 = vsub.f32 %v7968_v13, %v7566_v27 }
 0x21d   :  { %11821 = vst [vmem:[#allocation37_spill] sm:$0xff] %v7964_v56  ;;  %3552 = vadd.xlane.f32.xlu1 %v3551_v52  ;;  %v3180_v39 = vsub.f32 %v7962_v32, %v7603_v17  ;;  %v3181_v6 = vsub.f32 %v7964_v56, %v7616_v47  ;;  %v3182_v41 = vsub.f32 %v7966_v20, %v7636_v25  ;;  %v7988_v19 = vadd.f32 1e-09, %v2153_v1 }
 0x21e   :  { %11822 = vst [vmem:[#allocation38_spill] sm:$0xff] %v7966_v20  ;;  %v5114_v40 = vpop.eup %5113  ;;  %v3400_v43 = vmul.f32 %v3176_v18, %v3176_v18  ;;  %v3401_v33 = vmul.f32 %v3177_v57, %v3177_v57  ;;  %v3402_v46 = vmul.f32 %v3178_v4, %v3178_v4  ;;  %v1862_v27 = vmul.f32 %v7846_v53, %v7417_v30 }
 0x21f   :  { %11823 = vst [vmem:[#allocation68_spill] sm:$0xff] %v7968_v13  ;;  %v3403_v61 = vmul.f32 %v3179_v37, %v3179_v37  ;;  %v3183_v60 = vsub.f32 %v7968_v13, %v7646_v26  ;;  %v3404_v44 = vmul.f32 %v3180_v39, %v3180_v39  ;;  %v3405_v36 = vmul.f32 %v3181_v6, %v3181_v6 }
 0x220   :  { %v3554_v28 = vadd.f32 %v3401_v33, %v3400_v43  ;;  %v3406_v35 = vmul.f32 %v3182_v41, %v3182_v41  ;;  %v2402_v1 = vmul.f32 %v5114_v40, %v7950_v14  ;;  %v2395_v52 = vmul.f32 %v2394_v51, %v7862_v10  ;;  %v11827_v43 = vld [vmem:[#allocation81_spill] sm:$0xff] }
 0x221   :  { %v3407_v18 = vmul.f32 %v3183_v60, %v3183_v60  ;;  %v3559_v57 = vsel %vm11824_vm11, %v3404_v44, 0.0  ;;  %5117 = vrsqrt.f32 %v7988_v19  ;;  %v3560_v37 = vsel %vm11825_vm15, %v3405_v36, 0.0  ;;  %v8004_v41 = vpop.eup %5115 }
 0x222   :  { %v3555_v4 = vadd.f32 %v3554_v28, %v3402_v46  ;;  %v3562_v39 = vsel %vm11826_vm14, %v3406_v35, 0.0  ;;  %v2403_v0 = vmul.f32 %v5114_v40, %v2402_v1  ;;  %v1840_v13 = vmul.f32 0.5, %v1839_v21  ;;  %v11830_v35 = vld [vmem:[#allocation56_spill] sm:$0xff]  ;;  %v11831_v1 = vld [vmem:[#allocation21_spill] sm:$0xff] }
 0x223   :  { %v1852_v20 = vmul.f32 0.5, %v1851_v7  ;;  %vm2396_vm10 = vcmp.eq.f32.partialorder %v7862_v10, inf  ;;  %v3561_v6 = vadd.f32 %v3560_v37, %v3559_v57  ;;  %v8007_v51 = vadd.f32 1e-09, %v11827_v43  ;;  %v11832_v37 = vld [vmem:[#allocation17_spill] sm:$0xff] }
 0x224   :  { %v3556_v33 = vadd.f32 %v3555_v4, %v3403_v61  ;;  %v3564_v60 = vsel %vm11828_vm13, %v3407_v18, 0.0  ;;  %v2404_v44 = vmul.f32 0.5, %v2403_v0  ;;  %vm1798_vm1 = vcmp.eq.f32.partialorder %v7205_v23, 0.0  ;;  %v11835_v4 = vld [vmem:[#allocation19_spill] sm:$0xff] }
 0x225   :  { %v11829_v46 = vsub.f32 1.5, %v7380_v59  ;;  %v1863_v21 = vmul.f32 %v7846_v53, %v1862_v27  ;;  %v2399_v7 = vand.u32 2147483648, %v7862_v10  ;;  %v3563_v36 = vadd.f32 %v3562_v39, %v3561_v6  ;;  %v11834_v27 = vld [vmem:[#allocation23_spill] sm:$0xff]  ;;  %v11836_v6 = vld [vmem:[#allocation66_spill] sm:$0xff] }
 0x226   :  { %vm1808_vm12 = vcmp.eq.f32.partialorder %v11830_v35, inf  ;;  %v1818_v57 = vmul.f32 %v11831_v1, %v1817_v9  ;;  %vm1820_vm7 = vcmp.eq.f32.partialorder %v11832_v37, inf  ;;  %v2397_v61 = vsel %vm2396_vm10, %v7862_v10, %v2395_v52  ;;  %3557 = vadd.xlane.f32.xlu2 %v3556_v33  ;;  %v11840_v1 = vld [vmem:[#allocation96_spill] sm:$0xff] }
 0x227   :  { %v1806_v28 = vmul.f32 %v7329_v54, %v11829_v46  ;;  %vm2398_vm8 = vcmp.eq.f32.partialorder %v7862_v10, 0.0  ;;  %v2405_v0 = vsub.f32 1.5, %v2404_v44  ;;  %v8021_v59 = vpop.eup %5117  ;;  %v11833_v54 = vsub.f32 1.5, %v7704_v42  ;;  %v2162_v44 = vpop.xlane.xlu0 %2161 }
 0x228   :  { %vm1832_vm11 = vcmp.eq.f32.partialorder %v11835_v4, inf  ;;  %v1841_v39 = vsub.f32 1.5, %v1840_v13  ;;  %v8028_v43 = vadd.f32 1e-09, %v11836_v6  ;;  %v3565_v9 = vadd.f32 %v3564_v60, %v3563_v36 }
 0x229   :  { %v1830_v18 = vmul.f32 %v11834_v27, %v11833_v54  ;;  %v1853_v46 = vsub.f32 1.5, %v1852_v20  ;;  %5119 = vrsqrt.f32 %v8007_v51  ;;  %v2406_v52 = vmul.f32 %v5114_v40, %v2405_v0 }
 0x22a   :  { %v2414_v33 = vmul.f32 %v8021_v59, %v7988_v19  ;;  %vm1810_vm15 = vcmp.eq.f32.partialorder %v11830_v35, 0.0  ;;  %vm1822_vm14 = vcmp.eq.f32.partialorder %v11832_v37, 0.0  ;;  %v1864_v42 = vmul.f32 0.5, %v1863_v21  ;;  %3566 = vadd.xlane.f32.xlu0 %v3565_v9  ;;  %v11837_v21 = vld [vmem:[#allocation97_spill] sm:$0xff] }
 0x22b   :  { %v2400_v13 = vsel %vm2398_vm8, %v2399_v7, %v2397_v61  ;;  %vm2408_vm10 = vcmp.eq.f32.partialorder %v7950_v14, inf  ;;  %v2411_v20 = vand.u32 2147483648, %v7950_v14  ;;  %vm1834_vm13 = vcmp.eq.f32.partialorder %v11835_v4, 0.0 }
 0x22c   :  { %v1874_v40 = vmul.f32 %v8004_v41, %v7960_v16  ;;  %v2407_v60 = vmul.f32 %v2406_v52, %v7950_v14  ;;  %vm2410_vm9 = vcmp.eq.f32.partialorder %v7950_v14, 0.0  ;;  %v2415_v36 = vmul.f32 %v8021_v59, %v2414_v33 }
 0x22d   :  { %v11838_v10 = vand.u32 2147483648, %v7194_v58  ;;  %v1797_v61 = vsel %vm1796_vm6, %v7205_v23, %v11840_v1  ;;  %v1807_v0 = vmul.f32 %v1806_v28, %v11830_v35  ;;  %v8057_v54 = vadd.f32 1e-09, %v2162_v44 }
 0x22e   :  { %5121 = vrsqrt.f32 %v8028_v43  ;;  %v2780_v27 = vperm.slane %v2400_v13, %v7429_v11  ;;  %v2409_v6 = vsel %vm2408_vm10, %v7950_v14, %v2407_v60  ;;  %v2416_v9 = vmul.f32 0.5, %v2415_v36 }
 0x22f   :  { %v8050_v7 = vsel %vm1774_vm5, %v11838_v10, %v11837_v21  ;;  %v1819_v58 = vmul.f32 %v1818_v57, %v11832_v37  ;;  %v1842_v52 = vmul.f32 %v7440_v5, %v1841_v39  ;;  %v1854_v33 = vmul.f32 %v7449_v24, %v1853_v46  ;;  %v8065_v10 = vpop.eup %5119 }
 0x230   :  { %11839 = vst [vmem:[#allocation39_spill] sm:$0xff] %v8050_v7  ;;  %v2412_v21 = vsel %vm2410_vm9, %v2411_v20, %v2409_v6  ;;  %v1831_v28 = vmul.f32 %v1830_v18, %v11835_v4  ;;  %v1865_v44 = vsub.f32 1.5, %v1864_v42  ;;  %v1875_v1 = vmul.f32 %v8004_v41, %v1874_v40 }
 0x231   :  { %v2781_v56 = vperm.slane %v2412_v21, %v7433_v31  ;;  %vm1844_vm5 = vcmp.eq.f32.partialorder %v7377_v38, inf  ;;  %vm1846_vm6 = vcmp.eq.f32.partialorder %v7377_v38, 0.0  ;;  %5123 = vrsqrt.f32 %v8057_v54 }
 0x232   :  { %v11841_v24 = vand.u32 2147483648, %v7205_v23  ;;  %vm1856_vm9 = vcmp.eq.f32.partialorder %v7384_v8, inf  ;;  %v2417_v18 = vsub.f32 1.5, %v2416_v9  ;;  %v1809_v39 = vsel %vm1808_vm12, %v11830_v35, %v1807_v0 }
 0x233   :  { %v8083_v57 = vsel %vm11471_vm0, %v2781_v56, %v2780_v27  ;;  %v1821_v46 = vsel %vm1820_vm7, %v11832_v37, %v1819_v58  ;;  %v1843_v42 = vmul.f32 %v1842_v52, %v7377_v38  ;;  %v1855_v23 = vmul.f32 %v1854_v33, %v7384_v8 }
 0x234   :  { %v8079_v5 = vsel %vm1798_vm1, %v11841_v24, %v1797_v61  ;;  %11843 = vst [vmem:[#allocation76_spill] sm:$0xff] %v8083_v57  ;;  %v8093_v13 = vpop.eup %5121  ;;  %v1833_v56 = vsel %vm1832_vm11, %v11835_v4, %v1831_v28  ;;  %v1866_v20 = vmul.f32 %v7846_v53, %v1865_v44  ;;  %v1876_v40 = vmul.f32 0.5, %v1875_v1 }
 0x235   :  { %11842 = vst [vmem:[#allocation62_spill] sm:$0xff] %v8079_v5  ;;  %v1886_v60 = vmul.f32 %v8065_v10, %v8007_v51  ;;  %v1847_v61 = vand.u32 2147483648, %v7377_v38  ;;  %vm1858_vm1 = vcmp.eq.f32.partialorder %v7384_v8, 0.0  ;;  %v1859_v0 = vand.u32 2147483648, %v7384_v8 }
 0x236   :  { %v11844_v27 = vand.u32 2147483648, %v11830_v35  ;;  %v11846_v53 = vand.u32 2147483648, %v11832_v37  ;;  %vm1868_vm12 = vcmp.eq.f32.partialorder %v7417_v30, inf  ;;  %v2418_v58 = vmul.f32 %v8021_v59, %v2417_v18 }
 0x237   :  { %v5124_v52 = vpop.eup %5123  ;;  %v11848_v33 = vand.u32 2147483648, %v11835_v4  ;;  %v1845_v35 = vsel %vm1844_vm5, %v7377_v38, %v1843_v42  ;;  %v1857_v37 = vsel %vm1856_vm9, %v7384_v8, %v1855_v23  ;;  %v1898_v28 = vmul.f32 %v8093_v13, %v8028_v43  ;;  %v8294_v23 = vld [vmem:[%s11161_s9 + $0x78] sm:$0x3f] }
 0x238   :  { %v8110_v6 = vsel %vm1810_vm15, %v11844_v27, %v1809_v39  ;;  %v8116_v9 = vsel %vm1822_vm14, %v11846_v53, %v1821_v46  ;;  %v1867_v59 = vmul.f32 %v1866_v20, %v7417_v30  ;;  %v1877_v44 = vsub.f32 1.5, %v1876_v40 }
 0x239   :  { %11845 = vst [vmem:[#allocation77_spill] sm:$0xff] %v8110_v6  ;;  %v8124_v21 = vsel %vm1834_vm13, %v11848_v33, %v1833_v56  ;;  %v1887_v1 = vmul.f32 %v8065_v10, %v1886_v60  ;;  %v2426_v4 = vmul.f32 %v5124_v52, %v8057_v54  ;;  %vm1870_vm7 = vcmp.eq.f32.partialorder %v7417_v30, 0.0  ;;  %v8274_v33 = vld [vmem:[%s11161_s9 + $0x68] sm:$0x3f] }
 0x23a   :  { %11847 = vst [vmem:[#allocation74_spill] sm:$0xff] %v8116_v9  ;;  %v1871_v46 = vand.u32 2147483648, %v7417_v30  ;;  %v8145_v42 = vsel %vm1846_vm6, %v1847_v61, %v1845_v35  ;;  %v2419_v56 = vmul.f32 %v2418_v58, %v7988_v19  ;;  %v8153_v60 = vsel %vm1858_vm1, %v1859_v0, %v1857_v37 }
 0x23b   :  { %11849 = vst [vmem:[#allocation75_spill] sm:$0xff] %v8124_v21  ;;  %v2427_v20 = vmul.f32 %v5124_v52, %v2426_v4  ;;  %v1899_v27 = vmul.f32 %v8093_v13, %v1898_v28  ;;  %vm2420_vm8 = vcmp.eq.f32.partialorder %v7988_v19, inf  ;;  %v1869_v38 = vsel %vm1868_vm12, %v7417_v30, %v1867_v59 }
 0x23c   :  { %11851 = vst [vmem:[#allocation78_spill] sm:$0xff] %v8145_v42  ;;  %v1878_v61 = vmul.f32 %v8004_v41, %v1877_v44  ;;  %v1888_v53 = vmul.f32 0.5, %v1887_v1  ;;  %v2423_v0 = vand.u32 2147483648, %v7988_v19  ;;  %vm1880_vm11 = vcmp.eq.f32.partialorder %v7960_v16, inf }
 0x23d   :  { %11852 = vst [vmem:[#allocation79_spill] sm:$0xff] %v8153_v60  ;;  %v2428_v58 = vmul.f32 0.5, %v2427_v20  ;;  %v2421_v28 = vsel %vm2420_vm8, %v7988_v19, %v2419_v56  ;;  %vm2422_vm15 = vcmp.eq.f32.partialorder %v7988_v19, 0.0  ;;  %v8173_v59 = vsel %vm1870_vm7, %v1871_v46, %v1869_v38  ;;  %v11854_v19 = vld [vmem:[#allocation49_spill] sm:$0xff] }
 0x23e   :  { %11853 = vst [vmem:[#allocation63_spill] sm:$0xff] %v8173_v59  ;;  %v1900_v44 = vmul.f32 0.5, %v1899_v27  ;;  %v8176_v1 = vrot.slane %v7616_v47, 7  ;;  %v8179_v4 = vrot.slane %v7636_v25, 6  ;;  %v1879_v20 = vmul.f32 %v1878_v61, %v7960_v16  ;;  %v11857_v27 = vld [vmem:[#allocation54_spill] sm:$0xff]  ;;  %v11858_v61 = vld [vmem:[#allocation16_spill] sm:$0xff] }
 0x23f   :  { %v2429_v41 = vsub.f32 1.5, %v2428_v58  ;;  %v1889_v40 = vsub.f32 1.5, %v1888_v53  ;;  %v8183_v56 = vrot.slane %v7646_v26, 5  ;;  %v8186_v58 = vadd.f32 1e-09, %v11854_v19 }
 0x240   :  { %v2424_v30 = vsel %vm2422_vm15, %v2423_v0, %v2421_v28  ;;  %vm2432_vm14 = vcmp.eq.f32.partialorder %v8057_v54, inf  ;;  %v2435_v46 = vand.u32 2147483648, %v8057_v54  ;;  %vm2434_vm10 = vcmp.eq.f32.partialorder %v8057_v54, 0.0 }
 0x241   :  { %v2430_v39 = vmul.f32 %v5124_v52, %v2429_v41  ;;  %11855 = vst [vmem:[#allocation69_spill] sm:$0xff] %v8186_v58  ;;  %vm11856_vm13 = vcmask 1040384   ;;  %v2986_v26 = vsel %vm11454_vm3, %v8179_v4, %v8183_v56  ;;  %vm1892_vm5 = vcmp.eq.f32.partialorder %v8007_v51, inf }
 0x242   :  { %v2985_v25 = vsel %vm11856_vm13, %v7603_v17, %v8176_v1  ;;  %v1901_v52 = vsub.f32 1.5, %v1900_v44  ;;  %v8200_v38 = vadd.f32 1e-09, %v11857_v27  ;;  %v8203_v53 = vadd.f32 1e-09, %v11858_v61 }
 0x243   :  { %v2431_v47 = vmul.f32 %v2430_v39, %v8057_v54  ;;  %vm11859_vm6 = vcmask 1041408   ;;  %v2783_v0 = vperm.slane %v2424_v30, %v7429_v11  ;;  %v1890_v19 = vmul.f32 %v8065_v10, %v1889_v40  ;;  %v8230_v10 = vld [vmem:[%s11161_s9 + $0x48] sm:$0xff] }
 0x244   :  { %v2987_v39 = vsel %vm11859_vm6, %v2985_v25, %v2986_v26  ;;  %vm1904_vm9 = vcmp.eq.f32.partialorder %v8028_v43, inf  ;;  %5125 = vrsqrt.f32 %v8186_v58  ;;  %vm1882_vm1 = vcmp.eq.f32.partialorder %v7960_v16, 0.0  ;;  %v8247_v26 = vld [vmem:[%s11161_s9 + $0x58] sm:$0xff] }
 0x245   :  { %v2433_v28 = vsel %vm2432_vm14, %v8057_v54, %v2431_v47  ;;  %v8208_v17 = vperm.slane %v2987_v39, 0  ;;  %v8210_v41 = vperm.slane %v2987_v39, 1  ;;  %v8213_v44 = vperm.slane %v2987_v39, 2  ;;  %v8223_v54 = vld [vmem:[%s11161_s9 + $0x40] sm:$0xff] }
 0x246   :  { %v2436_v18 = vsel %vm2434_vm10, %v2435_v46, %v2433_v28  ;;  %v8215_v27 = vperm.slane %v2987_v39, 3  ;;  %5127 = vrsqrt.f32 %v8200_v38  ;;  %v8240_v46 = vld [vmem:[%s11161_s9 + $0x50] sm:$0xff]  ;;  %vm1894_vm12 = vcmp.eq.f32.partialorder %v8007_v51, 0.0  ;;  %v8259_v39 = vld [vmem:[%s11161_s9 + $0x60] sm:$0x3f] }
 0x247   :  { %11860 = vst [vmem:[#allocation70_spill] sm:$0xff] %v8208_v17  ;;  %v2784_v25 = vperm.slane %v2436_v18, %v7433_v31  ;;  %v3184_v30 = vsub.f32 %v8208_v17, %v8223_v54  ;;  %v3185_v40 = vsub.f32 %v8210_v41, %v8230_v10  ;;  %v1902_v18 = vmul.f32 %v8093_v13, %v1901_v52 }
 0x248   :  { %11861 = vst [vmem:[#allocation72_spill] sm:$0xff] %v8210_v41  ;;  %v3186_v47 = vsub.f32 %v8213_v44, %v8240_v46  ;;  %v3187_v61 = vsub.f32 %v8215_v27, %v8247_v26  ;;  %5129 = vrsqrt.f32 %v8203_v53  ;;  %v3188_v28 = vsub.f32 %v8208_v17, %v8259_v39 }
 0x249   :  { %11862 = vst [vmem:[#allocation73_spill] sm:$0xff] %v8213_v44  ;;  %v8254_v13 = vsel %vm11471_vm0, %v2784_v25, %v2783_v0  ;;  %v3408_v52 = vmul.f32 %v3184_v30, %v3184_v30  ;;  %v1881_v36 = vsel %vm1880_vm11, %v7960_v16, %v1879_v20  ;;  %v1891_v14 = vmul.f32 %v1890_v19, %v8007_v51  ;;  %v11865_v25 = vld [vmem:[#allocation18_spill] sm:$0xff] }
 0x24a   :  { %11863 = vst [vmem:[#allocation90_spill] sm:$0xff] %v8215_v27  ;;  %vm1906_vm7 = vcmp.eq.f32.partialorder %v8028_v43, 0.0  ;;  %v3409_v37 = vmul.f32 %v3185_v40, %v3185_v40  ;;  %v3410_v0 = vmul.f32 %v3186_v47, %v3186_v47  ;;  %v8269_v30 = vadd.f32 1e-09, %v11865_v25  ;;  %v8287_v25 = vld [vmem:[%s11161_s9 + $0x70] sm:$0x3f]  ;;  %v8298_v57 = vpop.eup %5125 }
 0x24b   :  { %11864 = vst [vmem:[#allocation87_spill] sm:$0xff] %v8254_v13  ;;  %v3189_v8 = vsub.f32 %v8210_v41, %v8274_v33  ;;  %v2988_v20 = vsel %vm11470_vm4, %v8259_v39, %v8176_v1  ;;  %v2989_v19 = vsel %vm11453_vm2, %v8179_v4, %v8183_v56  ;;  %v3411_v40 = vmul.f32 %v3187_v61, %v3187_v61  ;;  %v11867_v61 = vld [vmem:[#allocation99_spill] sm:$0xff] }
 0x24c   :  { %11866 = vst [vmem:[#allocation82_spill] sm:$0xff] %v8269_v30  ;;  %v3568_v47 = vadd.f32 %v3409_v37, %v3408_v52  ;;  %v3190_v35 = vsub.f32 %v8213_v44, %v8287_v25  ;;  %v3191_v13 = vsub.f32 %v8215_v27, %v8294_v23  ;;  %v1903_v37 = vmul.f32 %v1902_v18, %v8028_v43  ;;  %v8304_v6 = vpop.eup %5127 }
 0x24d   :  { %v8302_v52 = vadd.f32 1e-09, %v11867_v61  ;;  %v3412_v21 = vmul.f32 %v3188_v28, %v3188_v28  ;;  %v3413_v9 = vmul.f32 %v3189_v8, %v3189_v8  ;;  %vm11869_vm8 = vcmask 1042433  }
 0x24e   :  { %v3569_v5 = vadd.f32 %v3568_v47, %v3410_v0  ;;  %v3414_v7 = vmul.f32 %v3190_v35, %v3190_v35  ;;  %v3415_v60 = vmul.f32 %v3191_v13, %v3191_v13  ;;  %v2990_v42 = vsel %vm11869_vm8, %v2988_v20, %v2989_v19  ;;  %v8307_v32 = vpop.eup %5129 }
 0x24f   :  { %11868 = vst [vmem:[#allocation83_spill] sm:$0xff] %v8302_v52  ;;  %v1893_v12 = vsel %vm1892_vm5, %v8007_v51, %v1891_v14  ;;  %v8313_v18 = vadd.f32 1e-09, %v11870_v15  ;;  %vm11872_vm11 = vcmask 1045504   ;;  %5131 = vrsqrt.f32 %v8269_v30 }
 0x250   :  { %v3573_v61 = vsel %vm11872_vm11, %v3412_v21, 0.0  ;;  %vm11873_vm15 = vmmov %vm11872_vm11  ;;  %v3570_v28 = vadd.f32 %v3569_v5, %v3411_v40  ;;  %v1934_v0 = vmul.f32 %v8298_v57, %v8186_v58  ;;  %5133 = vrsqrt.f32 %v8302_v52 }
 0x251   :  { %11871 = vst [vmem:[#allocation84_spill] sm:$0xff] %v8313_v18  ;;  %v3574_v8 = vsel %vm11873_vm15, %v3413_v9, 0.0  ;;  %vm11874_vm14 = vmmov %vm11872_vm11  ;;  %v2991_v20 = vrot.slane %v2990_v42, 1  ;;  %v1905_v15 = vsel %vm1904_vm9, %v8028_v43, %v1903_v37  ;;  %v1922_v9 = vmul.f32 %v8304_v6, %v8200_v38 }
 0x252   :  { %v3575_v35 = vadd.f32 %v3574_v8, %v3573_v61  ;;  %v3576_v13 = vsel %vm11874_vm14, %v3414_v7, 0.0  ;;  %vm11875_vm10 = vmmov %vm11872_vm11  ;;  %v1910_v5 = vmul.f32 %v8307_v32, %v8203_v53  ;;  %3571 = vadd.xlane.f32.xlu1 %v3570_v28  ;;  %v11876_v21 = vand.u32 2147483648, %v7960_v16 }
 0x253   :  { %v3578_v14 = vsel %vm11875_vm10, %v3415_v60, 0.0  ;;  %5135 = vrsqrt.f32 %v8313_v18  ;;  %v8337_v42 = vperm.slane %v2991_v20, 0  ;;  %v8339_v60 = vperm.slane %v2991_v20, 1  ;;  %vm11888_vm6 = vmmov %vm11875_vm10 }
 0x254   :  { %v3577_v7 = vadd.f32 %v3576_v13, %v3575_v35  ;;  %v8334_v19 = vsel %vm1882_vm1, %v11876_v21, %v1881_v36  ;;  %v11880_v40 = vand.u32 2147483648, %v8007_v51  ;;  %v8347_v61 = vperm.slane %v2991_v20, 2  ;;  %vm11889_vm9 = vmmov %vm11888_vm6 }
 0x255   :  { %11877 = vst [vmem:[#allocation85_spill] sm:$0xff] %v8334_v19  ;;  %v8349_v8 = vperm.slane %v2991_v20, 3  ;;  %v11884_v16 = vand.u32 2147483648, %v8028_v43  ;;  %v1935_v28 = vmul.f32 %v8298_v57, %v1934_v0  ;;  %v3192_v35 = vsub.f32 %v8337_v42, %v8223_v54  ;;  %v8362_v51 = vpop.eup %5131  ;;  %vm11890_vm1 = vmmov %vm11888_vm6 }
 0x256   :  { %11878 = vst [vmem:[#allocation89_spill] sm:$0xff] %v8337_v42  ;;  %v8345_v47 = vsel %vm1894_vm12, %v11880_v40, %v1893_v12  ;;  %v3579_v37 = vadd.f32 %v3578_v14, %v3577_v7  ;;  %v3193_v12 = vsub.f32 %v8339_v60, %v8230_v10  ;;  %v1923_v13 = vmul.f32 %v8304_v6, %v1922_v9  ;;  %v8370_v0 = vpop.eup %5133  ;;  %vm11891_vm12 = vmmov %vm11890_vm1 }
 0x257   :  { %11879 = vst [vmem:[#allocation95_spill] sm:$0xff] %v8339_v60  ;;  %v8355_v36 = vsel %vm1906_vm7, %v11884_v16, %v1905_v15  ;;  %v1911_v14 = vmul.f32 %v8307_v32, %v1910_v5  ;;  %v3194_v43 = vsub.f32 %v8347_v61, %v8240_v46  ;;  %v3195_v20 = vsub.f32 %v8349_v8, %v8247_v26 }
 0x258   :  { %11881 = vst [vmem:[#allocation45_spill] sm:$0xff] %v8345_v47  ;;  %3580 = vadd.xlane.f32.xlu2 %v3579_v37  ;;  %v3416_v21 = vmul.f32 %v3192_v35, %v3192_v35  ;;  %v3417_v40 = vmul.f32 %v3193_v12, %v3193_v12  ;;  %v1936_v55 = vmul.f32 0.5, %v1935_v28  ;;  %v1924_v27 = vmul.f32 0.5, %v1923_v13 }
 0x259   :  { %11882 = vst [vmem:[#allocation59_spill] sm:$0xff] %v8347_v61  ;;  %v3418_v16 = vmul.f32 %v3194_v43, %v3194_v43  ;;  %v8381_v22 = vpop.eup %5135  ;;  %v3419_v15 = vmul.f32 %v3195_v20, %v3195_v20  ;;  %v1912_v7 = vmul.f32 0.5, %v1911_v14  ;;  %v1970_v35 = vmul.f32 %v8362_v51, %v8269_v30 }
 0x25a   :  { %11883 = vst [vmem:[#allocation91_spill] sm:$0xff] %v8349_v8  ;;  %v3582_v59 = vadd.f32 %v3417_v40, %v3416_v21  ;;  %v1958_v12 = vmul.f32 %v8370_v0, %v8302_v52  ;;  %v3196_v37 = vsub.f32 %v8337_v42, %v8259_v39  ;;  %v3197_v43 = vsub.f32 %v8339_v60, %v8274_v33 }
 0x25b   :  { %11885 = vst [vmem:[#allocation92_spill] sm:$0xff] %v8355_v36  ;;  %v3198_v28 = vsub.f32 %v8347_v61, %v8287_v25  ;;  %v1946_v13 = vmul.f32 %v8381_v22, %v8313_v18  ;;  %v3199_v14 = vsub.f32 %v8349_v8, %v8294_v23  ;;  %v2992_v20 = vsel %vm11454_vm3, %v8259_v39, %v8176_v1 }
 0x25c   :  { %v3583_v9 = vadd.f32 %v3582_v59, %v3418_v16  ;;  %vm11886_vm13 = vcmask 1044484   ;;  %v3420_v40 = vmul.f32 %v3196_v37, %v3196_v37  ;;  %v3421_v16 = vmul.f32 %v3197_v43, %v3197_v43 }
 0x25d   :  { %v2993_v59 = vsel %vm11886_vm13, %v8179_v4, %v8183_v56  ;;  %v3422_v5 = vmul.f32 %v3198_v28, %v3198_v28  ;;  %v1971_v62 = vmul.f32 %v8362_v51, %v1970_v35  ;;  %v1959_v36 = vmul.f32 %v8370_v0, %v1958_v12  ;;  %vm11897_vm13 = vmmov %vm11890_vm1 }
 0x25e   :  { %v3584_v21 = vadd.f32 %v3583_v9, %v3419_v15  ;;  %v3423_v47 = vmul.f32 %v3199_v14, %v3199_v14  ;;  %vm11887_vm5 = vcmask 1043458   ;;  %v3587_v24 = vsel %vm11888_vm6, %v3420_v40, 0.0  ;;  %vm11899_vm6 = vmmov %vm11890_vm1 }
 0x25f   :  { %v2994_v19 = vsel %vm11887_vm5, %v2992_v20, %v2993_v59  ;;  %v3588_v3 = vsel %vm11889_vm9, %v3421_v16, 0.0  ;;  %v3590_v8 = vsel %vm11890_vm1, %v3422_v5, 0.0  ;;  %v1937_v60 = vsub.f32 1.5, %v1936_v55  ;;  %vm11898_vm5 = vmmov %vm11890_vm1 }
 0x260   :  { %3585 = vadd.xlane.f32.xlu0 %v3584_v21  ;;  %v2995_v61 = vrot.slane %v2994_v19, 2  ;;  %v1925_v15 = vsub.f32 1.5, %v1924_v27  ;;  %v1947_v9 = vmul.f32 %v8381_v22, %v1946_v13  ;;  %v3589_v37 = vadd.f32 %v3588_v3, %v3587_v24  ;;  %vm11900_vm9 = vmmov %vm11890_vm1 }
 0x261   :  { %v3592_v35 = vsel %vm11891_vm12, %v3423_v47, 0.0  ;;  %v1913_v14 = vsub.f32 1.5, %v1912_v7  ;;  %v1972_v20 = vmul.f32 0.5, %v1971_v62  ;;  %v1960_v59 = vmul.f32 0.5, %v1959_v36 }
 0x262   :  { %v8412_v43 = vperm.slane %v2995_v61, 0  ;;  %v8414_v12 = vperm.slane %v2995_v61, 1  ;;  %v8416_v28 = vperm.slane %v2995_v61, 2  ;;  %v3591_v21 = vadd.f32 %v3590_v8, %v3589_v37  ;;  %v636_v8 = vpop.f32.mrf.mxu0 }
 0x263   :  { %v8418_v40 = vperm.slane %v2995_v61, 3  ;;  %v1938_v27 = vmul.f32 %v8298_v57, %v1937_v60  ;;  %v1926_v19 = vmul.f32 %v8304_v6, %v1925_v15  ;;  %vm1928_vm7 = vcmp.eq.f32.partialorder %v8200_v38, inf }
 0x264   :  { %11892 = vst [vmem:[#allocation93_spill] sm:$0xff] %v8412_v43  ;;  %v3200_v55 = vsub.f32 %v8412_v43, %v8223_v54  ;;  %v3201_v3 = vsub.f32 %v8414_v12, %v8230_v10  ;;  %v3202_v24 = vsub.f32 %v8416_v28, %v8240_v46  ;;  %vm1916_vm8 = vcmp.eq.f32.partialorder %v8203_v53, inf }
 0x265   :  { %11893 = vst [vmem:[#allocation94_spill] sm:$0xff] %v8414_v12  ;;  %v3593_v47 = vadd.f32 %v3592_v35, %v3591_v21  ;;  %vm1940_vm11 = vcmp.eq.f32.partialorder %v8186_v58, inf  ;;  %v1948_v61 = vmul.f32 0.5, %v1947_v9  ;;  %v3203_v36 = vsub.f32 %v8418_v40, %v8247_v26 }
 0x266   :  { %11894 = vst [vmem:[#allocation102_spill] sm:$0xff] %v8416_v28  ;;  %v3424_v7 = vmul.f32 %v3200_v55, %v3200_v55  ;;  %v3425_v5 = vmul.f32 %v3201_v3, %v3201_v3  ;;  %v1914_v57 = vmul.f32 %v8307_v32, %v1913_v14  ;;  %v1973_v60 = vsub.f32 1.5, %v1972_v20  ;;  %v11896_v32 = vld [vmem:[#allocation48_spill] sm:$0xff]  ;;  %v755_v55 = vld.sshfl [vmem:[#allocation1 + $0x8] sm:$0xff pattern:$0x75316420] }
 0x267   :  { %11895 = vst [vmem:[#allocation80_spill] sm:$0xff] %v8418_v40  ;;  %v1961_v6 = vsub.f32 1.5, %v1960_v59  ;;  %3594 = vadd.xlane.f32.xlu1 %v3593_v47  ;;  %v3426_v13 = vmul.f32 %v3202_v24, %v3202_v24  ;;  %vm1918_vm15 = vcmp.eq.f32.partialorder %v8203_v53, 0.0  ;;  %vm1976_vm14 = vcmp.eq.f32.partialorder %v8269_v30, inf }
 0x268   :  { %v3427_v16 = vmul.f32 %v3203_v36, %v3203_v36  ;;  %v3596_v15 = vadd.f32 %v3425_v5, %v3424_v7  ;;  %v3204_v9 = vsub.f32 %v8412_v43, %v8259_v39  ;;  %v3205_v37 = vsub.f32 %v8414_v12, %v8274_v33 }
 0x269   :  { %v1927_v35 = vmul.f32 %v1926_v19, %v8200_v38  ;;  %vm1930_vm10 = vcmp.eq.f32.partialorder %v8200_v38, 0.0  ;;  %v637_v14 = vadd.f32 %v636_v8, %v11896_v32  ;;  %v3206_v20 = vsub.f32 %v8416_v28, %v8287_v25  ;;  %v656_v8 = vpop.f32.mrf.mxu1 }
 0x26a   :  { %v3207_v59 = vsub.f32 %v8418_v40, %v8294_v23  ;;  %v1949_v21 = vsub.f32 1.5, %v1948_v61  ;;  %v3597_v3 = vadd.f32 %v3596_v15, %v3426_v13  ;;  %v3428_v24 = vmul.f32 %v3204_v9, %v3204_v9 }
 0x26b   :  { %v3429_v47 = vmul.f32 %v3205_v37, %v3205_v37  ;;  %v1974_v36 = vmul.f32 %v8362_v51, %v1973_v60  ;;  %v1962_v7 = vmul.f32 %v8370_v0, %v1961_v6  ;;  %v3430_v19 = vmul.f32 %v3206_v20, %v3206_v20  ;;  %v11901_v37 = vld [vmem:[#allocation41_spill] sm:$0xff] }
 0x26c   :  { %v3431_v5 = vmul.f32 %v3207_v59, %v3207_v59  ;;  %v1915_v62 = vmul.f32 %v1914_v57, %v8203_v53  ;;  %v3598_v12 = vadd.f32 %v3597_v3, %v3427_v16  ;;  %v3601_v28 = vsel %vm11897_vm13, %v3428_v24, 0.0 }
 0x26d   :  { %v3602_v43 = vsel %vm11898_vm5, %v3429_v47, 0.0  ;;  %v1939_v61 = vmul.f32 %v1938_v27, %v8186_v58  ;;  %v769_v40 = vsub.f32 %v637_v14, %v755_v55  ;;  %v3604_v15 = vsel %vm11899_vm6, %v3430_v19, 0.0  ;;  %v11903_v14 = vld [vmem:[#allocation46_spill] sm:$0xff]  ;;  %vm11924_vm6 = vmmov %vm11898_vm5 }
 0x26e   :  { %v3603_v13 = vadd.f32 %v3602_v43, %v3601_v28  ;;  %v1929_v51 = vsel %vm1928_vm7, %v8200_v38, %v1927_v35  ;;  %v1950_v57 = vmul.f32 %v8381_v22, %v1949_v21  ;;  %3599 = vadd.xlane.f32.xlu2 %v3598_v12  ;;  %v3606_v60 = vsel %vm11900_vm9, %v3431_v5, 0.0  ;;  %v756_v12 = vld.sshfl [vmem:[#allocation1 + $0x10] sm:$0xff pattern:$0x75316420]  ;;  %vm11929_vm9 = vmmov %vm11898_vm5 }
 0x26f   :  { %v1975_v6 = vmul.f32 %v1974_v36, %v8269_v30  ;;  %v1963_v16 = vmul.f32 %v1962_v7, %v8302_v52  ;;  %v657_v27 = vadd.f32 %v656_v8, %v11896_v32  ;;  %v1917_v28 = vsel %vm1916_vm8, %v8203_v53, %v1915_v62 }
 0x270   :  { %v3605_v43 = vadd.f32 %v3604_v15, %v3603_v13  ;;  %vm1964_vm1 = vcmp.eq.f32.partialorder %v8302_v52, inf  ;;  %v799_v22 = vperm.slane %v11901_v37, 2  ;;  %v8473_v35 = vsel %vm1940_vm11, %v8186_v58, %v1939_v61 }
 0x271   :  { %11902 = vst [vmem:[#allocation81_spill] sm:$0xff] %v8473_v35  ;;  %vm1952_vm12 = vcmp.eq.f32.partialorder %v8313_v18, inf  ;;  %v776_v20 = vmul.f32 %v769_v40, %v11903_v14  ;;  %v11904_v21 = vand.u32 2147483648, %v8200_v38  ;;  %v1951_v55 = vmul.f32 %v1950_v57, %v8313_v18 }
 0x272   :  { %v3607_v59 = vadd.f32 %v3606_v60, %v3605_v43  ;;  %v2849_v24 = vperm.slane %v11901_v37, 3  ;;  %v11906_v47 = vand.u32 2147483648, %v8203_v53  ;;  %v8495_v40 = vsel %vm1976_vm14, %v8269_v30, %v1975_v6 }
 0x273   :  { %v8481_v62 = vsel %vm1930_vm10, %v11904_v21, %v1929_v51  ;;  %11908 = vst [vmem:[#allocation17_spill] sm:$0xff] %v8495_v40  ;;  %v8498_v38 = vsel %vm1964_vm1, %v8302_v52, %v1963_v16  ;;  %v770_v7 = vsub.f32 %v657_v27, %v756_v12  ;;  %v813_v19 = vperm.slane %v799_v22, 0  ;;  %v11914_v27 = vld [vmem:[#allocation53_spill] sm:$0xff]  ;;  %vm11930_vm1 = vmmov %vm11898_vm5 }
 0x274   :  { %11905 = vst [vmem:[#allocation56_spill] sm:$0xff] %v8481_v62  ;;  %v8490_v36 = vsel %vm1918_vm15, %v11906_v47, %v1917_v28  ;;  %3608 = vadd.xlane.f32.xlu0 %v3607_v59  ;;  %v800_v5 = vperm.slane %v11901_v37, 4  ;;  %v2996_v8 = vsel %vm11453_vm2, %v8259_v39, %v8176_v1  ;;  %vm11910_vm7 = vcmask 1045509   ;;  %v2167_v47 = vpop.xlane.xlu1 %2166 }
 0x275   :  { %11907 = vst [vmem:[#allocation21_spill] sm:$0xff] %v8490_v36  ;;  %v2997_v53 = vsel %vm11910_vm7, %v8179_v4, %v8183_v56  ;;  %v783_v61 = vmul.f32 %v776_v20, %v776_v20  ;;  %v790_v13 = vand.u32 2147483647, %v776_v20  ;;  %v2850_v15 = vperm.slane %v11901_v37, 5 }
 0x276   :  { %11909 = vst [vmem:[#allocation23_spill] sm:$0xff] %v8498_v38  ;;  %vm11911_vm8 = vcmask 1044483   ;;  %v8512_v57 = vsel %vm1952_vm12, %v8313_v18, %v1951_v55  ;;  %v2863_v60 = vperm.slane %v2849_v24, 1  ;;  %vm11913_vm11 = vcmask 1046528   ;;  %vm11937_vm12 = vmmov %vm11910_vm7 }
 0x277   :  { %v2998_v51 = vsel %vm11911_vm8, %v2996_v8, %v2997_v53  ;;  %11912 = vst [vmem:[#allocation19_spill] sm:$0xff] %v8512_v57  ;;  %v8517_v16 = vsel %vm11913_vm11, %v8183_v56, %v8179_v4  ;;  %vm826_vm15 = vcmask 1042432   ;;  %v8520_v43 = vmul.f32 %v770_v7, %v11914_v27  ;;  %v616_v57 = vpop.f32.mrf.mxu3  ;;  %vm11939_vm8 = vmmov %vm11930_vm1 }
 0x278   :  { %v2999_v6 = vrot.slane %v2998_v51, 3  ;;  %vm11915_vm14 = vcmask 1044484   ;;  %vm11916_vm10 = vcmask 1046534   ;;  %v814_v12 = vperm.slane %v800_v5, 0  ;;  %vm11940_vm11 = vmmov %vm11930_vm1 }
 0x279   :  { %v3000_v28 = vsel %vm11915_vm14, %v8259_v39, %v8176_v1  ;;  %v3001_v22 = vsel %vm11916_vm10, %v8179_v4, %v8183_v56  ;;  %v820_v21 = vmul.f32 %v813_v19, %v783_v61  ;;  %v852_v55 = vmul.f32 %v813_v19, %v790_v13  ;;  %vm11941_vm14 = vmmov %vm11930_vm1 }
 0x27a   :  { %v8528_v14 = vperm.slane %v2999_v6, 0  ;;  %v8530_v20 = vperm.slane %v2999_v6, 1  ;;  %v8532_v59 = vperm.slane %v2999_v6, 2  ;;  %v2864_v24 = vperm.slane %v2850_v15, 1  ;;  %vm11943_vm10 = vmmov %vm11930_vm1 }
 0x27b   :  { %v8534_v7 = vperm.slane %v2999_v6, 3  ;;  %v2870_v8 = vmul.f32 %v2863_v60, %v783_v61  ;;  %vm11921_vm13 = vcmask 1045508   ;;  %v2901_v5 = vmul.f32 %v2863_v60, %v790_v13 }
 0x27c   :  { %11917 = vst [vmem:[#allocation66_spill] sm:$0xff] %v8528_v14  ;;  %v3208_v53 = vsub.f32 %v8528_v14, %v8223_v54  ;;  %v3209_v4 = vsub.f32 %v8530_v20, %v8230_v10  ;;  %v3002_v56 = vsel %vm11921_vm13, %v3000_v28, %v3001_v22  ;;  %v3210_v51 = vsub.f32 %v8532_v59, %v8240_v46  ;;  %v2176_v28 = vpop.xlane.xlu2 %2175  ;;  %vm11949_vm13 = vmmov %vm11930_vm1 }
 0x27d   :  { %11918 = vst [vmem:[#allocation97_spill] sm:$0xff] %v8530_v20  ;;  %v3211_v19 = vsub.f32 %v8534_v7, %v8247_v26  ;;  %v3212_v15 = vsub.f32 %v8528_v14, %v8259_v39  ;;  %v784_v61 = vmul.f32 %v8520_v43, %v8520_v43  ;;  %v8549_v6 = vadd.f32 1e-09, %v2167_v47 }
 0x27e   :  { %11919 = vst [vmem:[#allocation96_spill] sm:$0xff] %v8532_v59  ;;  %v3432_v27 = vmul.f32 %v3208_v53, %v3208_v53  ;;  %v3433_v0 = vmul.f32 %v3209_v4, %v3209_v4  ;;  %v791_v9 = vand.u32 2147483647, %v8520_v43  ;;  %v3434_v13 = vmul.f32 %v3210_v51, %v3210_v51 }
 0x27f   :  { %11920 = vst [vmem:[#allocation49_spill] sm:$0xff] %v8534_v7  ;;  %v3213_v60 = vsub.f32 %v8530_v20, %v8274_v33  ;;  %v3003_v22 = vrot.slane %v3002_v56, 4  ;;  %v8555_v3 = vsel %vm826_vm15, %v820_v21, 0.0  ;;  %v3435_v62 = vmul.f32 %v3211_v19, %v3211_v19 }
 0x280   :  { %11922 = vst [vmem:[#allocation54_spill] sm:$0xff] %v8555_v3  ;;  %v3610_v36 = vadd.f32 %v3433_v0, %v3432_v27  ;;  %v3214_v40 = vsub.f32 %v8532_v59, %v8287_v25  ;;  %v8560_v47 = vsel %vm826_vm15, %v852_v55, 0.0  ;;  %v3215_v43 = vsub.f32 %v8534_v7, %v8294_v23  ;;  %v757_v7 = vld.sshfl [vmem:[#allocation1 + $0x18] sm:$0xff pattern:$0x75316420] }
 0x281   :  { %11923 = vst [vmem:[#allocation16_spill] sm:$0xff] %v8560_v47  ;;  %v3436_v53 = vmul.f32 %v3212_v15, %v3212_v15  ;;  %v3437_v4 = vmul.f32 %v3213_v60, %v3213_v60  ;;  %5137 = vrsqrt.f32 %v8549_v6  ;;  %v8565_v51 = vadd.f32 1e-09, %v2176_v28 }
 0x282   :  { %v3611_v56 = vadd.f32 %v3610_v36, %v3434_v13  ;;  %v3438_v21 = vmul.f32 %v3214_v40, %v3214_v40  ;;  %v3439_v38 = vmul.f32 %v3215_v43, %v3215_v43  ;;  %v8569_v27 = vperm.slane %v3003_v22, 0  ;;  %v2181_v36 = vpop.xlane.xlu0 %2180 }
 0x283   :  { %v3615_v0 = vsel %vm11898_vm5, %v3436_v53, 0.0  ;;  %v3616_v19 = vsel %vm11924_vm6, %v3437_v4, 0.0  ;;  %v8572_v55 = vsel %vm826_vm15, %v2870_v8, 0.0  ;;  %v8574_v60 = vperm.slane %v3003_v22, 1  ;;  %vm11950_vm5 = vmmov %vm11930_vm1 }
 0x284   :  { %11925 = vst [vmem:[#allocation18_spill] sm:$0xff] %v8569_v27  ;;  %v3612_v30 = vadd.f32 %v3611_v56, %v3435_v62  ;;  %v3617_v15 = vadd.f32 %v3616_v19, %v3615_v0  ;;  %v8577_v28 = vsel %vm826_vm15, %v2901_v5, 0.0  ;;  %v3618_v40 = vsel %vm11929_vm9, %v3438_v21, 0.0  ;;  %v676_v5 = vpop.f32.mrf.mxu2  ;;  %v2195_v20 = vpop.xlane.xlu2 %2194  ;;  %vm11951_vm6 = vmmov %vm11930_vm1 }
 0x285   :  { %11926 = vst [vmem:[#allocation99_spill] sm:$0xff] %v8572_v55  ;;  %v3620_v13 = vsel %vm11930_vm1, %v3439_v38, 0.0  ;;  %v8581_v43 = vperm.slane %v3003_v22, 2  ;;  %v8583_v53 = vmul.f32 %v814_v12, %v784_v61  ;;  %v8585_v4 = vmul.f32 %v814_v12, %v791_v9  ;;  %v8601_v12 = vld.sshfl [vmem:[#allocation1] sm:$0xff pattern:$0x75316420]  ;;  %vm11952_vm9 = vmmov %vm11930_vm1 }
 0x286   :  { %11927 = vst [vmem:[#allocation20_spill] sm:$0xff] %v8574_v60  ;;  %v8587_v8 = vmul.f32 %v2864_v24, %v784_v61  ;;  %3613 = vadd.xlane.f32.xlu1 %v3612_v30  ;;  %v3619_v62 = vadd.f32 %v3618_v40, %v3617_v15  ;;  %v8590_v56 = vadd.f32 %v616_v57, %v11896_v32  ;;  %5139 = vrsqrt.f32 %v8565_v51  ;;  %v2190_v40 = vpop.xlane.xlu1 %2189 }
 0x287   :  { %11928 = vst [vmem:[#allocation48_spill] sm:$0xff] %v8577_v28  ;;  %v8593_v0 = vperm.slane %v3003_v22, 3  ;;  %v3216_v38 = vsub.f32 %v8569_v27, %v8223_v54  ;;  %v8597_v21 = vpop.eup %5137  ;;  %v8599_v19 = vmul.f32 %v2864_v24, %v791_v9  ;;  %v798_v30 = vperm.slane %v11901_v37, 0 }
 0x288   :  { %11931 = vst [vmem:[#allocation41_spill] sm:$0xff] %v8581_v43  ;;  %v3621_v61 = vadd.f32 %v3620_v13, %v3619_v62  ;;  %v3217_v57 = vsub.f32 %v8574_v60, %v8230_v10  ;;  %v8606_v15 = vadd.f32 1e-09, %v2181_v36  ;;  %v3218_v22 = vsub.f32 %v8581_v43, %v8240_v46 }
 0x289   :  { %11932 = vst [vmem:[#allocation46_spill] sm:$0xff] %v8583_v53  ;;  %v3219_v52 = vsub.f32 %v8593_v0, %v8247_v26  ;;  %v3440_v18 = vmul.f32 %v3216_v38, %v3216_v38  ;;  %v2848_v9 = vperm.slane %v11901_v37, 1  ;;  %v8614_v24 = vadd.f32 %v676_v5, %v11896_v32 }
 0x28a   :  { %11933 = vst [vmem:[#allocation53_spill] sm:$0xff] %v8585_v4  ;;  %v801_v13 = vperm.slane %v11901_v37, 6  ;;  %3622 = vadd.xlane.f32.xlu2 %v3621_v61  ;;  %v3441_v62 = vmul.f32 %v3217_v57, %v3217_v57  ;;  %v768_v36 = vsub.f32 %v8590_v56, %v8601_v12  ;;  %v2438_v35 = vmul.f32 %v8597_v21, %v8549_v6 }
 0x28b   :  { %11934 = vst [vmem:[#allocation103_spill] sm:$0xff] %v8587_v8  ;;  %v3442_v58 = vmul.f32 %v3218_v22, %v3218_v22  ;;  %v3004_v38 = vsel %vm11937_vm12, %v8259_v39, %v8176_v1  ;;  %v2851_v59 = vperm.slane %v11901_v37, 7  ;;  %v8625_v5 = vadd.f32 1e-09, %v2190_v40 }
 0x28c   :  { %11935 = vst [vmem:[#allocation104_spill] sm:$0xff] %v8593_v0  ;;  %v3443_v14 = vmul.f32 %v3219_v52, %v3219_v52  ;;  %v3624_v61 = vadd.f32 %v3441_v62, %v3440_v18  ;;  %v8627_v57 = vpop.eup %5139  ;;  %5141 = vrsqrt.f32 %v8606_v15  ;;  %v3220_v56 = vsub.f32 %v8569_v27, %v8259_v39 }
 0x28d   :  { %11936 = vst [vmem:[#allocation105_spill] sm:$0xff] %v8599_v19  ;;  %v3221_v12 = vsub.f32 %v8574_v60, %v8274_v33  ;;  %v3222_v1 = vsub.f32 %v8581_v43, %v8287_v25  ;;  %v8636_v22 = vperm.slane %v798_v30, 0  ;;  %v3223_v52 = vsub.f32 %v8593_v0, %v8294_v23  ;;  %v2204_v60 = vpop.xlane.xlu0 %2203 }
 0x28e   :  { %v3625_v37 = vadd.f32 %v3624_v61, %v3442_v58  ;;  %vm11938_vm7 = vcmask 1046533   ;;  %v8642_v40 = vperm.slane %v2848_v9, 1  ;;  %v771_v62 = vsub.f32 %v8614_v24, %v757_v7 }
 0x28f   :  { %v3006_v18 = vsel %vm11938_vm7, %v3004_v38, %v8517_v16  ;;  %v2439_v27 = vmul.f32 %v8597_v21, %v2438_v35  ;;  %v8646_v8 = vadd.f32 1e-09, %v2195_v20  ;;  %v2450_v30 = vmul.f32 %v8627_v57, %v8565_v51 }
 0x290   :  { %v3626_v43 = vadd.f32 %v3625_v37, %v3443_v14  ;;  %v3444_v58 = vmul.f32 %v3220_v56, %v3220_v56  ;;  %v3445_v61 = vmul.f32 %v3221_v12, %v3221_v12  ;;  %5143 = vrsqrt.f32 %v8625_v5 }
 0x291   :  { %v3446_v0 = vmul.f32 %v3222_v1, %v3222_v1  ;;  %v3447_v55 = vmul.f32 %v3223_v52, %v3223_v52  ;;  %v3007_v16 = vrot.slane %v3006_v18, 5  ;;  %v8651_v9 = vperm.slane %v801_v13, 0 }
 0x292   :  { %v8653_v38 = vadd.f32 1e-09, %v2204_v60  ;;  %3627 = vadd.xlane.f32.xlu0 %v3626_v43  ;;  %v3629_v35 = vsel %vm11939_vm8, %v3444_v58, 0.0  ;;  %v3630_v20 = vsel %vm11940_vm11, %v3445_v61, 0.0  ;;  %v8657_v7 = vpop.eup %5141  ;;  %5145 = vrsqrt.f32 %v8646_v8  ;;  %v11947_v58 = vld [vmem:[#allocation47_spill] sm:$0xff] }
 0x293   :  { %v3631_v14 = vadd.f32 %v3630_v20, %v3629_v35  ;;  %v3632_v24 = vsel %vm11941_vm14, %v3446_v0, 0.0  ;;  %v8661_v56 = vperm.slane %v3007_v16, 0  ;;  %v2440_v12 = vmul.f32 0.5, %v2439_v27  ;;  %v11948_v20 = vld [vmem:[#allocation51_spill] sm:$0xff] }
 0x294   :  { %v3634_v13 = vsel %vm11943_vm10, %v3447_v55, 0.0  ;;  %v8664_v1 = vperm.slane %v3007_v16, 1  ;;  %v8666_v60 = vperm.slane %v3007_v16, 2  ;;  %v2451_v43 = vmul.f32 %v8627_v57, %v2450_v30 }
 0x295   :  { %11942 = vst [vmem:[#allocation106_spill] sm:$0xff] %v8661_v56  ;;  %v3633_v37 = vadd.f32 %v3632_v24, %v3631_v14  ;;  %v8669_v52 = vperm.slane %v3007_v16, 3  ;;  %v3224_v18 = vsub.f32 %v8661_v56, %v8223_v54  ;;  %v775_v61 = vmul.f32 %v768_v36, %v11947_v58 }
 0x296   :  { %11944 = vst [vmem:[#allocation107_spill] sm:$0xff] %v8664_v1  ;;  %v2462_v0 = vmul.f32 %v8657_v7, %v8606_v15  ;;  %5147 = vrsqrt.f32 %v8653_v38  ;;  %v3225_v27 = vsub.f32 %v8664_v1, %v8230_v10  ;;  %v8679_v55 = vpop.eup %5143  ;;  %v3226_v30 = vsub.f32 %v8666_v60, %v8240_v46 }
 0x297   :  { %11945 = vst [vmem:[#allocation108_spill] sm:$0xff] %v8666_v60  ;;  %v3635_v35 = vadd.f32 %v3634_v13, %v3633_v37  ;;  %v3227_v16 = vsub.f32 %v8669_v52, %v8247_v26  ;;  %v3228_v36 = vsub.f32 %v8661_v56, %v8259_v39  ;;  %v8688_v14 = vmul.f32 %v771_v62, %v11948_v20 }
 0x298   :  { %11946 = vst [vmem:[#allocation109_spill] sm:$0xff] %v8669_v52  ;;  %v8690_v24 = vperm.slane %v2851_v59, 1  ;;  %v2441_v58 = vsub.f32 1.5, %v2440_v12  ;;  %v3448_v19 = vmul.f32 %v3224_v18, %v3224_v18  ;;  %v8692_v28 = vpop.eup %5145  ;;  %v2452_v53 = vmul.f32 0.5, %v2451_v43 }
 0x299   :  { %3636 = vadd.xlane.f32.xlu1 %v3635_v35  ;;  %v3449_v13 = vmul.f32 %v3225_v27, %v3225_v27  ;;  %v3450_v37 = vmul.f32 %v3226_v30, %v3226_v30  ;;  %v3229_v3 = vsub.f32 %v8664_v1, %v8274_v33  ;;  %v2463_v4 = vmul.f32 %v8657_v7, %v2462_v0 }
 0x29a   :  { %v2474_v56 = vmul.f32 %v8679_v55, %v8625_v5  ;;  %v3230_v59 = vsub.f32 %v8666_v60, %v8287_v25  ;;  %v3231_v62 = vsub.f32 %v8669_v52, %v8294_v23  ;;  %v3451_v12 = vmul.f32 %v3227_v16, %v3227_v16 }
 0x29b   :  { %v3638_v18 = vadd.f32 %v3449_v13, %v3448_v19  ;;  %v3452_v43 = vmul.f32 %v3228_v36, %v3228_v36  ;;  %v3453_v35 = vmul.f32 %v3229_v3, %v3229_v3  ;;  %v782_v30 = vmul.f32 %v775_v61, %v775_v61 }
 0x29c   :  { %v8703_v27 = vpop.eup %5147  ;;  %v2486_v20 = vmul.f32 %v8692_v28, %v8646_v8  ;;  %v3454_v0 = vmul.f32 %v3230_v59, %v3230_v59  ;;  %v3455_v1 = vmul.f32 %v3231_v62, %v3231_v62  ;;  %v789_v47 = vand.u32 2147483647, %v775_v61 }
 0x29d   :  { %v3639_v42 = vadd.f32 %v3638_v18, %v3450_v37  ;;  %v3643_v44 = vsel %vm11949_vm13, %v3452_v43, 0.0  ;;  %v3644_v60 = vsel %vm11950_vm5, %v3453_v35, 0.0  ;;  %v2442_v52 = vmul.f32 %v8597_v21, %v2441_v58 }
 0x29e   :  { %v2453_v16 = vsub.f32 1.5, %v2452_v53  ;;  %v3645_v19 = vadd.f32 %v3644_v60, %v3643_v44  ;;  %v3646_v3 = vsel %vm11951_vm6, %v3454_v0, 0.0  ;;  %v2464_v36 = vmul.f32 0.5, %v2463_v4 }
 0x29f   :  { %v2475_v13 = vmul.f32 %v8679_v55, %v2474_v56  ;;  %v3640_v41 = vadd.f32 %v3639_v42, %v3451_v12  ;;  %v3648_v17 = vsel %vm11952_vm9, %v3455_v1, 0.0  ;;  %v785_v61 = vmul.f32 %v8688_v14, %v8688_v14  ;;  %v8722_v42 = vpop.xlane.xlu0 %2222  ;;  %v8727_v1 = vpop.xlane.xlu1 %2208 }
 0x2a0   :  { %v2487_v37 = vmul.f32 %v8692_v28, %v2486_v20  ;;  %v2498_v59 = vmul.f32 %v8703_v27, %v8653_v38  ;;  %v3647_v62 = vadd.f32 %v3646_v3, %v3645_v19  ;;  %v819_v53 = vmul.f32 %v8636_v22, %v782_v30 }
 0x2a1   :  { %v792_v44 = vand.u32 2147483647, %v8688_v14  ;;  %vm2444_vm1 = vcmp.eq.f32.partialorder %v8549_v6, inf  ;;  %vm2446_vm12 = vcmp.eq.f32.partialorder %v8549_v6, 0.0  ;;  %3641 = vadd.xlane.f32.xlu2 %v3640_v41  ;;  %v851_v4 = vmul.f32 %v8636_v22, %v789_v47 }
 0x2a2   :  { %v2869_v21 = vmul.f32 %v8642_v40, %v782_v30  ;;  %v2900_v56 = vmul.f32 %v8642_v40, %v789_v47  ;;  %v3649_v60 = vadd.f32 %v3648_v17, %v3647_v62  ;;  %v2443_v58 = vmul.f32 %v2442_v52, %v8549_v6 }
 0x2a3   :  { %v2454_v14 = vmul.f32 %v8627_v57, %v2453_v16  ;;  %v2465_v12 = vsub.f32 1.5, %v2464_v36  ;;  %v2476_v18 = vmul.f32 0.5, %v2475_v13  ;;  %v8732_v43 = vmul.f32 %v8651_v9, %v785_v61  ;;  %v8745_v57 = vpop.xlane.xlu2 %2217 }
 0x2a4   :  { %v2447_v41 = vand.u32 2147483648, %v8549_v6  ;;  %v2488_v35 = vmul.f32 0.5, %v2487_v37  ;;  %v2499_v22 = vmul.f32 %v8703_v27, %v2498_v59  ;;  %3650 = vadd.xlane.f32.xlu0 %v3649_v60  ;;  %v8737_v47 = vsel %vm826_vm15, %v819_v53, 0.0 }
 0x2a5   :  { %11953 = vst [vmem:[#allocation47_spill] sm:$0xff] %v8732_v43  ;;  %v8740_v17 = vmul.f32 %v8651_v9, %v792_v44  ;;  %v8743_v40 = vmul.f32 %v8690_v24, %v785_v61  ;;  %v3232_v52 = vadd.f32 %v8223_v54, %v7605_v34  ;;  %v8750_v30 = vsel %vm826_vm15, %v851_v4, 0.0 }
 0x2a6   :  { %11954 = vst [vmem:[#allocation51_spill] sm:$0xff] %v8737_v47  ;;  %v8753_v20 = vsel %vm826_vm15, %v2869_v21, 0.0  ;;  %v8756_v0 = vsel %vm826_vm15, %v2900_v56, 0.0  ;;  %vm2456_vm7 = vcmp.eq.f32.partialorder %v8565_v51, inf  ;;  %v2445_v9 = vsel %vm2444_vm1, %v8549_v6, %v2443_v58  ;;  %vm11964_vm1 = vmmov %vm11952_vm9 }
 0x2a7   :  { %11955 = vst [vmem:[#allocation110_spill] sm:$0xff] %v8740_v17  ;;  %v2455_v16 = vmul.f32 %v2454_v14, %v8565_v51  ;;  %v2466_v19 = vmul.f32 %v8657_v7, %v2465_v12  ;;  %v2477_v3 = vsub.f32 1.5, %v2476_v18  ;;  %v2489_v36 = vsub.f32 1.5, %v2488_v35  ;;  %v8786_v56 = vpop.xlane.xlu0 %2245  ;;  %v2232_v14 = vpop.xlane.xlu1 %2231 }
 0x2a8   :  { %11956 = vst [vmem:[#allocation111_spill] sm:$0xff] %v8743_v40  ;;  %v2500_v13 = vmul.f32 0.5, %v2499_v22  ;;  %v3233_v61 = vadd.f32 %v8230_v10, %v7607_v49  ;;  %v3234_v37 = vadd.f32 %v8240_v46, %v7609_v48  ;;  %v8769_v59 = vmul.f32 %v8690_v24, %v792_v44  ;;  %v11991_v40 = vld [vmem:[#allocation90_spill] sm:$0xff] }
 0x2a9   :  { %11957 = vst [vmem:[#allocation112_spill] sm:$0xff] %v8750_v30  ;;  %vm2458_vm8 = vcmp.eq.f32.partialorder %v8565_v51, 0.0  ;;  %v3235_v62 = vadd.f32 %v8247_v26, %v7611_v29  ;;  %v4016_v53 = vmul.f32 %v3232_v52, %v3232_v52  ;;  %v8776_v7 = vsel %vm2446_vm12, %v2447_v41, %v2445_v9 }
 0x2aa   :  { %11958 = vst [vmem:[#allocation113_spill] sm:$0xff] %v8753_v20  ;;  %v2459_v4 = vand.u32 2147483648, %v8565_v51  ;;  %vm2468_vm11 = vcmp.eq.f32.partialorder %v8606_v15, inf  ;;  %vm2470_vm14 = vcmp.eq.f32.partialorder %v8606_v15, 0.0  ;;  %v2457_v24 = vsel %vm2456_vm7, %v8565_v51, %v2455_v16  ;;  %vm11966_vm7 = vmmov %vm11964_vm1 }
 0x2ab   :  { %11959 = vst [vmem:[#allocation114_spill] sm:$0xff] %v8756_v0  ;;  %v2467_v44 = vmul.f32 %v2466_v19, %v8606_v15  ;;  %v2478_v21 = vmul.f32 %v8679_v55, %v2477_v3  ;;  %v4017_v60 = vmul.f32 %v3233_v61, %v3233_v61  ;;  %v2490_v6 = vmul.f32 %v8692_v28, %v2489_v36  ;;  %v8807_v19 = vpop.xlane.xlu2 %2236  ;;  %v11995_v0 = vld [vmem:[#allocation95_spill] sm:$0xff] }
 0x2ac   :  { %11960 = vst [vmem:[#allocation115_spill] sm:$0xff] %v8769_v59  ;;  %v2501_v58 = vsub.f32 1.5, %v2500_v13  ;;  %v4018_v12 = vmul.f32 %v3234_v37, %v3234_v37  ;;  %v3236_v18 = vadd.f32 %v8259_v39, %v7605_v34  ;;  %v2471_v41 = vand.u32 2147483648, %v8606_v15  ;;  %v11994_v59 = vld [vmem:[#allocation89_spill] sm:$0xff] }
 0x2ad   :  { %11961 = vst [vmem:[#allocation116_spill] sm:$0xff] %v8776_v7  ;;  %v4019_v35 = vmul.f32 %v3235_v62, %v3235_v62  ;;  %v4128_v22 = vadd.f32 %v4017_v60, %v4016_v53  ;;  %v3237_v52 = vadd.f32 %v8274_v33, %v7607_v49  ;;  %v8798_v9 = vsel %vm2458_vm8, %v2459_v4, %v2457_v24  ;;  %v696_v60 = vpop.f32.mrf.mxu3  ;;  %vm11968_vm8 = vmmov %vm11964_vm1 }
 0x2ae   :  { %11962 = vst [vmem:[#allocation117_spill] sm:$0xff] %v8798_v9  ;;  %vm2480_vm10 = vcmp.eq.f32.partialorder %v8625_v5, inf  ;;  %v3238_v28 = vadd.f32 %v8287_v25, %v7609_v48  ;;  %v2469_v34 = vsel %vm2468_vm11, %v8606_v15, %v2467_v44  ;;  %v2479_v16 = vmul.f32 %v2478_v21, %v8625_v5  ;;  %vm11976_vm11 = vmmov %vm11964_vm1 }
 0x2af   :  { %v4129_v49 = vadd.f32 %v4128_v22, %v4018_v12  ;;  %v3239_v3 = vadd.f32 %v8294_v23, %v7611_v29  ;;  %vm2482_vm13 = vcmp.eq.f32.partialorder %v8625_v5, 0.0  ;;  %v2491_v51 = vmul.f32 %v2490_v6, %v8646_v8 }
 0x2b0   :  { %v2502_v36 = vmul.f32 %v8703_v27, %v2501_v58  ;;  %v4020_v13 = vmul.f32 %v3236_v18, %v3236_v18  ;;  %vm2492_vm5 = vcmp.eq.f32.partialorder %v8646_v8, inf  ;;  %v4021_v37 = vmul.f32 %v3237_v52, %v3237_v52  ;;  %v8837_v18 = vpop.xlane.xlu0 %2264 }
 0x2b1   :  { %v4130_v61 = vadd.f32 %v4129_v49, %v4019_v35  ;;  %v8819_v62 = vsel %vm2470_vm14, %v2471_v41, %v2469_v34  ;;  %v2483_v29 = vand.u32 2147483648, %v8625_v5  ;;  %vm2494_vm6 = vcmp.eq.f32.partialorder %v8646_v8, 0.0  ;;  %11965 = vst [vmem:[#allocation119_spill] sm:$0xff] %v8837_v18 }
 0x2b2   :  { %11963 = vst [vmem:[#allocation118_spill] sm:$0xff] %v8819_v62  ;;  %v4022_v53 = vmul.f32 %v3238_v28, %v3238_v28  ;;  %v2481_v27 = vsel %vm2480_vm10, %v8625_v5, %v2479_v16  ;;  %v2495_v4 = vand.u32 2147483648, %v8646_v8  ;;  %v4023_v24 = vmul.f32 %v3239_v3, %v3239_v3  ;;  %v8848_v28 = vpop.xlane.xlu1 %2250  ;;  %vm11978_vm10 = vmmov %vm11964_vm1 }
 0x2b3   :  { %4131 = vadd.xlane.f32.xlu1 %v4130_v61  ;;  %v4133_v44 = vsel %vm11952_vm9, %v4020_v13, 0.0  ;;  %v2493_v21 = vsel %vm2492_vm5, %v8646_v8, %v2491_v51  ;;  %v2503_v15 = vmul.f32 %v2502_v36, %v8653_v38  ;;  %v8831_v6 = vadd.f32 1e-09, %v8727_v1  ;;  %v8871_v13 = vpop.xlane.xlu2 %2259  ;;  %vm11985_vm5 = vmmov %vm11964_vm1 }
 0x2b4   :  { %v4134_v58 = vsel %vm11964_vm1, %v4021_v37, 0.0  ;;  %vm2504_vm12 = vcmp.eq.f32.partialorder %v8653_v38, inf  ;;  %v4136_v35 = vsel %vm11966_vm7, %v4022_v53, 0.0  ;;  %v8842_v22 = vsel %vm2482_vm13, %v2483_v29, %v2481_v27  ;;  %11971 = vst [vmem:[#allocation123_spill] sm:$0xff] %v8871_v13  ;;  %vm11984_vm13 = vmmov %vm11964_vm1 }
 0x2b5   :  { %v4135_v41 = vadd.f32 %v4134_v58, %v4133_v44  ;;  %11967 = vst [vmem:[#allocation120_spill] sm:$0xff] %v8842_v22  ;;  %v8846_v1 = vadd.f32 1e-09, %v8745_v57  ;;  %v4138_v34 = vsel %vm11968_vm8, %v4023_v24, 0.0  ;;  %v8853_v16 = vsel %vm2494_vm6, %v2495_v4, %v2493_v21  ;;  %vm11989_vm6 = vmmov %vm11964_vm1  ;;  %v12057_v22 = vld [vmem:[#allocation48_spill] sm:$0xff] }
 0x2b6   :  { %11969 = vst [vmem:[#allocation121_spill] sm:$0xff] %v8853_v16  ;;  %v8856_v49 = vadd.f32 %v696_v60, %v11896_v32  ;;  %v8859_v5 = vadd.f32 1e-09, %v8722_v42  ;;  %v8862_v51 = vsel %vm2504_vm12, %v8653_v38, %v2503_v15  ;;  %5149 = vrsqrt.f32 %v8831_v6  ;;  %vm11992_vm9 = vmmov %vm11964_vm1  ;;  %v12056_v16 = vld [vmem:[#allocation114_spill] sm:$0xff] }
 0x2b7   :  { %v4137_v3 = vadd.f32 %v4136_v35, %v4135_v41  ;;  %v3240_v57 = vadd.f32 %v8223_v54, %v7694_v45  ;;  %v3241_v8 = vadd.f32 %v8230_v10, %v7696_v50  ;;  %v8869_v36 = vadd.f32 1e-09, %v2232_v14  ;;  %v8912_v35 = vld [vmem:[%s11161_s9 + $0x50] sm:$0xff]  ;;  %vm11993_vm12 = vmmov %vm11964_vm1 }
 0x2b8   :  { %v3242_v42 = vadd.f32 %v8240_v46, %v7698_v63  ;;  %v3243_v37 = vadd.f32 %v8247_v26, %v7700_v2  ;;  %5151 = vrsqrt.f32 %v8846_v1  ;;  %v3244_v54 = vadd.f32 %v8259_v39, %v7694_v45  ;;  %v8891_v45 = vld [vmem:[%s11161_s9 + $0x40] sm:$0xff]  ;;  %v8906_v58 = vpop.xlane.xlu0 %2287  ;;  %11979 = vst [vmem:[#allocation125_spill] sm:$0xff] %v8912_v35  ;;  %vm12000_vm7 = vmmov %vm11964_vm1 }
 0x2b9   :  { %11970 = vst [vmem:[#allocation122_spill] sm:$0xff] %v8869_v36  ;;  %v4139_v61 = vadd.f32 %v4138_v34, %v4137_v3  ;;  %v4024_v29 = vmul.f32 %v3240_v57, %v3240_v57  ;;  %v4025_v53 = vmul.f32 %v3241_v8, %v3241_v8  ;;  %5153 = vrsqrt.f32 %v8859_v5  ;;  %v11973_v39 = vld [vmem:[#allocation25_spill] sm:$0xff]  ;;  %v11980_v34 = vld [vmem:[#allocation100_spill] sm:$0xff]  ;;  %v11982_v8 = vld [vmem:[#allocation26_spill] sm:$0xff] }
 0x2ba   :  { %v4026_v10 = vmul.f32 %v3242_v42, %v3242_v42  ;;  %v4027_v14 = vmul.f32 %v3243_v37, %v3243_v37  ;;  %v3245_v27 = vadd.f32 %v8274_v33, %v7696_v50  ;;  %v3246_v46 = vadd.f32 %v8287_v25, %v7698_v63  ;;  %11972 = vst [vmem:[#allocation124_spill] sm:$0xff] %v8891_v45  ;;  %v8898_v50 = vld [vmem:[%s11161_s9 + $0x48] sm:$0xff]  ;;  %v8919_v57 = vld [vmem:[%s11161_s9 + $0x58] sm:$0xff]  ;;  %vm12001_vm8 = vmmov %vm11964_vm1 }
 0x2bb   :  { %4140 = vadd.xlane.f32.xlu2 %v4139_v61  ;;  %v4142_v4 = vadd.f32 %v4025_v53, %v4024_v29  ;;  %v3247_v26 = vadd.f32 %v8294_v23, %v7700_v2  ;;  %v4028_v24 = vmul.f32 %v3244_v54, %v3244_v54  ;;  %5155 = vrsqrt.f32 %v8869_v36  ;;  %11974 = vst [vmem:[#allocation25_spill] sm:$0xff] %v8898_v50  ;;  %v11975_v63 = vld [vmem:[#allocation71_spill] sm:$0xff]  ;;  %v8925_v29 = vpop.xlane.xlu1 %2273 }
 0x2bc   :  { %v4029_v44 = vmul.f32 %v3245_v27, %v3245_v27  ;;  %v3248_v21 = vadd.f32 %v8891_v45, %v11973_v39  ;;  %v3249_v2 = vadd.f32 %v8898_v50, %v11975_v63  ;;  %v8902_v23 = vpop.eup %5149  ;;  %v4030_v25 = vmul.f32 %v3246_v46, %v3246_v46  ;;  %11977 = vst [vmem:[#allocation71_spill] sm:$0xff] %v8906_v58 }
 0x2bd   :  { %v4143_v33 = vadd.f32 %v4142_v4, %v4026_v10  ;;  %v4031_v15 = vmul.f32 %v3247_v26, %v3247_v26  ;;  %v4147_v60 = vsel %vm11976_vm11, %v4028_v24, 0.0  ;;  %vm2506_vm14 = vcmp.eq.f32.partialorder %v8653_v38, 0.0  ;;  %11981 = vst [vmem:[#allocation100_spill] sm:$0xff] %v8919_v57  ;;  %vm12002_vm11 = vmmov %vm11964_vm1 }
 0x2be   :  { %v4148_v41 = vsel %vm11978_vm10, %v4029_v44, 0.0  ;;  %v3250_v3 = vadd.f32 %v8912_v35, %v11980_v34  ;;  %v3251_v61 = vadd.f32 %v8919_v57, %v11982_v8  ;;  %v4032_v42 = vmul.f32 %v3248_v21, %v3248_v21  ;;  %v8923_v37 = vpop.eup %5151  ;;  %11983 = vst [vmem:[#allocation26_spill] sm:$0xff] %v8925_v29  ;;  %v8934_v44 = vld [vmem:[%s11161_s9 + $0x60] sm:$0x3f]  ;;  %vm12004_vm10 = vmmov %vm11964_vm1 }
 0x2bf   :  { %v4144_v53 = vadd.f32 %v4143_v33, %v4027_v14  ;;  %v4149_v54 = vadd.f32 %v4148_v41, %v4147_v60  ;;  %v4150_v10 = vsel %vm11984_vm13, %v4030_v25, 0.0  ;;  %v4152_v27 = vsel %vm11985_vm5, %v4031_v15, 0.0  ;;  %v8929_v4 = vpop.eup %5153  ;;  %v8941_v33 = vld [vmem:[%s11161_s9 + $0x68] sm:$0x3f]  ;;  %v8948_v25 = vld [vmem:[%s11161_s9 + $0x70] sm:$0x3f]  ;;  %vm12005_vm13 = vmmov %vm11964_vm1 }
 0x2c0   :  { %v4033_v46 = vmul.f32 %v3249_v2, %v3249_v2  ;;  %v4034_v26 = vmul.f32 %v3250_v3, %v3250_v3  ;;  %v4035_v24 = vmul.f32 %v3251_v61, %v3251_v61  ;;  %v3252_v21 = vadd.f32 %v8934_v44, %v11973_v39  ;;  %v8955_v39 = vld [vmem:[%s11161_s9 + $0x78] sm:$0x3f]  ;;  %v8961_v3 = vpop.xlane.xlu2 %2278  ;;  %vm12006_vm5 = vmmov %vm11964_vm1 }
 0x2c1   :  { %4145 = vadd.xlane.f32.xlu0 %v4144_v53  ;;  %v4151_v14 = vadd.f32 %v4150_v10, %v4149_v54  ;;  %v3253_v2 = vadd.f32 %v8941_v33, %v11975_v63  ;;  %v3254_v15 = vadd.f32 %v8948_v25, %v11980_v34  ;;  %v3255_v60 = vadd.f32 %v8955_v39, %v11982_v8  ;;  %v8959_v41 = vpop.eup %5155  ;;  %v11987_v53 = vld [vmem:[#allocation70_spill] sm:$0xff]  ;;  %v11988_v10 = vld [vmem:[#allocation72_spill] sm:$0xff]  ;;  %v11990_v8 = vld [vmem:[#allocation73_spill] sm:$0xff] }
 0x2c2   :  { %11986 = vst [vmem:[#allocation126_spill] sm:$0xff] %v8961_v3  ;;  %v4156_v63 = vadd.f32 %v4033_v46, %v4032_v42  ;;  %v4036_v61 = vmul.f32 %v3252_v21, %v3252_v21  ;;  %v3296_v54 = vadd.f32 %v8891_v45, %v11987_v53  ;;  %v3297_v34 = vadd.f32 %v8898_v50, %v11988_v10 }
 0x2c3   :  { %v4153_v12 = vadd.f32 %v4152_v27, %v4151_v14  ;;  %v4037_v48 = vmul.f32 %v3253_v2, %v3253_v2  ;;  %v4038_v55 = vmul.f32 %v3254_v15, %v3254_v15  ;;  %v4039_v52 = vmul.f32 %v3255_v60, %v3255_v60  ;;  %v3460_v60 = vpop.xlane.xlu0 %3459 }
 0x2c4   :  { %v4157_v62 = vadd.f32 %v4156_v63, %v4034_v26  ;;  %v4161_v9 = vsel %vm11989_vm6, %v4036_v61, 0.0  ;;  %v3298_v7 = vadd.f32 %v8912_v35, %v11990_v8  ;;  %v3299_v42 = vadd.f32 %v8919_v57, %v11991_v40  ;;  %vm12007_vm6 = vmmov %vm11964_vm1 }
 0x2c5   :  { %4154 = vadd.xlane.f32.xlu1 %v4153_v12  ;;  %v4162_v46 = vsel %vm11992_vm9, %v4037_v48, 0.0  ;;  %v4164_v21 = vsel %vm11964_vm1, %v4038_v55, 0.0  ;;  %v4166_v20 = vsel %vm11993_vm12, %v4039_v52, 0.0  ;;  %v4080_v27 = vmul.f32 %v3296_v54, %v3296_v54  ;;  %v3469_v48 = vpop.xlane.xlu1 %3468  ;;  %v11996_v52 = vld [vmem:[#allocation59_spill] sm:$0xff] }
 0x2c6   :  { %v4158_v14 = vadd.f32 %v4157_v62, %v4035_v24  ;;  %v4163_v2 = vadd.f32 %v4162_v46, %v4161_v9  ;;  %v4081_v15 = vmul.f32 %v3297_v34, %v3297_v34  ;;  %v4082_v26 = vmul.f32 %v3298_v7, %v3298_v7  ;;  %v11997_v9 = vld [vmem:[#allocation91_spill] sm:$0xff] }
 0x2c7   :  { %v4083_v63 = vmul.f32 %v3299_v42, %v3299_v42  ;;  %v8975_v61 = vadd.f32 1e-09, %v3460_v60  ;;  %v3308_v58 = vadd.f32 %v8934_v44, %v11994_v59  ;;  %v3309_v12 = vadd.f32 %v8941_v33, %v11995_v0 }
 0x2c8   :  { %4159 = vadd.xlane.f32.xlu2 %v4158_v14  ;;  %v4165_v55 = vadd.f32 %v4164_v21, %v4163_v2  ;;  %v4240_v43 = vadd.f32 %v4081_v15, %v4080_v27  ;;  %v3310_v62 = vadd.f32 %v8948_v25, %v11996_v52  ;;  %v3311_v7 = vadd.f32 %v8955_v39, %v11997_v9  ;;  %v3474_v2 = vpop.xlane.xlu2 %3473 }
 0x2c9   :  { %v11998_v24 = vand.u32 2147483648, %v8653_v38  ;;  %v2510_v34 = vmul.f32 %v8902_v23, %v8831_v6  ;;  %v2522_v42 = vmul.f32 %v8923_v37, %v8846_v1  ;;  %5157 = vrsqrt.f32 %v8975_v61 }
 0x2ca   :  { %v4167_v46 = vadd.f32 %v4166_v20, %v4165_v55  ;;  %v4241_v21 = vadd.f32 %v4240_v43, %v4082_v26  ;;  %v4092_v27 = vmul.f32 %v3308_v58, %v3308_v58  ;;  %v4093_v14 = vmul.f32 %v3309_v12, %v3309_v12 }
 0x2cb   :  { %v8990_v54 = vsel %vm2506_vm14, %v11998_v24, %v8862_v51  ;;  %v4094_v15 = vmul.f32 %v3310_v62, %v3310_v62  ;;  %v4095_v60 = vmul.f32 %v3311_v7, %v3311_v7  ;;  %v8997_v47 = vadd.f32 1e-09, %v3469_v48  ;;  %vm12003_vm14 = vmmov %vm11964_vm1 }
 0x2cc   :  { %11999 = vst [vmem:[#allocation70_spill] sm:$0xff] %v8990_v54  ;;  %v3300_v38 = vadd.f32 %v8934_v44, %v11987_v53  ;;  %4168 = vadd.xlane.f32.xlu0 %v4167_v46  ;;  %v4242_v51 = vadd.f32 %v4241_v21, %v4083_v63  ;;  %v4259_v24 = vsel %vm12000_vm7, %v4092_v27, 0.0  ;;  %v4260_v3 = vsel %vm12001_vm8, %v4093_v14, 0.0  ;;  %v3483_v21 = vpop.xlane.xlu0 %3482 }
 0x2cd   :  { %v3301_v20 = vadd.f32 %v8941_v33, %v11988_v10  ;;  %v9006_v43 = vadd.f32 1e-09, %v8807_v19  ;;  %v4261_v58 = vadd.f32 %v4260_v3, %v4259_v24  ;;  %v4262_v26 = vsel %vm12002_vm11, %v4094_v15, 0.0 }
 0x2ce   :  { %5159 = vrsqrt.f32 %v8997_v47  ;;  %v2511_v12 = vmul.f32 %v8902_v23, %v2510_v34  ;;  %v2523_v53 = vmul.f32 %v8923_v37, %v2522_v42  ;;  %4243 = vadd.xlane.f32.xlu1 %v4242_v51  ;;  %v4264_v63 = vsel %vm12003_vm14, %v4095_v60, 0.0  ;;  %v3488_v60 = vpop.xlane.xlu1 %3487 }
 0x2cf   :  { %v3302_v48 = vadd.f32 %v8948_v25, %v11990_v8  ;;  %v5158_v55 = vpop.eup %5157  ;;  %v4263_v10 = vadd.f32 %v4262_v26, %v4261_v58  ;;  %v3303_v19 = vadd.f32 %v8955_v39, %v11991_v40  ;;  %v4084_v3 = vmul.f32 %v3300_v38, %v3300_v38 }
 0x2d0   :  { %v4085_v62 = vmul.f32 %v3301_v20, %v3301_v20  ;;  %v3681_v7 = vmul.f32 %v5158_v55, %v8975_v61  ;;  %v3304_v34 = vadd.f32 %v8891_v45, %v11994_v59  ;;  %v3305_v42 = vadd.f32 %v8898_v50, %v11995_v0 }
 0x2d1   :  { %v4086_v46 = vmul.f32 %v3302_v48, %v3302_v48  ;;  %v4265_v27 = vadd.f32 %v4264_v63, %v4263_v10  ;;  %v4087_v14 = vmul.f32 %v3303_v19, %v3303_v19  ;;  %v4245_v8 = vsel %vm12004_vm10, %v4084_v3, 0.0  ;;  %v3497_v3 = vpop.xlane.xlu2 %3496 }
 0x2d2   :  { %v4246_v15 = vsel %vm12005_vm13, %v4085_v62, 0.0  ;;  %v3682_v40 = vmul.f32 %v5158_v55, %v3681_v7  ;;  %v3306_v24 = vadd.f32 %v8912_v35, %v11996_v52  ;;  %v3307_v0 = vadd.f32 %v8919_v57, %v11997_v9 }
 0x2d3   :  { %v4247_v38 = vadd.f32 %v4246_v15, %v4245_v8  ;;  %v4248_v51 = vsel %vm12006_vm5, %v4086_v46, 0.0  ;;  %v4250_v59 = vsel %vm12007_vm6, %v4087_v14, 0.0  ;;  %v4088_v58 = vmul.f32 %v3304_v34, %v3304_v34 }
 0x2d4   :  { %v5160_v20 = vpop.eup %5159  ;;  %v4089_v26 = vmul.f32 %v3305_v42, %v3305_v42  ;;  %v3683_v63 = vmul.f32 0.5, %v3682_v40  ;;  %v4090_v19 = vmul.f32 %v3306_v24, %v3306_v24  ;;  %v4091_v62 = vmul.f32 %v3307_v0, %v3307_v0  ;;  %v3502_v24 = vpop.xlane.xlu0 %3501 }
 0x2d5   :  { %v3693_v48 = vmul.f32 %v5160_v20, %v8997_v47  ;;  %v4249_v10 = vadd.f32 %v4248_v51, %v4247_v38  ;;  %v9031_v46 = vadd.f32 1e-09, %v3474_v2  ;;  %v9033_v8 = vadd.f32 1e-09, %v3483_v21 }
 0x2d6   :  { %v4254_v7 = vadd.f32 %v4089_v26, %v4088_v58  ;;  %v3684_v52 = vsub.f32 1.5, %v3683_v63  ;;  %4266 = vadd.xlane.f32.xlu1 %v4265_v27  ;;  %v9035_v35 = vadd.f32 1e-09, %v3488_v60  ;;  %v9037_v9 = vmul.f32 0.5, %v2511_v12  ;;  %v3511_v0 = vpop.xlane.xlu1 %3510 }
 0x2d7   :  { %v3694_v14 = vmul.f32 %v5160_v20, %v3693_v48  ;;  %v4251_v15 = vadd.f32 %v4250_v59, %v4249_v10  ;;  %v2534_v34 = vmul.f32 %v8929_v4, %v8859_v5  ;;  %5161 = vrsqrt.f32 %v9031_v46 }
 0x2d8   :  { %v4255_v42 = vadd.f32 %v4254_v7, %v4090_v19  ;;  %v2546_v2 = vmul.f32 %v8959_v41, %v8869_v36  ;;  %v3685_v40 = vmul.f32 %v5158_v55, %v3684_v52  ;;  %5163 = vrsqrt.f32 %v9033_v8 }
 0x2d9   :  { %v3695_v21 = vmul.f32 0.5, %v3694_v14  ;;  %4252 = vadd.xlane.f32.xlu2 %v4251_v15  ;;  %v9045_v27 = vmul.f32 0.5, %v2523_v53  ;;  %vm3687_vm9 = vcmp.eq.f32.partialorder %v8975_v61, inf  ;;  %v3690_v12 = vand.u32 2147483648, %v8975_v61 }
 0x2da   :  { %v4256_v60 = vadd.f32 %v4255_v42, %v4091_v62  ;;  %v3686_v38 = vmul.f32 %v3685_v40, %v8975_v61  ;;  %vm3689_vm1 = vcmp.eq.f32.partialorder %v8975_v61, 0.0  ;;  %5165 = vrsqrt.f32 %v9035_v35 }
 0x2db   :  { %v3696_v51 = vsub.f32 1.5, %v3695_v21  ;;  %v9053_v55 = vmul.f32 %v8929_v4, %v2534_v34  ;;  %5167 = vrsqrt.f32 %v9006_v43  ;;  %v9056_v53 = vadd.f32 1e-09, %v3497_v3 }
 0x2dc   :  { %4257 = vadd.xlane.f32.xlu0 %v4256_v60  ;;  %v9058_v59 = vadd.f32 1e-09, %v3502_v24  ;;  %v9061_v58 = vmul.f32 %v8959_v41, %v2546_v2  ;;  %v3688_v26 = vsel %vm3687_vm9, %v8975_v61, %v3686_v38  ;;  %v9064_v48 = vadd.f32 1e-09, %v3511_v0  ;;  %v12009_v24 = vld [vmem:[#allocation52_spill] sm:$0xff] }
 0x2dd   :  { %v3697_v63 = vmul.f32 %v5160_v20, %v3696_v51  ;;  %v5162_v10 = vpop.eup %5161  ;;  %v3691_v19 = vsel %vm3689_vm1, %v3690_v12, %v3688_v26  ;;  %vm3699_vm12 = vcmp.eq.f32.partialorder %v8997_v47, inf  ;;  %v3702_v62 = vand.u32 2147483648, %v8997_v47  ;;  %v3516_v20 = vpop.xlane.xlu2 %3515 }
 0x2de   :  { %5169 = vrsqrt.f32 %v9056_v53  ;;  %v5164_v3 = vpop.eup %5163  ;;  %v9070_v7 = vadd.f32 1e-09, %v8786_v56  ;;  %vm3701_vm7 = vcmp.eq.f32.partialorder %v8997_v47, 0.0  ;;  %v3705_v61 = vmul.f32 %v5162_v10, %v9031_v46  ;;  %v12008_v56 = vld [vmem:[#allocation50_spill] sm:$0xff] }
 0x2df   :  { %v3698_v52 = vmul.f32 %v3697_v63, %v8997_v47  ;;  %vm3711_vm8 = vcmp.eq.f32.partialorder %v9031_v46, inf  ;;  %v3714_v14 = vand.u32 2147483648, %v9031_v46  ;;  %v3717_v15 = vmul.f32 %v5164_v3, %v9033_v8 }
 0x2e0   :  { %5171 = vrsqrt.f32 %v9058_v59  ;;  %v9079_v34 = vadd.f32 1e-09, %v3516_v20  ;;  %v5166_v42 = vpop.eup %5165  ;;  %v4716_v2 = vperm.slane %v3691_v19, %v12008_v56  ;;  %v3706_v21 = vmul.f32 %v5162_v10, %v3705_v61 }
 0x2e1   :  { %v3700_v40 = vsel %vm3699_vm12, %v8997_v47, %v3698_v52  ;;  %vm3713_vm11 = vcmp.eq.f32.partialorder %v9031_v46, 0.0  ;;  %vm3723_vm14 = vcmp.eq.f32.partialorder %v9033_v8, inf  ;;  %5173 = vrsqrt.f32 %v9064_v48  ;;  %v9088_v12 = vpop.eup %5167 }
 0x2e2   :  { %v3703_v60 = vsel %vm3701_vm7, %v3702_v62, %v3700_v40  ;;  %v3718_v38 = vmul.f32 %v5164_v3, %v3717_v15  ;;  %vm3725_vm10 = vcmp.eq.f32.partialorder %v9033_v8, 0.0  ;;  %v3729_v51 = vmul.f32 %v5166_v42, %v9035_v35  ;;  %v3525_v40 = vpop.xlane.xlu0 %3524 }
 0x2e3   :  { %v4717_v0 = vperm.slane %v3703_v60, %v12009_v24  ;;  %v3707_v26 = vmul.f32 0.5, %v3706_v21  ;;  %v3726_v63 = vand.u32 2147483648, %v9033_v8  ;;  %vm3735_vm13 = vcmp.eq.f32.partialorder %v9035_v35, inf }
 0x2e4   :  { %v5170_v19 = vpop.eup %5169  ;;  %v3719_v52 = vmul.f32 0.5, %v3718_v38  ;;  %v3730_v61 = vmul.f32 %v5166_v42, %v3729_v51  ;;  %vm3737_vm5 = vcmp.eq.f32.partialorder %v9035_v35, 0.0  ;;  %5175 = vrsqrt.f32 %v9079_v34 }
 0x2e5   :  { %vm12010_vm6 = vcmask 130112   ;;  %v3708_v62 = vsub.f32 1.5, %v3707_v26  ;;  %v3738_v20 = vand.u32 2147483648, %v9035_v35  ;;  %v3741_v15 = vmul.f32 %v5170_v19, %v9056_v53 }
 0x2e6   :  { %v4718_v47 = vsel %vm12010_vm6, %v4717_v0, %v4716_v2  ;;  %v5172_v21 = vpop.eup %5171  ;;  %v3720_v60 = vsub.f32 1.5, %v3719_v52  ;;  %v3731_v57 = vmul.f32 0.5, %v3730_v61  ;;  %vm3747_vm9 = vcmp.eq.f32.partialorder %v9056_v53, inf }
 0x2e7   :  { %v3750_v38 = vand.u32 2147483648, %v9056_v53  ;;  %v9104_v51 = vadd.f32 1e-09, %v3525_v40  ;;  %v5174_v50 = vpop.eup %5173  ;;  %v3709_v45 = vmul.f32 %v5162_v10, %v3708_v62  ;;  %v3742_v17 = vmul.f32 %v5170_v19, %v3741_v15 }
 0x2e8   :  { %vm3749_vm1 = vcmp.eq.f32.partialorder %v9056_v53, 0.0  ;;  %v3753_v2 = vmul.f32 %v5172_v21, %v9058_v59  ;;  %v3762_v0 = vand.u32 2147483648, %v9058_v59  ;;  %v3721_v26 = vmul.f32 %v5164_v3, %v3720_v60 }
 0x2e9   :  { %v3732_v29 = vsub.f32 1.5, %v3731_v57  ;;  %vm3759_vm12 = vcmp.eq.f32.partialorder %v9058_v59, inf  ;;  %v3765_v52 = vmul.f32 %v5174_v50, %v9064_v48  ;;  %5177 = vrsqrt.f32 %v9104_v51 }
 0x2ea   :  { %v3710_v61 = vmul.f32 %v3709_v45, %v9031_v46  ;;  %v3743_v40 = vmul.f32 0.5, %v3742_v17  ;;  %v3754_v18 = vmul.f32 %v5172_v21, %v3753_v2  ;;  %vm3761_vm7 = vcmp.eq.f32.partialorder %v9058_v59, 0.0  ;;  %v5176_v10 = vpop.eup %5175 }
 0x2eb   :  { %vm3771_vm6 = vcmp.eq.f32.partialorder %v9064_v48, inf  ;;  %v3722_v62 = vmul.f32 %v3721_v26, %v9033_v8  ;;  %v3733_v15 = vmul.f32 %v5166_v42, %v3732_v29  ;;  %v3766_v3 = vmul.f32 %v5174_v50, %v3765_v52 }
 0x2ec   :  { %v3774_v57 = vand.u32 2147483648, %v9064_v48  ;;  %v3712_v60 = vsel %vm3711_vm8, %v9031_v46, %v3710_v61  ;;  %v3744_v13 = vsub.f32 1.5, %v3743_v40  ;;  %v3755_v30 = vmul.f32 0.5, %v3754_v18 }
 0x2ed   :  { %v3777_v17 = vmul.f32 %v5176_v10, %v9079_v34  ;;  %v3715_v45 = vsel %vm3713_vm11, %v3714_v14, %v3712_v60  ;;  %v3724_v2 = vsel %vm3723_vm14, %v9033_v8, %v3722_v62  ;;  %v3734_v29 = vmul.f32 %v3733_v15, %v9035_v35 }
 0x2ee   :  { %v3767_v42 = vmul.f32 0.5, %v3766_v3  ;;  %v4719_v26 = vperm.slane %v3715_v45, %v12008_v56  ;;  %v3727_v52 = vsel %vm3725_vm10, %v3726_v63, %v3724_v2  ;;  %v3745_v61 = vmul.f32 %v5170_v19, %v3744_v13 }
 0x2ef   :  { %v3756_v40 = vsub.f32 1.5, %v3755_v30  ;;  %v5178_v18 = vpop.eup %5177  ;;  %v4720_v36 = vperm.slane %v3727_v52, %v12009_v24  ;;  %v3736_v46 = vsel %vm3735_vm13, %v9035_v35, %v3734_v29  ;;  %v3778_v60 = vmul.f32 %v5176_v10, %v3777_v17 }
 0x2f0   :  { %v3768_v14 = vsub.f32 1.5, %v3767_v42  ;;  %v3739_v62 = vsel %vm3737_vm5, %v3738_v20, %v3736_v46  ;;  %v3746_v15 = vmul.f32 %v3745_v61, %v9056_v53  ;;  %v3789_v8 = vmul.f32 %v5178_v18, %v9104_v51 }
 0x2f1   :  { %v3757_v3 = vmul.f32 %v5172_v21, %v3756_v40  ;;  %vm12011_vm8 = vcmask 130112   ;;  %v4722_v30 = vperm.slane %v3739_v62, %v12008_v56  ;;  %v3779_v19 = vmul.f32 0.5, %v3778_v60 }
 0x2f2   :  { %v4721_v13 = vsel %vm12011_vm8, %v4720_v36, %v4719_v26  ;;  %v3769_v63 = vmul.f32 %v5174_v50, %v3768_v14  ;;  %v3748_v17 = vsel %vm3747_vm9, %v9056_v53, %v3746_v15  ;;  %v3790_v20 = vmul.f32 %v5178_v18, %v3789_v8  ;;  %vm12012_vm10 = vmmov %vm12011_vm8 }
 0x2f3   :  { %v4758_v45 = vsel %vm11470_vm4, %v4721_v13, %v4718_v47  ;;  %v3758_v35 = vmul.f32 %v3757_v3, %v9058_v59  ;;  %v3751_v21 = vsel %vm3749_vm1, %v3750_v38, %v3748_v17  ;;  %vm3773_vm11 = vcmp.eq.f32.partialorder %v9064_v48, 0.0  ;;  %vm12014_vm5 = vmmov %vm12011_vm8 }
 0x2f4   :  { %v3770_v2 = vmul.f32 %v3769_v63, %v9064_v48  ;;  %v3780_v36 = vsub.f32 1.5, %v3779_v19  ;;  %v4723_v50 = vperm.slane %v3751_v21, %v12009_v24  ;;  %vm3783_vm14 = vcmp.eq.f32.partialorder %v9079_v34, inf  ;;  %vm12020_vm8 = vmmov %vm12014_vm5 }
 0x2f5   :  { %v3760_v47 = vsel %vm3759_vm12, %v9058_v59, %v3758_v35  ;;  %v3791_v29 = vmul.f32 0.5, %v3790_v20  ;;  %v3786_v26 = vand.u32 2147483648, %v9079_v34  ;;  %vm3785_vm13 = vcmp.eq.f32.partialorder %v9079_v34, 0.0 }
 0x2f6   :  { %v3763_v42 = vsel %vm3761_vm7, %v3762_v0, %v3760_v47  ;;  %v3772_v53 = vsel %vm3771_vm6, %v9064_v48, %v3770_v2  ;;  %v3781_v38 = vmul.f32 %v5176_v10, %v3780_v36  ;;  %v4724_v52 = vsel %vm12012_vm10, %v4723_v50, %v4722_v30  ;;  %v758_v0 = vld.sshfl [vmem:[#allocation1 + $0x20] sm:$0xff pattern:$0x75316420]  ;;  %v12017_v50 = vld [vmem:[#allocation27_spill] sm:$0xff] }
 0x2f7   :  { %v4725_v61 = vperm.slane %v3763_v42, %v12008_v56  ;;  %v3775_v40 = vsel %vm3773_vm11, %v3774_v57, %v3772_v53  ;;  %v3792_v46 = vsub.f32 1.5, %v3791_v29  ;;  %v9163_v14 = vsel %vm11454_vm3, %v4724_v52, %v4758_v45  ;;  %v12018_v29 = vld [vmem:[#allocation101_spill] sm:$0xff]  ;;  %v12019_v53 = vld [vmem:[#allocation42_spill] sm:$0xff]  ;;  %v716_v52 = vpop.f32.mrf.mxu0 }
 0x2f8   :  { %12013 = vst [vmem:[#allocation72_spill] sm:$0xff] %v9163_v14  ;;  %v4726_v60 = vperm.slane %v3775_v40, %v12009_v24  ;;  %v3782_v59 = vmul.f32 %v3781_v38, %v9079_v34  ;;  %v2513_v48 = vsub.f32 1.5, %v9037_v9  ;;  %v2536_v10 = vmul.f32 0.5, %v9053_v55 }
 0x2f9   :  { %v2558_v62 = vmul.f32 %v9088_v12, %v9006_v43  ;;  %v3793_v15 = vmul.f32 %v5178_v18, %v3792_v46  ;;  %vm3795_vm9 = vcmp.eq.f32.partialorder %v9104_v51, inf  ;;  %v3798_v8 = vand.u32 2147483648, %v9104_v51  ;;  %v12045_v18 = vld [vmem:[#allocation54_spill] sm:$0xff] }
 0x2fa   :  { %v9173_v57 = vsel %vm12014_vm5, %v4726_v60, %v4725_v61  ;;  %v3784_v3 = vsel %vm3783_vm14, %v9079_v34, %v3782_v59  ;;  %vm3797_vm1 = vcmp.eq.f32.partialorder %v9104_v51, 0.0  ;;  %v772_v30 = vsub.f32 %v8856_v49, %v758_v0  ;;  %v12022_v60 = vld [vmem:[#allocation86_spill] sm:$0xff] }
 0x2fb   :  { %12015 = vst [vmem:[#allocation73_spill] sm:$0xff] %v9173_v57  ;;  %v3787_v13 = vsel %vm3785_vm13, %v3786_v26, %v3784_v3  ;;  %v3794_v55 = vmul.f32 %v3793_v15, %v9104_v51  ;;  %v2548_v63 = vmul.f32 0.5, %v9061_v58  ;;  %5179 = vrsqrt.f32 %v9070_v7  ;;  %v12016_v58 = vld [vmem:[#allocation44_spill] sm:$0xff] }
 0x2fc   :  { %v2559_v19 = vmul.f32 %v9088_v12, %v2558_v62  ;;  %v4728_v45 = vperm.slane %v3787_v13, %v12008_v56  ;;  %v2514_v35 = vmul.f32 %v8902_v23, %v2513_v48  ;;  %v2525_v20 = vsub.f32 1.5, %v9045_v27  ;;  %v736_v13 = vpop.f32.mrf.mxu1 }
 0x2fd   :  { %v3796_v17 = vsel %vm3795_vm9, %v9104_v51, %v3794_v55  ;;  %v2537_v21 = vsub.f32 1.5, %v2536_v10  ;;  %v3260_v36 = vadd.f32 %v8934_v44, %v12016_v58  ;;  %v3261_v47 = vadd.f32 %v8941_v33, %v12017_v50 }
 0x2fe   :  { %v3799_v2 = vsel %vm3797_vm1, %v3798_v8, %v3796_v17  ;;  %v3262_v42 = vadd.f32 %v8948_v25, %v12018_v29  ;;  %v9204_v38 = vmul.f32 %v772_v30, %v12019_v53  ;;  %vm2516_vm12 = vcmp.eq.f32.partialorder %v8831_v6, inf  ;;  %v12027_v53 = vld [vmem:[#allocation122_spill] sm:$0xff] }
 0x2ff   :  { %v4729_v49 = vperm.slane %v3799_v2, %v12009_v24  ;;  %vm2518_vm7 = vcmp.eq.f32.partialorder %v8831_v6, 0.0  ;;  %v2549_v23 = vsub.f32 1.5, %v2548_v63  ;;  %v2519_v27 = vand.u32 2147483648, %v8831_v6 }
 0x300   :  { %vm2528_vm6 = vcmp.eq.f32.partialorder %v8846_v1, inf  ;;  %v2560_v51 = vmul.f32 0.5, %v2559_v19  ;;  %v2515_v40 = vmul.f32 %v2514_v35, %v8831_v6  ;;  %v2526_v46 = vmul.f32 %v8923_v37, %v2525_v20  ;;  %v759_v19 = vld.sshfl [vmem:[#allocation1 + $0x28] sm:$0xff pattern:$0x75316420] }
 0x301   :  { %v9211_v26 = vsel %vm12020_vm8, %v4729_v49, %v4728_v45  ;;  %v9213_v61 = vpop.eup %5179  ;;  %v3263_v59 = vadd.f32 %v8955_v39, %v12022_v60  ;;  %v4044_v0 = vmul.f32 %v3260_v36, %v3260_v36  ;;  %v2538_v48 = vmul.f32 %v8929_v4, %v2537_v21 }
 0x302   :  { %12021 = vst [vmem:[#allocation90_spill] sm:$0xff] %v9211_v26  ;;  %v9221_v10 = vadd.f32 1e-09, %v8848_v28  ;;  %v4045_v62 = vmul.f32 %v3261_v47, %v3261_v47  ;;  %v4046_v15 = vmul.f32 %v3262_v42, %v3262_v42  ;;  %v2550_v3 = vmul.f32 %v8959_v41, %v2549_v23  ;;  %v760_v47 = vld.sshfl [vmem:[#allocation1 + $0x30] sm:$0xff pattern:$0x75316420] }
 0x303   :  { %v717_v8 = vadd.f32 %v716_v52, %v11896_v32  ;;  %v4047_v55 = vmul.f32 %v3263_v59, %v3263_v59  ;;  %vm12023_vm11 = vcmask 1045504   ;;  %v2561_v37 = vsub.f32 1.5, %v2560_v51 }
 0x304   :  { %v4175_v30 = vsel %vm12023_vm11, %v4044_v0, 0.0  ;;  %v2570_v63 = vmul.f32 %v9213_v61, %v9070_v7  ;;  %vm12024_vm14 = vmmov %vm12023_vm11  ;;  %v9232_v45 = vmul.f32 %v9204_v38, %v9204_v38  ;;  %vm2530_vm13 = vcmp.eq.f32.partialorder %v8846_v1, 0.0  ;;  %v12029_v0 = vld [vmem:[#allocation40_spill] sm:$0xff] }
 0x305   :  { %v4176_v4 = vsel %vm12024_vm14, %v4045_v62, 0.0  ;;  %vm12025_vm10 = vmmov %vm12023_vm11  ;;  %v2531_v41 = vand.u32 2147483648, %v8846_v1  ;;  %v2527_v35 = vmul.f32 %v2526_v46, %v8846_v1  ;;  %vm2540_vm5 = vcmp.eq.f32.partialorder %v8859_v5, inf }
 0x306   :  { %v4178_v28 = vsel %vm12025_vm10, %v4046_v15, 0.0  ;;  %v4177_v17 = vadd.f32 %v4176_v4, %v4175_v30  ;;  %v737_v20 = vadd.f32 %v736_v13, %v11896_v32  ;;  %vm12026_vm9 = vmmov %vm12025_vm10  ;;  %v2517_v2 = vsel %vm2516_vm12, %v8831_v6, %v2515_v40 }
 0x307   :  { %v4180_v21 = vsel %vm12026_vm9, %v4047_v55, 0.0  ;;  %v2539_v49 = vmul.f32 %v2538_v48, %v8859_v5  ;;  %v773_v36 = vsub.f32 %v717_v8, %v759_v19  ;;  %v2551_v23 = vmul.f32 %v2550_v3, %v12027_v53  ;;  %v12030_v3 = vld [vmem:[#allocation43_spill] sm:$0xff]  ;;  %vm12073_vm10 = vmmov %vm12026_vm9 }
 0x308   :  { %v4179_v42 = vadd.f32 %v4178_v28, %v4177_v17  ;;  %v2562_v51 = vmul.f32 %v9088_v12, %v2561_v37  ;;  %v2571_v52 = vmul.f32 %v9213_v61, %v2570_v63  ;;  %5181 = vrsqrt.f32 %v9221_v10  ;;  %v12033_v17 = vld [vmem:[#allocation55_spill] sm:$0xff] }
 0x309   :  { %vm2542_vm1 = vcmp.eq.f32.partialorder %v8859_v5, 0.0  ;;  %v2543_v32 = vand.u32 2147483648, %v8859_v5  ;;  %vm2552_vm8 = vcmp.eq.f32.partialorder %v12027_v53, inf  ;;  %v9253_v46 = vsel %vm2518_vm7, %v2519_v27, %v2517_v2 }
 0x30a   :  { %v4181_v40 = vadd.f32 %v4180_v21, %v4179_v42  ;;  %12028 = vst [vmem:[#allocation89_spill] sm:$0xff] %v9253_v46  ;;  %v2529_v59 = vsel %vm2528_vm6, %v8846_v1, %v2527_v35  ;;  %v774_v12 = vsub.f32 %v737_v20, %v760_v47  ;;  %v802_v48 = vperm.slane %v12029_v0, 0  ;;  %v12050_v42 = vld [vmem:[#allocation65_spill] sm:$0xff] }
 0x30b   :  { %v2541_v62 = vsel %vm2540_vm5, %v8859_v5, %v2539_v49  ;;  %v2555_v15 = vand.u32 2147483648, %v12027_v53  ;;  %v9264_v8 = vmul.f32 %v773_v36, %v12030_v3  ;;  %v803_v6 = vperm.slane %v12029_v0, 2  ;;  %v12039_v3 = vld [vmem:[#allocation53_spill] sm:$0xff] }
 0x30c   :  { %4182 = vadd.xlane.f32.xlu0 %v4181_v40  ;;  %v2553_v27 = vsel %vm2552_vm8, %v12027_v53, %v2551_v23  ;;  %vm2554_vm12 = vcmp.eq.f32.partialorder %v12027_v53, 0.0  ;;  %v2563_v13 = vmul.f32 %v2562_v51, %v9006_v43  ;;  %v2572_v55 = vmul.f32 0.5, %v2571_v52  ;;  %v12035_v40 = vld [vmem:[#allocation112_spill] sm:$0xff]  ;;  %v12047_v51 = vld [vmem:[#allocation47_spill] sm:$0xff] }
 0x30d   :  { %v11437_v30 = vand.u32 2147483647, %v9204_v38  ;;  %v9273_v37 = vsel %vm2530_vm13, %v2531_v41, %v2529_v59  ;;  %vm2564_vm7 = vcmp.eq.f32.partialorder %v9006_v43, inf  ;;  %v816_v63 = vperm.slane %v802_v48, 0  ;;  %v12038_v48 = vld [vmem:[#allocation123_spill] sm:$0xff]  ;;  %vm12074_vm13 = vmmov %vm12026_vm9 }
 0x30e   :  { %12031 = vst [vmem:[#allocation95_spill] sm:$0xff] %v9273_v37  ;;  %v9276_v19 = vpop.eup %5181  ;;  %v9282_v28 = vsel %vm2542_vm1, %v2543_v32, %v2541_v62  ;;  %v9285_v35 = vmul.f32 %v774_v12, %v12033_v17  ;;  %v804_v20 = vperm.slane %v12029_v0, 4  ;;  %v9288_v1 = vsel %vm2554_vm12, %v2555_v15, %v2553_v27 }
 0x30f   :  { %12032 = vst [vmem:[#allocation59_spill] sm:$0xff] %v9282_v28  ;;  %v2567_v41 = vand.u32 2147483648, %v9006_v43  ;;  %v11436_v21 = vand.u32 2147483647, %v9264_v8  ;;  %v817_v2 = vperm.slane %v803_v6, 0  ;;  %v2565_v36 = vsel %vm2564_vm7, %v9006_v43, %v2563_v13  ;;  %v12040_v13 = vld [vmem:[#allocation119_spill] sm:$0xff] }
 0x310   :  { %12034 = vst [vmem:[#allocation91_spill] sm:$0xff] %v9288_v1  ;;  %vm2566_vm6 = vcmp.eq.f32.partialorder %v9006_v43, 0.0  ;;  %v2573_v5 = vsub.f32 1.5, %v2572_v55  ;;  %v2582_v53 = vmul.f32 %v9276_v19, %v9221_v10  ;;  %v855_v23 = vmul.f32 %v816_v63, %v11437_v30  ;;  %v12036_v43 = vld [vmem:[#allocation16_spill] sm:$0xff] }
 0x311   :  { %v11435_v52 = vand.u32 2147483647, %v9285_v35  ;;  %v818_v32 = vperm.slane %v804_v20, 0  ;;  %v860_v59 = vadd.f32 %v12036_v43, %v12035_v40  ;;  %v9308_v12 = vsel %vm2566_vm6, %v2567_v41, %v2565_v36  ;;  %v12041_v36 = vld [vmem:[#allocation26_spill] sm:$0xff]  ;;  %vm12085_vm6 = vmmov %vm12026_vm9 }
 0x312   :  { %12037 = vst [vmem:[#allocation44_spill] sm:$0xff] %v9308_v12  ;;  %v9311_v62 = vadd.f32 1e-09, %v12038_v48  ;;  %v856_v15 = vmul.f32 %v817_v2, %v11436_v21  ;;  %v861_v6 = vsel %vm826_vm15, %v12039_v3, 0.0  ;;  %v2574_v27 = vmul.f32 %v9213_v61, %v2573_v5  ;;  %v12042_v43 = vld [vmem:[#allocation110_spill] sm:$0xff] }
 0x313   :  { %v9319_v55 = vadd.f32 1e-09, %v12040_v13  ;;  %v9323_v17 = vmul.f32 %v9264_v8, %v9264_v8  ;;  %v862_v20 = vadd.f32 %v861_v6, %v860_v59  ;;  %v2583_v41 = vmul.f32 %v9276_v19, %v2582_v53  ;;  %v12043_v5 = vld [vmem:[#allocation126_spill] sm:$0xff] }
 0x314   :  { %v9327_v40 = vadd.f32 1e-09, %v12041_v36  ;;  %v863_v48 = vsel %vm826_vm15, %v12042_v43, 0.0  ;;  %v865_v3 = vsel %vm826_vm15, %v855_v23, 0.0  ;;  %v9335_v13 = vadd.f32 1e-09, %v12043_v5 }
 0x315   :  { %v857_v34 = vmul.f32 %v818_v32, %v11435_v52  ;;  %v864_v59 = vadd.f32 %v863_v48, %v862_v20  ;;  %5183 = vrsqrt.f32 %v9311_v62  ;;  %v867_v53 = vsel %vm826_vm15, %v856_v15, 0.0  ;;  %v12044_v5 = vld [vmem:[#allocation51_spill] sm:$0xff]  ;;  %v12046_v15 = vld [vmem:[#allocation46_spill] sm:$0xff]  ;;  %v12051_v52 = vld [vmem:[#allocation25_spill] sm:$0xff] }
 0x316   :  { %v9343_v6 = vmul.f32 %v9285_v35, %v9285_v35  ;;  %v823_v23 = vmul.f32 %v816_v63, %v9232_v45  ;;  %5185 = vrsqrt.f32 %v9319_v55  ;;  %v824_v43 = vmul.f32 %v817_v2, %v9323_v17 }
 0x317   :  { %v866_v36 = vadd.f32 %v865_v3, %v864_v59  ;;  %v829_v9 = vadd.f32 %v12045_v18, %v12044_v5  ;;  %v9351_v20 = vmul.f32 %v2574_v27, %v9070_v7  ;;  %v9353_v48 = vmul.f32 0.5, %v2583_v41  ;;  %v12048_v41 = vld [vmem:[#allocation88_spill] sm:$0xff] }
 0x318   :  { %5187 = vrsqrt.f32 %v9327_v40  ;;  %v830_v61 = vsel %vm826_vm15, %v12046_v15, 0.0  ;;  %v869_v3 = vsel %vm826_vm15, %v857_v34, 0.0  ;;  %v825_v2 = vmul.f32 %v818_v32, %v9343_v6  ;;  %v12049_v5 = vld [vmem:[#allocation124_spill] sm:$0xff]  ;;  %v12053_v34 = vld [vmem:[#allocation125_spill] sm:$0xff] }
 0x319   :  { %5189 = vrsqrt.f32 %v9335_v13  ;;  %v868_v63 = vadd.f32 %v867_v53, %v866_v36  ;;  %v831_v59 = vadd.f32 %v830_v61, %v829_v9  ;;  %v832_v18 = vsel %vm826_vm15, %v12047_v51, 0.0  ;;  %v12052_v9 = vld [vmem:[#allocation28_spill] sm:$0xff]  ;;  %v12054_v51 = vld [vmem:[#allocation29_spill] sm:$0xff] }
 0x31a   :  { %v834_v27 = vsel %vm826_vm15, %v823_v23, 0.0  ;;  %v3264_v47 = vadd.f32 %v12049_v5, %v12048_v41  ;;  %v836_v15 = vsel %vm826_vm15, %v824_v43, 0.0  ;;  %v3265_v53 = vadd.f32 %v12051_v52, %v12050_v42  ;;  %v12055_v61 = vld [vmem:[#allocation100_spill] sm:$0xff] }
 0x31b   :  { %v870_v49 = vadd.f32 %v869_v3, %v868_v63  ;;  %v833_v4 = vadd.f32 %v832_v18, %v831_v59  ;;  %v9369_v36 = vpop.eup %5183  ;;  %vm2576_vm11 = vcmp.eq.f32.partialorder %v9070_v7, inf  ;;  %v3266_v32 = vadd.f32 %v12053_v34, %v12052_v9 }
 0x31c   :  { %v3267_v23 = vadd.f32 %v12055_v61, %v12054_v51  ;;  %v4048_v21 = vmul.f32 %v3264_v47, %v3264_v47  ;;  %v2852_v30 = vperm.slane %v12029_v0, 1  ;;  %v9377_v63 = vpop.eup %5185  ;;  %v4049_v3 = vmul.f32 %v3265_v53, %v3265_v53 }
 0x31d   :  { %871 = vadd.xlane.f32.xlu2 %v870_v49  ;;  %v835_v43 = vadd.f32 %v834_v27, %v833_v4  ;;  %v2853_v59 = vperm.slane %v12029_v0, 3  ;;  %v2854_v18 = vperm.slane %v12029_v0, 5  ;;  %v2585_v57 = vsub.f32 1.5, %v9353_v48 }
 0x31e   :  { %v9381_v26 = vpop.eup %5187  ;;  %v4050_v14 = vmul.f32 %v3266_v32, %v3266_v32  ;;  %v2866_v54 = vperm.slane %v2852_v30, 1  ;;  %v2909_v47 = vadd.f32 %v12057_v22, %v12056_v16  ;;  %v4051_v28 = vmul.f32 %v3267_v23, %v3267_v23  ;;  %v12060_v16 = vld [vmem:[#allocation105_spill] sm:$0xff]  ;;  %v12061_v23 = vld [vmem:[#allocation71_spill] sm:$0xff] }
 0x31f   :  { %v9386_v12 = vpop.eup %5189  ;;  %v837_v1 = vadd.f32 %v836_v15, %v835_v43  ;;  %v4184_v49 = vadd.f32 %v4049_v3, %v4048_v21  ;;  %v2867_v4 = vperm.slane %v2853_v59, 1  ;;  %v2594_v27 = vmul.f32 %v9369_v36, %v9311_v62 }
 0x320   :  { %v838_v0 = vsel %vm826_vm15, %v825_v2, 0.0  ;;  %v2868_v53 = vperm.slane %v2854_v18, 1  ;;  %v12058_v37 = vand.u32 2147483647, %v9204_v38  ;;  %v12059_v46 = vand.u32 2147483647, %v9264_v8 }
 0x321   :  { %v839_v32 = vadd.f32 %v838_v0, %v837_v1  ;;  %v4185_v30 = vadd.f32 %v4184_v49, %v4050_v14  ;;  %v2910_v15 = vsel %vm826_vm15, %v12060_v16, 0.0  ;;  %v2606_v21 = vmul.f32 %v9377_v63, %v9319_v55  ;;  %v12064_v1 = vld [vmem:[#allocation99_spill] sm:$0xff] }
 0x322   :  { %v2904_v48 = vmul.f32 %v2866_v54, %v12058_v37  ;;  %v2905_v22 = vmul.f32 %v2867_v4, %v12059_v46  ;;  %v9400_v43 = vadd.f32 1e-09, %v12061_v23  ;;  %v2911_v3 = vadd.f32 %v2910_v15, %v2909_v47  ;;  %v12062_v37 = vld [vmem:[#allocation115_spill] sm:$0xff]  ;;  %v12063_v46 = vld [vmem:[#allocation113_spill] sm:$0xff] }
 0x323   :  { %v2873_v2 = vmul.f32 %v2866_v54, %v9232_v45  ;;  %840 = vadd.xlane.f32.xlu1 %v839_v32  ;;  %v4186_v38 = vadd.f32 %v4185_v30, %v4051_v28  ;;  %v2912_v14 = vsel %vm826_vm15, %v12062_v37, 0.0  ;;  %v2878_v59 = vadd.f32 %v12064_v1, %v12063_v46  ;;  %v12065_v16 = vld [vmem:[#allocation103_spill] sm:$0xff]  ;;  %v3530_v30 = vpop.xlane.xlu1 %3529  ;;  %v12068_v37 = vld [vmem:[#allocation66_spill] sm:$0xff] }
 0x324   :  { %v2914_v8 = vsel %vm826_vm15, %v2904_v48, 0.0  ;;  %v2595_v18 = vmul.f32 %v9369_v36, %v2594_v27  ;;  %v2913_v49 = vadd.f32 %v2912_v14, %v2911_v3  ;;  %v2874_v0 = vmul.f32 %v2867_v4, %v9323_v17  ;;  %v12067_v23 = vld [vmem:[#allocation111_spill] sm:$0xff] }
 0x325   :  { %v2879_v47 = vsel %vm826_vm15, %v12065_v16, 0.0  ;;  %v2618_v54 = vmul.f32 %v9381_v26, %v9327_v40  ;;  %4187 = vadd.xlane.f32.xlu0 %v4186_v38  ;;  %v12066_v45 = vand.u32 2147483647, %v9285_v35  ;;  %v2916_v48 = vsel %vm826_vm15, %v2905_v22, 0.0  ;;  %v12071_v16 = vld [vmem:[#allocation49_spill] sm:$0xff] }
 0x326   :  { %v2880_v32 = vadd.f32 %v2879_v47, %v2878_v59  ;;  %v2915_v15 = vadd.f32 %v2914_v8, %v2913_v49  ;;  %v2875_v27 = vmul.f32 %v2868_v53, %v9343_v6  ;;  %v2881_v17 = vsel %vm826_vm15, %v12067_v23, 0.0  ;;  %v12069_v49 = vld [vmem:[#allocation97_spill] sm:$0xff] }
 0x327   :  { %v2906_v28 = vmul.f32 %v2868_v53, %v12066_v45  ;;  %v2883_v4 = vsel %vm826_vm15, %v2873_v2, 0.0  ;;  %v9425_v3 = vsel %vm2576_vm11, %v9070_v7, %v9351_v20  ;;  %v9428_v35 = vmul.f32 %v9276_v19, %v2585_v57 }
 0x328   :  { %5191 = vrsqrt.f32 %v9400_v43  ;;  %v2882_v22 = vadd.f32 %v2881_v17, %v2880_v32  ;;  %v2607_v38 = vmul.f32 %v9377_v63, %v2606_v21  ;;  %v2917_v6 = vadd.f32 %v2916_v48, %v2915_v15 }
 0x329   :  { %v2885_v53 = vsel %vm826_vm15, %v2874_v0, 0.0  ;;  %v3324_v2 = vadd.f32 %v8934_v44, %v12068_v37  ;;  %v9435_v14 = vmul.f32 0.5, %v2595_v18  ;;  %v2619_v8 = vmul.f32 %v9381_v26, %v2618_v54  ;;  %v12070_v44 = vld [vmem:[#allocation96_spill] sm:$0xff]  ;;  %v3539_v54 = vpop.xlane.xlu2 %3538 }
 0x32a   :  { %v2918_v20 = vsel %vm826_vm15, %v2906_v28, 0.0  ;;  %v2884_v46 = vadd.f32 %v2883_v4, %v2882_v22  ;;  %v2630_v57 = vmul.f32 %v9386_v12, %v9335_v13  ;;  %v9441_v19 = vadd.f32 1e-09, %v3530_v30  ;;  %v3544_v4 = vpop.xlane.xlu0 %3543 }
 0x32b   :  { %v2919_v1 = vadd.f32 %v2918_v20, %v2917_v6  ;;  %v2887_v21 = vsel %vm826_vm15, %v2875_v27, 0.0  ;;  %v3325_v0 = vadd.f32 %v8941_v33, %v12069_v49  ;;  %v3326_v18 = vadd.f32 %v8948_v25, %v12070_v44  ;;  %vm12072_vm15 = vmmov %vm12026_vm9  ;;  %v3553_v22 = vpop.xlane.xlu1 %3552 }
 0x32c   :  { %v2886_v59 = vadd.f32 %v2885_v53, %v2884_v46  ;;  %v3327_v47 = vadd.f32 %v8955_v39, %v12071_v16  ;;  %vm2578_vm14 = vcmp.eq.f32.partialorder %v9070_v7, 0.0  ;;  %v4108_v45 = vmul.f32 %v3324_v2, %v3324_v2  ;;  %v9477_v2 = vld [vmem:[%s11161_s9 + $0x40] sm:$0xff] }
 0x32d   :  { %2920 = vadd.xlane.f32.xlu2 %v2919_v1  ;;  %v3256_v28 = vadd.f32 %v12049_v5, %v12016_v58  ;;  %v3257_v48 = vadd.f32 %v12051_v52, %v12017_v50  ;;  %v3258_v33 = vadd.f32 %v12053_v34, %v12018_v29  ;;  %v4109_v30 = vmul.f32 %v3325_v0, %v3325_v0  ;;  %v12076_v0 = vld [vmem:[#allocation94_spill] sm:$0xff] }
 0x32e   :  { %v9457_v32 = vpop.eup %5191  ;;  %v2888_v25 = vadd.f32 %v2887_v21, %v2886_v59  ;;  %v4110_v15 = vmul.f32 %v3326_v18, %v3326_v18  ;;  %v4111_v39 = vmul.f32 %v3327_v47, %v3327_v47  ;;  %v9459_v27 = vadd.f32 1e-09, %v3539_v54  ;;  %v9487_v59 = vld [vmem:[%s11161_s9 + $0x48] sm:$0xff]  ;;  %v9494_v47 = vld [vmem:[%s11161_s9 + $0x50] sm:$0xff] }
 0x32f   :  { %v4287_v23 = vsel %vm12072_vm15, %v4108_v45, 0.0  ;;  %v3259_v17 = vadd.f32 %v12055_v61, %v12022_v60  ;;  %v4040_v58 = vmul.f32 %v3256_v28, %v3256_v28  ;;  %v2597_v5 = vsub.f32 1.5, %v9435_v14  ;;  %v12075_v14 = vld [vmem:[#allocation93_spill] sm:$0xff]  ;;  %v12077_v54 = vld [vmem:[#allocation102_spill] sm:$0xff]  ;;  %vm12087_vm15 = vmmov %vm12085_vm6 }
 0x330   :  { %v2608_v50 = vmul.f32 0.5, %v2607_v38  ;;  %2889 = vadd.xlane.f32.xlu1 %v2888_v25  ;;  %v4288_v29 = vsel %vm12073_vm10, %v4109_v30, 0.0  ;;  %v4290_v52 = vsel %vm12074_vm13, %v4110_v15, 0.0  ;;  %v9467_v34 = vmul.f32 0.5, %v2619_v8  ;;  %v9501_v28 = vld [vmem:[%s11161_s9 + $0x58] sm:$0xff]  ;;  %vm12088_vm10 = vmmov %vm12085_vm6 }
 0x331   :  { %5193 = vrsqrt.f32 %v9441_v19  ;;  %v4289_v6 = vadd.f32 %v4288_v29, %v4287_v23  ;;  %v4041_v53 = vmul.f32 %v3257_v48, %v3257_v48  ;;  %vm2588_vm5 = vcmp.eq.f32.partialorder %v9221_v10, inf  ;;  %v12078_v48 = vld [vmem:[#allocation80_spill] sm:$0xff]  ;;  %vm12089_vm13 = vmmov %vm12085_vm6 }
 0x332   :  { %v9471_v60 = vadd.f32 1e-09, %v3544_v4  ;;  %v4292_v61 = vsel %vm12026_vm9, %v4111_v39, 0.0  ;;  %v4042_v38 = vmul.f32 %v3258_v33, %v3258_v33  ;;  %v3312_v8 = vadd.f32 %v9477_v2, %v12075_v14 }
 0x333   :  { %5195 = vrsqrt.f32 %v9459_v27  ;;  %v4291_v20 = vadd.f32 %v4290_v52, %v4289_v6  ;;  %v4043_v46 = vmul.f32 %v3259_v17, %v3259_v17  ;;  %v4170_v1 = vadd.f32 %v4041_v53, %v4040_v58  ;;  %v3558_v6 = vpop.xlane.xlu2 %3557 }
 0x334   :  { %v9482_v21 = vadd.f32 1e-09, %v3553_v22  ;;  %v3313_v18 = vadd.f32 %v9487_v59, %v12076_v0  ;;  %v3314_v45 = vadd.f32 %v9494_v47, %v12077_v54  ;;  %v3315_v33 = vadd.f32 %v9501_v28, %v12078_v48 }
 0x335   :  { %v2609_v25 = vsub.f32 1.5, %v2608_v50  ;;  %v2631_v30 = vmul.f32 %v9386_v12, %v2630_v57  ;;  %v4293_v15 = vadd.f32 %v4292_v61, %v4291_v20  ;;  %v4171_v39 = vadd.f32 %v4170_v1, %v4042_v38 }
 0x336   :  { %5197 = vrsqrt.f32 %v9471_v60  ;;  %v4096_v23 = vmul.f32 %v3312_v8, %v3312_v8  ;;  %v4097_v17 = vmul.f32 %v3313_v18, %v3313_v18  ;;  %v4098_v58 = vmul.f32 %v3314_v45, %v3314_v45  ;;  %v12083_v18 = vld [vmem:[#allocation41_spill] sm:$0xff] }
 0x337   :  { %v9507_v29 = vpop.eup %5193  ;;  %v2598_v4 = vmul.f32 %v9369_v36, %v2597_v5  ;;  %v2642_v22 = vmul.f32 %v9457_v32, %v9400_v43  ;;  %4294 = vadd.xlane.f32.xlu0 %v4293_v15  ;;  %v4172_v50 = vadd.f32 %v4171_v39, %v4043_v46  ;;  %v12079_v57 = vand.u32 2147483648, %v9070_v7  ;;  %v3567_v15 = vpop.xlane.xlu0 %3566 }
 0x338   :  { %5199 = vrsqrt.f32 %v9482_v21  ;;  %v4099_v61 = vmul.f32 %v3315_v33, %v3315_v33  ;;  %v4268_v38 = vadd.f32 %v4097_v17, %v4096_v23  ;;  %v2587_v36 = vmul.f32 %v9428_v35, %v9221_v10 }
 0x339   :  { %v9518_v53 = vsel %vm2578_vm14, %v12079_v57, %v9425_v3  ;;  %v9521_v8 = vpop.eup %5195  ;;  %vm2600_vm1 = vcmp.eq.f32.partialorder %v9311_v62, inf  ;;  %v2621_v5 = vsub.f32 1.5, %v9467_v34  ;;  %v9527_v20 = vmul.f32 0.5, %v2631_v30  ;;  %4173 = vadd.xlane.f32.xlu2 %v4172_v50  ;;  %v9594_v30 = vld [vmem:[%s11161_s9 + $0x68] sm:$0x3f]  ;;  %vm12086_vm14 = vmmov %vm12085_vm6 }
 0x33a   :  { %12080 = vst [vmem:[#allocation27_spill] sm:$0xff] %v9518_v53  ;;  %v2610_v7 = vmul.f32 %v9377_v63, %v2609_v25  ;;  %v3801_v3 = vmul.f32 %v9507_v29, %v9441_v19  ;;  %v9532_v46 = vadd.f32 1e-09, %v3558_v6  ;;  %v4269_v1 = vadd.f32 %v4268_v38, %v4098_v58  ;;  %v12084_v58 = vld [vmem:[#allocation104_spill] sm:$0xff] }
 0x33b   :  { %v2599_v35 = vmul.f32 %v2598_v4, %v9311_v62  ;;  %v2643_v34 = vmul.f32 %v9457_v32, %v2642_v22  ;;  %v3813_v25 = vmul.f32 %v9521_v8, %v9459_v27  ;;  %v9548_v23 = vsel %vm2588_vm5, %v9221_v10, %v2587_v36  ;;  %v12081_v4 = vld [vmem:[#allocation18_spill] sm:$0xff]  ;;  %vm12090_vm5 = vmmov %vm12085_vm6 }
 0x33c   :  { %v9539_v33 = vpop.eup %5197  ;;  %v4270_v39 = vadd.f32 %v4269_v1, %v4099_v61  ;;  %v9551_v17 = vmul.f32 %v9381_v26, %v2621_v5  ;;  %v3328_v22 = vadd.f32 %v9477_v2, %v12081_v4  ;;  %v9559_v50 = vmul.f32 %v2610_v7, %v9319_v55  ;;  %v12082_v1 = vld [vmem:[#allocation20_spill] sm:$0xff]  ;;  %vm12091_vm9 = vmmov %vm12090_vm5 }
 0x33d   :  { %v3802_v61 = vmul.f32 %v9507_v29, %v3801_v3  ;;  %5201 = vrsqrt.f32 %v9532_v46  ;;  %v9567_v26 = vsel %vm2600_vm1, %v9311_v62, %v2599_v35  ;;  %v9569_v38 = vmul.f32 0.5, %v2643_v34  ;;  %vm12095_vm1 = vmmov %vm12090_vm5 }
 0x33e   :  { %v9556_v6 = vpop.eup %5199  ;;  %4271 = vadd.xlane.f32.xlu1 %v4270_v39  ;;  %v3825_v36 = vmul.f32 %v9539_v33, %v9471_v60  ;;  %v9573_v5 = vadd.f32 1e-09, %v3567_v15  ;;  %v3814_v7 = vmul.f32 %v9521_v8, %v3813_v25  ;;  %v3329_v3 = vadd.f32 %v9487_v59, %v12082_v1  ;;  %v9587_v15 = vld [vmem:[%s11161_s9 + $0x60] sm:$0x3f] }
 0x33f   :  { %v3330_v39 = vadd.f32 %v9494_v47, %v12083_v18  ;;  %v3331_v63 = vadd.f32 %v9501_v28, %v12084_v58  ;;  %v3837_v35 = vmul.f32 %v9556_v6, %v9482_v21  ;;  %v4112_v34 = vmul.f32 %v3328_v22, %v3328_v22  ;;  %v9601_v22 = vld [vmem:[%s11161_s9 + $0x70] sm:$0x3f] }
 0x340   :  { %v3316_v25 = vadd.f32 %v9587_v15, %v12075_v14  ;;  %v3317_v45 = vadd.f32 %v9594_v30, %v12076_v0  ;;  %v3803_v52 = vmul.f32 0.5, %v3802_v61  ;;  %v4113_v57 = vmul.f32 %v3329_v3, %v3329_v3  ;;  %v9611_v0 = vld [vmem:[%s11161_s9 + $0x78] sm:$0x3f] }
 0x341   :  { %v4114_v53 = vmul.f32 %v3330_v39, %v3330_v39  ;;  %v3318_v31 = vadd.f32 %v9601_v22, %v12077_v54  ;;  %vm2590_vm8 = vcmp.eq.f32.partialorder %v9221_v10, 0.0  ;;  %v3826_v14 = vmul.f32 %v9539_v33, %v3825_v36 }
 0x342   :  { %5203 = vrsqrt.f32 %v9573_v5  ;;  %v3319_v61 = vadd.f32 %v9611_v0, %v12078_v48  ;;  %v4100_v3 = vmul.f32 %v3316_v25, %v3316_v25  ;;  %v4115_v11 = vmul.f32 %v3331_v63, %v3331_v63 }
 0x343   :  { %v9615_v39 = vpop.eup %5201  ;;  %v4296_v58 = vadd.f32 %v4113_v57, %v4112_v34  ;;  %v4101_v54 = vmul.f32 %v3317_v45, %v3317_v45  ;;  %v4102_v18 = vmul.f32 %v3318_v31, %v3318_v31  ;;  %vm2602_vm12 = vcmp.eq.f32.partialorder %v9311_v62, 0.0 }
 0x344   :  { %vm2612_vm7 = vcmp.eq.f32.partialorder %v9319_v55, inf  ;;  %v3815_v36 = vmul.f32 0.5, %v3814_v7  ;;  %v3838_v1 = vmul.f32 %v9556_v6, %v3837_v35  ;;  %v4103_v4 = vmul.f32 %v3319_v61, %v3319_v61 }
 0x345   :  { %v4273_v24 = vsel %vm12085_vm6, %v4100_v3, 0.0  ;;  %vm2624_vm11 = vcmp.eq.f32.partialorder %v9327_v40, inf  ;;  %v4297_v48 = vadd.f32 %v4296_v58, %v4114_v53  ;;  %v4274_v25 = vsel %vm12086_vm14, %v4101_v54, 0.0 }
 0x346   :  { %v4276_v63 = vsel %vm12087_vm15, %v4102_v18, 0.0  ;;  %v3268_v31 = vadd.f32 %v9587_v15, %v12048_v41  ;;  %v2645_v45 = vsub.f32 1.5, %v9569_v38  ;;  %v3827_v57 = vmul.f32 0.5, %v3826_v14 }
 0x347   :  { %v3849_v7 = vmul.f32 %v9615_v39, %v9532_v46  ;;  %v4275_v35 = vadd.f32 %v4274_v25, %v4273_v24  ;;  %v4298_v34 = vadd.f32 %v4297_v48, %v4115_v11  ;;  %v4278_v61 = vsel %vm12088_vm10, %v4103_v4, 0.0 }
 0x348   :  { %v3269_v53 = vadd.f32 %v9594_v30, %v12050_v42  ;;  %v3270_v58 = vadd.f32 %v9601_v22, %v12052_v9  ;;  %v9634_v18 = vpop.eup %5203  ;;  %v3804_v3 = vsub.f32 1.5, %v3803_v52  ;;  %v3816_v41 = vsub.f32 1.5, %v3815_v36 }
 0x349   :  { %v4277_v54 = vadd.f32 %v4276_v63, %v4275_v35  ;;  %v3271_v38 = vadd.f32 %v9611_v0, %v12054_v51  ;;  %v3839_v14 = vmul.f32 0.5, %v3838_v1  ;;  %4299 = vadd.xlane.f32.xlu0 %v4298_v34  ;;  %v4052_v24 = vmul.f32 %v3268_v31, %v3268_v31 }
 0x34a   :  { %v4053_v11 = vmul.f32 %v3269_v53, %v3269_v53  ;;  %v4054_v48 = vmul.f32 %v3270_v58, %v3270_v58  ;;  %v3828_v4 = vsub.f32 1.5, %v3827_v57  ;;  %v3850_v25 = vmul.f32 %v9615_v39, %v3849_v7 }
 0x34b   :  { %v4279_v42 = vadd.f32 %v4278_v61, %v4277_v54  ;;  %v4055_v56 = vmul.f32 %v3271_v38, %v3271_v38  ;;  %v3861_v9 = vmul.f32 %v9634_v18, %v9573_v5  ;;  %v4189_v52 = vsel %vm12089_vm13, %v4052_v24, 0.0 }
 0x34c   :  { %v4190_v36 = vsel %vm12090_vm5, %v4053_v11, 0.0  ;;  %v4192_v63 = vsel %vm12091_vm9, %v4054_v48, 0.0  ;;  %v2623_v51 = vmul.f32 %v9551_v17, %v9327_v40  ;;  %v12092_v1 = vsub.f32 1.5, %v9527_v20  ;;  %vm12103_vm5 = vmmov %vm12095_vm1 }
 0x34d   :  { %v2646_v57 = vmul.f32 %v9457_v32, %v2645_v45  ;;  %4280 = vadd.xlane.f32.xlu2 %v4279_v42  ;;  %v4191_v7 = vadd.f32 %v4190_v36, %v4189_v52  ;;  %v12093_v35 = vand.u32 2147483648, %v9221_v10  ;;  %v3805_v53 = vmul.f32 %v9507_v29, %v3804_v3  ;;  %v12099_v52 = vld [vmem:[#allocation32_spill] sm:$0xff]  ;;  %vm12104_vm2 = vmmov %vm12103_vm5 }
 0x34e   :  { %v2634_v31 = vmul.f32 %v9386_v12, %v12092_v1  ;;  %v4194_v17 = vsel %vm12095_vm1, %v4055_v56, 0.0  ;;  %v3817_v20 = vmul.f32 %v9521_v8, %v3816_v41  ;;  %v3829_v12 = vmul.f32 %v9539_v33, %v3828_v4  ;;  %v12101_v1 = vld [vmem:[#allocation34_spill] sm:$0xff]  ;;  %vm12105_vm3 = vmmov %vm12104_vm2 }
 0x34f   :  { %v9655_v34 = vsel %vm2590_vm8, %v12093_v35, %v9548_v23  ;;  %v3840_v32 = vsub.f32 1.5, %v3839_v14  ;;  %v4193_v45 = vadd.f32 %v4192_v63, %v4191_v7  ;;  %v12096_v58 = vand.u32 2147483648, %v9311_v62  ;;  %v12100_v63 = vld [vmem:[#allocation33_spill] sm:$0xff] }
 0x350   :  { %12094 = vst [vmem:[#allocation101_spill] sm:$0xff] %v9655_v34  ;;  %v9673_v29 = vsel %vm2612_vm7, %v9319_v55, %v9559_v50  ;;  %v3851_v56 = vmul.f32 0.5, %v3850_v25  ;;  %v3862_v8 = vmul.f32 %v9634_v18, %v3861_v9  ;;  %v9679_v33 = vsel %vm2624_vm11, %v9327_v40, %v2623_v51  ;;  %v3581_v9 = vpop.xlane.xlu2 %3580 }
 0x351   :  { %v9667_v10 = vsel %vm2602_vm12, %v12096_v58, %v9567_v26  ;;  %12098 = vst [vmem:[#allocation86_spill] sm:$0xff] %v9679_v33  ;;  %v9682_v23 = vmul.f32 %v2634_v31, %v9335_v13  ;;  %v9685_v62 = vmul.f32 %v2646_v57, %v9400_v43  ;;  %v3572_v26 = vpop.xlane.xlu1 %3571  ;;  %v4195_v3 = vadd.f32 %v4194_v17, %v4193_v45  ;;  %v12102_v31 = vld [vmem:[#allocation35_spill] sm:$0xff] }
 0x352   :  { %12097 = vst [vmem:[#allocation42_spill] sm:$0xff] %v9667_v10  ;;  %vm3807_vm8 = vcmp.eq.f32.partialorder %v9441_v19, inf  ;;  %v3810_v50 = vand.u32 2147483648, %v9441_v19  ;;  %v3822_v41 = vand.u32 2147483648, %v9459_v27  ;;  %v3834_v54 = vand.u32 2147483648, %v9471_v60 }
 0x353   :  { %v3806_v14 = vmul.f32 %v3805_v53, %v9441_v19  ;;  %v9694_v24 = vmul.f32 %v3817_v20, %v9459_v27  ;;  %v9697_v11 = vmul.f32 %v3829_v12, %v9471_v60  ;;  %v3841_v48 = vmul.f32 %v9556_v6, %v3840_v32  ;;  %4196 = vadd.xlane.f32.xlu1 %v4195_v3  ;;  %v3586_v53 = vpop.xlane.xlu0 %3585 }
 0x354   :  { %vm3819_vm12 = vcmp.eq.f32.partialorder %v9459_v27, inf  ;;  %v3852_v4 = vsub.f32 1.5, %v3851_v56  ;;  %v3863_v25 = vmul.f32 0.5, %v3862_v8  ;;  %v9701_v42 = vadd.f32 1e-09, %v3572_v26 }
 0x355   :  { %v3284_v36 = vadd.f32 %v9587_v15, %v12099_v52  ;;  %vm3831_vm7 = vcmp.eq.f32.partialorder %v9471_v60, inf  ;;  %vm3843_vm6 = vcmp.eq.f32.partialorder %v9482_v21, inf  ;;  %v3285_v51 = vadd.f32 %v9594_v30, %v12100_v63 }
 0x356   :  { %v3286_v6 = vadd.f32 %v9601_v22, %v12101_v1  ;;  %v3287_v57 = vadd.f32 %v9611_v0, %v12102_v31  ;;  %v3320_v7 = vadd.f32 %v9477_v2, %v12068_v37  ;;  %v9715_v35 = vadd.f32 1e-09, %v3581_v9 }
 0x357   :  { %v4068_v17 = vmul.f32 %v3284_v36, %v3284_v36  ;;  %v3321_v20 = vadd.f32 %v9487_v59, %v12069_v49  ;;  %v3322_v12 = vadd.f32 %v9494_v47, %v12070_v44  ;;  %vm3809_vm11 = vcmp.eq.f32.partialorder %v9441_v19, 0.0 }
 0x358   :  { %vm3821_vm14 = vcmp.eq.f32.partialorder %v9459_v27, 0.0  ;;  %v4069_v32 = vmul.f32 %v3285_v51, %v3285_v51  ;;  %v4070_v45 = vmul.f32 %v3286_v6, %v3286_v6  ;;  %v4071_v58 = vmul.f32 %v3287_v57, %v3287_v57 }
 0x359   :  { %v3323_v37 = vadd.f32 %v9501_v28, %v12071_v16  ;;  %vm3833_vm15 = vcmp.eq.f32.partialorder %v9471_v60, 0.0  ;;  %vm3845_vm10 = vcmp.eq.f32.partialorder %v9482_v21, 0.0  ;;  %vm3855_vm13 = vcmp.eq.f32.partialorder %v9532_v46, inf  ;;  %v9738_v6 = vpop.xlane.xlu1 %3594 }
 0x35a   :  { %5205 = vrsqrt.f32 %v9701_v42  ;;  %v4217_v49 = vsel %vm12103_vm5, %v4068_v17, 0.0  ;;  %v4104_v44 = vmul.f32 %v3320_v7, %v3320_v7  ;;  %v4105_v56 = vmul.f32 %v3321_v20, %v3321_v20  ;;  %vm12106_vm5 = vmmov %vm12104_vm2  ;;  %v12107_v20 = vld [vmem:[#allocation64_spill] sm:$0xff] }
 0x35b   :  { %vm2636_vm9 = vcmp.eq.f32.partialorder %v9335_v13, inf  ;;  %vm2648_vm1 = vcmp.eq.f32.partialorder %v9400_v43, inf  ;;  %v3864_v8 = vsub.f32 1.5, %v3863_v25  ;;  %v4218_v26 = vsel %vm12104_vm2, %v4069_v32, 0.0 }
 0x35c   :  { %v4220_v16 = vsel %vm12105_vm3, %v4070_v45, 0.0  ;;  %v4106_v3 = vmul.f32 %v3322_v12, %v3322_v12  ;;  %v3853_v9 = vmul.f32 %v9615_v39, %v3852_v4  ;;  %5207 = vrsqrt.f32 %v9715_v35  ;;  %v12108_v12 = vld [vmem:[#allocation30_spill] sm:$0xff]  ;;  %v12109_v4 = vld [vmem:[#allocation57_spill] sm:$0xff] }
 0x35d   :  { %v9736_v36 = vadd.f32 1e-09, %v3586_v53  ;;  %v4219_v51 = vadd.f32 %v4218_v26, %v4217_v49  ;;  %v4222_v57 = vsel %vm12106_vm5, %v4071_v58, 0.0  ;;  %v4107_v7 = vmul.f32 %v3323_v37, %v3323_v37 }
 0x35e   :  { %v4282_v17 = vadd.f32 %v4105_v56, %v4104_v44  ;;  %v3272_v25 = vadd.f32 %v9477_v2, %v12107_v20  ;;  %v3842_v32 = vmul.f32 %v3841_v48, %v9482_v21  ;;  %v3273_v39 = vadd.f32 %v9487_v59, %v12108_v12  ;;  %v12110_v44 = vld [vmem:[#allocation31_spill] sm:$0xff]  ;;  %v3600_v48 = vpop.xlane.xlu2 %3599 }
 0x35f   :  { %v4221_v45 = vadd.f32 %v4220_v16, %v4219_v51  ;;  %v3274_v53 = vadd.f32 %v9494_v47, %v12109_v4  ;;  %v3808_v49 = vsel %vm3807_vm8, %v9441_v19, %v3806_v14  ;;  %v3865_v58 = vmul.f32 %v9634_v18, %v3864_v8 }
 0x360   :  { %v4283_v37 = vadd.f32 %v4282_v17, %v4106_v3  ;;  %v3275_v56 = vadd.f32 %v9501_v28, %v12110_v44  ;;  %v9754_v26 = vpop.eup %5205  ;;  %5209 = vrsqrt.f32 %v9736_v36  ;;  %v4056_v51 = vmul.f32 %v3272_v25, %v3272_v25  ;;  %v9771_v25 = vpop.xlane.xlu0 %3608 }
 0x361   :  { %v4223_v16 = vadd.f32 %v4222_v57, %v4221_v45  ;;  %v4057_v61 = vmul.f32 %v3273_v39, %v3273_v39  ;;  %v3820_v38 = vsel %vm3819_vm12, %v9459_v27, %v9694_v24  ;;  %v3854_v14 = vmul.f32 %v3853_v9, %v9532_v46  ;;  %vm12126_vm12 = vmmov %vm12106_vm5 }
 0x362   :  { %v4284_v18 = vadd.f32 %v4283_v37, %v4107_v7  ;;  %v4058_v8 = vmul.f32 %v3274_v53, %v3274_v53  ;;  %v9762_v3 = vpop.eup %5207  ;;  %v3832_v17 = vsel %vm3831_vm7, %v9471_v60, %v9697_v11  ;;  %v3844_v57 = vsel %vm3843_vm6, %v9482_v21, %v3842_v32  ;;  %vm12128_vm7 = vmmov %vm12106_vm5 }
 0x363   :  { %4224 = vadd.xlane.f32.xlu0 %v4223_v16  ;;  %v4059_v45 = vmul.f32 %v3275_v56, %v3275_v56  ;;  %v4198_v24 = vadd.f32 %v4057_v61, %v4056_v51  ;;  %vm3857_vm2 = vcmp.eq.f32.partialorder %v9532_v46, 0.0  ;;  %v3858_v9 = vand.u32 2147483648, %v9532_v46  ;;  %v9829_v51 = vpop.xlane.xlu1 %3613  ;;  %vm12130_vm6 = vmmov %vm12106_vm5 }
 0x364   :  { %vm3867_vm3 = vcmp.eq.f32.partialorder %v9573_v5, inf  ;;  %v3873_v7 = vmul.f32 %v9754_v26, %v9701_v42  ;;  %4285 = vadd.xlane.f32.xlu2 %v4284_v18  ;;  %v9782_v11 = vsel %vm3809_vm11, %v3810_v50, %v3808_v49  ;;  %v9788_v61 = vsel %vm3821_vm14, %v3822_v41, %v3820_v38  ;;  %v12118_v38 = vld [vmem:[#allocation50_spill] sm:$0xff]  ;;  %vm12133_vm11 = vmmov %vm12106_vm5 }
 0x365   :  { %12111 = vst [vmem:[#allocation122_spill] sm:$0xff] %v9782_v11  ;;  %v3866_v32 = vmul.f32 %v3865_v58, %v9573_v5  ;;  %v4199_v39 = vadd.f32 %v4198_v24, %v4058_v8  ;;  %v9795_v53 = vsel %vm3833_vm15, %v3834_v54, %v3832_v17  ;;  %v12114_v37 = vand.u32 2147483648, %v9482_v21  ;;  %v12119_v58 = vld [vmem:[#allocation52_spill] sm:$0xff]  ;;  %vm12134_vm14 = vmmov %vm12106_vm5 }
 0x366   :  { %12112 = vst [vmem:[#allocation40_spill] sm:$0xff] %v9788_v61  ;;  %v3856_v27 = vsel %vm3855_vm13, %v9532_v46, %v3854_v14  ;;  %v3885_v50 = vmul.f32 %v9762_v3, %v9715_v35  ;;  %v9808_v41 = vpop.eup %5209  ;;  %v9814_v60 = vsel %vm2636_vm9, %v9335_v13, %v9682_v23  ;;  %v9820_v21 = vsel %vm2648_vm1, %v9400_v43, %v9685_v62  ;;  %v12123_v46 = vld [vmem:[#allocation38_spill] sm:$0xff]  ;;  %vm12135_vm15 = vmmov %vm12106_vm5 }
 0x367   :  { %12113 = vst [vmem:[#allocation43_spill] sm:$0xff] %v9795_v53  ;;  %v9801_v19 = vsel %vm3845_vm10, %v12114_v37, %v3844_v57  ;;  %vm3869_vm8 = vcmp.eq.f32.partialorder %v9573_v5, 0.0  ;;  %v4200_v54 = vadd.f32 %v4199_v39, %v4059_v45  ;;  %v3870_v16 = vand.u32 2147483648, %v9573_v5  ;;  %v12121_v45 = vld [vmem:[#allocation36_spill] sm:$0xff]  ;;  %v9849_v37 = vpop.xlane.xlu2 %3622  ;;  %vm12136_vm10 = vmmov %vm12106_vm5 }
 0x368   :  { %12115 = vst [vmem:[#allocation55_spill] sm:$0xff] %v9801_v19  ;;  %v3874_v23 = vmul.f32 %v9754_v26, %v3873_v7  ;;  %v9837_v18 = vsel %vm3857_vm2, %v3858_v9, %v3856_v27  ;;  %v3868_v8 = vsel %vm3867_vm3, %v9573_v5, %v3866_v32  ;;  %v3886_v17 = vmul.f32 %v9762_v3, %v3885_v50  ;;  %v12122_v7 = vld [vmem:[#allocation37_spill] sm:$0xff]  ;;  %v12124_v27 = vld [vmem:[#allocation68_spill] sm:$0xff]  ;;  %v9864_v53 = vpop.xlane.xlu0 %3627  ;;  %vm12137_vm13 = vmmov %vm12106_vm5 }
 0x369   :  { %12116 = vst [vmem:[#allocation112_spill] sm:$0xff] %v9814_v60  ;;  %4201 = vadd.xlane.f32.xlu1 %v4200_v54  ;;  %v3897_v57 = vmul.f32 %v9808_v41, %v9736_v36  ;;  %v3288_v24 = vadd.f32 %v9477_v2, %v12121_v45  ;;  %v3289_v39 = vadd.f32 %v9487_v59, %v12122_v7  ;;  %v9862_v19 = vadd.f32 1e-09, %v9738_v6  ;;  %v12125_v6 = vld [vmem:[#allocation18_spill] sm:$0xff]  ;;  %vm12142_vm1 = vmmov %vm12106_vm5 }
 0x36a   :  { %12117 = vst [vmem:[#allocation16_spill] sm:$0xff] %v9820_v21  ;;  %v3290_v9 = vadd.f32 %v9494_v47, %v12123_v46  ;;  %v3291_v32 = vadd.f32 %v9501_v28, %v12124_v27  ;;  %v3276_v50 = vadd.f32 %v9587_v15, %v12107_v20  ;;  %v3277_v54 = vadd.f32 %v9594_v30, %v12108_v12  ;;  %vm12143_vm5 = vmmov %vm12142_vm1 }
 0x36b   :  { %12120 = vst [vmem:[#allocation123_spill] sm:$0xff] %v9837_v18  ;;  %v3875_v62 = vmul.f32 0.5, %v3874_v23  ;;  %v4072_v14 = vmul.f32 %v3288_v24, %v3288_v24  ;;  %v4073_v56 = vmul.f32 %v3289_v39, %v3289_v39  ;;  %v3278_v49 = vadd.f32 %v9601_v22, %v12109_v4  ;;  %vm12144_vm2 = vmmov %vm12142_vm1 }
 0x36c   :  { %v4074_v61 = vmul.f32 %v3290_v9, %v3290_v9  ;;  %v3279_v11 = vadd.f32 %v9611_v0, %v12110_v44  ;;  %v4060_v10 = vmul.f32 %v3276_v50, %v3276_v50  ;;  %v9868_v20 = vadd.f32 1e-09, %v3600_v48 }
 0x36d   :  { %v4075_v34 = vmul.f32 %v3291_v32, %v3291_v32  ;;  %v4226_v12 = vadd.f32 %v4073_v56, %v4072_v14  ;;  %v4061_v23 = vmul.f32 %v3277_v54, %v3277_v54  ;;  %v3898_v4 = vmul.f32 %v9808_v41, %v3897_v57  ;;  %v12129_v14 = vld [vmem:[#allocation20_spill] sm:$0xff]  ;;  %v9885_v32 = vpop.xlane.xlu1 %3636 }
 0x36e   :  { %v4062_v39 = vmul.f32 %v3278_v49, %v3278_v49  ;;  %v3332_v21 = vadd.f32 %v9587_v15, %v12125_v6  ;;  %v3887_v60 = vmul.f32 0.5, %v3886_v17  ;;  %v4063_v33 = vmul.f32 %v3279_v11, %v3279_v11  ;;  %v12131_v17 = vld [vmem:[#allocation41_spill] sm:$0xff] }
 0x36f   :  { %v4227_v9 = vadd.f32 %v4226_v12, %v4074_v61  ;;  %v4203_v44 = vsel %vm12126_vm12, %v4060_v10, 0.0  ;;  %v9878_v48 = vsel %vm3869_vm8, %v3870_v16, %v3868_v8  ;;  %5211 = vrsqrt.f32 %v9862_v19  ;;  %v12132_v16 = vld [vmem:[#allocation104_spill] sm:$0xff]  ;;  %v9895_v6 = vpop.xlane.xlu2 %3641  ;;  %vm12145_vm12 = vmmov %vm12142_vm1 }
 0x370   :  { %12127 = vst [vmem:[#allocation53_spill] sm:$0xff] %v9878_v48  ;;  %v4204_v56 = vsel %vm12128_vm7, %v4061_v23, 0.0  ;;  %v3333_v57 = vadd.f32 %v9594_v30, %v12129_v14  ;;  %v3876_v49 = vsub.f32 1.5, %v3875_v62  ;;  %5213 = vrsqrt.f32 %v9868_v20  ;;  %vm12146_vm7 = vmmov %vm12142_vm1 }
 0x371   :  { %v4228_v61 = vadd.f32 %v4227_v9, %v4075_v34  ;;  %v4206_v11 = vsel %vm12130_vm6, %v4062_v39, 0.0  ;;  %v4205_v10 = vadd.f32 %v4204_v56, %v4203_v44  ;;  %v3334_v5 = vadd.f32 %v9601_v22, %v12131_v17  ;;  %vm12147_vm6 = vmmov %vm12142_vm1 }
 0x372   :  { %v3335_v8 = vadd.f32 %v9611_v0, %v12132_v16  ;;  %v4116_v50 = vmul.f32 %v3332_v21, %v3332_v21  ;;  %v3888_v54 = vsub.f32 1.5, %v3887_v60  ;;  %v9892_v12 = vmul.f32 0.5, %v3898_v4 }
 0x373   :  { %4229 = vadd.xlane.f32.xlu0 %v4228_v61  ;;  %v4208_v62 = vsel %vm12133_vm11, %v4063_v33, 0.0  ;;  %v4117_v23 = vmul.f32 %v3333_v57, %v3333_v57  ;;  %v4207_v34 = vadd.f32 %v4206_v11, %v4205_v10  ;;  %v4118_v9 = vmul.f32 %v3334_v5, %v3334_v5  ;;  %v9910_v57 = vpop.xlane.xlu0 %3650  ;;  %vm12148_vm11 = vmmov %vm12142_vm1 }
 0x374   :  { %v4119_v39 = vmul.f32 %v3335_v8, %v3335_v8  ;;  %v4301_v44 = vsel %vm12134_vm14, %v4116_v50, 0.0  ;;  %v3882_v14 = vand.u32 2147483648, %v9701_v42  ;;  %v9902_v60 = vadd.f32 1e-09, %v9771_v25  ;;  %vm12149_vm14 = vmmov %vm12142_vm1 }
 0x375   :  { %v4302_v21 = vsel %vm12135_vm15, %v4117_v23, 0.0  ;;  %v9905_v4 = vpop.eup %5211  ;;  %v9908_v33 = vmul.f32 %v9754_v26, %v3876_v49  ;;  %v4209_v61 = vadd.f32 %v4208_v62, %v4207_v34  ;;  %v4304_v10 = vsel %vm12136_vm10, %v4118_v9, 0.0  ;;  %v12138_v23 = vld [vmem:[#allocation106_spill] sm:$0xff]  ;;  %v4132_v34 = vpop.xlane.xlu1 %4131 }
 0x376   :  { %v4303_v11 = vadd.f32 %v4302_v21, %v4301_v44  ;;  %v9913_v17 = vpop.eup %5213  ;;  %v9916_v5 = vmul.f32 %v9762_v3, %v3888_v54  ;;  %v3900_v25 = vsub.f32 1.5, %v9892_v12  ;;  %v4306_v16 = vsel %vm12137_vm13, %v4119_v39, 0.0 }
 0x377   :  { %v3280_v8 = vadd.f32 %v9477_v2, %v12099_v52  ;;  %4210 = vadd.xlane.f32.xlu2 %v4209_v61  ;;  %v3281_v49 = vadd.f32 %v9487_v59, %v12100_v63  ;;  %v3282_v50 = vadd.f32 %v9494_v47, %v12101_v1  ;;  %v3283_v62 = vadd.f32 %v9501_v28, %v12102_v31  ;;  %v12139_v31 = vld [vmem:[#allocation107_spill] sm:$0xff]  ;;  %v12140_v61 = vld [vmem:[#allocation108_spill] sm:$0xff] }
 0x378   :  { %v4305_v26 = vadd.f32 %v4304_v10, %v4303_v11  ;;  %v9930_v3 = vmul.f32 %v9905_v4, %v9862_v19  ;;  %5215 = vrsqrt.f32 %v9902_v60  ;;  %v3336_v52 = vadd.f32 %v9477_v2, %v12138_v23  ;;  %v12141_v10 = vld [vmem:[#allocation109_spill] sm:$0xff] }
 0x379   :  { %v4064_v54 = vmul.f32 %v3280_v8, %v3280_v8  ;;  %v9937_v63 = vmul.f32 %v9913_v17, %v9868_v20  ;;  %v4065_v1 = vmul.f32 %v3281_v49, %v3281_v49  ;;  %v4066_v39 = vmul.f32 %v3282_v50, %v3282_v50 }
 0x37a   :  { %v4307_v9 = vadd.f32 %v4306_v16, %v4305_v26  ;;  %v4067_v44 = vmul.f32 %v3283_v62, %v3283_v62  ;;  %v3337_v21 = vadd.f32 %v9487_v59, %v12139_v31  ;;  %v3338_v11 = vadd.f32 %v9494_v47, %v12140_v61  ;;  %v4141_v26 = vpop.xlane.xlu2 %4140 }
 0x37b   :  { %v3339_v8 = vadd.f32 %v9501_v28, %v12141_v10  ;;  %v4212_v2 = vadd.f32 %v4065_v1, %v4064_v54  ;;  %v4120_v56 = vmul.f32 %v3336_v52, %v3336_v52  ;;  %v3340_v24 = vadd.f32 %v9587_v15, %v12138_v23  ;;  %v4146_v52 = vpop.xlane.xlu0 %4145 }
 0x37c   :  { %4308 = vadd.xlane.f32.xlu1 %v4307_v9  ;;  %v3341_v16 = vadd.f32 %v9594_v30, %v12139_v31  ;;  %v4121_v49 = vmul.f32 %v3337_v21, %v3337_v21  ;;  %v4122_v50 = vmul.f32 %v3338_v11, %v3338_v11  ;;  %v3342_v59 = vadd.f32 %v9601_v22, %v12140_v61 }
 0x37d   :  { %v4123_v62 = vmul.f32 %v3339_v8, %v3339_v8  ;;  %v4213_v47 = vadd.f32 %v4212_v2, %v4066_v39  ;;  %v3343_v28 = vadd.f32 %v9611_v0, %v12141_v10  ;;  %v4124_v9 = vmul.f32 %v3340_v24, %v3340_v24 }
 0x37e   :  { %v4125_v54 = vmul.f32 %v3341_v16, %v3341_v16  ;;  %v9953_v1 = vpop.eup %5215  ;;  %vm3879_vm9 = vcmp.eq.f32.partialorder %v9701_v42, inf  ;;  %v4310_v23 = vadd.f32 %v4121_v49, %v4120_v56  ;;  %v4126_v31 = vmul.f32 %v3342_v59, %v3342_v59 }
 0x37f   :  { %v3292_v21 = vadd.f32 %v9587_v15, %v12121_v45  ;;  %v3293_v11 = vadd.f32 %v9594_v30, %v12122_v7  ;;  %v4214_v61 = vadd.f32 %v4213_v47, %v4067_v44  ;;  %v4127_v39 = vmul.f32 %v3343_v28, %v3343_v28  ;;  %v4155_v47 = vpop.xlane.xlu1 %4154 }
 0x380   :  { %v4315_v8 = vsel %vm12142_vm1, %v4124_v9, 0.0  ;;  %v4316_v24 = vsel %vm12143_vm5, %v4125_v54, 0.0  ;;  %v4311_v10 = vadd.f32 %v4310_v23, %v4122_v50  ;;  %v4318_v16 = vsel %vm12144_vm2, %v4126_v31, 0.0 }
 0x381   :  { %v4317_v2 = vadd.f32 %v4316_v24, %v4315_v8  ;;  %v3294_v56 = vadd.f32 %v9601_v22, %v12123_v46  ;;  %vm3881_vm3 = vcmp.eq.f32.partialorder %v9701_v42, 0.0  ;;  %vm3891_vm8 = vcmp.eq.f32.partialorder %v9715_v35, inf  ;;  %4215 = vadd.xlane.f32.xlu2 %v4214_v61 }
 0x382   :  { %v4320_v30 = vsel %vm12145_vm12, %v4127_v39, 0.0  ;;  %v3295_v15 = vadd.f32 %v9611_v0, %v12124_v27  ;;  %v4076_v45 = vmul.f32 %v3292_v21, %v3292_v21  ;;  %v4077_v7 = vmul.f32 %v3293_v11, %v3293_v11 }
 0x383   :  { %v4312_v44 = vadd.f32 %v4311_v10, %v4123_v62  ;;  %v4319_v49 = vadd.f32 %v4318_v16, %v4317_v2  ;;  %v4078_v50 = vmul.f32 %v3294_v56, %v3294_v56  ;;  %v9970_v59 = vadd.f32 1e-09, %v4132_v34  ;;  %v4169_v21 = vpop.xlane.xlu0 %4168 }
 0x384   :  { %v4079_v28 = vmul.f32 %v3295_v15, %v3295_v15  ;;  %v4231_v22 = vsel %vm12146_vm7, %v4076_v45, 0.0  ;;  %v4232_v46 = vsel %vm12147_vm6, %v4077_v7, 0.0  ;;  %v9974_v9 = vadd.f32 1e-09, %v4141_v26  ;;  %v4160_v26 = vpop.xlane.xlu2 %4159 }
 0x385   :  { %v9977_v54 = vadd.f32 1e-09, %v9829_v51  ;;  %4313 = vadd.xlane.f32.xlu1 %v4312_v44  ;;  %v4233_v0 = vadd.f32 %v4232_v46, %v4231_v22  ;;  %v4234_v27 = vsel %vm12148_vm11, %v4078_v50, 0.0  ;;  %5217 = vrsqrt.f32 %v9970_v59 }
 0x386   :  { %v3878_v34 = vmul.f32 %v9908_v33, %v9701_v42  ;;  %v3910_v62 = vmul.f32 %v9905_v4, %v9930_v3  ;;  %v4321_v23 = vadd.f32 %v4320_v30, %v4319_v49  ;;  %v4236_v31 = vsel %vm12149_vm14, %v4079_v28, 0.0 }
 0x387   :  { %v3922_v11 = vmul.f32 %v9913_v17, %v9937_v63  ;;  %v4235_v61 = vadd.f32 %v4234_v27, %v4233_v0  ;;  %5219 = vrsqrt.f32 %v9974_v9  ;;  %v3890_v39 = vmul.f32 %v9916_v5, %v9715_v35  ;;  %v10040_v44 = vpop.xlane.xlu1 %4243 }
 0x388   :  { %v3901_v33 = vmul.f32 %v9808_v41, %v3900_v25  ;;  %v9995_v3 = vadd.f32 1e-09, %v4146_v52  ;;  %v9997_v8 = vadd.f32 1e-09, %v4155_v47  ;;  %5221 = vrsqrt.f32 %v9977_v54 }
 0x389   :  { %v4237_v24 = vadd.f32 %v4236_v31, %v4235_v61  ;;  %v10000_v10 = vadd.f32 1e-09, %v4160_v26  ;;  %v10002_v63 = vadd.f32 1e-09, %v4169_v21  ;;  %v3880_v2 = vsel %vm3879_vm9, %v9701_v42, %v3878_v34  ;;  %4322 = vadd.xlane.f32.xlu2 %v4321_v23 }
 0x38a   :  { %v10007_v5 = vmul.f32 0.5, %v3910_v62  ;;  %v10010_v12 = vadd.f32 1e-09, %v9849_v37  ;;  %5223 = vrsqrt.f32 %v9995_v3  ;;  %v10013_v25 = vmul.f32 0.5, %v3922_v11 }
 0x38b   :  { %v5218_v41 = vpop.eup %5217  ;;  %v3933_v52 = vmul.f32 %v9953_v1, %v9902_v60  ;;  %v10018_v16 = vadd.f32 1e-09, %v9864_v53  ;;  %5225 = vrsqrt.f32 %v9997_v8  ;;  %v10022_v56 = vmul.f32 %v3901_v33, %v9736_v36 }
 0x38c   :  { %v4353_v30 = vmul.f32 %v5218_v41, %v9970_v59  ;;  %5227 = vrsqrt.f32 %v10000_v10  ;;  %v10031_v45 = vsel %vm3881_vm3, %v3882_v14, %v3880_v2  ;;  %v10036_v53 = vsel %vm3891_vm8, %v9715_v35, %v3890_v39 }
 0x38d   :  { %v5220_v15 = vpop.eup %5219  ;;  %4238 = vadd.xlane.f32.xlu1 %v4237_v24  ;;  %5229 = vrsqrt.f32 %v10002_v63  ;;  %v10049_v28 = vmul.f32 %v9953_v1, %v3933_v52  ;;  %vm4359_vm15 = vcmp.eq.f32.partialorder %v9970_v59, inf  ;;  %vm4361_vm10 = vcmp.eq.f32.partialorder %v9970_v59, 0.0 }
 0x38e   :  { %5231 = vrsqrt.f32 %v10010_v12  ;;  %v4354_v50 = vmul.f32 %v5218_v41, %v4353_v30  ;;  %v4365_v42 = vmul.f32 %v5220_v15, %v9974_v9  ;;  %v10045_v14 = vpop.eup %5221  ;;  %v4362_v0 = vand.u32 2147483648, %v9970_v59 }
 0x38f   :  { %5233 = vrsqrt.f32 %v10018_v16  ;;  %vm4371_vm13 = vcmp.eq.f32.partialorder %v9974_v9, inf  ;;  %vm4373_vm9 = vcmp.eq.f32.partialorder %v9974_v9, 0.0  ;;  %v4374_v62 = vand.u32 2147483648, %v9974_v9  ;;  %v10078_v49 = vpop.xlane.xlu1 %4266 }
 0x390   :  { %v5224_v22 = vpop.eup %5223  ;;  %v4355_v46 = vmul.f32 0.5, %v4354_v50  ;;  %v4366_v27 = vmul.f32 %v5220_v15, %v4365_v42  ;;  %vm4383_vm1 = vcmp.eq.f32.partialorder %v9995_v3, inf  ;;  %vm4385_vm5 = vcmp.eq.f32.partialorder %v9995_v3, 0.0 }
 0x391   :  { %v5226_v34 = vpop.eup %5225  ;;  %v4377_v23 = vmul.f32 %v5224_v22, %v9995_v3  ;;  %v4386_v33 = vand.u32 2147483648, %v9995_v3  ;;  %vm4395_vm2 = vcmp.eq.f32.partialorder %v9997_v8, inf  ;;  %vm4397_vm3 = vcmp.eq.f32.partialorder %v9997_v8, 0.0 }
 0x392   :  { %v5228_v31 = vpop.eup %5227  ;;  %v4356_v26 = vsub.f32 1.5, %v4355_v46  ;;  %v4367_v21 = vmul.f32 0.5, %v4366_v27  ;;  %v4389_v11 = vmul.f32 %v5226_v34, %v9997_v8  ;;  %vm3893_vm8 = vcmp.eq.f32.partialorder %v9715_v35, 0.0 }
 0x393   :  { %v5230_v61 = vpop.eup %5229  ;;  %v4378_v39 = vmul.f32 %v5224_v22, %v4377_v23  ;;  %v4401_v24 = vmul.f32 %v5228_v31, %v10000_v10  ;;  %vm3903_vm12 = vcmp.eq.f32.partialorder %v9736_v36, inf  ;;  %v4398_v47 = vand.u32 2147483648, %v9997_v8 }
 0x394   :  { %v10064_v2 = vpop.eup %5231  ;;  %v4357_v52 = vmul.f32 %v5218_v41, %v4356_v26  ;;  %v4368_v30 = vsub.f32 1.5, %v4367_v21  ;;  %v4390_v50 = vmul.f32 %v5226_v34, %v4389_v11  ;;  %v4413_v42 = vmul.f32 %v5230_v61, %v10002_v63  ;;  %v10074_v21 = vpop.xlane.xlu2 %4252 }
 0x395   :  { %v10067_v46 = vpop.eup %5233  ;;  %v4379_v27 = vmul.f32 0.5, %v4378_v39  ;;  %v4402_v23 = vmul.f32 %v5228_v31, %v4401_v24  ;;  %vm4407_vm7 = vcmp.eq.f32.partialorder %v10000_v10, inf  ;;  %vm3905_vm6 = vcmp.eq.f32.partialorder %v9736_v36, 0.0 }
 0x396   :  { %v4358_v7 = vmul.f32 %v4357_v52, %v9970_v59  ;;  %v4369_v37 = vmul.f32 %v5220_v15, %v4368_v30  ;;  %v4391_v41 = vmul.f32 0.5, %v4390_v50  ;;  %v4414_v26 = vmul.f32 %v5230_v61, %v4413_v42 }
 0x397   :  { %v4380_v11 = vsub.f32 1.5, %v4379_v27  ;;  %v4403_v39 = vmul.f32 0.5, %v4402_v23  ;;  %vm4409_vm11 = vcmp.eq.f32.partialorder %v10000_v10, 0.0  ;;  %v12150_v27 = vld [vmem:[#allocation24_spill] sm:$0xff]  ;;  %vm4419_vm14 = vcmp.eq.f32.partialorder %v10002_v63, inf }
 0x398   :  { %v4360_v24 = vsel %vm4359_vm15, %v9970_v59, %v4358_v7  ;;  %v4370_v51 = vmul.f32 %v4369_v37, %v9974_v9  ;;  %v4392_v52 = vsub.f32 1.5, %v4391_v41  ;;  %v4415_v15 = vmul.f32 0.5, %v4414_v26 }
 0x399   :  { %v4363_v30 = vsel %vm4361_vm10, %v4362_v0, %v4360_v24  ;;  %v4381_v50 = vmul.f32 %v5224_v22, %v4380_v11  ;;  %v4404_v42 = vsub.f32 1.5, %v4403_v39  ;;  %v4410_v59 = vand.u32 2147483648, %v10000_v10  ;;  %v12151_v22 = vld [vmem:[#allocation98_spill] sm:$0xff] }
 0x39a   :  { %v4800_v23 = vperm.slane %v4363_v30, %v12150_v27  ;;  %v4372_v48 = vsel %vm4371_vm13, %v9974_v9, %v4370_v51  ;;  %v4393_v7 = vmul.f32 %v5226_v34, %v4392_v52  ;;  %v4416_v18 = vsub.f32 1.5, %v4415_v15 }
 0x39b   :  { %v4375_v37 = vsel %vm4373_vm9, %v4374_v62, %v4372_v48  ;;  %v4382_v41 = vmul.f32 %v4381_v50, %v9995_v3  ;;  %v4405_v26 = vmul.f32 %v5228_v31, %v4404_v42  ;;  %vm4421_vm15 = vcmp.eq.f32.partialorder %v10002_v63, 0.0 }
 0x39c   :  { %v4801_v0 = vperm.slane %v4375_v37, %v12151_v22  ;;  %v4394_v11 = vmul.f32 %v4393_v7, %v9997_v8  ;;  %v4417_v39 = vmul.f32 %v5230_v61, %v4416_v18  ;;  %v4422_v48 = vand.u32 2147483648, %v10002_v63  ;;  %v872_v61 = vpop.xlane.xlu2 %871 }
 0x39d   :  { %v4384_v51 = vsel %vm4383_vm1, %v9995_v3, %v4382_v41  ;;  %v4406_v34 = vmul.f32 %v4405_v26, %v10000_v10  ;;  %vm3915_vm10 = vcmp.eq.f32.partialorder %v9862_v19, inf  ;;  %v3945_v24 = vmul.f32 %v10045_v14, %v9977_v54 }
 0x39e   :  { %v4802_v9 = vsel %vm11471_vm0, %v4801_v0, %v4800_v23  ;;  %v4387_v62 = vsel %vm4385_vm5, %v4386_v33, %v4384_v51  ;;  %v4396_v18 = vsel %vm4395_vm2, %v9997_v8, %v4394_v11  ;;  %v4418_v31 = vmul.f32 %v4417_v39, %v10002_v63  ;;  %v841_v33 = vpop.xlane.xlu1 %840  ;;  %v10149_v0 = vpop.xlane.xlu0 %4257 }
 0x39f   :  { %v4803_v52 = vperm.slane %v4387_v62, %v12150_v27  ;;  %v4399_v15 = vsel %vm4397_vm3, %v4398_v47, %v4396_v18  ;;  %v4408_v3 = vsel %vm4407_vm7, %v10000_v10, %v4406_v34  ;;  %v12152_v8 = vand.u32 2147483648, %v9715_v35 }
 0x3a0   :  { %v4804_v50 = vperm.slane %v4399_v15, %v12151_v22  ;;  %v4411_v42 = vsel %vm4409_vm11, %v4410_v59, %v4408_v3  ;;  %v4420_v23 = vsel %vm4419_vm14, %v10002_v63, %v4418_v31  ;;  %v3904_v7 = vsel %vm3903_vm12, %v9736_v36, %v10022_v56 }
 0x3a1   :  { %v10134_v47 = vsel %vm3893_vm8, %v12152_v8, %v10036_v53  ;;  %v4806_v37 = vperm.slane %v4411_v42, %v12150_v27  ;;  %v4423_v10 = vsel %vm4421_vm15, %v4422_v48, %v4420_v23  ;;  %v12154_v41 = vsub.f32 1.5, %v10007_v5 }
 0x3a2   :  { %12153 = vst [vmem:[#allocation119_spill] sm:$0xff] %v10134_v47  ;;  %v3935_v59 = vmul.f32 0.5, %v10049_v28  ;;  %v4805_v35 = vsel %vm11471_vm0, %v4804_v50, %v4803_v52  ;;  %v4807_v53 = vperm.slane %v4423_v10, %v12151_v22  ;;  %v12155_v11 = vsub.f32 1.5, %v10013_v25  ;;  %v12216_v47 = vld [vmem:[#allocation23_spill] sm:$0xff] }
 0x3a3   :  { %v3913_v26 = vmul.f32 %v9905_v4, %v12154_v41  ;;  %vm3927_vm13 = vcmp.eq.f32.partialorder %v9868_v20, inf  ;;  %v3946_v63 = vmul.f32 %v10045_v14, %v3945_v24  ;;  %v4842_v5 = vsel %vm11470_vm4, %v4805_v35, %v4802_v9 }
 0x3a4   :  { %v3925_v56 = vmul.f32 %v9913_v17, %v12155_v11  ;;  %v12156_v28 = vand.u32 2147483648, %v9736_v36  ;;  %v3957_v25 = vmul.f32 %v10064_v2, %v10010_v12  ;;  %v4808_v17 = vsel %vm11471_vm0, %v4807_v53, %v4806_v37  ;;  %v2921_v23 = vpop.xlane.xlu2 %2920 }
 0x3a5   :  { %vm3917_vm9 = vcmp.eq.f32.partialorder %v9862_v19, 0.0  ;;  %vm3929_vm1 = vcmp.eq.f32.partialorder %v9868_v20, 0.0  ;;  %v3930_v51 = vand.u32 2147483648, %v9868_v20  ;;  %v10172_v34 = vadd.f32 1e-09, %v9885_v32 }
 0x3a6   :  { %v10163_v39 = vsel %vm3905_vm6, %v12156_v28, %v3904_v7  ;;  %vm12158_vm5 = vcmask 1042434   ;;  %v3914_v36 = vmul.f32 %v3913_v26, %v9862_v19  ;;  %v3936_v9 = vsub.f32 1.5, %v3935_v59 }
 0x3a7   :  { %12157 = vst [vmem:[#allocation26_spill] sm:$0xff] %v10163_v39  ;;  %v10175_v48 = vsel %vm12158_vm5, %v4808_v17, %v4842_v5  ;;  %v873_v62 = vrot.slane %v872_v61, 4  ;;  %v842_v18 = vrot.slane %v841_v33, 4  ;;  %v3926_v31 = vmul.f32 %v3925_v56, %v9868_v20 }
 0x3a8   :  { %12159 = vst [vmem:[#allocation110_spill] sm:$0xff] %v10175_v48  ;;  %v3947_v24 = vmul.f32 0.5, %v3946_v63  ;;  %v3969_v52 = vmul.f32 %v10067_v46, %v10018_v16  ;;  %v10182_v15 = vadd.f32 1e-09, %v10040_v44  ;;  %v3958_v32 = vmul.f32 %v10064_v2, %v3957_v25  ;;  %v2890_v44 = vpop.xlane.xlu1 %2889 }
 0x3a9   :  { %v10186_v3 = vadd.f32 1e-09, %v9895_v6  ;;  %v874_v50 = vadd.f32 %v873_v62, %v872_v61  ;;  %v843_v42 = vadd.f32 %v842_v18, %v841_v33  ;;  %vm3939_vm2 = vcmp.eq.f32.partialorder %v9902_v60, inf  ;;  %v10199_v61 = vpop.xlane.xlu0 %4182 }
 0x3aa   :  { %5235 = vrsqrt.f32 %v10172_v34  ;;  %v10193_v7 = vadd.f32 1e-09, %v9910_v57  ;;  %v3916_v37 = vsel %vm3915_vm10, %v9862_v19, %v3914_v36  ;;  %v3937_v6 = vmul.f32 %v9953_v1, %v3936_v9 }
 0x3ab   :  { %v875_v33 = vrot.slane %v874_v50, 2  ;;  %v844_v10 = vrot.slane %v843_v42, 2  ;;  %v3928_v41 = vsel %vm3927_vm13, %v9868_v20, %v3926_v31  ;;  %v3948_v26 = vsub.f32 1.5, %v3947_v24 }
 0x3ac   :  { %5237 = vrsqrt.f32 %v10182_v15  ;;  %v2922_v57 = vrot.slane %v2921_v23, 4  ;;  %v3959_v59 = vmul.f32 0.5, %v3958_v32  ;;  %v3970_v35 = vmul.f32 %v10067_v46, %v3969_v52 }
 0x3ad   :  { %5239 = vrsqrt.f32 %v10186_v3  ;;  %v2891_v53 = vrot.slane %v2890_v44, 4  ;;  %v845_v11 = vadd.f32 %v844_v10, %v843_v42  ;;  %v876_v56 = vadd.f32 %v875_v33, %v874_v50 }
 0x3ae   :  { %5241 = vrsqrt.f32 %v10193_v7  ;;  %v2923_v1 = vadd.f32 %v2922_v57, %v2921_v23  ;;  %v3938_v63 = vmul.f32 %v3937_v6, %v9902_v60  ;;  %v3942_v5 = vand.u32 2147483648, %v9902_v60 }
 0x3af   :  { %v10211_v28 = vadd.f32 1e-09, %v10074_v21  ;;  %v2892_v25 = vadd.f32 %v2891_v53, %v2890_v44  ;;  %v3949_v36 = vmul.f32 %v10045_v14, %v3948_v26  ;;  %v10217_v9 = vadd.f32 1e-09, %v10078_v49 }
 0x3b0   :  { %v10213_v17 = vpop.eup %5235  ;;  %v846_v62 = vrot.slane %v845_v11, 1  ;;  %v877_v18 = vrot.slane %v876_v56, 1  ;;  %v12160_v31 = vand.u32 2147483648, %v9862_v19  ;;  %v10227_v21 = vsel %vm3929_vm1, %v3930_v51, %v3928_v41 }
 0x3b1   :  { %12162 = vst [vmem:[#allocation51_spill] sm:$0xff] %v10227_v21  ;;  %v3960_v52 = vsub.f32 1.5, %v3959_v59  ;;  %v3971_v32 = vmul.f32 0.5, %v3970_v35  ;;  %v2924_v14 = vrot.slane %v2923_v1, 2  ;;  %v2893_v42 = vrot.slane %v2892_v25, 2  ;;  %v4188_v41 = vpop.xlane.xlu0 %4187 }
 0x3b2   :  { %v10223_v24 = vsel %vm3917_vm9, %v12160_v31, %v3916_v37  ;;  %v10229_v50 = vpop.eup %5237  ;;  %v847_v49 = vadd.f32 %v846_v62, %v845_v11  ;;  %v878_v23 = vadd.f32 %v877_v18, %v876_v56  ;;  %v3940_v19 = vsel %vm3939_vm2, %v9902_v60, %v3938_v63  ;;  %v12180_v37 = vld [vmem:[#allocation39_spill] sm:$0xff]  ;;  %v12190_v18 = vld [vmem:[#allocation74_spill] sm:$0xff] }
 0x3b3   :  { %12161 = vst [vmem:[#allocation126_spill] sm:$0xff] %v10223_v24  ;;  %v10231_v44 = vpop.eup %5239  ;;  %vm3941_vm3 = vcmp.eq.f32.partialorder %v9902_v60, 0.0  ;;  %v3981_v20 = vmul.f32 %v10213_v17, %v10172_v34  ;;  %5243 = vrsqrt.f32 %v10211_v28  ;;  %v3950_v6 = vmul.f32 %v3949_v36, %v9977_v54 }
 0x3b4   :  { %v10240_v51 = vpop.eup %5241  ;;  %vm3951_vm8 = vcmp.eq.f32.partialorder %v9977_v54, inf  ;;  %5245 = vrsqrt.f32 %v10217_v9  ;;  %4914 = vpush %v847_v49  ;;  %vm3953_vm12 = vcmp.eq.f32.partialorder %v9977_v54, 0.0  ;;  %v3972_v33 = vsub.f32 1.5, %v3971_v32 }
 0x3b5   :  { %v4545_v10 = vmul.f32 %v10229_v50, %v10182_v15  ;;  %4916 = vpush %v878_v23  ;;  %v10252_v26 = vsel %vm3941_vm3, %v3942_v5, %v3940_v19  ;;  %v3961_v57 = vmul.f32 %v10064_v2, %v3960_v52  ;;  %v2894_v59 = vadd.f32 %v2893_v42, %v2892_v25 }
 0x3b6   :  { %12163 = vst [vmem:[#allocation54_spill] sm:$0xff] %v10252_v26  ;;  %v2925_v35 = vadd.f32 %v2924_v14, %v2923_v1  ;;  %v3954_v53 = vand.u32 2147483648, %v9977_v54  ;;  %v3982_v11 = vmul.f32 %v10213_v17, %v3981_v20  ;;  %v3993_v56 = vmul.f32 %v10231_v44, %v10186_v3  ;;  %v4174_v20 = vpop.xlane.xlu2 %4173  ;;  %v12185_v14 = vld [vmem:[#allocation62_spill] sm:$0xff]  ;;  %v12209_v26 = vld [vmem:[#allocation84_spill] sm:$0xff] }
 0x3b7   :  { %v4005_v63 = vmul.f32 %v10240_v51, %v10193_v7  ;;  %v3952_v36 = vsel %vm3951_vm8, %v9977_v54, %v3950_v6  ;;  %vm3963_vm7 = vcmp.eq.f32.partialorder %v10010_v12, inf  ;;  %v3966_v2 = vand.u32 2147483648, %v10010_v12  ;;  %v12167_v54 = vld [vmem:[#allocation79_spill] sm:$0xff] }
 0x3b8   :  { %v10267_v1 = vadd.f32 1e-09, %v10149_v0  ;;  %v3973_v62 = vmul.f32 %v10067_v46, %v3972_v33  ;;  %v4546_v31 = vmul.f32 %v10229_v50, %v4545_v10  ;;  %v3962_v32 = vmul.f32 %v3961_v57, %v10010_v12  ;;  %v12165_v10 = vld [vmem:[#allocation78_spill] sm:$0xff] }
 0x3b9   :  { %v10269_v5 = vpop.eup %5243  ;;  %v2895_v42 = vrot.slane %v2894_v59, 1  ;;  %v2926_v0 = vrot.slane %v2925_v35, 1  ;;  %v10282_v49 = vsel %vm3953_vm12, %v3954_v53, %v3952_v36  ;;  %vm3965_vm6 = vcmp.eq.f32.partialorder %v10010_v12, 0.0 }
 0x3ba   :  { %v10276_v52 = vpop.eup %5245  ;;  %12164 = vst [vmem:[#allocation46_spill] sm:$0xff] %v10282_v49  ;;  %v3983_v23 = vmul.f32 0.5, %v3982_v11  ;;  %v3994_v46 = vmul.f32 %v10231_v44, %v3993_v56  ;;  %v4006_v19 = vmul.f32 %v10240_v51, %v4005_v63  ;;  %vm3975_vm11 = vcmp.eq.f32.partialorder %v10018_v16, inf }
 0x3bb   :  { %5247 = vrsqrt.f32 %v10267_v1  ;;  %v2896_v6 = vadd.f32 %v2895_v42, %v2894_v59  ;;  %v2927_v33 = vadd.f32 %v2926_v0, %v2925_v35  ;;  %v12166_v57 = vperm.slane %v12165_v10, %v12118_v38  ;;  %v12170_v35 = vld [vmem:[#allocation63_spill] sm:$0xff]  ;;  %v12172_v0 = vld [vmem:[#allocation85_spill] sm:$0xff] }
 0x3bc   :  { %v12168_v53 = vperm.slane %v12167_v54, %v12119_v58  ;;  %vm12169_vm14 = vcmask 130112   ;;  %v4547_v11 = vmul.f32 0.5, %v4546_v31  ;;  %v4581_v56 = vmul.f32 %v10276_v52, %v10217_v9 }
 0x3bd   :  { %v4557_v63 = vmul.f32 %v10269_v5, %v10211_v28  ;;  %v10301_v25 = vadd.f32 1e-09, %v10199_v61  ;;  %v10303_v59 = vadd.f32 1e-09, %v4188_v41  ;;  %4918 = vpush %v2896_v6  ;;  %v12171_v42 = vperm.slane %v12170_v35, %v12118_v38  ;;  %vm12174_vm15 = vmmov %vm12169_vm14  ;;  %v12182_v6 = vld [vmem:[#allocation22_spill] sm:$0xff] }
 0x3be   :  { %v2709_v36 = vsel %vm12169_vm14, %v12168_v53, %v12166_v57  ;;  %v12173_v10 = vperm.slane %v12172_v0, %v12119_v58  ;;  %v12175_v57 = vld [vmem:[#allocation45_spill] sm:$0xff]  ;;  %v12177_v53 = vld [vmem:[#allocation92_spill] sm:$0xff]  ;;  %vm12179_vm10 = vmmov %vm12169_vm14  ;;  %v12181_v41 = vperm.slane %v12180_v37, %v12118_v38  ;;  %v12183_v8 = vperm.slane %v12182_v6, %v12119_v58  ;;  %4920 = vpush %v2927_v33 }
 0x3bf   :  { %v12176_v54 = vperm.slane %v12175_v57, %v12118_v38  ;;  %v12178_v60 = vperm.slane %v12177_v53, %v12119_v58  ;;  %vm12184_vm13 = vmmov %vm12179_vm10  ;;  %v3984_v4 = vsub.f32 1.5, %v3983_v23  ;;  %v3995_v0 = vmul.f32 0.5, %v3994_v46  ;;  %v4272_v57 = vpop.xlane.xlu1 %4271  ;;  %v12192_v23 = vld [vmem:[#allocation75_spill] sm:$0xff]  ;;  %v12196_v33 = vld [vmem:[#allocation61_spill] sm:$0xff] }
 0x3c0   :  { %v2712_v31 = vsel %vm12174_vm15, %v12173_v10, %v12171_v42  ;;  %v2700_v35 = vsel %vm12184_vm13, %v12183_v8, %v12181_v41  ;;  %v4007_v30 = vmul.f32 0.5, %v4006_v19  ;;  %v4295_v42 = vpop.xlane.xlu0 %4294  ;;  %v10326_v10 = vadd.f32 1e-09, %v4174_v20  ;;  %vm12189_vm9 = vmmov %vm12179_vm10  ;;  %v12195_v20 = vld [vmem:[#allocation58_spill] sm:$0xff] }
 0x3c1   :  { %v2715_v61 = vsel %vm12179_vm10, %v12178_v60, %v12176_v54  ;;  %v2733_v53 = vsel %vm11470_vm4, %v2712_v31, %v2709_v36  ;;  %v12186_v60 = vperm.slane %v12185_v14, %v12118_v38  ;;  %v12187_v54 = vld [vmem:[#allocation77_spill] sm:$0xff]  ;;  %v12191_v8 = vperm.slane %v12190_v18, %v12118_v38  ;;  %vm12194_vm1 = vmmov %vm12189_vm9 }
 0x3c2   :  { %v12188_v37 = vperm.slane %v12187_v54, %v12119_v58  ;;  %v12193_v46 = vperm.slane %v12192_v23, %v12119_v58  ;;  %vm12197_vm5 = vcmask 1043459   ;;  %v4548_v31 = vsub.f32 1.5, %v4547_v11 }
 0x3c3   :  { %v2727_v36 = vsel %vm12197_vm5, %v12196_v33, %v12195_v20  ;;  %v4582_v14 = vmul.f32 %v10276_v52, %v4581_v56  ;;  %v4558_v41 = vmul.f32 %v10269_v5, %v4557_v63  ;;  %5249 = vrsqrt.f32 %v10301_v25 }
 0x3c4   :  { %v2703_v6 = vsel %vm12189_vm9, %v12188_v37, %v12186_v60  ;;  %v2706_v19 = vsel %vm12194_vm1, %v12193_v46, %v12191_v8  ;;  %v10349_v60 = vpop.eup %5247  ;;  %5251 = vrsqrt.f32 %v10303_v59  ;;  %v10352_v18 = vadd.f32 1e-09, %v4295_v42  ;;  %v12199_v37 = vld [vmem:[#allocation60_spill] sm:$0xff] }
 0x3c5   :  { %vm12198_vm2 = vcmask 1042434   ;;  %vm12200_vm3 = vcmask 1044484   ;;  %v3964_v11 = vsel %vm3963_vm7, %v10010_v12, %v3962_v32  ;;  %v3974_v56 = vmul.f32 %v3973_v62, %v10018_v16 }
 0x3c6   :  { %v10355_v54 = vsel %vm12198_vm2, %v2715_v61, %v2733_v53  ;;  %v2728_v8 = vsel %vm12200_vm3, %v12199_v37, %v2727_v36  ;;  %v3996_v63 = vsub.f32 1.5, %v3995_v0  ;;  %5253 = vrsqrt.f32 %v10326_v10  ;;  %v12201_v53 = vld [vmem:[#allocation69_spill] sm:$0xff] }
 0x3c7   :  { %v3985_v23 = vmul.f32 %v10213_v17, %v3984_v4  ;;  %vm3987_vm8 = vcmp.eq.f32.partialorder %v10172_v34, inf  ;;  %vm3999_vm12 = vcmp.eq.f32.partialorder %v10186_v3, inf  ;;  %v4008_v42 = vsub.f32 1.5, %v4007_v30  ;;  %v4281_v30 = vpop.xlane.xlu2 %4280 }
 0x3c8   :  { %vm1942_vm14 = vcmp.eq.f32.partialorder %v12201_v53, 0.0  ;;  %v4583_v46 = vmul.f32 0.5, %v4582_v14  ;;  %v4569_v32 = vmul.f32 %v10349_v60, %v10267_v1  ;;  %vm12202_vm7 = vcmask 1045509  }
 0x3c9   :  { %v2729_v62 = vsel %vm12202_vm7, %v2700_v35, %v2728_v8  ;;  %vm11469_vm15 = vcmask 1047559   ;;  %v10376_v4 = vsel %vm3965_vm6, %v3966_v2, %v3964_v11  ;;  %v4549_v17 = vmul.f32 %v10229_v50, %v4548_v31  ;;  %v10380_v20 = vpop.eup %5249 }
 0x3ca   :  { %12203 = vst [vmem:[#allocation47_spill] sm:$0xff] %v10376_v4  ;;  %v4559_v0 = vmul.f32 0.5, %v4558_v41  ;;  %5255 = vrsqrt.f32 %v10352_v18  ;;  %v10385_v33 = vsel %vm3975_vm11, %v10018_v16, %v3974_v56  ;;  %v3997_v35 = vmul.f32 %v10231_v44, %v3996_v63  ;;  %v10391_v2 = vpop.eup %5251  ;;  %v4300_v63 = vpop.xlane.xlu0 %4299 }
 0x3cb   :  { %v10388_v36 = vadd.f32 1e-09, %v4272_v57  ;;  %vm12204_vm10 = vcmask 1046534   ;;  %v4009_v50 = vmul.f32 %v10240_v51, %v4008_v42  ;;  %vm4011_vm6 = vcmp.eq.f32.partialorder %v10193_v7, inf }
 0x3cc   :  { %v2730_v12 = vsel %vm12204_vm10, %v2703_v6, %v2729_v62  ;;  %v10399_v41 = vpop.eup %5253  ;;  %v3986_v37 = vmul.f32 %v3985_v23, %v10172_v34  ;;  %v4584_v44 = vsub.f32 1.5, %v4583_v46  ;;  %v4570_v57 = vmul.f32 %v10349_v60, %v4569_v32  ;;  %v4197_v6 = vpop.xlane.xlu1 %4196 }
 0x3cd   :  { %v10397_v14 = vsel %vm11469_vm15, %v2706_v19, %v2730_v12  ;;  %v10403_v8 = vadd.f32 1e-09, %v4281_v30  ;;  %v4550_v11 = vmul.f32 %v4549_v17, %v10182_v15  ;;  %v4560_v51 = vsub.f32 1.5, %v4559_v0 }
 0x3ce   :  { %12205 = vst [vmem:[#allocation88_spill] sm:$0xff] %v10397_v14  ;;  %v4437_v56 = vmul.f32 %v10380_v20, %v10301_v25  ;;  %v10408_v42 = vadd.f32 1e-09, %v4197_v6  ;;  %v3998_v19 = vmul.f32 %v3997_v35, %v10186_v3  ;;  %vm4551_vm11 = vcmp.eq.f32.partialorder %v10182_v15, inf }
 0x3cf   :  { %v4449_v23 = vmul.f32 %v10391_v2, %v10303_v59  ;;  %5257 = vrsqrt.f32 %v10388_v36  ;;  %v4010_v32 = vmul.f32 %v4009_v50, %v10193_v7  ;;  %v4554_v62 = vand.u32 2147483648, %v10182_v15 }
 0x3d0   :  { %v10415_v46 = vpop.eup %5255  ;;  %v4425_v17 = vmul.f32 %v10399_v41, %v10326_v10  ;;  %5259 = vrsqrt.f32 %v10408_v42  ;;  %v4585_v0 = vmul.f32 %v10276_v52, %v4584_v44  ;;  %v4571_v30 = vmul.f32 0.5, %v4570_v57 }
 0x3d1   :  { %v10423_v35 = vadd.f32 1e-09, %v4300_v63  ;;  %5261 = vrsqrt.f32 %v10403_v8  ;;  %v4552_v12 = vsel %vm4551_vm11, %v10182_v15, %v4550_v11  ;;  %vm4553_vm13 = vcmp.eq.f32.partialorder %v10182_v15, 0.0 }
 0x3d2   :  { %v4561_v50 = vmul.f32 %v10269_v5, %v4560_v51  ;;  %v4438_v6 = vmul.f32 %v10380_v20, %v4437_v56  ;;  %v10433_v31 = vsel %vm3987_vm8, %v10172_v34, %v3986_v37  ;;  %v10438_v52 = vsel %vm3999_vm12, %v10186_v3, %v3998_v19  ;;  %v12206_v37 = vld [vmem:[#allocation81_spill] sm:$0xff] }
 0x3d3   :  { %v4450_v44 = vmul.f32 %v10391_v2, %v4449_v23  ;;  %v4629_v57 = vmul.f32 %v10415_v46, %v10352_v18  ;;  %v10446_v15 = vsel %vm4011_vm6, %v10193_v7, %v4010_v32  ;;  %vm4563_vm9 = vcmp.eq.f32.partialorder %v10211_v28, inf }
 0x3d4   :  { %v4426_v5 = vmul.f32 %v10399_v41, %v4425_v17  ;;  %v12207_v11 = vand.u32 2147483648, %v12201_v53  ;;  %v10459_v63 = vsel %vm4553_vm13, %v4554_v62, %v4552_v12  ;;  %v4586_v19 = vmul.f32 %v4585_v0, %v10217_v9 }
 0x3d5   :  { %v10457_v56 = vpop.eup %5257  ;;  %12208 = vst [vmem:[#allocation124_spill] sm:$0xff] %v10459_v63  ;;  %v4572_v23 = vsub.f32 1.5, %v4571_v30  ;;  %5263 = vrsqrt.f32 %v10423_v35  ;;  %vm4587_vm1 = vcmp.eq.f32.partialorder %v10217_v9, inf  ;;  %v4562_v17 = vmul.f32 %v4561_v50, %v10211_v28 }
 0x3d6   :  { %v10455_v51 = vsel %vm1942_vm14, %v12207_v11, %v12206_v37  ;;  %v10463_v32 = vpop.eup %5259  ;;  %vm4565_vm5 = vcmp.eq.f32.partialorder %v10211_v28, 0.0  ;;  %v4439_v53 = vmul.f32 0.5, %v4438_v6  ;;  %vm4589_vm2 = vcmp.eq.f32.partialorder %v10217_v9, 0.0 }
 0x3d7   :  { %v10468_v37 = vpop.eup %5261  ;;  %v4590_v62 = vand.u32 2147483648, %v10217_v9  ;;  %v4451_v12 = vmul.f32 0.5, %v4450_v44  ;;  %v4630_v0 = vmul.f32 %v10415_v46, %v4629_v57  ;;  %v4566_v11 = vand.u32 2147483648, %v10211_v28 }
 0x3d8   :  { %v4427_v61 = vmul.f32 0.5, %v4426_v5  ;;  %v4593_v50 = vmul.f32 %v10457_v56, %v10388_v36  ;;  %v4588_v6 = vsel %vm4587_vm1, %v10217_v9, %v4586_v19  ;;  %v4573_v48 = vmul.f32 %v10349_v60, %v4572_v23  ;;  %v4225_v19 = vpop.xlane.xlu0 %4224  ;;  %v12212_v9 = vld [vmem:[#allocation83_spill] sm:$0xff] }
 0x3d9   :  { %vm4575_vm3 = vcmp.eq.f32.partialorder %v10267_v1, inf  ;;  %v4461_v44 = vmul.f32 %v10463_v32, %v10408_v42  ;;  %v4564_v57 = vsel %vm4563_vm9, %v10211_v28, %v4562_v17  ;;  %vm4577_vm8 = vcmp.eq.f32.partialorder %v10267_v1, 0.0  ;;  %v4286_v17 = vpop.xlane.xlu2 %4285 }
 0x3da   :  { %v4578_v5 = vand.u32 2147483648, %v10267_v1  ;;  %v4440_v30 = vsub.f32 1.5, %v4439_v53  ;;  %v4605_v14 = vmul.f32 %v10468_v37, %v10403_v8  ;;  %vm4443_vm12 = vcmp.eq.f32.partialorder %v10301_v25, inf }
 0x3db   :  { %v10490_v63 = vpop.eup %5263  ;;  %v4452_v23 = vsub.f32 1.5, %v4451_v12  ;;  %v4631_v4 = vmul.f32 0.5, %v4630_v0  ;;  %v10494_v49 = vadd.f32 1e-09, %v4225_v19  ;;  %vm1954_vm14 = vcmp.eq.f32.partialorder %v12209_v26, 0.0 }
 0x3dc   :  { %v10499_v53 = vsel %vm4589_vm2, %v4590_v62, %v4588_v6  ;;  %vm4455_vm7 = vcmp.eq.f32.partialorder %v10303_v59, inf  ;;  %v4428_v21 = vsub.f32 1.5, %v4427_v61  ;;  %v4594_v24 = vmul.f32 %v10457_v56, %v4593_v50  ;;  %v12213_v6 = vld [vmem:[#allocation82_spill] sm:$0xff] }
 0x3dd   :  { %12210 = vst [vmem:[#allocation65_spill] sm:$0xff] %v10499_v53  ;;  %v10503_v39 = vadd.f32 1e-09, %v4286_v17  ;;  %v10507_v12 = vsel %vm4565_vm5, %v4566_v11, %v4564_v57  ;;  %v4574_v0 = vmul.f32 %v4573_v48, %v10267_v1  ;;  %v4462_v19 = vmul.f32 %v10463_v32, %v4461_v44  ;;  %v4202_v57 = vpop.xlane.xlu1 %4201 }
 0x3de   :  { %12211 = vst [vmem:[#allocation25_spill] sm:$0xff] %v10507_v12  ;;  %5265 = vrsqrt.f32 %v10494_v49  ;;  %vm1966_vm10 = vcmp.eq.f32.partialorder %v12212_v9, 0.0  ;;  %v4441_v62 = vmul.f32 %v10380_v20, %v4440_v30  ;;  %vm4445_vm6 = vcmp.eq.f32.partialorder %v10301_v25, 0.0 }
 0x3df   :  { %v4641_v61 = vmul.f32 %v10490_v63, %v10423_v35  ;;  %v4606_v50 = vmul.f32 %v10468_v37, %v4605_v14  ;;  %5267 = vrsqrt.f32 %v10503_v39  ;;  %v4453_v28 = vmul.f32 %v10391_v2, %v4452_v23 }
 0x3e0   :  { %vm4457_vm11 = vcmp.eq.f32.partialorder %v10303_v59, 0.0  ;;  %v4458_v48 = vand.u32 2147483648, %v10303_v59  ;;  %v4632_v11 = vsub.f32 1.5, %v4631_v4  ;;  %vm1978_vm13 = vcmp.eq.f32.partialorder %v12213_v6, 0.0 }
 0x3e1   :  { %v4429_v44 = vmul.f32 %v10399_v41, %v4428_v21  ;;  %v4595_v14 = vmul.f32 0.5, %v4594_v24  ;;  %vm4635_vm9 = vcmp.eq.f32.partialorder %v10352_v18, inf  ;;  %v4638_v2 = vand.u32 2147483648, %v10352_v18 }
 0x3e2   :  { %v4463_v23 = vmul.f32 0.5, %v4462_v19  ;;  %v10530_v17 = vadd.f32 1e-09, %v4202_v57  ;;  %v4576_v4 = vsel %vm4575_vm3, %v10267_v1, %v4574_v0  ;;  %v4442_v20 = vmul.f32 %v4441_v62, %v10301_v25 }
 0x3e3   :  { %v4642_v60 = vmul.f32 %v10490_v63, %v4641_v61  ;;  %v4607_v30 = vmul.f32 0.5, %v4606_v50  ;;  %v4454_v24 = vmul.f32 %v4453_v28, %v10303_v59  ;;  %v4633_v21 = vmul.f32 %v10415_v46, %v4632_v11 }
 0x3e4   :  { %v10537_v53 = vpop.eup %5265  ;;  %vm4431_vm1 = vcmp.eq.f32.partialorder %v10326_v10, inf  ;;  %5269 = vrsqrt.f32 %v10530_v17  ;;  %vm4637_vm5 = vcmp.eq.f32.partialorder %v10352_v18, 0.0  ;;  %v4430_v0 = vmul.f32 %v4429_v44, %v10326_v10 }
 0x3e5   :  { %v10543_v41 = vpop.eup %5267  ;;  %vm4433_vm2 = vcmp.eq.f32.partialorder %v10326_v10, 0.0  ;;  %v4596_v19 = vsub.f32 1.5, %v4595_v14  ;;  %v4509_v62 = vmul.f32 %v10537_v53, %v10494_v49  ;;  %v10552_v61 = vsel %vm4577_vm8, %v4578_v5, %v4576_v4  ;;  %v12214_v4 = vld [vmem:[#allocation19_spill] sm:$0xff]  ;;  %s10677_s9 = spop %4914 }
 0x3e6   :  { %v4434_v46 = vand.u32 2147483648, %v10326_v10  ;;  %v4464_v50 = vsub.f32 1.5, %v4463_v23  ;;  %v4617_v28 = vmul.f32 %v10543_v41, %v10503_v39  ;;  %v4444_v11 = vsel %vm4443_vm12, %v10301_v25, %v4442_v20  ;;  %s849_s29 = smul.f32 0.0013020834, %s10677_s9  ;;  %s10823_s11 = spop %4916 }
 0x3e7   :  { %v4643_v44 = vmul.f32 0.5, %v4642_v60  ;;  %v4608_v57 = vsub.f32 1.5, %v4607_v30  ;;  %v4510_v14 = vmul.f32 %v10537_v53, %v4509_v62  ;;  %v4456_v1 = vsel %vm4455_vm7, %v10303_v59, %v4454_v24  ;;  %v12219_v59 = vld [vmem:[#allocation17_spill] sm:$0xff]  ;;  %s880_s12 = smul.f32 0.0013020834, %s10823_s11 }
 0x3e8   :  { %v4634_v5 = vmul.f32 %v4633_v21, %v10352_v18  ;;  %v12215_v23 = vand.u32 2147483648, %v12209_v26  ;;  %v12217_v20 = vand.u32 2147483648, %v12212_v9  ;;  %v4432_v30 = vsel %vm4431_vm1, %v10326_v10, %v4430_v0  ;;  %s10726_s30 = smax.f32 %s5492_s5, %s849_s29 }
 0x3e9   :  { %v4597_v24 = vmul.f32 %v10457_v56, %v4596_v19  ;;  %vm4599_vm3 = vcmp.eq.f32.partialorder %v10388_v36, inf  ;;  %v4618_v21 = vmul.f32 %v10543_v41, %v4617_v28  ;;  %v4465_v9 = vmul.f32 %v10463_v32, %v4464_v50  ;;  %v4230_v50 = vpop.xlane.xlu0 %4229  ;;  %s881_s1 = smax.f32 %s5492_s5, %s880_s12 }
 0x3ea   :  { %v10570_v12 = vsel %vm1954_vm14, %v12215_v23, %v12214_v4  ;;  %v10577_v60 = vsel %vm1966_vm10, %v12217_v20, %v12216_v47  ;;  %v5270_v26 = vpop.eup %5269  ;;  %v12218_v4 = vand.u32 2147483648, %v10301_v25  ;;  %v4511_v23 = vmul.f32 0.5, %v4510_v14 }
 0x3eb   :  { %v10594_v0 = vsel %vm4457_vm11, %v4458_v48, %v4456_v1  ;;  %vm4601_vm8 = vcmp.eq.f32.partialorder %v10388_v36, 0.0  ;;  %v4644_v56 = vsub.f32 1.5, %v4643_v44  ;;  %v4609_v19 = vmul.f32 %v10468_v37, %v4608_v57 }
 0x3ec   :  { %v4447_v47 = vsel %vm4445_vm6, %v12218_v4, %v4444_v11  ;;  %v4473_v28 = vmul.f32 %v5270_v26, %v10530_v17  ;;  %v4636_v20 = vsel %vm4635_vm9, %v10352_v18, %v4634_v5  ;;  %v4435_v25 = vsel %vm4433_vm2, %v4434_v46, %v4432_v30 }
 0x3ed   :  { %v4602_v32 = vand.u32 2147483648, %v10388_v36  ;;  %v12220_v48 = vand.u32 2147483648, %v12213_v6  ;;  %v4598_v37 = vmul.f32 %v4597_v24, %v10388_v36  ;;  %v4619_v44 = vmul.f32 0.5, %v4618_v21 }
 0x3ee   :  { %v4474_v57 = vmul.f32 %v5270_v26, %v4473_v28  ;;  %v10613_v14 = vadd.f32 1e-09, %v4230_v50  ;;  %v4810_v1 = vperm.slane %v4447_v47, %v12151_v22  ;;  %v4812_v10 = vperm.slane %v10594_v0, %v12150_v27  ;;  %s10843_s0 = spop %4918 }
 0x3ef   :  { %v10610_v11 = vsel %vm1978_vm13, %v12220_v48, %v12219_v59  ;;  %v4466_v46 = vmul.f32 %v4465_v9, %v10408_v42  ;;  %v4512_v5 = vsub.f32 1.5, %v4511_v23  ;;  %v4645_v30 = vmul.f32 %v10490_v63, %v4644_v56  ;;  %v4211_v56 = vpop.xlane.xlu2 %4210  ;;  %s2898_s13 = smul.f32 0.0013020834, %s10843_s0  ;;  %s10932_s4 = spop %4920 }
 0x3f0   :  { %v4610_v6 = vmul.f32 %v4609_v19, %v10403_v8  ;;  %v4475_v4 = vmul.f32 0.5, %v4474_v57  ;;  %5271 = vrsqrt.f32 %v10613_v14  ;;  %v10624_v24 = vsel %vm4637_vm5, %v4638_v2, %v4636_v20  ;;  %s2929_s15 = smul.f32 0.0013020834, %s10932_s4 }
 0x3f1   :  { %v4809_v21 = vperm.slane %v4435_v25, %v12150_v27  ;;  %vm4647_vm12 = vcmp.eq.f32.partialorder %v10423_v35, inf  ;;  %v4650_v47 = vand.u32 2147483648, %v10423_v35  ;;  %v4600_v9 = vsel %vm4599_vm3, %v10388_v36, %v4598_v37  ;;  %s10897_s14 = smax.f32 %s5492_s5, %s2898_s13 }
 0x3f2   :  { %vm4467_vm14 = vcmp.eq.f32.partialorder %v10408_v42, inf  ;;  %v4620_v63 = vsub.f32 1.5, %v4619_v44  ;;  %v4476_v23 = vsub.f32 1.5, %v4475_v4  ;;  %vm4611_vm7 = vcmp.eq.f32.partialorder %v10403_v8, inf  ;;  %s2930_s7 = smax.f32 %s5492_s5, %s2929_s15 }
 0x3f3   :  { %v4468_v18 = vsel %vm4467_vm14, %v10408_v42, %v4466_v46  ;;  %v4513_v2 = vmul.f32 %v10537_v53, %v4512_v5  ;;  %v10636_v19 = vadd.f32 1e-09, %v4211_v56  ;;  %v4646_v28 = vmul.f32 %v4645_v30, %v10423_v35  ;;  %v4309_v46 = vpop.xlane.xlu1 %4308 }
 0x3f4   :  { %v4612_v20 = vsel %vm4611_vm7, %v10403_v8, %v4610_v6  ;;  %v4614_v25 = vand.u32 2147483648, %v10403_v8  ;;  %v4470_v50 = vand.u32 2147483648, %v10408_v42  ;;  %v10644_v59 = vsel %vm4601_vm8, %v4602_v32, %v4600_v9 }
 0x3f5   :  { %vm4469_vm10 = vcmp.eq.f32.partialorder %v10408_v42, 0.0  ;;  %v4477_v48 = vmul.f32 %v5270_v26, %v4476_v23  ;;  %5273 = vrsqrt.f32 %v10636_v19  ;;  %v10649_v37 = vsel %vm11471_vm0, %v4810_v1, %v4809_v21  ;;  %v12240_v26 = vld [vmem:[#allocation91_spill] sm:$0xff] }
 0x3f6   :  { %v5272_v53 = vpop.eup %5271  ;;  %vm4613_vm6 = vcmp.eq.f32.partialorder %v10403_v8, 0.0  ;;  %v4471_v44 = vsel %vm4469_vm10, %v4470_v50, %v4468_v18  ;;  %v4621_v57 = vmul.f32 %v10543_v41, %v4620_v63  ;;  %v4514_v36 = vmul.f32 %v4513_v2, %v10494_v49 }
 0x3f7   :  { %v10653_v5 = vsel %vm4613_vm6, %v4614_v25, %v4612_v20  ;;  %v4521_v32 = vmul.f32 %v5272_v53, %v10613_v14  ;;  %v10657_v42 = vadd.f32 1e-09, %v4309_v46  ;;  %v10664_v1 = vsel %vm4647_vm12, %v10423_v35, %v4646_v28  ;;  %v4216_v28 = vpop.xlane.xlu2 %4215 }
 0x3f8   :  { %vm4515_vm11 = vcmp.eq.f32.partialorder %v10494_v49, inf  ;;  %vm4517_vm13 = vcmp.eq.f32.partialorder %v10494_v49, 0.0  ;;  %v4813_v8 = vperm.slane %v4471_v44, %v12151_v22  ;;  %v4478_v41 = vmul.f32 %v4477_v48, %v10530_v17 }
 0x3f9   :  { %v4522_v30 = vmul.f32 %v5272_v53, %v4521_v32  ;;  %5275 = vrsqrt.f32 %v10657_v42  ;;  %vm2614_vm9 = vcmp.eq.f32.partialorder %v9319_v55, 0.0  ;;  %v4518_v4 = vand.u32 2147483648, %v10494_v49 }
 0x3fa   :  { %v4622_v21 = vmul.f32 %v4621_v57, %v10503_v39  ;;  %vm4623_vm1 = vcmp.eq.f32.partialorder %v10503_v39, inf  ;;  %v4516_v63 = vsel %vm4515_vm11, %v10494_v49, %v4514_v36  ;;  %vm4625_vm5 = vcmp.eq.f32.partialorder %v10503_v39, 0.0 }
 0x3fb   :  { %v5274_v9 = vpop.eup %5273  ;;  %v4626_v23 = vand.u32 2147483648, %v10503_v39  ;;  %v4523_v56 = vmul.f32 0.5, %v4522_v30  ;;  %vm2626_vm2 = vcmp.eq.f32.partialorder %v9327_v40, 0.0  ;;  %vm4479_vm3 = vcmp.eq.f32.partialorder %v10530_v17, inf  ;;  %v4314_v49 = vpop.xlane.xlu1 %4313 }
 0x3fc   :  { %vm4481_vm8 = vcmp.eq.f32.partialorder %v10530_v17, 0.0  ;;  %v4482_v18 = vand.u32 2147483648, %v10530_v17  ;;  %v4485_v2 = vmul.f32 %v5274_v9, %v10636_v19  ;;  %v10691_v20 = vsel %vm11471_vm0, %v4813_v8, %v4812_v10 }
 0x3fd   :  { %v4480_v25 = vsel %vm4479_vm3, %v10530_v17, %v4478_v41  ;;  %v4524_v50 = vsub.f32 1.5, %v4523_v56  ;;  %v10694_v48 = vadd.f32 1e-09, %v4216_v28  ;;  %vm2638_vm12 = vcmp.eq.f32.partialorder %v9335_v13, 0.0 }
 0x3fe   :  { %v10700_v44 = vsel %vm4517_vm13, %v4518_v4, %v4516_v63  ;;  %v4624_v57 = vsel %vm4623_vm1, %v10503_v39, %v4622_v21  ;;  %vm4527_vm14 = vcmp.eq.f32.partialorder %v10613_v14, inf  ;;  %v4486_v0 = vmul.f32 %v5274_v9, %v4485_v2  ;;  %v12223_v39 = vld [vmem:[#allocation21_spill] sm:$0xff] }
 0x3ff   :  { %v5276_v10 = vpop.eup %5275  ;;  %vm2650_vm7 = vcmp.eq.f32.partialorder %v9400_v43, 0.0  ;;  %v4525_v46 = vmul.f32 %v5272_v53, %v4524_v50  ;;  %vm4529_vm10 = vcmp.eq.f32.partialorder %v10613_v14, 0.0  ;;  %v4530_v36 = vand.u32 2147483648, %v10613_v14  ;;  %v4323_v50 = vpop.xlane.xlu2 %4322 }
 0x400   :  { %5277 = vrsqrt.f32 %v10694_v48  ;;  %v10712_v32 = vsel %vm4481_vm8, %v4482_v18, %v4480_v25  ;;  %v4487_v8 = vmul.f32 0.5, %v4486_v0  ;;  %v4653_v41 = vmul.f32 %v5276_v10, %v10657_v42 }
 0x401   :  { %v10715_v30 = vadd.f32 1e-09, %v4314_v49  ;;  %v10721_v53 = vsel %vm4625_vm5, %v4626_v23, %v4624_v57  ;;  %v4526_v21 = vmul.f32 %v4525_v46, %v10613_v14  ;;  %vm4491_vm6 = vcmp.eq.f32.partialorder %v10636_v19, inf }
 0x402   :  { %v4488_v17 = vsub.f32 1.5, %v4487_v8  ;;  %vm4493_vm11 = vcmp.eq.f32.partialorder %v10636_v19, 0.0  ;;  %v4654_v63 = vmul.f32 %v5276_v10, %v4653_v41  ;;  %v4494_v23 = vand.u32 2147483648, %v10636_v19 }
 0x403   :  { %5279 = vrsqrt.f32 %v10715_v30  ;;  %v4662_v56 = vand.u32 2147483648, %v10657_v42  ;;  %v4506_v18 = vand.u32 2147483648, %v10694_v48  ;;  %v4528_v2 = vsel %vm4527_vm14, %v10613_v14, %v4526_v21 }
 0x404   :  { %v4489_v28 = vmul.f32 %v5274_v9, %v4488_v17  ;;  %v4655_v25 = vmul.f32 0.5, %v4654_v63  ;;  %v2840_v57 = vstv %s10726_s30  ;;  %v10739_v46 = vadd.f32 1e-09, %v4323_v50  ;;  %v12224_v50 = vld [vmem:[#allocation56_spill] sm:$0xff] }
 0x405   :  { %v12221_v49 = vlaneseq  ;;  %v12222_v41 = vand.u32 2147483648, %v9319_v55  ;;  %v2716_v21 = vperm.slane %v12223_v39, %v12118_v38  ;;  %v2717_v6 = vperm.slane %v12224_v50, %v12119_v58  ;;  %v4239_v55 = vpop.xlane.xlu1 %4238 }
 0x406   :  { %v5278_v0 = vpop.eup %5277  ;;  %v4490_v9 = vmul.f32 %v4489_v28, %v10636_v19  ;;  %v4656_v17 = vsub.f32 1.5, %v4655_v25  ;;  %5281 = vrsqrt.f32 %v10739_v46  ;;  %v12226_v39 = vand.u32 2147483648, %v9327_v40  ;;  %v12227_v40 = vld [vmem:[#allocation112_spill] sm:$0xff] }
 0x407   :  { %v10742_v8 = vshrl.u32 %v12221_v49, 7  ;;  %v10749_v4 = vsel %vm2614_vm9, %v12222_v41, %v9673_v29  ;;  %v4497_v63 = vmul.f32 %v5278_v0, %v10694_v48  ;;  %v10759_v49 = vsel %vm4529_vm10, %v4530_v36, %v4528_v2  ;;  %v12225_v29 = vld [vmem:[#allocation86_spill] sm:$0xff] }
 0x408   :  { %v10768_v28 = vsel %vm2626_vm2, %v12226_v39, %v12225_v29  ;;  %v4492_v41 = vsel %vm4491_vm6, %v10636_v19, %v4490_v9  ;;  %v4657_v14 = vmul.f32 %v5276_v10, %v4656_v17  ;;  %v10773_v2 = vadd.f32 1e-09, %v4239_v55 }
 0x409   :  { %v5280_v25 = vpop.eup %5279  ;;  %v4498_v36 = vmul.f32 %v5278_v0, %v4497_v63  ;;  %v10777_v50 = vsel %vm4493_vm11, %v4494_v23, %v4492_v41  ;;  %vm4503_vm13 = vcmp.eq.f32.partialorder %v10694_v48, inf  ;;  %v12228_v29 = vand.u32 2147483648, %v9335_v13  ;;  %v12230_v23 = vld [vmem:[#allocation16_spill] sm:$0xff] }
 0x40a   :  { %v4665_v62 = vmul.f32 %v5280_v25, %v10715_v30  ;;  %vm12229_vm9 = vcmask 130112   ;;  %vm4505_vm1 = vcmp.eq.f32.partialorder %v10694_v48, 0.0  ;;  %5283 = vrsqrt.f32 %v10773_v2 }
 0x40b   :  { %v10786_v39 = vsel %vm2638_vm12, %v12228_v29, %v12227_v40  ;;  %v2718_v10 = vsel %vm12229_vm9, %v2717_v6, %v2716_v21  ;;  %v4499_v9 = vmul.f32 0.5, %v4498_v36  ;;  %v12231_v17 = vand.u32 2147483648, %v9400_v43  ;;  %vm12237_vm8 = vmmov %vm12229_vm9 }
 0x40c   :  { %v4658_v55 = vmul.f32 %v4657_v14, %v10657_v42  ;;  %vm4659_vm5 = vcmp.eq.f32.partialorder %v10657_v42, inf  ;;  %v4666_v6 = vmul.f32 %v5280_v25, %v4665_v62  ;;  %v2719_v21 = vperm.slane %v10455_v51, %v12118_v38  ;;  %v5282_v29 = vpop.eup %5281  ;;  %v12233_v51 = vld [vmem:[#allocation89_spill] sm:$0xff]  ;;  %vm12242_vm14 = vmmov %vm12237_vm8 }
 0x40d   :  { %v10797_v63 = vsel %vm2650_vm7, %v12231_v17, %v12230_v23  ;;  %v4500_v41 = vsub.f32 1.5, %v4499_v9  ;;  %vm4671_vm2 = vcmp.eq.f32.partialorder %v10715_v30, inf  ;;  %v2720_v43 = vperm.slane %v10570_v12, %v12119_v58  ;;  %v12235_v17 = vld [vmem:[#allocation95_spill] sm:$0xff] }
 0x40e   :  { %v2722_v40 = vperm.slane %v10577_v60, %v12118_v38  ;;  %v4667_v23 = vmul.f32 0.5, %v4666_v6  ;;  %v2723_v14 = vperm.slane %v10610_v11, %v12119_v58  ;;  %vm12232_vm3 = vcmask 1043459   ;;  %v12238_v6 = vld [vmem:[#allocation59_spill] sm:$0xff] }
 0x40f   :  { %v2735_v62 = vsel %vm12232_vm3, %v2718_v10, %v10355_v54  ;;  %v12234_v9 = vperm.slane %v12233_v51, %v12150_v27  ;;  %v12236_v13 = vperm.slane %v12235_v17, %v12151_v22  ;;  %v4501_v12 = vmul.f32 %v5278_v0, %v4500_v41  ;;  %v12244_v41 = vld [vmem:[#allocation44_spill] sm:$0xff] }
 0x410   :  { %v4677_v19 = vmul.f32 %v5282_v29, %v10739_v46  ;;  %v2721_v60 = vsel %vm12237_vm8, %v2720_v43, %v2719_v21  ;;  %v12239_v11 = vperm.slane %v12238_v6, %v12150_v27  ;;  %v12241_v54 = vperm.slane %v12240_v26, %v12151_v22  ;;  %v12246_v21 = vld [vmem:[#allocation27_spill] sm:$0xff]  ;;  %v5284_v26 = vpop.eup %5283 }
 0x411   :  { %v2797_v36 = vsel %vm11471_vm0, %v12236_v13, %v12234_v9  ;;  %vm3977_vm12 = vcmp.eq.f32.partialorder %v10018_v16, 0.0  ;;  %v4668_v51 = vsub.f32 1.5, %v4667_v23  ;;  %v2724_v13 = vsel %vm12242_vm14, %v2723_v14, %v2722_v40  ;;  %v12249_v14 = vld [vmem:[#allocation101_spill] sm:$0xff] }
 0x412   :  { %v2800_v10 = vsel %vm11471_vm0, %v12241_v54, %v12239_v11  ;;  %vm12243_vm7 = vcmask 1044484   ;;  %v12245_v9 = vperm.slane %v12244_v41, %v12150_v27  ;;  %v12247_v43 = vperm.slane %v12246_v21, %v12151_v22 }
 0x413   :  { %v2736_v0 = vsel %vm12243_vm7, %v2721_v60, %v2735_v62  ;;  %vm3989_vm10 = vcmp.eq.f32.partialorder %v10172_v34, 0.0  ;;  %v4502_v23 = vmul.f32 %v4501_v12, %v10694_v48  ;;  %v4678_v6 = vmul.f32 %v5282_v29, %v4677_v19  ;;  %v12250_v19 = vld [vmem:[#allocation42_spill] sm:$0xff] }
 0x414   :  { %v2803_v17 = vsel %vm11471_vm0, %v12247_v43, %v12245_v9  ;;  %vm12248_vm6 = vcmask 1045509   ;;  %v2804_v62 = vperm.slane %v12249_v14, %v12150_v27  ;;  %vm4001_vm11 = vcmp.eq.f32.partialorder %v10186_v3, 0.0 }
 0x415   :  { %v2737_v40 = vsel %vm12248_vm6, %v2724_v13, %v2736_v0  ;;  %vm4013_vm9 = vcmp.eq.f32.partialorder %v10193_v7, 0.0  ;;  %vm4649_vm3 = vcmp.eq.f32.partialorder %v10423_v35, 0.0  ;;  %v4669_v60 = vmul.f32 %v5280_v25, %v4668_v51 }
 0x416   :  { %vm4683_vm8 = vcmp.eq.f32.partialorder %v10739_v46, inf  ;;  %v4533_v11 = vmul.f32 %v5284_v26, %v10773_v2  ;;  %v2805_v12 = vperm.slane %v12250_v19, %v12151_v22  ;;  %v2807_v54 = vperm.slane %v10749_v4, %v12150_v27 }
 0x417   :  { %v4504_v13 = vsel %vm4503_vm13, %v10694_v48, %v4502_v23  ;;  %v4679_v0 = vmul.f32 0.5, %v4678_v6  ;;  %v2808_v41 = vperm.slane %v10768_v28, %v12151_v22  ;;  %v2810_v25 = vperm.slane %v10786_v39, %v12150_v27 }
 0x418   :  { %v10872_v51 = vsel %vm4505_vm1, %v4506_v18, %v4504_v13  ;;  %v4670_v4 = vmul.f32 %v4669_v60, %v10715_v30  ;;  %v4534_v9 = vmul.f32 %v5284_v26, %v4533_v11  ;;  %v2806_v21 = vsel %vm11471_vm0, %v2805_v12, %v2804_v62 }
 0x419   :  { %v4660_v43 = vsel %vm4659_vm5, %v10657_v42, %v4658_v55  ;;  %v4680_v28 = vsub.f32 1.5, %v4679_v0  ;;  %vm4539_vm7 = vcmp.eq.f32.partialorder %v10773_v2, inf  ;;  %v2809_v48 = vsel %vm11471_vm0, %v2808_v41, %v2807_v54 }
 0x41a   :  { %v2811_v18 = vperm.slane %v10797_v63, %v12151_v22  ;;  %v4818_v39 = vperm.slane %v10872_v51, %v12150_v27  ;;  %v4672_v23 = vsel %vm4671_vm2, %v10715_v30, %v4670_v4  ;;  %v4535_v55 = vmul.f32 0.5, %v4534_v9 }
 0x41b   :  { %v2820_v6 = vsel %vm11470_vm4, %v2800_v10, %v2797_v36  ;;  %v4681_v14 = vmul.f32 %v5282_v29, %v4680_v28  ;;  %vm12251_vm6 = vcmask 1042434   ;;  %vm2827_vm15 = vcmask 113664  }
 0x41c   :  { %v2812_v62 = vsel %vm11471_vm0, %v2811_v18, %v2810_v25  ;;  %v2821_v63 = vsel %vm12251_vm6, %v2803_v17, %v2820_v6  ;;  %v4536_v60 = vsub.f32 1.5, %v4535_v55  ;;  %vm12252_vm2 = vcmask 1043459   ;;  %v12267_v55 = vld [vmem:[#allocation119_spill] sm:$0xff] }
 0x41d   :  { %v2822_v11 = vsel %vm12252_vm2, %v2806_v21, %v2821_v63  ;;  %vm2833_vm1 = vcmp.eq.s32.totalorder %v10742_v8, 0  ;;  %vm2834_vm14 = vcmp.eq.s32.totalorder %v12118_v38, 0  ;;  %v4682_v36 = vmul.f32 %v4681_v14, %v10739_v46  ;;  %v12278_v14 = vld [vmem:[#allocation51_spill] sm:$0xff]  ;;  %v12280_v63 = vld [vmem:[#allocation54_spill] sm:$0xff] }
 0x41e   :  { %vm12253_vm4 = vcmask 1044484   ;;  %vm10904_vm0 = vmand %vm2833_vm1, %vm2834_vm14  ;;  %vm2836_vm6 = vcmp.eq.s32.totalorder %v12118_v38, 1  ;;  %v2838_v17 = vstv %s881_s1  ;;  %v4537_v19 = vmul.f32 %v5284_v26, %v4536_v60 }
 0x41f   :  { %v2823_v29 = vsel %vm12253_vm4, %v2809_v48, %v2822_v11  ;;  %vm12256_vm5 = vcmask 1045509   ;;  %vm2830_vm2 = vcmask 228352   ;;  %vm10910_vm13 = vmand %vm2833_vm1, %vm2836_vm6  ;;  %v4862_v54 = vstv %s10897_s14 }
 0x420   :  { %v2824_v12 = vsel %vm12256_vm5, %v2812_v62, %v2823_v29  ;;  %v4684_v13 = vsel %vm4683_vm8, %v10739_v46, %v4682_v36  ;;  %v2839_v41 = vsel %vm10910_vm13, %v2838_v17, 0.0  ;;  %v12259_v26 = vand.u32 2147483648, %v10018_v16  ;;  %v12285_v29 = vld [vmem:[#allocation46_spill] sm:$0xff] }
 0x421   :  { %v2829_v0 = vsel %vm2827_vm15, %v2737_v40, %v2824_v12  ;;  %v4538_v4 = vmul.f32 %v4537_v19, %v10773_v2  ;;  %v2841_v21 = vsel %vm10904_vm0, %v2840_v57, %v2839_v41  ;;  %v12260_v40 = vand.u32 2147483648, %v10172_v34  ;;  %v12286_v19 = vld [vmem:[#allocation47_spill] sm:$0xff] }
 0x422   :  { %v3979_v25 = vsel %vm3977_vm12, %v12259_v26, %v10385_v33  ;;  %v2832_v9 = vsel %vm2830_vm2, %v2829_v0, 0.0  ;;  %v2843_v48 = vrot.slane %v2841_v21, 2  ;;  %v12261_v16 = vand.u32 2147483648, %v10186_v3  ;;  %v12290_v21 = vld [vmem:[#allocation124_spill] sm:$0xff] }
 0x423   :  { %v3991_v28 = vsel %vm3989_vm10, %v12260_v40, %v10433_v31  ;;  %v12262_v18 = vand.u32 2147483648, %v10193_v7  ;;  %v4651_v34 = vsel %vm4649_vm3, %v4650_v47, %v10664_v1  ;;  %v4540_v31 = vsel %vm4539_vm7, %v10773_v2, %v4538_v4 }
 0x424   :  { %v4003_v33 = vsel %vm4001_vm11, %v12261_v16, %v10438_v52  ;;  %vm12263_vm4 = vcmp.eq.f32.partialorder %v10657_v42, 0.0  ;;  %v12264_v52 = vand.u32 2147483648, %v10715_v30  ;;  %vm12265_vm12 = vcmp.eq.f32.partialorder %v10715_v30, 0.0 }
 0x425   :  { %v4015_v57 = vsel %vm4013_vm9, %v12262_v18, %v10446_v15  ;;  %v4663_v3 = vsel %vm12263_vm4, %v4662_v56, %v4660_v43  ;;  %v12266_v15 = vperm.slane %v10031_v45, %v12118_v38  ;;  %v12268_v35 = vperm.slane %v12267_v55, %v12119_v58  ;;  %v12273_v56 = vld [vmem:[#allocation26_spill] sm:$0xff] }
 0x426   :  { %v4675_v7 = vsel %vm12265_vm12, %v12264_v52, %v4672_v23  ;;  %vm12269_vm10 = vcmask 130112   ;;  %vm12270_vm11 = vcmask 1045504   ;;  %v12271_v6 = vand.u32 2147483648, %v10739_v46  ;;  %v12275_v43 = vld [vmem:[#allocation126_spill] sm:$0xff] }
 0x427   :  { %v4742_v47 = vsel %vm12269_vm10, %v12268_v35, %v12266_v15  ;;  %v2845_v1 = vsel %vm12270_vm11, %v2832_v9, %v2843_v48  ;;  %vm12272_vm9 = vcmp.eq.f32.partialorder %v10739_v46, 0.0  ;;  %v12274_v30 = vperm.slane %v12273_v56, %v12118_v38  ;;  %vm12277_vm3 = vmmov %vm12269_vm10  ;;  %v12292_v48 = vld [vmem:[#allocation25_spill] sm:$0xff] }
 0x428   :  { %v4687_v42 = vsel %vm12272_vm9, %v12271_v6, %v4684_v13  ;;  %v12276_v23 = vperm.slane %v12275_v43, %v12119_v58  ;;  %v12279_v62 = vperm.slane %v12278_v14, %v12118_v38  ;;  %v12281_v60 = vperm.slane %v12280_v63, %v12119_v58  ;;  %vm12282_vm8 = vmmov %vm12277_vm3  ;;  %2847 = vst [vmem:[#allocation11 + $0x8] sm:$0xff] %v2845_v1  ;;  %v12310_v63 = vld [vmem:[#allocation117_spill] sm:$0xff] }
 0x429   :  { %v12283_v36 = vand.u32 2147483648, %v10773_v2  ;;  %vm12284_vm14 = vcmp.eq.f32.partialorder %v10773_v2, 0.0  ;;  %v4749_v17 = vperm.slane %v12285_v29, %v12118_v38  ;;  %v4750_v12 = vperm.slane %v12286_v19, %v12119_v58  ;;  %vm12288_vm1 = vmmov %vm12277_vm3  ;;  %v12317_v29 = vld [vmem:[#allocation118_spill] sm:$0xff]  ;;  %v12319_v19 = vld [vmem:[#allocation120_spill] sm:$0xff] }
 0x42a   :  { %v4745_v45 = vsel %vm12277_vm3, %v12276_v23, %v12274_v30  ;;  %v4748_v11 = vsel %vm12282_vm8, %v12281_v60, %v12279_v62  ;;  %v4752_v13 = vperm.slane %v3979_v25, %v12118_v38  ;;  %v4753_v0 = vperm.slane %v3991_v28, %v12119_v58  ;;  %vm12299_vm12 = vmmov %vm12288_vm1  ;;  %v12308_v62 = vld [vmem:[#allocation116_spill] sm:$0xff] }
 0x42b   :  { %v10996_v46 = vsel %vm12284_vm14, %v12283_v36, %v4540_v31  ;;  %v4755_v41 = vperm.slane %v4003_v33, %v12118_v38  ;;  %v4756_v26 = vperm.slane %v4015_v57, %v12119_v58  ;;  %vm12287_vm7 = vcmask 1041409   ;;  %v12296_v33 = vld [vmem:[#allocation65_spill] sm:$0xff]  ;;  %vm12300_vm10 = vmmov %vm12288_vm1 }
 0x42c   :  { %v4765_v4 = vsel %vm12287_vm7, %v4745_v45, %v4742_v47  ;;  %v4751_v2 = vsel %vm12288_vm1, %v4750_v12, %v4749_v17  ;;  %vm12289_vm5 = vcmask 1042434   ;;  %v12291_v40 = vperm.slane %v12290_v21, %v12150_v27 }
 0x42d   :  { %v4766_v9 = vsel %vm12289_vm5, %v4748_v11, %v4765_v4  ;;  %v12293_v16 = vperm.slane %v12292_v48, %v12151_v22  ;;  %vm12294_vm6 = vcmask 244912   ;;  %v12295_v28 = vperm.slane %v10552_v61, %v12150_v27 }
 0x42e   :  { %v12297_v18 = vperm.slane %v12296_v33, %v12151_v22  ;;  %vm12298_vm4 = vmmov %vm12294_vm6  ;;  %v4754_v31 = vsel %vm12299_vm12, %v4753_v0, %v4752_v13  ;;  %v4757_v52 = vsel %vm12300_vm10, %v4756_v26, %v4755_v41  ;;  %vm12301_vm11 = vcmask 1043459   ;;  %v12322_v0 = vld [vmem:[#allocation121_spill] sm:$0xff]  ;;  %v12324_v26 = vld [vmem:[#allocation70_spill] sm:$0xff] }
 0x42f   :  { %v4826_v25 = vsel %vm12294_vm6, %v12293_v16, %v12291_v40  ;;  %v4767_v15 = vsel %vm12301_vm11, %v4751_v2, %v4766_v9  ;;  %v12302_v55 = vperm.slane %v10644_v59, %v12150_v27  ;;  %v12303_v35 = vperm.slane %v10653_v5, %v12151_v22  ;;  %vm12304_vm9 = vmmov %vm12298_vm4  ;;  %v12328_v2 = vld [vmem:[#allocation67_spill] sm:$0xff]  ;;  %v12329_v9 = vld [vmem:[#allocation76_spill] sm:$0xff] }
 0x430   :  { %v4829_v57 = vsel %vm12298_vm4, %v12297_v18, %v12295_v28  ;;  %vm12305_vm3 = vcmask 1044484   ;;  %v4833_v1 = vperm.slane %v10721_v53, %v12150_v27  ;;  %v4834_v6 = vperm.slane %v10624_v24, %v12151_v22  ;;  %vm12307_vm14 = vmmov %vm12298_vm4  ;;  %v12330_v40 = vld [vmem:[#allocation122_spill] sm:$0xff]  ;;  %v12332_v16 = vld [vmem:[#allocation40_spill] sm:$0xff] }
 0x431   :  { %v4832_v61 = vsel %vm12304_vm9, %v12303_v35, %v12302_v55  ;;  %v4768_v47 = vsel %vm12305_vm3, %v4754_v31, %v4767_v15  ;;  %v4836_v56 = vperm.slane %v4651_v34, %v12150_v27  ;;  %vm12306_vm8 = vcmask 1045509   ;;  %vm12312_vm1 = vmmov %vm12298_vm4  ;;  %v12336_v18 = vld [vmem:[#allocation87_spill] sm:$0xff] }
 0x432   :  { %v4769_v30 = vsel %vm12306_vm8, %v4757_v52, %v4768_v47  ;;  %v4837_v43 = vperm.slane %v4663_v3, %v12151_v22  ;;  %v4839_v59 = vperm.slane %v4675_v7, %v12150_v27  ;;  %v4840_v5 = vperm.slane %v4687_v42, %v12151_v22  ;;  %vm12313_vm5 = vmmov %vm12312_vm1  ;;  %v12340_v52 = vld [vmem:[#allocation55_spill] sm:$0xff]  ;;  %v12345_v47 = vld [vmem:[#allocation53_spill] sm:$0xff] }
 0x433   :  { %v4835_v23 = vsel %vm12307_vm14, %v4834_v6, %v4833_v1  ;;  %v4849_v45 = vsel %vm12287_vm7, %v4829_v57, %v4826_v25  ;;  %v4860_v14 = vstv %s2930_s7  ;;  %v12309_v53 = vperm.slane %v12308_v62, %v12150_v27  ;;  %vm12314_vm6 = vmmov %vm12312_vm1  ;;  %v12343_v35 = vld [vmem:[#allocation123_spill] sm:$0xff] }
 0x434   :  { %v12311_v24 = vperm.slane %v12310_v63, %v12151_v22  ;;  %v4838_v60 = vsel %vm12313_vm5, %v4837_v43, %v4836_v56  ;;  %v4841_v3 = vsel %vm12314_vm6, %v4840_v5, %v4839_v59  ;;  %vm12315_vm4 = vcmask 1042434   ;;  %vm12316_vm12 = vmmov %vm12301_vm11  ;;  %v12349_v5 = vld [vmem:[#allocation72_spill] sm:$0xff] }
 0x435   :  { %v4850_v7 = vsel %vm12315_vm4, %v4832_v61, %v4849_v45  ;;  %v4861_v42 = vsel %vm10910_vm13, %v4860_v14, 0.0  ;;  %v12318_v17 = vperm.slane %v12317_v29, %v12150_v27  ;;  %v12320_v12 = vperm.slane %v12319_v19, %v12151_v22  ;;  %vm12321_vm10 = vmmov %vm12312_vm1 }
 0x436   :  { %v2788_v34 = vsel %vm12312_vm1, %v12311_v24, %v12309_v53  ;;  %v4851_v11 = vsel %vm12316_vm12, %v4835_v23, %v4850_v7  ;;  %v4863_v36 = vsel %vm10904_vm0, %v4862_v54, %v4861_v42  ;;  %v12323_v41 = vperm.slane %v12322_v0, %v12150_v27  ;;  %vm12326_vm13 = vmmov %vm12312_vm1  ;;  %v12350_v23 = vld [vmem:[#allocation73_spill] sm:$0xff]  ;;  %v12353_v53 = vld [vmem:[#allocation90_spill] sm:$0xff] }
 0x437   :  { %v2791_v13 = vsel %vm12321_vm10, %v12320_v12, %v12318_v17  ;;  %v12325_v8 = vperm.slane %v12324_v26, %v12151_v22  ;;  %v4822_v10 = vperm.slane %v10996_v46, %v12151_v22  ;;  %vm12327_vm0 = vmmov %vm12305_vm3  ;;  %v2815_v21 = vsel %vm12301_vm11, %v12329_v9, %v12328_v2  ;;  %v12338_v46 = vld [vmem:[#allocation43_spill] sm:$0xff] }
 0x438   :  { %v4852_v54 = vsel %vm12327_vm0, %v4838_v60, %v4851_v11  ;;  %v12331_v48 = vperm.slane %v12330_v40, %v12118_v38  ;;  %v12333_v25 = vperm.slane %v12332_v16, %v12119_v58  ;;  %vm12334_vm9 = vcmask 130112   ;;  %vm12335_vm3 = vmmov %vm12306_vm8 }
 0x439   :  { %v2794_v4 = vsel %vm12326_vm13, %v12325_v8, %v12323_v41  ;;  %v4853_v33 = vsel %vm12335_vm3, %v4841_v3, %v4852_v54  ;;  %vm12337_vm8 = vmmov %vm12327_vm0  ;;  %v12339_v31 = vperm.slane %v12338_v46, %v12118_v38  ;;  %v12341_v15 = vperm.slane %v12340_v52, %v12119_v58  ;;  %v12361_v3 = vld [vmem:[#allocation88_spill] sm:$0xff] }
 0x43a   :  { %v4733_v28 = vsel %vm12334_vm9, %v12333_v25, %v12331_v48  ;;  %v2816_v57 = vsel %vm12337_vm8, %v12336_v18, %v2815_v21  ;;  %vm12342_vm14 = vmmov %vm12334_vm9  ;;  %v12344_v61 = vperm.slane %v12343_v35, %v12118_v38  ;;  %v12346_v1 = vperm.slane %v12345_v47, %v12119_v58 }
 0x43b   :  { %v4736_v55 = vsel %vm12342_vm14, %v12341_v15, %v12339_v31  ;;  %vm12347_vm7 = vmmov %vm12334_vm9  ;;  %v4857_v56 = vsel %vm2827_vm15, %v4769_v30, %v4853_v33  ;;  %v4865_v43 = vrot.slane %v4863_v36, 2  ;;  %v4821_v14 = vperm.slane %v10759_v49, %v12150_v27 }
 0x43c   :  { %v4739_v6 = vsel %vm12347_vm7, %v12346_v1, %v12344_v61  ;;  %vm12348_vm1 = vmmov %vm12335_vm3  ;;  %v4859_v62 = vsel %vm2830_vm2, %v4857_v56, 0.0  ;;  %vm12352_vm6 = vcmask 1046534   ;;  %vm12355_vm12 = vcmask 1045504  }
 0x43d   :  { %v2817_v59 = vsel %vm12348_vm1, %v2788_v34, %v2816_v57  ;;  %vm12351_vm5 = vmmov %vm12301_vm11  ;;  %v4867_v63 = vsel %vm12355_vm12, %v4859_v62, %v4865_v43  ;;  %vm12356_vm10 = vcmask 1047559   ;;  %v12358_v34 = vperm.slane %v10712_v32, %v12150_v27  ;;  %v12365_v32 = vld [vmem:[#allocation110_spill] sm:$0xff] }
 0x43e   :  { %v4760_v45 = vsel %vm12351_vm5, %v12350_v23, %v12349_v5  ;;  %v2818_v38 = vsel %vm12352_vm6, %v2791_v13, %v2817_v59  ;;  %vm12354_vm4 = vmmov %vm12327_vm0  ;;  %v12359_v60 = vperm.slane %v10777_v50, %v12151_v22  ;;  %vm12360_vm0 = vcmask 244912   ;;  %4870 = vst [vmem:[#allocation11 + $0x18] sm:$0xff] %v4867_v63 }
 0x43f   :  { %v4761_v58 = vsel %vm12354_vm4, %v12353_v53, %v4760_v45  ;;  %v2819_v30 = vsel %vm12356_vm10, %v2794_v4, %v2818_v38  ;;  %vm12357_vm13 = vmmov %vm12348_vm1  ;;  %v12363_v11 = vperm.slane %v10700_v44, %v12151_v22 }
 0x440   :  { %v4762_v24 = vsel %vm12357_vm13, %v4733_v28, %v4761_v58  ;;  %v4817_v49 = vsel %vm12360_vm0, %v12359_v60, %v12358_v34  ;;  %v2828_v7 = vsel %vm2827_vm15, %v12361_v3, %v2819_v30  ;;  %vm12362_vm11 = vmmov %vm12352_vm6 }
 0x441   :  { %v4763_v42 = vsel %vm12362_vm11, %v4736_v55, %v4762_v24  ;;  %vm12364_vm9 = vmmov %vm12360_vm0  ;;  %v2831_v29 = vsel %vm2830_vm2, %v2828_v7, 0.0 }
 0x442   :  { %v4820_v36 = vsel %vm12364_vm9, %v12363_v11, %v4818_v39  ;;  %vm12366_vm3 = vmmov %vm12351_vm5  ;;  %2846 = vst [vmem:[#allocation11] sm:$0xff] %v2831_v29 }
 0x443   :  { %v4844_v50 = vsel %vm12366_vm3, %v10649_v37, %v12365_v32  ;;  %vm12367_vm8 = vmmov %vm12356_vm10 }
 0x444   :  { %v4764_v17 = vsel %vm12367_vm8, %v4739_v6, %v4763_v42  ;;  %vm12368_vm14 = vmmov %vm12360_vm0 }
 0x445   :  { %v4823_v19 = vsel %vm12368_vm14, %v4822_v10, %v4821_v14  ;;  %vm12369_vm7 = vmmov %vm12354_vm4 }
 0x446   :  { %v4845_v12 = vsel %vm12369_vm7, %v10691_v20, %v4844_v50  ;;  %vm12370_vm5 = vmmov %vm12352_vm6 }
 0x447   :  { %v4846_v27 = vsel %vm12348_vm1, %v4817_v49, %v4845_v12  ;;  %vm12371_vm6 = vmmov %vm12367_vm8 }
 0x448   :  { %v4847_v22 = vsel %vm12370_vm5, %v4820_v36, %v4846_v27 }
 0x449   :  { %v4848_v37 = vsel %vm12371_vm6, %v4823_v19, %v4847_v22 }
 0x44a   :  { %v4856_v44 = vsel %vm2827_vm15, %v4764_v17, %v4848_v37 }
 0x44b   :  { %v4858_v51 = vsel %vm2830_vm2, %v4856_v44, 0.0 }
 0x44c   :  { %4869 = vst [vmem:[#allocation11 + $0x10] sm:$0xff] %v4858_v51 }
 0x44d   :  { %4883 = dma.vmem_to_hbm [thread:$0]  %s4876_s16, 512, %s4878_s19, [#allocation4], %s5494_s20, %s5494_s20, %s5495_s21  }
 0x44e   :  { %5476 = dma.done.wait [#allocation4], 512  }
 0x44f   :  { %5477 = vsyncadd [#allocation4], 4294966784 }
 0x450   :  { %4888 = vsyncpa [#allocation3], 1 }
 0x451   :  { %4889 = vsyncpa [#allocation6], 1 }
 0x452   :  { %4890 = vsyncpa [#allocation9], 1 }
 0x453   :  { %4891 = vsyncpa [#allocation4], 1 }

</bundles_post_ra>
